<compile_context>
chip_gen: v5e
topology: v5e:2x2
jax: 0.10.0
libtpu: 0.0.40
codegen_flags: <defaults>
</compile_context>

<pallas_src>
import functools

import numpy as np
import jax
import jax.numpy as jnp
from jax.experimental import pallas as pl
from jax.experimental.pallas import tpu as pltpu


# ----------------------------------------------------------------------------------
# Kernel 1: generic fused matmul + bias (+ReLU).  Only used for the tiny low-res heads.
# ----------------------------------------------------------------------------------
def _matmul_bias_kernel(x_ref, w_ref, b_ref, o_ref, *, apply_relu):
    acc = jnp.dot(x_ref[...], w_ref[...], preferred_element_type=jnp.float32)
    acc = acc + b_ref[...]                                   # (1, N) broadcast
    if apply_relu:
        acc = jnp.maximum(acc, 0.0)
    o_ref[...] = acc.astype(o_ref.dtype)


def matmul_bias_act(x, w, b, *, relu=False, tm_target=1024):
    """y = act(x @ w + b); x:(M,K) w:(K,N) b:(N,) -> (M,N), f32.  M is padded, not asserted."""
    M, K = x.shape
    N = w.shape[1]
    tm = min(tm_target, M)                 # tm == M  => block equals full dim (always legal)
    Mp = pl.cdiv(M, tm) * tm
    if Mp != M:
        x = jnp.pad(x, ((0, Mp - M), (0, 0)))
    y = pl.pallas_call(
        functools.partial(_matmul_bias_kernel, apply_relu=relu),
        out_shape=jax.ShapeDtypeStruct((Mp, N), jnp.float32),
        grid=(Mp // tm,),
        in_specs=[pl.BlockSpec((tm, K), lambda i: (i, 0)),
                  pl.BlockSpec((K, N), lambda i: (0, 0)),
                  pl.BlockSpec((1, N), lambda i: (0, 0))],
        out_specs=pl.BlockSpec((tm, N), lambda i: (i, 0)),
        compiler_params=pltpu.CompilerParams(dimension_semantics=("parallel",)),
    )(x, w, b.reshape(1, N))
    return y[:M] if Mp != M else y


# ----------------------------------------------------------------------------------
# Kernel 2: transposed conv (k=2s, stride=s, pad=s/2) as 9 shifted matmuls accumulated
#           in VMEM.  Grid = (batch, low-res row); the padded low-res feature stays
#           resident per batch, so the input is read from HBM once (no x9 blow-up).
# ----------------------------------------------------------------------------------
def _deconv9_kernel(fp_ref, w_ref, o_ref):
    # fp_ref: (Hq+2, Wq+2, Cf)  padded low-res conv+BN feature (resident for this batch)
    # w_ref : (9, Cf, N)        per-shift weight blocks,  N = s*s*Cout
    # o_ref : (Wq, N)           one low-res row of outputs (all sub-pixels)
    wq, n = o_ref.shape
    cf = fp_ref.shape[-1]
    i = pl.program_id(1)
    acc = jnp.zeros((wq, n), jnp.float32)
    for dy in range(3):
        rows = fp_ref[i + dy]                                # (Wq+2, Cf)
        for dx in range(3):
            win = rows[dx:dx + wq, :]                        # (Wq, Cf)
            wk = w_ref[dy * 3 + dx]                          # (Cf, N)
            if cf == 1:
                acc = acc + win * wk                         # (Wq,1)*(1,N) broadcast (VPU)
            else:
                acc = acc + jnp.dot(win, wk, preferred_element_type=jnp.float32)
    o_ref[...] = acc.astype(o_ref.dtype)


def deconv9(f, wexp, stride, cout):
    """f: (B, Hq, Wq, Cf) low-res 1x1-conv+BN output; wexp: (9, Cf, s*s*cout).
    Returns the upsampled (B, Hq*s, Wq*s, cout)."""
    B, Hq, Wq, Cf = f.shape
    s = stride
    n = s * s * cout
    fp = jnp.pad(f, ((0, 0), (1, 1), (1, 1), (0, 0)))        # cheap: low-res only
    y = pl.pallas_call(
        _deconv9_kernel,
        out_shape=jax.ShapeDtypeStruct((B, Hq, Wq, n), jnp.float32),
        grid=(B, Hq),
        in_specs=[pl.BlockSpec((None, Hq + 2, Wq + 2, Cf), lambda b, i: (b, 0, 0, 0)),
                  pl.BlockSpec((9, Cf, n), lambda b, i: (0, 0, 0))],
        out_specs=pl.BlockSpec((None, None, Wq, n), lambda b, i: (b, i, 0, 0)),
        compiler_params=pltpu.CompilerParams(
            dimension_semantics=("parallel", "parallel")),
    )(fp, wexp)
    # sub-pixel interleave: (B,Hq,Wq,s,s,cout) -> (B, Hq*s, Wq*s, cout)
    # TODO(synk): fold this into strided output stores to save one HBM pass.
    y = y.reshape(B, Hq, Wq, s, s, cout).transpose(0, 1, 3, 2, 4, 5)
    return y.reshape(B, Hq * s, Wq * s, cout)


# ----------------------------------------------------------------------------------
# Kernel 3: fused LocationAdaptiveLearner + side1 1x1 conv + dynamic fusion.
#           One pass over the full-resolution rows; no full-res intermediates hit HBM.
# ----------------------------------------------------------------------------------
def _ada_fuse_kernel(ycomb_ref, r1_ref, s2_ref, s3_ref,
                     w1_ref, b1_ref, w2_ref, b2_ref, w3_ref, b3_ref,
                     sel5_ref, ws1_ref, bs1_ref, o_ref):
    nclass = o_ref.shape[-1]
    v = ycomb_ref[...]                                       # (tm, 5*nclass) = [side5_w | side5]
    # ada chain: w1 is zero-row-extended so it consumes the combined tensor directly.
    a = jnp.dot(v, w1_ref[...], preferred_element_type=jnp.float32) + b1_ref[...]
    a = jnp.maximum(a, 0.0)
    a = jnp.dot(a, w2_ref[...], preferred_element_type=jnp.float32) + b2_ref[...]
    a = jnp.maximum(a, 0.0)
    # side5 extraction via selector matmul (avoids in-kernel lane slicing).
    s5 = jnp.dot(v, sel5_ref[...], preferred_element_type=jnp.float32)        # (tm, nclass)
    # side1 = 1x1 conv + folded BN on res1, computed in the same epilogue.
    s1 = jnp.dot(r1_ref[...], ws1_ref[...], preferred_element_type=jnp.float32) + bs1_ref[...]
    feats = (s5, s1, s2_ref[...], s3_ref[...])               # the 4 fuse components
    acc = jnp.zeros((v.shape[0], nclass), jnp.float32)
    for k in range(4):
        ada_k = jnp.dot(a, w3_ref[k], preferred_element_type=jnp.float32) + b3_ref[k]
        acc = acc + ada_k * feats[k]                         # (tm,1) feats broadcast over classes
    o_ref[...] = acc.astype(o_ref.dtype)


def ada_fuse(ycomb, res1_flat, side2_flat, side3_flat, params, nclass, *, tm_target=2048):
    M, c5 = ycomb.shape
    c4 = 4 * nclass
    c1 = res1_flat.shape[1]
    tm = min(tm_target, M)
    Mp = pl.cdiv(M, tm) * tm

    def padM(x):
        return jnp.pad(x, ((0, Mp - M), (0, 0))) if Mp != M else x

    w1, b1 = params["ada1"]                 # w1: (c5, c4) zero-row-extended
    w2, b2 = params["ada2"]
    w3s, b3s = params["ada3_split"]         # (4, c4, nclass), (4, 1, nclass)
    sel5 = params["sel5"]                   # (c5, nclass)
    ws1, bs1 = params["side1"]              # (c1, 1), (1,)

    fuse = pl.pallas_call(
        _ada_fuse_kernel,
        out_shape=jax.ShapeDtypeStruct((Mp, nclass), jnp.float32),
        grid=(Mp // tm,),
        in_specs=[pl.BlockSpec((tm, c5), lambda i: (i, 0)),
                  pl.BlockSpec((tm, c1), lambda i: (i, 0)),
                  pl.BlockSpec((tm, 1), lambda i: (i, 0)),
                  pl.BlockSpec((tm, 1), lambda i: (i, 0)),
                  pl.BlockSpec((c5, c4), lambda i: (0, 0)),
                  pl.BlockSpec((1, c4), lambda i: (0, 0)),
                  pl.BlockSpec((c4, c4), lambda i: (0, 0)),
                  pl.BlockSpec((1, c4), lambda i: (0, 0)),
                  pl.BlockSpec((4, c4, nclass), lambda i: (0, 0, 0)),
                  pl.BlockSpec((4, 1, nclass), lambda i: (0, 0, 0)),
                  pl.BlockSpec((c5, nclass), lambda i: (0, 0)),
                  pl.BlockSpec((c1, 1), lambda i: (0, 0)),
                  pl.BlockSpec((1, 1), lambda i: (0, 0))],
        out_specs=pl.BlockSpec((tm, nclass), lambda i: (i, 0)),
        compiler_params=pltpu.CompilerParams(dimension_semantics=("parallel",)),
    )(padM(ycomb), padM(res1_flat), padM(side2_flat), padM(side3_flat),
      w1, b1.reshape(1, c4), w2, b2.reshape(1, c4), w3s, b3s,
      sel5, ws1, bs1.reshape(1, 1))
    return fuse[:M] if Mp != M else fuse


# --------------------------------- parameter prep ---------------------------------

def fold_bn(w, b, gamma, beta, mean, var, eps=1e-5):
    """Fold eval-mode BatchNorm into a 1x1 conv given as w:(Cin,Cout), b:(Cout,)."""
    scale = gamma / jnp.sqrt(var + eps)
    return w * scale[None, :], (b - mean) * scale + beta


def expand_deconv_weight(wt, stride):
    """wt: numpy (Cin, Cout, k, k), k = 2*stride, padding = stride//2.
    Returns (9, Cin, stride*stride*Cout): one (Cin, s*s*Cout) block per 3x3 shift."""
    Cin, Cout, k, _ = wt.shape
    s, p = stride, stride // 2
    wbig = np.zeros((3, 3, Cin, s, s, Cout), np.float32)
    for idy, dy in enumerate((-1, 0, 1)):
        for idx_, dx in enumerate((-1, 0, 1)):
            for ry in range(s):
                ky = ry + p - dy * s
                if not 0 <= ky < k:
                    continue
                for rx in range(s):
                    kx = rx + p - dx * s
                    if not 0 <= kx < k:
                        continue
                    wbig[idy, idx_, :, ry, rx, :] = wt[:, :, ky, kx]
    return jnp.asarray(wbig.reshape(9, Cin, s * s * Cout))


def init_params(key, nclass, feat_chans):
    def nxt():
        nonlocal key
        key, sub = jax.random.split(key)
        return sub

    def conv_bn(cin, cout):
        w = 0.1 * jax.random.normal(nxt(), (cin, cout), jnp.float32)
        b = 0.1 * jax.random.normal(nxt(), (cout,), jnp.float32)
        gamma = 1.0 + 0.1 * jax.random.normal(nxt(), (cout,), jnp.float32)
        beta = 0.1 * jax.random.normal(nxt(), (cout,), jnp.float32)
        mean = 0.1 * jax.random.normal(nxt(), (cout,), jnp.float32)
        var = 1.0 + 0.1 * jnp.abs(jax.random.normal(nxt(), (cout,), jnp.float32))
        return fold_bn(w, b, gamma, beta, mean, var)

    def deconv_raw(c, stride):
        k = 2 * stride
        return np.asarray(0.1 * jax.random.normal(nxt(), (c, c, k, k), jnp.float32))

    c4 = 4 * nclass
    c5 = 5 * nclass                       # fused [side5_w | side5] channel count

    # --- res5 path: fuse side5_w (c4 ch) and side5 (nclass ch) heads -----------------
    w5, b5 = conv_bn(feat_chans[3], nclass)
    w5w, b5w = conv_bn(feat_chans[3], c4)
    w5c = jnp.concatenate([w5w, w5], axis=1)                 # order: [side5_w | side5]
    b5c = jnp.concatenate([b5w, b5], axis=0)
    wt5 = deconv_raw(nclass, 8)
    wt5w = deconv_raw(c4, 8)
    wt5c = np.zeros((c5, c5, 16, 16), np.float32)            # block-diagonal deconv
    wt5c[:c4, :c4] = wt5w
    wt5c[c4:, c4:] = wt5

    # --- ada learner weights ----------------------------------------------------------
    w1, b1 = conv_bn(c4, c4)
    w1ext = jnp.concatenate([w1, jnp.zeros((nclass, c4), jnp.float32)], axis=0)  # (c5, c4)
    w3, b3 = conv_bn(c4, c4)
    # ada output channel = class*4 + k  ->  split per fuse component k.
    w3s = jnp.stack([w3[:, k::4] for k in range(4)], axis=0)                     # (4, c4, nclass)
    b3s = jnp.stack([b3[k::4].reshape(1, nclass) for k in range(4)], axis=0)     # (4, 1, nclass)
    sel5 = np.zeros((c5, nclass), np.float32)                # selects side5 out of [s5w|s5]
    for c in range(nclass):
        sel5[c4 + c, c] = 1.0

    return {
        "side1": conv_bn(feat_chans[0], 1),
        "side2_conv": conv_bn(feat_chans[0], 1),
        "side2_up": expand_deconv_weight(deconv_raw(1, 2), 2),
        "side3_conv": conv_bn(feat_chans[1], 1),
        "side3_up": expand_deconv_weight(deconv_raw(1, 4), 4),
        "side5c_conv": (w5c, b5c),
        "side5c_up": expand_deconv_weight(wt5c, 8),
        "ada1": (w1ext, b1),
        "ada2": conv_bn(c4, c4),
        "ada3_split": (w3s, b3s),
        "sel5": jnp.asarray(sel5),
    }


# ------------------------------------ forward --------------------------------------

def dff_forward(params, nclass, input_, res1, res2, res3, res4, res5):
    del input_, res4                                         # unused by DFF.forward
    # TODO(synk): `res1 is None` bilinear-interpolation fallback branch not implemented.
    B, H, W, _ = res1.shape
    M = B * H * W
    c4, c5 = 4 * nclass, 5 * nclass

    def conv1x1(x, w, b, relu=False):
        b_, h_, w_, cin = x.shape
        y = matmul_bias_act(x.reshape(b_ * h_ * w_, cin), w, b, relu=relu)
        return y.reshape(b_, h_, w_, -1)

    # tiny low-resolution 1x1 conv + folded BN heads
    f2 = conv1x1(res2, *params["side2_conv"])                # (B, H/2, W/2, 1)
    f3 = conv1x1(res3, *params["side3_conv"])                # (B, H/4, W/4, 1)
    f5 = conv1x1(res5, *params["side5c_conv"])               # (B, H/8, W/8, 5*nclass)

    # transposed-conv upsampling (in-kernel 9-shift accumulation)
    side2 = deconv9(f2, params["side2_up"], 2, 1)            # (B, H, W, 1)
    side3 = deconv9(f3, params["side3_up"], 4, 1)            # (B, H, W, 1)
    y5 = deconv9(f5, params["side5c_up"], 8, c5)             # (B, H, W, [side5_w | side5])
    side5 = y5[..., c4:]                                     # (B, H, W, nclass) — returned

    # fused LocationAdaptiveLearner + side1 conv + dynamic fusion (single full-res pass)
    fuse = ada_fuse(y5.reshape(M, c5), res1.reshape(M, -1),
                    side2.reshape(M, 1), side3.reshape(M, 1),
                    params, nclass)
    return side5, fuse.reshape(B, H, W, nclass)              # NHWC


# -------------------------------------- main ----------------------------------------

if __name__ == "__main__":
    nclass = 4
    feat_chans = (8, 16, 32, 32)
    B, H, W = 2, 16, 16

    key = jax.random.PRNGKey(0)
    kp, k0, k1, k2, k3, k4, k5 = jax.random.split(key, 7)
    params = init_params(kp, nclass, feat_chans)

    # layout: NHWC example inputs (PyTorch reference would be NCHW transposed)
    input_ = jax.random.normal(k0, (B, H, W, 3), jnp.float32)
    res1 = jax.random.normal(k1, (B, H, W, feat_chans[0]), jnp.float32)
    res2 = jax.random.normal(k2, (B, H // 2, W // 2, feat_chans[0]), jnp.float32)
    res3 = jax.random.normal(k3, (B, H // 4, W // 4, feat_chans[1]), jnp.float32)
    res4 = jax.random.normal(k4, (B, H // 8, W // 8, feat_chans[2]), jnp.float32)
    res5 = jax.random.normal(k5, (B, H // 8, W // 8, feat_chans[3]), jnp.float32)

    fwd = jax.jit(dff_forward, static_argnums=(1,))
    side5, fuse = fwd(params, nclass, input_, res1, res2, res3, res4, res5)
    jax.block_until_ready((side5, fuse))

    assert side5.shape == (B, H, W, nclass), side5.shape
    assert fuse.shape == (B, H, W, nclass), fuse.shape
    assert bool(jnp.all(jnp.isfinite(side5))) and bool(jnp.all(jnp.isfinite(fuse)))
    print("KERNEL_OK")
</pallas_src>

<mosaic_0001>
module attributes {stable_mosaic.version = 11 : i64} {
  func.func @_matmul_bias_kernel(%arg0: i32, %arg1: memref<8x32xf32, #tpu.memory_space<vmem>>, %arg2: memref<32x20xf32, #tpu.memory_space<vmem>>, %arg3: memref<1x20xf32, #tpu.memory_space<vmem>>, %arg4: memref<8x20xf32, #tpu.memory_space<vmem>>) attributes {dimension_semantics = [#tpu.dimension_semantics<parallel>], iteration_bounds = array<i64: 1>, scalar_prefetch = 0 : i64, scratch_operands = 0 : i64, tpu.core_type = #tpu.core_type<tc>, window_params = [{transform_indices = @transform_0, window_bounds = array<i64: 8, 32>}, {pipeline_mode = #tpu.pipeline_mode<synchronous>, transform_indices = @transform_1, window_bounds = array<i64: 32, 20>}, {pipeline_mode = #tpu.pipeline_mode<synchronous>, transform_indices = @transform_2, window_bounds = array<i64: 1, 20>}, {transform_indices = @transform_3, window_bounds = array<i64: 8, 20>}]} {
    %c0 = arith.constant 0 : index
    %c0_0 = arith.constant 0 : index
    %0 = vector.load %arg1[%c0, %c0_0] : memref<8x32xf32, #tpu.memory_space<vmem>>, vector<8x32xf32>
    %c0_1 = arith.constant 0 : index
    %c0_2 = arith.constant 0 : index
    %1 = vector.load %arg2[%c0_1, %c0_2] : memref<32x20xf32, #tpu.memory_space<vmem>>, vector<32x20xf32>
    %cst = arith.constant dense<0.000000e+00> : vector<8x20xf32>
    %2 = tpu.matmul %0, %1, %cst {dimension_numbers = #tpu.dot_dimension_numbers<[1], [0], [0], [1], [0, 0, 1, 1], [], []>} : vector<8x32xf32>, vector<32x20xf32>, vector<8x20xf32> -> vector<8x20xf32>
    %c0_3 = arith.constant 0 : index
    %c0_4 = arith.constant 0 : index
    %3 = vector.load %arg3[%c0_3, %c0_4] : memref<1x20xf32, #tpu.memory_space<vmem>>, vector<1x20xf32>
    %4 = vector.broadcast %3 : vector<1x20xf32> to vector<8x20xf32>
    %5 = arith.addf %2, %4 : vector<8x20xf32>
    %c0_5 = arith.constant 0 : index
    %c0_6 = arith.constant 0 : index
    %6 = vector.load %arg4[%c0_5, %c0_6] : memref<8x20xf32, #tpu.memory_space<vmem>>, vector<8x20xf32>
    tpu.vector_store %arg4[%c0_5, %c0_6], %5 {strides = array<i32>} : memref<8x20xf32, #tpu.memory_space<vmem>>, vector<8x20xf32>,
    return
  }
  func.func @transform_0(%arg0: i32) -> (i32, i32) {
    %c0_i32 = arith.constant 0 : i32
    %c0_i32_0 = arith.constant 0 : i32
    return %arg0, %c0_i32 : i32, i32
  }
  func.func @transform_1(%arg0: i32) -> (i32, i32) {
    %c0_i32 = arith.constant 0 : i32
    %c0_i32_0 = arith.constant 0 : i32
    %c0_i32_1 = arith.constant 0 : i32
    return %c0_i32, %c0_i32_0 : i32, i32
  }
  func.func @transform_2(%arg0: i32) -> (i32, i32) {
    %c0_i32 = arith.constant 0 : i32
    %c0_i32_0 = arith.constant 0 : i32
    %c0_i32_1 = arith.constant 0 : i32
    return %c0_i32, %c0_i32_0 : i32, i32
  }
  func.func @transform_3(%arg0: i32) -> (i32, i32) {
    %c0_i32 = arith.constant 0 : i32
    %c0_i32_0 = arith.constant 0 : i32
    return %arg0, %c0_i32 : i32, i32
  }
}

module attributes {stable_mosaic.version = 11 : i64} {
  func.func @_deconv9_kernel(%arg0: i32, %arg1: i32, %arg2: memref<1x4x4x20xf32, #tpu.memory_space<vmem>>, %arg3: memref<9x20x1280xf32, #tpu.memory_space<vmem>>, %arg4: memref<1x1x2x1280xf32, #tpu.memory_space<vmem>>) attributes {dimension_semantics = [#tpu.dimension_semantics<parallel>, #tpu.dimension_semantics<parallel>], iteration_bounds = array<i64: 2, 2>, scalar_prefetch = 0 : i64, scratch_operands = 0 : i64, tpu.core_type = #tpu.core_type<tc>, window_params = [{transform_indices = @transform_0, window_bounds = array<i64: 1, 4, 4, 20>}, {pipeline_mode = #tpu.pipeline_mode<synchronous>, transform_indices = @transform_1, window_bounds = array<i64: 9, 20, 1280>}, {transform_indices = @transform_2, window_bounds = array<i64: 1, 1, 2, 1280>}]} {
    %cst = arith.constant 0.000000e+00 : f32
    %0 = vector.broadcast %cst : f32 to vector<2x1280xf32>
    %c0_i32 = arith.constant 0 : i32
    %1 = arith.addi %arg1, %c0_i32 : i32
    %c0 = arith.constant 0 : index
    %2 = arith.index_cast %1 : i32 to index
    %c0_0 = arith.constant 0 : index
    %c0_1 = arith.constant 0 : index
    %3 = vector.load %arg2[%c0, %2, %c0_0, %c0_1] : memref<1x4x4x20xf32, #tpu.memory_space<vmem>>, vector<1x1x4x20xf32>
    %4 = vector.shape_cast %3 : vector<1x1x4x20xf32> to vector<4x20xf32>
    %5 = vector.extract_strided_slice %4 {offsets = [0, 0], sizes = [2, 20], strides = [1, 1]} : vector<4x20xf32> to vector<2x20xf32>
    %c0_2 = arith.constant 0 : index
    %c0_3 = arith.constant 0 : index
    %c0_4 = arith.constant 0 : index
    %6 = vector.load %arg3[%c0_2, %c0_3, %c0_4] : memref<9x20x1280xf32, #tpu.memory_space<vmem>>, vector<1x20x1280xf32>
    %7 = vector.shape_cast %6 : vector<1x20x1280xf32> to vector<20x1280xf32>
    %cst_5 = arith.constant dense<0.000000e+00> : vector<2x1280xf32>
    %8 = tpu.matmul %5, %7, %cst_5 {dimension_numbers = #tpu.dot_dimension_numbers<[1], [0], [0], [1], [0, 0, 1, 1], [], []>} : vector<2x20xf32>, vector<20x1280xf32>, vector<2x1280xf32> -> vector<2x1280xf32>
    %9 = arith.addf %0, %8 : vector<2x1280xf32>
    %10 = vector.extract_strided_slice %4 {offsets = [1, 0], sizes = [2, 20], strides = [1, 1]} : vector<4x20xf32> to vector<2x20xf32>
    %c1 = arith.constant 1 : index
    %c0_6 = arith.constant 0 : index
    %c0_7 = arith.constant 0 : index
    %11 = vector.load %arg3[%c1, %c0_6, %c0_7] : memref<9x20x1280xf32, #tpu.memory_space<vmem>>, vector<1x20x1280xf32>
    %12 = vector.shape_cast %11 : vector<1x20x1280xf32> to vector<20x1280xf32>
    %cst_8 = arith.constant dense<0.000000e+00> : vector<2x1280xf32>
    %13 = tpu.matmul %10, %12, %cst_8 {dimension_numbers = #tpu.dot_dimension_numbers<[1], [0], [0], [1], [0, 0, 1, 1], [], []>} : vector<2x20xf32>, vector<20x1280xf32>, vector<2x1280xf32> -> vector<2x1280xf32>
    %14 = arith.addf %9, %13 : vector<2x1280xf32>
    %15 = vector.extract_strided_slice %4 {offsets = [2, 0], sizes = [2, 20], strides = [1, 1]} : vector<4x20xf32> to vector<2x20xf32>
    %c2 = arith.constant 2 : index
    %c0_9 = arith.constant 0 : index
    %c0_10 = arith.constant 0 : index
    %16 = vector.load %arg3[%c2, %c0_9, %c0_10] : memref<9x20x1280xf32, #tpu.memory_space<vmem>>, vector<1x20x1280xf32>
    %17 = vector.shape_cast %16 : vector<1x20x1280xf32> to vector<20x1280xf32>
    %cst_11 = arith.constant dense<0.000000e+00> : vector<2x1280xf32>
    %18 = tpu.matmul %15, %17, %cst_11 {dimension_numbers = #tpu.dot_dimension_numbers<[1], [0], [0], [1], [0, 0, 1, 1], [], []>} : vector<2x20xf32>, vector<20x1280xf32>, vector<2x1280xf32> -> vector<2x1280xf32>
    %19 = arith.addf %14, %18 : vector<2x1280xf32>
    %c1_i32 = arith.constant 1 : i32
    %20 = arith.addi %arg1, %c1_i32 : i32
    %c0_12 = arith.constant 0 : index
    %21 = arith.index_cast %20 : i32 to index
    %c0_13 = arith.constant 0 : index
    %c0_14 = arith.constant 0 : index
    %22 = vector.load %arg2[%c0_12, %21, %c0_13, %c0_14] : memref<1x4x4x20xf32, #tpu.memory_space<vmem>>, vector<1x1x4x20xf32>
    %23 = vector.shape_cast %22 : vector<1x1x4x20xf32> to vector<4x20xf32>
    %24 = vector.extract_strided_slice %23 {offsets = [0, 0], sizes = [2, 20], strides = [1, 1]} : vector<4x20xf32> to vector<2x20xf32>
    %c3 = arith.constant 3 : index
    %c0_15 = arith.constant 0 : index
    %c0_16 = arith.constant 0 : index
    %25 = vector.load %arg3[%c3, %c0_15, %c0_16] : memref<9x20x1280xf32, #tpu.memory_space<vmem>>, vector<1x20x1280xf32>
    %26 = vector.shape_cast %25 : vector<1x20x1280xf32> to vector<20x1280xf32>
    %cst_17 = arith.constant dense<0.000000e+00> : vector<2x1280xf32>
    %27 = tpu.matmul %24, %26, %cst_17 {dimension_numbers = #tpu.dot_dimension_numbers<[1], [0], [0], [1], [0, 0, 1, 1], [], []>} : vector<2x20xf32>, vector<20x1280xf32>, vector<2x1280xf32> -> vector<2x1280xf32>
    %28 = arith.addf %19, %27 : vector<2x1280xf32>
    %29 = vector.extract_strided_slice %23 {offsets = [1, 0], sizes = [2, 20], strides = [1, 1]} : vector<4x20xf32> to vector<2x20xf32>
    %c4 = arith.constant 4 : index
    %c0_18 = arith.constant 0 : index
    %c0_19 = arith.constant 0 : index
    %30 = vector.load %arg3[%c4, %c0_18, %c0_19] : memref<9x20x1280xf32, #tpu.memory_space<vmem>>, vector<1x20x1280xf32>
    %31 = vector.shape_cast %30 : vector<1x20x1280xf32> to vector<20x1280xf32>
    %cst_20 = arith.constant dense<0.000000e+00> : vector<2x1280xf32>
    %32 = tpu.matmul %29, %31, %cst_20 {dimension_numbers = #tpu.dot_dimension_numbers<[1], [0], [0], [1], [0, 0, 1, 1], [], []>} : vector<2x20xf32>, vector<20x1280xf32>, vector<2x1280xf32> -> vector<2x1280xf32>
    %33 = arith.addf %28, %32 : vector<2x1280xf32>
    %34 = vector.extract_strided_slice %23 {offsets = [2, 0], sizes = [2, 20], strides = [1, 1]} : vector<4x20xf32> to vector<2x20xf32>
    %c5 = arith.constant 5 : index
    %c0_21 = arith.constant 0 : index
    %c0_22 = arith.constant 0 : index
    %35 = vector.load %arg3[%c5, %c0_21, %c0_22] : memref<9x20x1280xf32, #tpu.memory_space<vmem>>, vector<1x20x1280xf32>
    %36 = vector.shape_cast %35 : vector<1x20x1280xf32> to vector<20x1280xf32>
    %cst_23 = arith.constant dense<0.000000e+00> : vector<2x1280xf32>
    %37 = tpu.matmul %34, %36, %cst_23 {dimension_numbers = #tpu.dot_dimension_numbers<[1], [0], [0], [1], [0, 0, 1, 1], [], []>} : vector<2x20xf32>, vector<20x1280xf32>, vector<2x1280xf32> -> vector<2x1280xf32>
    %38 = arith.addf %33, %37 : vector<2x1280xf32>
    %c2_i32 = arith.constant 2 : i32
    %39 = arith.addi %arg1, %c2_i32 : i32
    %c0_24 = arith.constant 0 : index
    %40 = arith.index_cast %39 : i32 to index
    %c0_25 = arith.constant 0 : index
    %c0_26 = arith.constant 0 : index
    %41 = vector.load %arg2[%c0_24, %40, %c0_25, %c0_26] : memref<1x4x4x20xf32, #tpu.memory_space<vmem>>, vector<1x1x4x20xf32>
    %42 = vector.shape_cast %41 : vector<1x1x4x20xf32> to vector<4x20xf32>
    %43 = vector.extract_strided_slice %42 {offsets = [0, 0], sizes = [2, 20], strides = [1, 1]} : vector<4x20xf32> to vector<2x20xf32>
    %c6 = arith.constant 6 : index
    %c0_27 = arith.constant 0 : index
    %c0_28 = arith.constant 0 : index
    %44 = vector.load %arg3[%c6, %c0_27, %c0_28] : memref<9x20x1280xf32, #tpu.memory_space<vmem>>, vector<1x20x1280xf32>
    %45 = vector.shape_cast %44 : vector<1x20x1280xf32> to vector<20x1280xf32>
    %cst_29 = arith.constant dense<0.000000e+00> : vector<2x1280xf32>
    %46 = tpu.matmul %43, %45, %cst_29 {dimension_numbers = #tpu.dot_dimension_numbers<[1], [0], [0], [1], [0, 0, 1, 1], [], []>} : vector<2x20xf32>, vector<20x1280xf32>, vector<2x1280xf32> -> vector<2x1280xf32>
    %47 = arith.addf %38, %46 : vector<2x1280xf32>
    %48 = vector.extract_strided_slice %42 {offsets = [1, 0], sizes = [2, 20], strides = [1, 1]} : vector<4x20xf32> to vector<2x20xf32>
    %c7 = arith.constant 7 : index
    %c0_30 = arith.constant 0 : index
    %c0_31 = arith.constant 0 : index
    %49 = vector.load %arg3[%c7, %c0_30, %c0_31] : memref<9x20x1280xf32, #tpu.memory_space<vmem>>, vector<1x20x1280xf32>
    %50 = vector.shape_cast %49 : vector<1x20x1280xf32> to vector<20x1280xf32>
    %cst_32 = arith.constant dense<0.000000e+00> : vector<2x1280xf32>
    %51 = tpu.matmul %48, %50, %cst_32 {dimension_numbers = #tpu.dot_dimension_numbers<[1], [0], [0], [1], [0, 0, 1, 1], [], []>} : vector<2x20xf32>, vector<20x1280xf32>, vector<2x1280xf32> -> vector<2x1280xf32>
    %52 = arith.addf %47, %51 : vector<2x1280xf32>
    %53 = vector.extract_strided_slice %42 {offsets = [2, 0], sizes = [2, 20], strides = [1, 1]} : vector<4x20xf32> to vector<2x20xf32>
    %c8 = arith.constant 8 : index
    %c0_33 = arith.constant 0 : index
    %c0_34 = arith.constant 0 : index
    %54 = vector.load %arg3[%c8, %c0_33, %c0_34] : memref<9x20x1280xf32, #tpu.memory_space<vmem>>, vector<1x20x1280xf32>
    %55 = vector.shape_cast %54 : vector<1x20x1280xf32> to vector<20x1280xf32>
    %cst_35 = arith.constant dense<0.000000e+00> : vector<2x1280xf32>
    %56 = tpu.matmul %53, %55, %cst_35 {dimension_numbers = #tpu.dot_dimension_numbers<[1], [0], [0], [1], [0, 0, 1, 1], [], []>} : vector<2x20xf32>, vector<20x1280xf32>, vector<2x1280xf32> -> vector<2x1280xf32>
    %57 = arith.addf %52, %56 : vector<2x1280xf32>
    %c0_36 = arith.constant 0 : index
    %c0_37 = arith.constant 0 : index
    %c0_38 = arith.constant 0 : index
    %c0_39 = arith.constant 0 : index
    %58 = vector.load %arg4[%c0_36, %c0_37, %c0_38, %c0_39] : memref<1x1x2x1280xf32, #tpu.memory_space<vmem>>, vector<1x1x2x1280xf32>
    %59 = vector.shape_cast %58 : vector<1x1x2x1280xf32> to vector<2x1280xf32>
    %60 = vector.shape_cast %57 : vector<2x1280xf32> to vector<1x1x2x1280xf32>
    tpu.vector_store %arg4[%c0_36, %c0_37, %c0_38, %c0_39], %60 {strides = array<i32>} : memref<1x1x2x1280xf32, #tpu.memory_space<vmem>>, vector<1x1x2x1280xf32>,
    return
  }
  func.func @transform_0(%arg0: i32, %arg1: i32) -> (i32, i32, i32, i32) {
    %c0_i32 = arith.constant 0 : i32
    %c0_i32_0 = arith.constant 0 : i32
    %c0_i32_1 = arith.constant 0 : i32
    %c0_i32_2 = arith.constant 0 : i32
    return %arg0, %c0_i32, %c0_i32_0, %c0_i32_1 : i32, i32, i32, i32
  }
  func.func @transform_1(%arg0: i32, %arg1: i32) -> (i32, i32, i32) {
    %c0_i32 = arith.constant 0 : i32
    %c0_i32_0 = arith.constant 0 : i32
    %c0_i32_1 = arith.constant 0 : i32
    %c0_i32_2 = arith.constant 0 : i32
    return %c0_i32, %c0_i32_0, %c0_i32_1 : i32, i32, i32
  }
  func.func @transform_2(%arg0: i32, %arg1: i32) -> (i32, i32, i32, i32) {
    %c0_i32 = arith.constant 0 : i32
    %c0_i32_0 = arith.constant 0 : i32
    %c0_i32_1 = arith.constant 0 : i32
    return %arg0, %arg1, %c0_i32, %c0_i32_0 : i32, i32, i32, i32
  }
}

module attributes {stable_mosaic.version = 11 : i64} {
  func.func @_matmul_bias_kernel(%arg0: i32, %arg1: memref<128x8xf32, #tpu.memory_space<vmem>>, %arg2: memref<8x1xf32, #tpu.memory_space<vmem>>, %arg3: memref<1x1xf32, #tpu.memory_space<vmem>>, %arg4: memref<128x1xf32, #tpu.memory_space<vmem>>) attributes {dimension_semantics = [#tpu.dimension_semantics<parallel>], iteration_bounds = array<i64: 1>, scalar_prefetch = 0 : i64, scratch_operands = 0 : i64, tpu.core_type = #tpu.core_type<tc>, window_params = [{transform_indices = @transform_0, window_bounds = array<i64: 128, 8>}, {pipeline_mode = #tpu.pipeline_mode<synchronous>, transform_indices = @transform_1, window_bounds = array<i64: 8, 1>}, {pipeline_mode = #tpu.pipeline_mode<synchronous>, transform_indices = @transform_2, window_bounds = array<i64: 1, 1>}, {transform_indices = @transform_3, window_bounds = array<i64: 128, 1>}]} {
    %c0 = arith.constant 0 : index
    %c0_0 = arith.constant 0 : index
    %0 = vector.load %arg1[%c0, %c0_0] : memref<128x8xf32, #tpu.memory_space<vmem>>, vector<128x8xf32>
    %c0_1 = arith.constant 0 : index
    %c0_2 = arith.constant 0 : index
    %1 = vector.load %arg2[%c0_1, %c0_2] : memref<8x1xf32, #tpu.memory_space<vmem>>, vector<8x1xf32>
    %cst = arith.constant dense<0.000000e+00> : vector<128x1xf32>
    %2 = tpu.matmul %0, %1, %cst {dimension_numbers = #tpu.dot_dimension_numbers<[1], [0], [0], [1], [0, 0, 1, 1], [], []>} : vector<128x8xf32>, vector<8x1xf32>, vector<128x1xf32> -> vector<128x1xf32>
    %c0_3 = arith.constant 0 : index
    %c0_4 = arith.constant 0 : index
    %3 = vector.load %arg3[%c0_3, %c0_4] : memref<1x1xf32, #tpu.memory_space<vmem>>, vector<1x1xf32>
    %4 = vector.broadcast %3 : vector<1x1xf32> to vector<128x1xf32>
    %5 = arith.addf %2, %4 : vector<128x1xf32>
    %c0_5 = arith.constant 0 : index
    %c0_6 = arith.constant 0 : index
    %6 = vector.load %arg4[%c0_5, %c0_6] : memref<128x1xf32, #tpu.memory_space<vmem>>, vector<128x1xf32>
    tpu.vector_store %arg4[%c0_5, %c0_6], %5 {strides = array<i32>} : memref<128x1xf32, #tpu.memory_space<vmem>>, vector<128x1xf32>,
    return
  }
  func.func @transform_0(%arg0: i32) -> (i32, i32) {
    %c0_i32 = arith.constant 0 : i32
    %c0_i32_0 = arith.constant 0 : i32
    return %arg0, %c0_i32 : i32, i32
  }
  func.func @transform_1(%arg0: i32) -> (i32, i32) {
    %c0_i32 = arith.constant 0 : i32
    %c0_i32_0 = arith.constant 0 : i32
    %c0_i32_1 = arith.constant 0 : i32
    return %c0_i32, %c0_i32_0 : i32, i32
  }
  func.func @transform_2(%arg0: i32) -> (i32, i32) {
    %c0_i32 = arith.constant 0 : i32
    %c0_i32_0 = arith.constant 0 : i32
    %c0_i32_1 = arith.constant 0 : i32
    return %c0_i32, %c0_i32_0 : i32, i32
  }
  func.func @transform_3(%arg0: i32) -> (i32, i32) {
    %c0_i32 = arith.constant 0 : i32
    %c0_i32_0 = arith.constant 0 : i32
    return %arg0, %c0_i32 : i32, i32
  }
}

module attributes {stable_mosaic.version = 11 : i64} {
  func.func @_deconv9_kernel(%arg0: i32, %arg1: i32, %arg2: memref<1x10x10x1xf32, #tpu.memory_space<vmem>>, %arg3: memref<9x1x4xf32, #tpu.memory_space<vmem>>, %arg4: memref<1x1x8x4xf32, #tpu.memory_space<vmem>>) attributes {dimension_semantics = [#tpu.dimension_semantics<parallel>, #tpu.dimension_semantics<parallel>], iteration_bounds = array<i64: 2, 8>, scalar_prefetch = 0 : i64, scratch_operands = 0 : i64, tpu.core_type = #tpu.core_type<tc>, window_params = [{transform_indices = @transform_0, window_bounds = array<i64: 1, 10, 10, 1>}, {pipeline_mode = #tpu.pipeline_mode<synchronous>, transform_indices = @transform_1, window_bounds = array<i64: 9, 1, 4>}, {transform_indices = @transform_2, window_bounds = array<i64: 1, 1, 8, 4>}]} {
    %cst = arith.constant 0.000000e+00 : f32
    %0 = vector.broadcast %cst : f32 to vector<8x4xf32>
    %c0_i32 = arith.constant 0 : i32
    %1 = arith.addi %arg1, %c0_i32 : i32
    %c0 = arith.constant 0 : index
    %2 = arith.index_cast %1 : i32 to index
    %c0_0 = arith.constant 0 : index
    %c0_1 = arith.constant 0 : index
    %3 = vector.load %arg2[%c0, %2, %c0_0, %c0_1] : memref<1x10x10x1xf32, #tpu.memory_space<vmem>>, vector<1x1x10x1xf32>
    %4 = vector.shape_cast %3 : vector<1x1x10x1xf32> to vector<10x1xf32>
    %5 = vector.extract_strided_slice %4 {offsets = [0, 0], sizes = [8, 1], strides = [1, 1]} : vector<10x1xf32> to vector<8x1xf32>
    %c0_2 = arith.constant 0 : index
    %c0_3 = arith.constant 0 : index
    %c0_4 = arith.constant 0 : index
    %6 = vector.load %arg3[%c0_2, %c0_3, %c0_4] : memref<9x1x4xf32, #tpu.memory_space<vmem>>, vector<1x1x4xf32>
    %7 = vector.shape_cast %6 : vector<1x1x4xf32> to vector<1x4xf32>
    %8 = vector.broadcast %5 : vector<8x1xf32> to vector<8x4xf32>
    %9 = vector.broadcast %7 : vector<1x4xf32> to vector<8x4xf32>
    %10 = arith.mulf %8, %9 : vector<8x4xf32>
    %11 = arith.addf %0, %10 : vector<8x4xf32>
    %12 = vector.extract_strided_slice %4 {offsets = [1, 0], sizes = [8, 1], strides = [1, 1]} : vector<10x1xf32> to vector<8x1xf32>
    %c1 = arith.constant 1 : index
    %c0_5 = arith.constant 0 : index
    %c0_6 = arith.constant 0 : index
    %13 = vector.load %arg3[%c1, %c0_5, %c0_6] : memref<9x1x4xf32, #tpu.memory_space<vmem>>, vector<1x1x4xf32>
    %14 = vector.shape_cast %13 : vector<1x1x4xf32> to vector<1x4xf32>
    %15 = vector.broadcast %12 : vector<8x1xf32> to vector<8x4xf32>
    %16 = vector.broadcast %14 : vector<1x4xf32> to vector<8x4xf32>
    %17 = arith.mulf %15, %16 : vector<8x4xf32>
    %18 = arith.addf %11, %17 : vector<8x4xf32>
    %19 = vector.extract_strided_slice %4 {offsets = [2, 0], sizes = [8, 1], strides = [1, 1]} : vector<10x1xf32> to vector<8x1xf32>
    %c2 = arith.constant 2 : index
    %c0_7 = arith.constant 0 : index
    %c0_8 = arith.constant 0 : index
    %20 = vector.load %arg3[%c2, %c0_7, %c0_8] : memref<9x1x4xf32, #tpu.memory_space<vmem>>, vector<1x1x4xf32>
    %21 = vector.shape_cast %20 : vector<1x1x4xf32> to vector<1x4xf32>
    %22 = vector.broadcast %19 : vector<8x1xf32> to vector<8x4xf32>
    %23 = vector.broadcast %21 : vector<1x4xf32> to vector<8x4xf32>
    %24 = arith.mulf %22, %23 : vector<8x4xf32>
    %25 = arith.addf %18, %24 : vector<8x4xf32>
    %c1_i32 = arith.constant 1 : i32
    %26 = arith.addi %arg1, %c1_i32 : i32
    %c0_9 = arith.constant 0 : index
    %27 = arith.index_cast %26 : i32 to index
    %c0_10 = arith.constant 0 : index
    %c0_11 = arith.constant 0 : index
    %28 = vector.load %arg2[%c0_9, %27, %c0_10, %c0_11] : memref<1x10x10x1xf32, #tpu.memory_space<vmem>>, vector<1x1x10x1xf32>
    %29 = vector.shape_cast %28 : vector<1x1x10x1xf32> to vector<10x1xf32>
    %30 = vector.extract_strided_slice %29 {offsets = [0, 0], sizes = [8, 1], strides = [1, 1]} : vector<10x1xf32> to vector<8x1xf32>
    %c3 = arith.constant 3 : index
    %c0_12 = arith.constant 0 : index
    %c0_13 = arith.constant 0 : index
    %31 = vector.load %arg3[%c3, %c0_12, %c0_13] : memref<9x1x4xf32, #tpu.memory_space<vmem>>, vector<1x1x4xf32>
    %32 = vector.shape_cast %31 : vector<1x1x4xf32> to vector<1x4xf32>
    %33 = vector.broadcast %30 : vector<8x1xf32> to vector<8x4xf32>
    %34 = vector.broadcast %32 : vector<1x4xf32> to vector<8x4xf32>
    %35 = arith.mulf %33, %34 : vector<8x4xf32>
    %36 = arith.addf %25, %35 : vector<8x4xf32>
    %37 = vector.extract_strided_slice %29 {offsets = [1, 0], sizes = [8, 1], strides = [1, 1]} : vector<10x1xf32> to vector<8x1xf32>
    %c4 = arith.constant 4 : index
    %c0_14 = arith.constant 0 : index
    %c0_15 = arith.constant 0 : index
    %38 = vector.load %arg3[%c4, %c0_14, %c0_15] : memref<9x1x4xf32, #tpu.memory_space<vmem>>, vector<1x1x4xf32>
    %39 = vector.shape_cast %38 : vector<1x1x4xf32> to vector<1x4xf32>
    %40 = vector.broadcast %37 : vector<8x1xf32> to vector<8x4xf32>
    %41 = vector.broadcast %39 : vector<1x4xf32> to vector<8x4xf32>
    %42 = arith.mulf %40, %41 : vector<8x4xf32>
    %43 = arith.addf %36, %42 : vector<8x4xf32>
    %44 = vector.extract_strided_slice %29 {offsets = [2, 0], sizes = [8, 1], strides = [1, 1]} : vector<10x1xf32> to vector<8x1xf32>
    %c5 = arith.constant 5 : index
    %c0_16 = arith.constant 0 : index
    %c0_17 = arith.constant 0 : index
    %45 = vector.load %arg3[%c5, %c0_16, %c0_17] : memref<9x1x4xf32, #tpu.memory_space<vmem>>, vector<1x1x4xf32>
    %46 = vector.shape_cast %45 : vector<1x1x4xf32> to vector<1x4xf32>
    %47 = vector.broadcast %44 : vector<8x1xf32> to vector<8x4xf32>
    %48 = vector.broadcast %46 : vector<1x4xf32> to vector<8x4xf32>
    %49 = arith.mulf %47, %48 : vector<8x4xf32>
    %50 = arith.addf %43, %49 : vector<8x4xf32>
    %c2_i32 = arith.constant 2 : i32
    %51 = arith.addi %arg1, %c2_i32 : i32
    %c0_18 = arith.constant 0 : index
    %52 = arith.index_cast %51 : i32 to index
    %c0_19 = arith.constant 0 : index
    %c0_20 = arith.constant 0 : index
    %53 = vector.load %arg2[%c0_18, %52, %c0_19, %c0_20] : memref<1x10x10x1xf32, #tpu.memory_space<vmem>>, vector<1x1x10x1xf32>
    %54 = vector.shape_cast %53 : vector<1x1x10x1xf32> to vector<10x1xf32>
    %55 = vector.extract_strided_slice %54 {offsets = [0, 0], sizes = [8, 1], strides = [1, 1]} : vector<10x1xf32> to vector<8x1xf32>
    %c6 = arith.constant 6 : index
    %c0_21 = arith.constant 0 : index
    %c0_22 = arith.constant 0 : index
    %56 = vector.load %arg3[%c6, %c0_21, %c0_22] : memref<9x1x4xf32, #tpu.memory_space<vmem>>, vector<1x1x4xf32>
    %57 = vector.shape_cast %56 : vector<1x1x4xf32> to vector<1x4xf32>
    %58 = vector.broadcast %55 : vector<8x1xf32> to vector<8x4xf32>
    %59 = vector.broadcast %57 : vector<1x4xf32> to vector<8x4xf32>
    %60 = arith.mulf %58, %59 : vector<8x4xf32>
    %61 = arith.addf %50, %60 : vector<8x4xf32>
    %62 = vector.extract_strided_slice %54 {offsets = [1, 0], sizes = [8, 1], strides = [1, 1]} : vector<10x1xf32> to vector<8x1xf32>
    %c7 = arith.constant 7 : index
    %c0_23 = arith.constant 0 : index
    %c0_24 = arith.constant 0 : index
    %63 = vector.load %arg3[%c7, %c0_23, %c0_24] : memref<9x1x4xf32, #tpu.memory_space<vmem>>, vector<1x1x4xf32>
    %64 = vector.shape_cast %63 : vector<1x1x4xf32> to vector<1x4xf32>
    %65 = vector.broadcast %62 : vector<8x1xf32> to vector<8x4xf32>
    %66 = vector.broadcast %64 : vector<1x4xf32> to vector<8x4xf32>
    %67 = arith.mulf %65, %66 : vector<8x4xf32>
    %68 = arith.addf %61, %67 : vector<8x4xf32>
    %69 = vector.extract_strided_slice %54 {offsets = [2, 0], sizes = [8, 1], strides = [1, 1]} : vector<10x1xf32> to vector<8x1xf32>
    %c8 = arith.constant 8 : index
    %c0_25 = arith.constant 0 : index
    %c0_26 = arith.constant 0 : index
    %70 = vector.load %arg3[%c8, %c0_25, %c0_26] : memref<9x1x4xf32, #tpu.memory_space<vmem>>, vector<1x1x4xf32>
    %71 = vector.shape_cast %70 : vector<1x1x4xf32> to vector<1x4xf32>
    %72 = vector.broadcast %69 : vector<8x1xf32> to vector<8x4xf32>
    %73 = vector.broadcast %71 : vector<1x4xf32> to vector<8x4xf32>
    %74 = arith.mulf %72, %73 : vector<8x4xf32>
    %75 = arith.addf %68, %74 : vector<8x4xf32>
    %c0_27 = arith.constant 0 : index
    %c0_28 = arith.constant 0 : index
    %c0_29 = arith.constant 0 : index
    %c0_30 = arith.constant 0 : index
    %76 = vector.load %arg4[%c0_27, %c0_28, %c0_29, %c0_30] : memref<1x1x8x4xf32, #tpu.memory_space<vmem>>, vector<1x1x8x4xf32>
    %77 = vector.shape_cast %76 : vector<1x1x8x4xf32> to vector<8x4xf32>
    %78 = vector.shape_cast %75 : vector<8x4xf32> to vector<1x1x8x4xf32>
    tpu.vector_store %arg4[%c0_27, %c0_28, %c0_29, %c0_30], %78 {strides = array<i32>} : memref<1x1x8x4xf32, #tpu.memory_space<vmem>>, vector<1x1x8x4xf32>,
    return
  }
  func.func @transform_0(%arg0: i32, %arg1: i32) -> (i32, i32, i32, i32) {
    %c0_i32 = arith.constant 0 : i32
    %c0_i32_0 = arith.constant 0 : i32
    %c0_i32_1 = arith.constant 0 : i32
    %c0_i32_2 = arith.constant 0 : i32
    return %arg0, %c0_i32, %c0_i32_0, %c0_i32_1 : i32, i32, i32, i32
  }
  func.func @transform_1(%arg0: i32, %arg1: i32) -> (i32, i32, i32) {
    %c0_i32 = arith.constant 0 : i32
    %c0_i32_0 = arith.constant 0 : i32
    %c0_i32_1 = arith.constant 0 : i32
    %c0_i32_2 = arith.constant 0 : i32
    return %c0_i32, %c0_i32_0, %c0_i32_1 : i32, i32, i32
  }
  func.func @transform_2(%arg0: i32, %arg1: i32) -> (i32, i32, i32, i32) {
    %c0_i32 = arith.constant 0 : i32
    %c0_i32_0 = arith.constant 0 : i32
    %c0_i32_1 = arith.constant 0 : i32
    return %arg0, %arg1, %c0_i32, %c0_i32_0 : i32, i32, i32, i32
  }
}

module attributes {stable_mosaic.version = 11 : i64} {
  func.func @_matmul_bias_kernel(%arg0: i32, %arg1: memref<32x16xf32, #tpu.memory_space<vmem>>, %arg2: memref<16x1xf32, #tpu.memory_space<vmem>>, %arg3: memref<1x1xf32, #tpu.memory_space<vmem>>, %arg4: memref<32x1xf32, #tpu.memory_space<vmem>>) attributes {dimension_semantics = [#tpu.dimension_semantics<parallel>], iteration_bounds = array<i64: 1>, scalar_prefetch = 0 : i64, scratch_operands = 0 : i64, tpu.core_type = #tpu.core_type<tc>, window_params = [{transform_indices = @transform_0, window_bounds = array<i64: 32, 16>}, {pipeline_mode = #tpu.pipeline_mode<synchronous>, transform_indices = @transform_1, window_bounds = array<i64: 16, 1>}, {pipeline_mode = #tpu.pipeline_mode<synchronous>, transform_indices = @transform_2, window_bounds = array<i64: 1, 1>}, {transform_indices = @transform_3, window_bounds = array<i64: 32, 1>}]} {
    %c0 = arith.constant 0 : index
    %c0_0 = arith.constant 0 : index
    %0 = vector.load %arg1[%c0, %c0_0] : memref<32x16xf32, #tpu.memory_space<vmem>>, vector<32x16xf32>
    %c0_1 = arith.constant 0 : index
    %c0_2 = arith.constant 0 : index
    %1 = vector.load %arg2[%c0_1, %c0_2] : memref<16x1xf32, #tpu.memory_space<vmem>>, vector<16x1xf32>
    %cst = arith.constant dense<0.000000e+00> : vector<32x1xf32>
    %2 = tpu.matmul %0, %1, %cst {dimension_numbers = #tpu.dot_dimension_numbers<[1], [0], [0], [1], [0, 0, 1, 1], [], []>} : vector<32x16xf32>, vector<16x1xf32>, vector<32x1xf32> -> vector<32x1xf32>
    %c0_3 = arith.constant 0 : index
    %c0_4 = arith.constant 0 : index
    %3 = vector.load %arg3[%c0_3, %c0_4] : memref<1x1xf32, #tpu.memory_space<vmem>>, vector<1x1xf32>
    %4 = vector.broadcast %3 : vector<1x1xf32> to vector<32x1xf32>
    %5 = arith.addf %2, %4 : vector<32x1xf32>
    %c0_5 = arith.constant 0 : index
    %c0_6 = arith.constant 0 : index
    %6 = vector.load %arg4[%c0_5, %c0_6] : memref<32x1xf32, #tpu.memory_space<vmem>>, vector<32x1xf32>
    tpu.vector_store %arg4[%c0_5, %c0_6], %5 {strides = array<i32>} : memref<32x1xf32, #tpu.memory_space<vmem>>, vector<32x1xf32>,
    return
  }
  func.func @transform_0(%arg0: i32) -> (i32, i32) {
    %c0_i32 = arith.constant 0 : i32
    %c0_i32_0 = arith.constant 0 : i32
    return %arg0, %c0_i32 : i32, i32
  }
  func.func @transform_1(%arg0: i32) -> (i32, i32) {
    %c0_i32 = arith.constant 0 : i32
    %c0_i32_0 = arith.constant 0 : i32
    %c0_i32_1 = arith.constant 0 : i32
    return %c0_i32, %c0_i32_0 : i32, i32
  }
  func.func @transform_2(%arg0: i32) -> (i32, i32) {
    %c0_i32 = arith.constant 0 : i32
    %c0_i32_0 = arith.constant 0 : i32
    %c0_i32_1 = arith.constant 0 : i32
    return %c0_i32, %c0_i32_0 : i32, i32
  }
  func.func @transform_3(%arg0: i32) -> (i32, i32) {
    %c0_i32 = arith.constant 0 : i32
    %c0_i32_0 = arith.constant 0 : i32
    return %arg0, %c0_i32 : i32, i32
  }
}

module attributes {stable_mosaic.version = 11 : i64} {
  func.func @_deconv9_kernel(%arg0: i32, %arg1: i32, %arg2: memref<1x6x6x1xf32, #tpu.memory_space<vmem>>, %arg3: memref<9x1x16xf32, #tpu.memory_space<vmem>>, %arg4: memref<1x1x4x16xf32, #tpu.memory_space<vmem>>) attributes {dimension_semantics = [#tpu.dimension_semantics<parallel>, #tpu.dimension_semantics<parallel>], iteration_bounds = array<i64: 2, 4>, scalar_prefetch = 0 : i64, scratch_operands = 0 : i64, tpu.core_type = #tpu.core_type<tc>, window_params = [{transform_indices = @transform_0, window_bounds = array<i64: 1, 6, 6, 1>}, {pipeline_mode = #tpu.pipeline_mode<synchronous>, transform_indices = @transform_1, window_bounds = array<i64: 9, 1, 16>}, {transform_indices = @transform_2, window_bounds = array<i64: 1, 1, 4, 16>}]} {
    %cst = arith.constant 0.000000e+00 : f32
    %0 = vector.broadcast %cst : f32 to vector<4x16xf32>
    %c0_i32 = arith.constant 0 : i32
    %1 = arith.addi %arg1, %c0_i32 : i32
    %c0 = arith.constant 0 : index
    %2 = arith.index_cast %1 : i32 to index
    %c0_0 = arith.constant 0 : index
    %c0_1 = arith.constant 0 : index
    %3 = vector.load %arg2[%c0, %2, %c0_0, %c0_1] : memref<1x6x6x1xf32, #tpu.memory_space<vmem>>, vector<1x1x6x1xf32>
    %4 = vector.shape_cast %3 : vector<1x1x6x1xf32> to vector<6x1xf32>
    %5 = vector.extract_strided_slice %4 {offsets = [0, 0], sizes = [4, 1], strides = [1, 1]} : vector<6x1xf32> to vector<4x1xf32>
    %c0_2 = arith.constant 0 : index
    %c0_3 = arith.constant 0 : index
    %c0_4 = arith.constant 0 : index
    %6 = vector.load %arg3[%c0_2, %c0_3, %c0_4] : memref<9x1x16xf32, #tpu.memory_space<vmem>>, vector<1x1x16xf32>
    %7 = vector.shape_cast %6 : vector<1x1x16xf32> to vector<1x16xf32>
    %8 = vector.broadcast %5 : vector<4x1xf32> to vector<4x16xf32>
    %9 = vector.broadcast %7 : vector<1x16xf32> to vector<4x16xf32>
    %10 = arith.mulf %8, %9 : vector<4x16xf32>
    %11 = arith.addf %0, %10 : vector<4x16xf32>
    %12 = vector.extract_strided_slice %4 {offsets = [1, 0], sizes = [4, 1], strides = [1, 1]} : vector<6x1xf32> to vector<4x1xf32>
    %c1 = arith.constant 1 : index
    %c0_5 = arith.constant 0 : index
    %c0_6 = arith.constant 0 : index
    %13 = vector.load %arg3[%c1, %c0_5, %c0_6] : memref<9x1x16xf32, #tpu.memory_space<vmem>>, vector<1x1x16xf32>
    %14 = vector.shape_cast %13 : vector<1x1x16xf32> to vector<1x16xf32>
    %15 = vector.broadcast %12 : vector<4x1xf32> to vector<4x16xf32>
    %16 = vector.broadcast %14 : vector<1x16xf32> to vector<4x16xf32>
    %17 = arith.mulf %15, %16 : vector<4x16xf32>
    %18 = arith.addf %11, %17 : vector<4x16xf32>
    %19 = vector.extract_strided_slice %4 {offsets = [2, 0], sizes = [4, 1], strides = [1, 1]} : vector<6x1xf32> to vector<4x1xf32>
    %c2 = arith.constant 2 : index
    %c0_7 = arith.constant 0 : index
    %c0_8 = arith.constant 0 : index
    %20 = vector.load %arg3[%c2, %c0_7, %c0_8] : memref<9x1x16xf32, #tpu.memory_space<vmem>>, vector<1x1x16xf32>
    %21 = vector.shape_cast %20 : vector<1x1x16xf32> to vector<1x16xf32>
    %22 = vector.broadcast %19 : vector<4x1xf32> to vector<4x16xf32>
    %23 = vector.broadcast %21 : vector<1x16xf32> to vector<4x16xf32>
    %24 = arith.mulf %22, %23 : vector<4x16xf32>
    %25 = arith.addf %18, %24 : vector<4x16xf32>
    %c1_i32 = arith.constant 1 : i32
    %26 = arith.addi %arg1, %c1_i32 : i32
    %c0_9 = arith.constant 0 : index
    %27 = arith.index_cast %26 : i32 to index
    %c0_10 = arith.constant 0 : index
    %c0_11 = arith.constant 0 : index
    %28 = vector.load %arg2[%c0_9, %27, %c0_10, %c0_11] : memref<1x6x6x1xf32, #tpu.memory_space<vmem>>, vector<1x1x6x1xf32>
    %29 = vector.shape_cast %28 : vector<1x1x6x1xf32> to vector<6x1xf32>
    %30 = vector.extract_strided_slice %29 {offsets = [0, 0], sizes = [4, 1], strides = [1, 1]} : vector<6x1xf32> to vector<4x1xf32>
    %c3 = arith.constant 3 : index
    %c0_12 = arith.constant 0 : index
    %c0_13 = arith.constant 0 : index
    %31 = vector.load %arg3[%c3, %c0_12, %c0_13] : memref<9x1x16xf32, #tpu.memory_space<vmem>>, vector<1x1x16xf32>
    %32 = vector.shape_cast %31 : vector<1x1x16xf32> to vector<1x16xf32>
    %33 = vector.broadcast %30 : vector<4x1xf32> to vector<4x16xf32>
    %34 = vector.broadcast %32 : vector<1x16xf32> to vector<4x16xf32>
    %35 = arith.mulf %33, %34 : vector<4x16xf32>
    %36 = arith.addf %25, %35 : vector<4x16xf32>
    %37 = vector.extract_strided_slice %29 {offsets = [1, 0], sizes = [4, 1], strides = [1, 1]} : vector<6x1xf32> to vector<4x1xf32>
    %c4 = arith.constant 4 : index
    %c0_14 = arith.constant 0 : index
    %c0_15 = arith.constant 0 : index
    %38 = vector.load %arg3[%c4, %c0_14, %c0_15] : memref<9x1x16xf32, #tpu.memory_space<vmem>>, vector<1x1x16xf32>
    %39 = vector.shape_cast %38 : vector<1x1x16xf32> to vector<1x16xf32>
    %40 = vector.broadcast %37 : vector<4x1xf32> to vector<4x16xf32>
    %41 = vector.broadcast %39 : vector<1x16xf32> to vector<4x16xf32>
    %42 = arith.mulf %40, %41 : vector<4x16xf32>
    %43 = arith.addf %36, %42 : vector<4x16xf32>
    %44 = vector.extract_strided_slice %29 {offsets = [2, 0], sizes = [4, 1], strides = [1, 1]} : vector<6x1xf32> to vector<4x1xf32>
    %c5 = arith.constant 5 : index
    %c0_16 = arith.constant 0 : index
    %c0_17 = arith.constant 0 : index
    %45 = vector.load %arg3[%c5, %c0_16, %c0_17] : memref<9x1x16xf32, #tpu.memory_space<vmem>>, vector<1x1x16xf32>
    %46 = vector.shape_cast %45 : vector<1x1x16xf32> to vector<1x16xf32>
    %47 = vector.broadcast %44 : vector<4x1xf32> to vector<4x16xf32>
    %48 = vector.broadcast %46 : vector<1x16xf32> to vector<4x16xf32>
    %49 = arith.mulf %47, %48 : vector<4x16xf32>
    %50 = arith.addf %43, %49 : vector<4x16xf32>
    %c2_i32 = arith.constant 2 : i32
    %51 = arith.addi %arg1, %c2_i32 : i32
    %c0_18 = arith.constant 0 : index
    %52 = arith.index_cast %51 : i32 to index
    %c0_19 = arith.constant 0 : index
    %c0_20 = arith.constant 0 : index
    %53 = vector.load %arg2[%c0_18, %52, %c0_19, %c0_20] : memref<1x6x6x1xf32, #tpu.memory_space<vmem>>, vector<1x1x6x1xf32>
    %54 = vector.shape_cast %53 : vector<1x1x6x1xf32> to vector<6x1xf32>
    %55 = vector.extract_strided_slice %54 {offsets = [0, 0], sizes = [4, 1], strides = [1, 1]} : vector<6x1xf32> to vector<4x1xf32>
    %c6 = arith.constant 6 : index
    %c0_21 = arith.constant 0 : index
    %c0_22 = arith.constant 0 : index
    %56 = vector.load %arg3[%c6, %c0_21, %c0_22] : memref<9x1x16xf32, #tpu.memory_space<vmem>>, vector<1x1x16xf32>
    %57 = vector.shape_cast %56 : vector<1x1x16xf32> to vector<1x16xf32>
    %58 = vector.broadcast %55 : vector<4x1xf32> to vector<4x16xf32>
    %59 = vector.broadcast %57 : vector<1x16xf32> to vector<4x16xf32>
    %60 = arith.mulf %58, %59 : vector<4x16xf32>
    %61 = arith.addf %50, %60 : vector<4x16xf32>
    %62 = vector.extract_strided_slice %54 {offsets = [1, 0], sizes = [4, 1], strides = [1, 1]} : vector<6x1xf32> to vector<4x1xf32>
    %c7 = arith.constant 7 : index
    %c0_23 = arith.constant 0 : index
    %c0_24 = arith.constant 0 : index
    %63 = vector.load %arg3[%c7, %c0_23, %c0_24] : memref<9x1x16xf32, #tpu.memory_space<vmem>>, vector<1x1x16xf32>
    %64 = vector.shape_cast %63 : vector<1x1x16xf32> to vector<1x16xf32>
    %65 = vector.broadcast %62 : vector<4x1xf32> to vector<4x16xf32>
    %66 = vector.broadcast %64 : vector<1x16xf32> to vector<4x16xf32>
    %67 = arith.mulf %65, %66 : vector<4x16xf32>
    %68 = arith.addf %61, %67 : vector<4x16xf32>
    %69 = vector.extract_strided_slice %54 {offsets = [2, 0], sizes = [4, 1], strides = [1, 1]} : vector<6x1xf32> to vector<4x1xf32>
    %c8 = arith.constant 8 : index
    %c0_25 = arith.constant 0 : index
    %c0_26 = arith.constant 0 : index
    %70 = vector.load %arg3[%c8, %c0_25, %c0_26] : memref<9x1x16xf32, #tpu.memory_space<vmem>>, vector<1x1x16xf32>
    %71 = vector.shape_cast %70 : vector<1x1x16xf32> to vector<1x16xf32>
    %72 = vector.broadcast %69 : vector<4x1xf32> to vector<4x16xf32>
    %73 = vector.broadcast %71 : vector<1x16xf32> to vector<4x16xf32>
    %74 = arith.mulf %72, %73 : vector<4x16xf32>
    %75 = arith.addf %68, %74 : vector<4x16xf32>
    %c0_27 = arith.constant 0 : index
    %c0_28 = arith.constant 0 : index
    %c0_29 = arith.constant 0 : index
    %c0_30 = arith.constant 0 : index
    %76 = vector.load %arg4[%c0_27, %c0_28, %c0_29, %c0_30] : memref<1x1x4x16xf32, #tpu.memory_space<vmem>>, vector<1x1x4x16xf32>
    %77 = vector.shape_cast %76 : vector<1x1x4x16xf32> to vector<4x16xf32>
    %78 = vector.shape_cast %75 : vector<4x16xf32> to vector<1x1x4x16xf32>
    tpu.vector_store %arg4[%c0_27, %c0_28, %c0_29, %c0_30], %78 {strides = array<i32>} : memref<1x1x4x16xf32, #tpu.memory_space<vmem>>, vector<1x1x4x16xf32>,
    return
  }
  func.func @transform_0(%arg0: i32, %arg1: i32) -> (i32, i32, i32, i32) {
    %c0_i32 = arith.constant 0 : i32
    %c0_i32_0 = arith.constant 0 : i32
    %c0_i32_1 = arith.constant 0 : i32
    %c0_i32_2 = arith.constant 0 : i32
    return %arg0, %c0_i32, %c0_i32_0, %c0_i32_1 : i32, i32, i32, i32
  }
  func.func @transform_1(%arg0: i32, %arg1: i32) -> (i32, i32, i32) {
    %c0_i32 = arith.constant 0 : i32
    %c0_i32_0 = arith.constant 0 : i32
    %c0_i32_1 = arith.constant 0 : i32
    %c0_i32_2 = arith.constant 0 : i32
    return %c0_i32, %c0_i32_0, %c0_i32_1 : i32, i32, i32
  }
  func.func @transform_2(%arg0: i32, %arg1: i32) -> (i32, i32, i32, i32) {
    %c0_i32 = arith.constant 0 : i32
    %c0_i32_0 = arith.constant 0 : i32
    %c0_i32_1 = arith.constant 0 : i32
    return %arg0, %arg1, %c0_i32, %c0_i32_0 : i32, i32, i32, i32
  }
}

module attributes {stable_mosaic.version = 11 : i64} {
  func.func @_ada_fuse_kernel(%arg0: i32, %arg1: memref<512x20xf32, #tpu.memory_space<vmem>>, %arg2: memref<512x8xf32, #tpu.memory_space<vmem>>, %arg3: memref<512x1xf32, #tpu.memory_space<vmem>>, %arg4: memref<512x1xf32, #tpu.memory_space<vmem>>, %arg5: memref<20x16xf32, #tpu.memory_space<vmem>>, %arg6: memref<1x16xf32, #tpu.memory_space<vmem>>, %arg7: memref<16x16xf32, #tpu.memory_space<vmem>>, %arg8: memref<1x16xf32, #tpu.memory_space<vmem>>, %arg9: memref<4x16x4xf32, #tpu.memory_space<vmem>>, %arg10: memref<4x1x4xf32, #tpu.memory_space<vmem>>, %arg11: memref<20x4xf32, #tpu.memory_space<vmem>>, %arg12: memref<8x1xf32, #tpu.memory_space<vmem>>, %arg13: memref<1x1xf32, #tpu.memory_space<vmem>>, %arg14: memref<512x4xf32, #tpu.memory_space<vmem>>) attributes {dimension_semantics = [#tpu.dimension_semantics<parallel>], iteration_bounds = array<i64: 1>, scalar_prefetch = 0 : i64, scratch_operands = 0 : i64, tpu.core_type = #tpu.core_type<tc>, window_params = [{transform_indices = @transform_0, window_bounds = array<i64: 512, 20>}, {transform_indices = @transform_1, window_bounds = array<i64: 512, 8>}, {transform_indices = @transform_2, window_bounds = array<i64: 512, 1>}, {transform_indices = @transform_3, window_bounds = array<i64: 512, 1>}, {pipeline_mode = #tpu.pipeline_mode<synchronous>, transform_indices = @transform_4, window_bounds = array<i64: 20, 16>}, {pipeline_mode = #tpu.pipeline_mode<synchronous>, transform_indices = @transform_5, window_bounds = array<i64: 1, 16>}, {pipeline_mode = #tpu.pipeline_mode<synchronous>, transform_indices = @transform_6, window_bounds = array<i64: 16, 16>}, {pipeline_mode = #tpu.pipeline_mode<synchronous>, transform_indices = @transform_7, window_bounds = array<i64: 1, 16>}, {pipeline_mode = #tpu.pipeline_mode<synchronous>, transform_indices = @transform_8, window_bounds = array<i64: 4, 16, 4>}, {pipeline_mode = #tpu.pipeline_mode<synchronous>, transform_indices = @transform_9, window_bounds = array<i64: 4, 1, 4>}, {pipeline_mode = #tpu.pipeline_mode<synchronous>, transform_indices = @transform_10, window_bounds = array<i64: 20, 4>}, {pipeline_mode = #tpu.pipeline_mode<synchronous>, transform_indices = @transform_11, window_bounds = array<i64: 8, 1>}, {pipeline_mode = #tpu.pipeline_mode<synchronous>, transform_indices = @transform_12, window_bounds = array<i64: 1, 1>}, {transform_indices = @transform_13, window_bounds = array<i64: 512, 4>}]} {
    %c0 = arith.constant 0 : index
    %c0_0 = arith.constant 0 : index
    %0 = vector.load %arg1[%c0, %c0_0] : memref<512x20xf32, #tpu.memory_space<vmem>>, vector<512x20xf32>
    %c0_1 = arith.constant 0 : index
    %c0_2 = arith.constant 0 : index
    %1 = vector.load %arg5[%c0_1, %c0_2] : memref<20x16xf32, #tpu.memory_space<vmem>>, vector<20x16xf32>
    %cst = arith.constant dense<0.000000e+00> : vector<512x16xf32>
    %2 = tpu.matmul %0, %1, %cst {dimension_numbers = #tpu.dot_dimension_numbers<[1], [0], [0], [1], [0, 0, 1, 1], [], []>} : vector<512x20xf32>, vector<20x16xf32>, vector<512x16xf32> -> vector<512x16xf32>
    %c0_3 = arith.constant 0 : index
    %c0_4 = arith.constant 0 : index
    %3 = vector.load %arg6[%c0_3, %c0_4] : memref<1x16xf32, #tpu.memory_space<vmem>>, vector<1x16xf32>
    %4 = vector.broadcast %3 : vector<1x16xf32> to vector<512x16xf32>
    %5 = arith.addf %2, %4 : vector<512x16xf32>
    %cst_5 = arith.constant 0.000000e+00 : f32
    %6 = vector.broadcast %cst_5 : f32 to vector<512x16xf32>
    %7 = arith.maximumf %5, %6 : vector<512x16xf32>
    %c0_6 = arith.constant 0 : index
    %c0_7 = arith.constant 0 : index
    %8 = vector.load %arg7[%c0_6, %c0_7] : memref<16x16xf32, #tpu.memory_space<vmem>>, vector<16x16xf32>
    %cst_8 = arith.constant dense<0.000000e+00> : vector<512x16xf32>
    %9 = tpu.matmul %7, %8, %cst_8 {dimension_numbers = #tpu.dot_dimension_numbers<[1], [0], [0], [1], [0, 0, 1, 1], [], []>} : vector<512x16xf32>, vector<16x16xf32>, vector<512x16xf32> -> vector<512x16xf32>
    %c0_9 = arith.constant 0 : index
    %c0_10 = arith.constant 0 : index
    %10 = vector.load %arg8[%c0_9, %c0_10] : memref<1x16xf32, #tpu.memory_space<vmem>>, vector<1x16xf32>
    %11 = vector.broadcast %10 : vector<1x16xf32> to vector<512x16xf32>
    %12 = arith.addf %9, %11 : vector<512x16xf32>
    %cst_11 = arith.constant 0.000000e+00 : f32
    %13 = vector.broadcast %cst_11 : f32 to vector<512x16xf32>
    %14 = arith.maximumf %12, %13 : vector<512x16xf32>
    %c0_12 = arith.constant 0 : index
    %c0_13 = arith.constant 0 : index
    %15 = vector.load %arg11[%c0_12, %c0_13] : memref<20x4xf32, #tpu.memory_space<vmem>>, vector<20x4xf32>
    %cst_14 = arith.constant dense<0.000000e+00> : vector<512x4xf32>
    %16 = tpu.matmul %0, %15, %cst_14 {dimension_numbers = #tpu.dot_dimension_numbers<[1], [0], [0], [1], [0, 0, 1, 1], [], []>} : vector<512x20xf32>, vector<20x4xf32>, vector<512x4xf32> -> vector<512x4xf32>
    %c0_15 = arith.constant 0 : index
    %c0_16 = arith.constant 0 : index
    %17 = vector.load %arg2[%c0_15, %c0_16] : memref<512x8xf32, #tpu.memory_space<vmem>>, vector<512x8xf32>
    %c0_17 = arith.constant 0 : index
    %c0_18 = arith.constant 0 : index
    %18 = vector.load %arg12[%c0_17, %c0_18] : memref<8x1xf32, #tpu.memory_space<vmem>>, vector<8x1xf32>
    %cst_19 = arith.constant dense<0.000000e+00> : vector<512x1xf32>
    %19 = tpu.matmul %17, %18, %cst_19 {dimension_numbers = #tpu.dot_dimension_numbers<[1], [0], [0], [1], [0, 0, 1, 1], [], []>} : vector<512x8xf32>, vector<8x1xf32>, vector<512x1xf32> -> vector<512x1xf32>
    %c0_20 = arith.constant 0 : index
    %c0_21 = arith.constant 0 : index
    %20 = vector.load %arg13[%c0_20, %c0_21] : memref<1x1xf32, #tpu.memory_space<vmem>>, vector<1x1xf32>
    %21 = vector.broadcast %20 : vector<1x1xf32> to vector<512x1xf32>
    %22 = arith.addf %19, %21 : vector<512x1xf32>
    %c0_22 = arith.constant 0 : index
    %c0_23 = arith.constant 0 : index
    %23 = vector.load %arg3[%c0_22, %c0_23] : memref<512x1xf32, #tpu.memory_space<vmem>>, vector<512x1xf32>
    %c0_24 = arith.constant 0 : index
    %c0_25 = arith.constant 0 : index
    %24 = vector.load %arg4[%c0_24, %c0_25] : memref<512x1xf32, #tpu.memory_space<vmem>>, vector<512x1xf32>
    %cst_26 = arith.constant 0.000000e+00 : f32
    %25 = vector.broadcast %cst_26 : f32 to vector<512x4xf32>
    %c0_27 = arith.constant 0 : index
    %c0_28 = arith.constant 0 : index
    %c0_29 = arith.constant 0 : index
    %26 = vector.load %arg9[%c0_27, %c0_28, %c0_29] : memref<4x16x4xf32, #tpu.memory_space<vmem>>, vector<1x16x4xf32>
    %27 = vector.shape_cast %26 : vector<1x16x4xf32> to vector<16x4xf32>
    %cst_30 = arith.constant dense<0.000000e+00> : vector<512x4xf32>
    %28 = tpu.matmul %14, %27, %cst_30 {dimension_numbers = #tpu.dot_dimension_numbers<[1], [0], [0], [1], [0, 0, 1, 1], [], []>} : vector<512x16xf32>, vector<16x4xf32>, vector<512x4xf32> -> vector<512x4xf32>
    %c0_31 = arith.constant 0 : index
    %c0_32 = arith.constant 0 : index
    %c0_33 = arith.constant 0 : index
    %29 = vector.load %arg10[%c0_31, %c0_32, %c0_33] : memref<4x1x4xf32, #tpu.memory_space<vmem>>, vector<1x1x4xf32>
    %30 = vector.shape_cast %29 : vector<1x1x4xf32> to vector<1x4xf32>
    %31 = vector.broadcast %30 : vector<1x4xf32> to vector<512x4xf32>
    %32 = arith.addf %28, %31 : vector<512x4xf32>
    %33 = arith.mulf %32, %16 : vector<512x4xf32>
    %34 = arith.addf %25, %33 : vector<512x4xf32>
    %c1 = arith.constant 1 : index
    %c0_34 = arith.constant 0 : index
    %c0_35 = arith.constant 0 : index
    %35 = vector.load %arg9[%c1, %c0_34, %c0_35] : memref<4x16x4xf32, #tpu.memory_space<vmem>>, vector<1x16x4xf32>
    %36 = vector.shape_cast %35 : vector<1x16x4xf32> to vector<16x4xf32>
    %cst_36 = arith.constant dense<0.000000e+00> : vector<512x4xf32>
    %37 = tpu.matmul %14, %36, %cst_36 {dimension_numbers = #tpu.dot_dimension_numbers<[1], [0], [0], [1], [0, 0, 1, 1], [], []>} : vector<512x16xf32>, vector<16x4xf32>, vector<512x4xf32> -> vector<512x4xf32>
    %c1_37 = arith.constant 1 : index
    %c0_38 = arith.constant 0 : index
    %c0_39 = arith.constant 0 : index
    %38 = vector.load %arg10[%c1_37, %c0_38, %c0_39] : memref<4x1x4xf32, #tpu.memory_space<vmem>>, vector<1x1x4xf32>
    %39 = vector.shape_cast %38 : vector<1x1x4xf32> to vector<1x4xf32>
    %40 = vector.broadcast %39 : vector<1x4xf32> to vector<512x4xf32>
    %41 = arith.addf %37, %40 : vector<512x4xf32>
    %42 = vector.broadcast %22 : vector<512x1xf32> to vector<512x4xf32>
    %43 = arith.mulf %41, %42 : vector<512x4xf32>
    %44 = arith.addf %34, %43 : vector<512x4xf32>
    %c2 = arith.constant 2 : index
    %c0_40 = arith.constant 0 : index
    %c0_41 = arith.constant 0 : index
    %45 = vector.load %arg9[%c2, %c0_40, %c0_41] : memref<4x16x4xf32, #tpu.memory_space<vmem>>, vector<1x16x4xf32>
    %46 = vector.shape_cast %45 : vector<1x16x4xf32> to vector<16x4xf32>
    %cst_42 = arith.constant dense<0.000000e+00> : vector<512x4xf32>
    %47 = tpu.matmul %14, %46, %cst_42 {dimension_numbers = #tpu.dot_dimension_numbers<[1], [0], [0], [1], [0, 0, 1, 1], [], []>} : vector<512x16xf32>, vector<16x4xf32>, vector<512x4xf32> -> vector<512x4xf32>
    %c2_43 = arith.constant 2 : index
    %c0_44 = arith.constant 0 : index
    %c0_45 = arith.constant 0 : index
    %48 = vector.load %arg10[%c2_43, %c0_44, %c0_45] : memref<4x1x4xf32, #tpu.memory_space<vmem>>, vector<1x1x4xf32>
    %49 = vector.shape_cast %48 : vector<1x1x4xf32> to vector<1x4xf32>
    %50 = vector.broadcast %49 : vector<1x4xf32> to vector<512x4xf32>
    %51 = arith.addf %47, %50 : vector<512x4xf32>
    %52 = vector.broadcast %23 : vector<512x1xf32> to vector<512x4xf32>
    %53 = arith.mulf %51, %52 : vector<512x4xf32>
    %54 = arith.addf %44, %53 : vector<512x4xf32>
    %c3 = arith.constant 3 : index
    %c0_46 = arith.constant 0 : index
    %c0_47 = arith.constant 0 : index
    %55 = vector.load %arg9[%c3, %c0_46, %c0_47] : memref<4x16x4xf32, #tpu.memory_space<vmem>>, vector<1x16x4xf32>
    %56 = vector.shape_cast %55 : vector<1x16x4xf32> to vector<16x4xf32>
    %cst_48 = arith.constant dense<0.000000e+00> : vector<512x4xf32>
    %57 = tpu.matmul %14, %56, %cst_48 {dimension_numbers = #tpu.dot_dimension_numbers<[1], [0], [0], [1], [0, 0, 1, 1], [], []>} : vector<512x16xf32>, vector<16x4xf32>, vector<512x4xf32> -> vector<512x4xf32>
    %c3_49 = arith.constant 3 : index
    %c0_50 = arith.constant 0 : index
    %c0_51 = arith.constant 0 : index
    %58 = vector.load %arg10[%c3_49, %c0_50, %c0_51] : memref<4x1x4xf32, #tpu.memory_space<vmem>>, vector<1x1x4xf32>
    %59 = vector.shape_cast %58 : vector<1x1x4xf32> to vector<1x4xf32>
    %60 = vector.broadcast %59 : vector<1x4xf32> to vector<512x4xf32>
    %61 = arith.addf %57, %60 : vector<512x4xf32>
    %62 = vector.broadcast %24 : vector<512x1xf32> to vector<512x4xf32>
    %63 = arith.mulf %61, %62 : vector<512x4xf32>
    %64 = arith.addf %54, %63 : vector<512x4xf32>
    %c0_52 = arith.constant 0 : index
    %c0_53 = arith.constant 0 : index
    %65 = vector.load %arg14[%c0_52, %c0_53] : memref<512x4xf32, #tpu.memory_space<vmem>>, vector<512x4xf32>
    tpu.vector_store %arg14[%c0_52, %c0_53], %64 {strides = array<i32>} : memref<512x4xf32, #tpu.memory_space<vmem>>, vector<512x4xf32>,
    return
  }
  func.func @transform_0(%arg0: i32) -> (i32, i32) {
    %c0_i32 = arith.constant 0 : i32
    %c0_i32_0 = arith.constant 0 : i32
    return %arg0, %c0_i32 : i32, i32
  }
  func.func @transform_1(%arg0: i32) -> (i32, i32) {
    %c0_i32 = arith.constant 0 : i32
    %c0_i32_0 = arith.constant 0 : i32
    return %arg0, %c0_i32 : i32, i32
  }
  func.func @transform_2(%arg0: i32) -> (i32, i32) {
    %c0_i32 = arith.constant 0 : i32
    %c0_i32_0 = arith.constant 0 : i32
    return %arg0, %c0_i32 : i32, i32
  }
  func.func @transform_3(%arg0: i32) -> (i32, i32) {
    %c0_i32 = arith.constant 0 : i32
    %c0_i32_0 = arith.constant 0 : i32
    return %arg0, %c0_i32 : i32, i32
  }
  func.func @transform_4(%arg0: i32) -> (i32, i32) {
    %c0_i32 = arith.constant 0 : i32
    %c0_i32_0 = arith.constant 0 : i32
    %c0_i32_1 = arith.constant 0 : i32
    return %c0_i32, %c0_i32_0 : i32, i32
  }
  func.func @transform_5(%arg0: i32) -> (i32, i32) {
    %c0_i32 = arith.constant 0 : i32
    %c0_i32_0 = arith.constant 0 : i32
    %c0_i32_1 = arith.constant 0 : i32
    return %c0_i32, %c0_i32_0 : i32, i32
  }
  func.func @transform_6(%arg0: i32) -> (i32, i32) {
    %c0_i32 = arith.constant 0 : i32
    %c0_i32_0 = arith.constant 0 : i32
    %c0_i32_1 = arith.constant 0 : i32
    return %c0_i32, %c0_i32_0 : i32, i32
  }
  func.func @transform_7(%arg0: i32) -> (i32, i32) {
    %c0_i32 = arith.constant 0 : i32
    %c0_i32_0 = arith.constant 0 : i32
    %c0_i32_1 = arith.constant 0 : i32
    return %c0_i32, %c0_i32_0 : i32, i32
  }
  func.func @transform_8(%arg0: i32) -> (i32, i32, i32) {
    %c0_i32 = arith.constant 0 : i32
    %c0_i32_0 = arith.constant 0 : i32
    %c0_i32_1 = arith.constant 0 : i32
    %c0_i32_2 = arith.constant 0 : i32
    return %c0_i32, %c0_i32_0, %c0_i32_1 : i32, i32, i32
  }
  func.func @transform_9(%arg0: i32) -> (i32, i32, i32) {
    %c0_i32 = arith.constant 0 : i32
    %c0_i32_0 = arith.constant 0 : i32
    %c0_i32_1 = arith.constant 0 : i32
    %c0_i32_2 = arith.constant 0 : i32
    return %c0_i32, %c0_i32_0, %c0_i32_1 : i32, i32, i32
  }
  func.func @transform_10(%arg0: i32) -> (i32, i32) {
    %c0_i32 = arith.constant 0 : i32
    %c0_i32_0 = arith.constant 0 : i32
    %c0_i32_1 = arith.constant 0 : i32
    return %c0_i32, %c0_i32_0 : i32, i32
  }
  func.func @transform_11(%arg0: i32) -> (i32, i32) {
    %c0_i32 = arith.constant 0 : i32
    %c0_i32_0 = arith.constant 0 : i32
    %c0_i32_1 = arith.constant 0 : i32
    return %c0_i32, %c0_i32_0 : i32, i32
  }
  func.func @transform_12(%arg0: i32) -> (i32, i32) {
    %c0_i32 = arith.constant 0 : i32
    %c0_i32_0 = arith.constant 0 : i32
    %c0_i32_1 = arith.constant 0 : i32
    return %c0_i32, %c0_i32_0 : i32, i32
  }
  func.func @transform_13(%arg0: i32) -> (i32, i32) {
    %c0_i32 = arith.constant 0 : i32
    %c0_i32_0 = arith.constant 0 : i32
    return %arg0, %c0_i32 : i32, i32
  }
}

</mosaic_0001>

<bundles_post_ra>
// kernel: dff_forward.9
= control target key start
LH: loop header
LB: loop body
LE: loop exit
PB: predicated region body
PF: predicated region fallthrough
CT: control target
= control target key end

     0   :  { %8 = vsyncpa [#allocation3], 0  ;;  %s182_s0 = inlined_call_operand.hbm [shape: f32[8,32], index: 0, kind: input, shape index: {}]   ;;  %s183_s1 = inlined_call_operand.vmem [shape: f32[32,20], index: 1, kind: input, shape index: {}]   ;;  %s184_s2 = inlined_call_operand.hbm [shape: f32[1,20], index: 2, kind: input, shape index: {}]   ;;  %s185_s3 = inlined_call_operand.vmem [shape: f32[8,20], index: 3, kind: output, shape index: {}]  }
   0x1   :  { %s15_s14 = sshll.u32 %s182_s0, 4  ;;  %s16_s14 = int_to_ptr.hbm [resolvable:$true] %s15_s14 }
   0x2   :  { %9 = vsyncpa [#allocation5], 0  ;;  %s139_s15 = smov [#allocation2]   ;;  %s28_s19 = sshll.u32 %s184_s2, 4  ;;  %s29_s19 = int_to_ptr.hbm [resolvable:$true] %s28_s19 }
   0x3   :  { %s17_s16 = sshll.u32 %s139_s15, 4  ;;  %s140_s20 = smov [#allocation4]   ;;  %s18_s16 = int_to_ptr.vmem [resolvable:$true] %s17_s16 }
   0x4   :  { %20 = dma.hbm_to_vmem [thread:$0]  %s16_s14, 128, %s18_s16, [#allocation3]  }
   0x5   :  { %s30_s21 = sshll.u32 %s140_s20, 4  ;;  %s31_s21 = int_to_ptr.vmem [resolvable:$true] %s30_s21 }
   0x6   :  { %33 = dma.hbm_to_vmem [thread:$0]  %s29_s19, 16, %s31_s21, [#allocation5]  }
   0x7   :  { %135 = dma.done.wait [#allocation3], 128  }
   0x8   :  { %136 = vsyncadd [#allocation3], 4294967168 }
   0x9   :  { %137 = dma.done.wait [#allocation5], 16  }
   0xa   :  { %138 = vsyncadd [#allocation5], 4294967280  ;;  %v46_v0 = vld [vmem:[%s183_s1 + $0x18] sm:$0xff]  ;;  %v45_v1 = vld [vmem:[%s183_s1 + $0x10] sm:$0xff]  ;;  %vm51_vm0 = vcmask 261120   ;;  %vm75_vm1 = vcmask 162816  }
   0xb   :  { %67 = vmatpush.msra.mxu0 %v46_v0  ;;  %v44_v2 = vld [vmem:[%s183_s1 + $0x8] sm:$0xff]  ;;  %v43_v3 = vld [vmem:[%s183_s1] sm:$0xff] }
   0xc   :  { %v42_v4 = vld [vmem:[#allocation2] sm:$0xff]  ;;  %v86_v5 = vld [vmem:[#allocation4] ss:$0 sm:$0xff] }
   0xd   :  { %68 = vmatpush.msra.mxu0 %v45_v1 }
   0xf   :  { %69 = vmatpush.msra.mxu0 %v44_v2 }
  0x11   :  { %70 = vmatpush.msra.mxu0 %v43_v3 }
  0x12   :  { %83 = vmatmul.msk.f32.vlgmr.msra.gmra.mxu0 %vm51_vm0, %v42_v4 }
  0x8f   :  { %v72_v6 = vpop.f32.mrf.mxu0 }
  0x90   :  { %v73_v7 = vadd.f32 %v86_v5, %v72_v6 }
  0x92   :  { %76 = vst.msk [vmem:[%s185_s3] sm:$0xff] %vm75_vm1, %v73_v7 }
  0x93   :  { %81 = vsyncpa [#allocation3], 1 }
  0x94   :  { %82 = vsyncpa [#allocation5], 1 }

// kernel: dff_forward.7
= control target key start
LH: loop header
LB: loop body
LE: loop exit
PB: predicated region body
PF: predicated region fallthrough
CT: control target
= control target key end

     0   :  { %s350_s0 = inlined_call_operand.hbm [shape: f32[128,8], index: 0, kind: input, shape index: {}]   ;;  %s351_s1 = inlined_call_operand.vmem [shape: f32[8,1], index: 1, kind: input, shape index: {}]   ;;  %s352_s2 = inlined_call_operand.<no memory space> [shape: f32[1,1], index: 2, kind: input, shape index: {}]   ;;  %s353_s3 = inlined_call_operand.vmem [shape: f32[128,1], index: 3, kind: output, shape index: {}]  }
   0x1   :  { %v8_v0 = vstv %s352_s2 }
   0x2   :  { %9 = vst [vmem:[#allocation2] sm:$0x1] %v8_v0 }
   0x3   :  { %10 = vsyncpa [#allocation4], 0  ;;  %s15_s16 = sshll.u32 %s350_s0, 4  ;;  %s238_s17 = smov [#allocation3]   ;;  %s16_s16 = int_to_ptr.hbm [resolvable:$true] %s15_s16 }
   0x4   :  { %s17_s18 = sshll.u32 %s238_s17, 4  ;;  %s239_s19 = smov 128   ;;  %s18_s18 = int_to_ptr.vmem [resolvable:$true] %s17_s18 }
   0x5   :  { %s240_s20 = smov 8  }
   0x6   :  { %23 = dma.hbm_to_vmem [thread:$0]  %s16_s16, 2048, %s18_s18, [#allocation4], %s239_s19, %s239_s19, %s240_s20  }
   0x7   :  { %236 = dma.done.wait [#allocation4], 2048  }
   0x8   :  { %237 = vsyncadd [#allocation4], 4294965248  ;;  %vm53_vm0 = vcmask 64512   ;;  %v48_v1 = vld [vmem:[%s351_s1] sm:$0xff]  ;;  %v41_v6 = vld [vmem:[#allocation3 + $0x48] sm:$0xff]  ;;  %vm167_vm1 = vcmask 7168  }
   0x9   :  { %v40_v2 = vld [vmem:[#allocation3 + $0x40] sm:$0xff]  ;;  %206 = vmatpush.msra.mxu2 %v48_v1  ;;  %207 = vmatpush.msra.mxu3 %v48_v1  ;;  %v45_v7 = vld [vmem:[#allocation3 + $0x68] sm:$0xff]  ;;  %v42_v10 = vld [vmem:[#allocation3 + $0x50] sm:$0xff] }
   0xa   :  { %v44_v3 = vld [vmem:[#allocation3 + $0x60] sm:$0xff]  ;;  %197 = vmatmul.msk.f32.vlgmr.msra.gmra.mxu2 %vm53_vm0, %v40_v2  ;;  %117 = vmatpush.msra.mxu0 %v48_v1  ;;  %v33_v8 = vld [vmem:[#allocation3 + $0x8] sm:$0xff]  ;;  %v46_v11 = vld [vmem:[#allocation3 + $0x70] sm:$0xff] }
   0xb   :  { %v32_v4 = vld [vmem:[#allocation3] sm:$0xff]  ;;  %201 = vmatmul.msk.f32.vlgmr.msra.gmra.mxu3 %vm53_vm0, %v44_v3  ;;  %205 = vmatpush.msra.mxu1 %v48_v1  ;;  %v37_v9 = vld [vmem:[#allocation3 + $0x28] sm:$0xff]  ;;  %v34_v12 = vld [vmem:[#allocation3 + $0x10] sm:$0xff] }
   0xc   :  { %v36_v5 = vld [vmem:[#allocation3 + $0x20] sm:$0xff]  ;;  %189 = vmatmul.msk.f32.vlgmr.msra.gmra.mxu0 %vm53_vm0, %v32_v4  ;;  %v38_v13 = vld [vmem:[#allocation3 + $0x30] sm:$0xff]  ;;  %v43_v14 = vld [vmem:[#allocation3 + $0x58] sm:$0xff] }
   0xd   :  { %193 = vmatmul.msk.f32.vlgmr.msra.gmra.mxu1 %vm53_vm0, %v36_v5  ;;  %v47_v15 = vld [vmem:[#allocation3 + $0x78] sm:$0xff] }
   0xe   :  { %v35_v16 = vld [vmem:[#allocation3 + $0x18] sm:$0xff] }
   0xf   :  { %v39_v17 = vld [vmem:[#allocation3 + $0x38] sm:$0xff] }
  0x10   :  { %v211_v18 = vld [vmem:[#allocation2] ss:$0 sm:$0xff] }
  0x12   :  { %198 = vmatmul.msk.f32.gmra.mxu2 %vm53_vm0, %v41_v6 }
  0x13   :  { %202 = vmatmul.msk.f32.gmra.mxu3 %vm53_vm0, %v45_v7 }
  0x14   :  { %190 = vmatmul.msk.f32.gmra.mxu0 %vm53_vm0, %v33_v8 }
  0x15   :  { %194 = vmatmul.msk.f32.gmra.mxu1 %vm53_vm0, %v37_v9 }
  0x1a   :  { %199 = vmatmul.msk.f32.gmra.mxu2 %vm53_vm0, %v42_v10 }
  0x1b   :  { %203 = vmatmul.msk.f32.gmra.mxu3 %vm53_vm0, %v46_v11 }
  0x1c   :  { %191 = vmatmul.msk.f32.gmra.mxu0 %vm53_vm0, %v34_v12 }
  0x1d   :  { %195 = vmatmul.msk.f32.gmra.mxu1 %vm53_vm0, %v38_v13 }
  0x22   :  { %200 = vmatmul.msk.f32.gmra.mxu2 %vm53_vm0, %v43_v14 }
  0x23   :  { %204 = vmatmul.msk.f32.gmra.mxu3 %vm53_vm0, %v47_v15 }
  0x24   :  { %192 = vmatmul.msk.f32.gmra.mxu0 %vm53_vm0, %v35_v16 }
  0x25   :  { %196 = vmatmul.msk.f32.gmra.mxu1 %vm53_vm0, %v39_v17 }
  0x89   :  { %v119_v19 = vpop.f32.mrf.mxu0 }
  0x8a   :  { %v131_v20 = vpop.f32.mrf.mxu1  ;;  %v120_v21 = vadd.f32 %v211_v18, %v119_v19 }
  0x8b   :  { %v132_v22 = vadd.f32 %v211_v18, %v131_v20 }
  0x8c   :  { %168 = vst.msk [vmem:[%s353_s3] sm:$0xff] %vm167_vm1, %v120_v21 }
  0x8d   :  { %172 = vst.msk [vmem:[%s353_s3 + $0x20] sm:$0xff] %vm167_vm1, %v132_v22  ;;  %v143_v23 = vpop.f32.mrf.mxu2 }
  0x8e   :  { %v155_v24 = vpop.f32.mrf.mxu3  ;;  %v144_v25 = vadd.f32 %v211_v18, %v143_v23 }
  0x8f   :  { %v156_v26 = vadd.f32 %v211_v18, %v155_v24 }
  0x90   :  { %176 = vst.msk [vmem:[%s353_s3 + $0x40] sm:$0xff] %vm167_vm1, %v144_v25 }
  0x91   :  { %180 = vst.msk [vmem:[%s353_s3 + $0x60] sm:$0xff] %vm167_vm1, %v156_v26  ;;  %v122_v27 = vpop.f32.mrf.mxu0 }
  0x92   :  { %v134_v28 = vpop.f32.mrf.mxu1  ;;  %v123_v29 = vadd.f32 %v211_v18, %v122_v27 }
  0x93   :  { %v135_v30 = vadd.f32 %v211_v18, %v134_v28 }
  0x94   :  { %169 = vst.msk [vmem:[%s353_s3 + $0x8] sm:$0xff] %vm167_vm1, %v123_v29 }
  0x95   :  { %173 = vst.msk [vmem:[%s353_s3 + $0x28] sm:$0xff] %vm167_vm1, %v135_v30  ;;  %v146_v31 = vpop.f32.mrf.mxu2 }
  0x96   :  { %v158_v32 = vpop.f32.mrf.mxu3  ;;  %v147_v33 = vadd.f32 %v211_v18, %v146_v31 }
  0x97   :  { %v159_v34 = vadd.f32 %v211_v18, %v158_v32 }
  0x98   :  { %177 = vst.msk [vmem:[%s353_s3 + $0x48] sm:$0xff] %vm167_vm1, %v147_v33 }
  0x99   :  { %181 = vst.msk [vmem:[%s353_s3 + $0x68] sm:$0xff] %vm167_vm1, %v159_v34  ;;  %v125_v35 = vpop.f32.mrf.mxu0 }
  0x9a   :  { %v137_v36 = vpop.f32.mrf.mxu1  ;;  %v126_v37 = vadd.f32 %v211_v18, %v125_v35 }
  0x9b   :  { %v138_v38 = vadd.f32 %v211_v18, %v137_v36 }
  0x9c   :  { %170 = vst.msk [vmem:[%s353_s3 + $0x10] sm:$0xff] %vm167_vm1, %v126_v37 }
  0x9d   :  { %174 = vst.msk [vmem:[%s353_s3 + $0x30] sm:$0xff] %vm167_vm1, %v138_v38  ;;  %v149_v39 = vpop.f32.mrf.mxu2 }
  0x9e   :  { %v161_v40 = vpop.f32.mrf.mxu3  ;;  %v150_v41 = vadd.f32 %v211_v18, %v149_v39 }
  0x9f   :  { %v162_v42 = vadd.f32 %v211_v18, %v161_v40 }
  0xa0   :  { %178 = vst.msk [vmem:[%s353_s3 + $0x50] sm:$0xff] %vm167_vm1, %v150_v41 }
  0xa1   :  { %182 = vst.msk [vmem:[%s353_s3 + $0x70] sm:$0xff] %vm167_vm1, %v162_v42  ;;  %v128_v43 = vpop.f32.mrf.mxu0 }
  0xa2   :  { %v140_v44 = vpop.f32.mrf.mxu1  ;;  %v129_v45 = vadd.f32 %v211_v18, %v128_v43 }
  0xa3   :  { %v141_v46 = vadd.f32 %v211_v18, %v140_v44 }
  0xa4   :  { %171 = vst.msk [vmem:[%s353_s3 + $0x18] sm:$0xff] %vm167_vm1, %v129_v45 }
  0xa5   :  { %175 = vst.msk [vmem:[%s353_s3 + $0x38] sm:$0xff] %vm167_vm1, %v141_v46  ;;  %v152_v47 = vpop.f32.mrf.mxu2 }
  0xa6   :  { %v164_v48 = vpop.f32.mrf.mxu3  ;;  %v153_v49 = vadd.f32 %v211_v18, %v152_v47 }
  0xa7   :  { %v165_v50 = vadd.f32 %v211_v18, %v164_v48 }
  0xa8   :  { %179 = vst.msk [vmem:[%s353_s3 + $0x58] sm:$0xff] %vm167_vm1, %v153_v49 }
  0xa9   :  { %183 = vst.msk [vmem:[%s353_s3 + $0x78] sm:$0xff] %vm167_vm1, %v165_v50 }
  0xaa   :  { %188 = vsyncpa [#allocation4], 1 }

// kernel: dff_forward.12
= control target key start
LH: loop header
LB: loop body
LE: loop exit
PB: predicated region body
PF: predicated region fallthrough
CT: control target
= control target key end

     0   :  { %7 = vsyncpa [#allocation3], 0  ;;  %s3125_s9 = smov 0   ;;  %s3127_s10 = smov 0   ;;  %s3591_s0 = inlined_call_operand.vmem [shape: f32[2,4,4,20], index: 0, kind: input, shape index: {}]   ;;  %s3592_s1 = inlined_call_operand.hbm [shape: f32[9,20,1280], index: 1, kind: input, shape index: {}]   ;;  %s3593_s2 = inlined_call_operand.vmem [shape: f32[2,2,2,1280], index: 2, kind: output, shape index: {}]  }
   0x1   :  { %s3129_s11 = smov 0   ;;  %s3131_s12 = smov 0  }
   0x2   :  { %s3133_s13 = smov 0  }
   0x3 LB: > { %s2780_s14 = sadd.s32 4294967295, %s3105_s13   ;;  %s22_s15 = sadd.s32 1, %s3097_s11  ;;  %s3105_s13 = sphi %s3133_s13, %s13_s13   ;;  %s3101_s12 = sphi %s3131_s12, %s3599_s12   ;;  %s3097_s11 = sphi %s3129_s11, %s3598_s11   ;;  %s3093_s10 = sphi %s3127_s10, %s3597_s10   ;;  %s3089_s9 = sphi %s3125_s9, %s3596_s9  }
   0x4   : > { %p23_p0 = scmp.ge.s32.totalorder %s22_s15, 2  ;;  %s25_s16 = sadd.s32 1, %s3101_s12 }
   0x5   : > { %p2782_p1 = scmp.ge.s32.totalorder %s3105_s13, 1  ;;  %p105_p2 = scmp.lt.s32.totalorder %s3105_s13, 5 }
   0x6   : > { %s3601_s15 = smov (%p23_p0, %s22_s15), 0  ;;  %s3603_s16 = smov (!%p23_p0, %s25_s16), %s3101_s12 }
   0x7   : > { %p3158_p3 = pnand %p2782_p1, %p105_p2  ;;  %p27_p4 = scmp.ge.s32.totalorder %s3603_s16, 2 }
   0x8   : > { %p3162_p5 = scmp.eq.s32.totalorder %s2780_s14, 0  ;;  %s116_s21 = sshll.u32 %s3592_s1, 4  ;;  %s117_s21 = int_to_ptr.hbm [resolvable:$true] %s116_s21 }
   0x9   : > { %p2984_p6 = pneg %p3158_p3  ;;  %s3605_s16 = smov (%p27_p4, %s3603_s16), 0 }
   0xa   : > { %s3107_s22 = smov [#allocation2]   ;;  %s3108_s24 = smov 1280  }
   0xb   : > { %s118_s23 = sshll.u32 %s3107_s22, 4  ;;  %p2985_p7 = pnand %p3162_p5, %p2984_p6  ;;  %s119_s23 = int_to_ptr.vmem [resolvable:$true] %s118_s23 }
   0xc   : > { %s3109_s25 = smov 80   ;;  %142 = sbr.rel (%p3158_p3) target bundleno = 336 (0x150), region = 28 }
   0xd   : > { %2987 = dma.hbm_to_vmem [thread:$0]  (!%p2985_p7), %s117_s21, 34560, %s119_s23, [#allocation3], %s3108_s24, %s3108_s24, %s3109_s25  }
  0x11   : > { %3084 = dma.done.wait (%p3162_p5), [#allocation3], 34560  }
  0x12   : > { %3086 = vsyncadd (%p3162_p5), [#allocation3], 4294932736  ;;  %p169_p8 = scmp.lt.s32.totalorder %s3093_s10, 1  ;;  %vm252_vm0 = vcmask 1043456   ;;  %s2790_s30 = sshll.u32 %s3089_s9, 2  ;;  %v227_v4 = vld [vmem:[#allocation2 + $0x140] sm:$0xff] }
  0x13   : > { %v237_v0 = vld [vmem:[#allocation2 + $0x190] sm:$0xf]  ;;  %v238_v1 = vld [vmem:[#allocation2 + $0x198] sm:$0xf]  ;;  %v239_v2 = vld [vmem:[#allocation2 + $0x1a0] sm:$0xf] }
  0x14   : > { %s3607_s10 = smov (!%p169_p8, %s3093_s10), 1  ;;  %2791 = vmatpush.msk.msra.mxu0 %vm252_vm0, %v237_v0  ;;  %2793 = vmatpush.msk.msra.mxu1 %vm252_vm0, %v238_v1  ;;  %v240_v3 = vld [vmem:[#allocation2 + $0x1a8] sm:$0xf]  ;;  %v229_v6 = vld [vmem:[#allocation2 + $0x150] sm:$0xff]  ;;  %v230_v7 = vld [vmem:[#allocation2 + $0x158] sm:$0xff]  ;;  %vm249_vm1 = vcmask 162816  }
  0x15   : > { %s2977_s26 = sshll.u32 %s3607_s10, 4  ;;  %v228_v5 = vld [vmem:[#allocation2 + $0x148] sm:$0xff]  ;;  %2795 = vmatpush.msk.msra.mxu2 %vm252_vm0, %v239_v2  ;;  %2797 = vmatpush.msk.msra.mxu3 %vm252_vm0, %v240_v3  ;;  %v217_v8 = vld [vmem:[#allocation2 + $0xf0] sm:$0xff]  ;;  %v218_v9 = vld [vmem:[#allocation2 + $0xf8] sm:$0xff]  ;;  %p176_p9 = scmp.lt.s32.totalorder %s3089_s9, 1  ;;  %vm2658_vm2 = vcmask 1041408  }
  0x16   : > { %s173_s29 = scalar_lea.vmem %s3591_s0, %s2977_s26  ;;  %297 = vmatpush.msra.mxu0 %v227_v4  ;;  %317 = vmatpush.msra.mxu1 %v228_v5  ;;  %v219_v10 = vld [vmem:[#allocation2 + $0x100] sm:$0xff]  ;;  %v220_v11 = vld [vmem:[#allocation2 + $0x108] sm:$0xff]  ;;  %v242_v14 = vld [vmem:[#allocation2 + $0x1b8] sm:$0xf]  ;;  %s2979_s5 = smul.u32 20, %s3607_s10  ;;  %vm2660_vm3 = vcmask 1045508  }
  0x17   : > { %s3192_s3 = scalar_lea.vmem %s173_s29, %s2790_s30  ;;  %337 = vmatpush.msra.mxu2 %v229_v6  ;;  %357 = vmatpush.msra.mxu3 %v230_v7  ;;  %v243_v15 = vld [vmem:[#allocation2 + $0x1c0] sm:$0xf]  ;;  %v244_v16 = vld [vmem:[#allocation2 + $0x1c8] sm:$0xf]  ;;  %v241_v17 = vld [vmem:[#allocation2 + $0x1b0] sm:$0xf] }
  0x18   : > { %v3197_v12 = vld [vmem:[%s3192_s3] sm:$0xf]  ;;  %298 = vmatpush.msra.mxu0 %v217_v8  ;;  %318 = vmatpush.msra.mxu1 %v218_v9  ;;  %v232_v18 = vld [vmem:[#allocation2 + $0x168] sm:$0xff]  ;;  %v233_v19 = vld [vmem:[#allocation2 + $0x170] sm:$0xff]  ;;  %s3609_s9 = smov (!%p176_p9, %s3089_s9), 1 }
  0x19   : > { %v248_v13 = vrot.slane %v3197_v12, 1  ;;  %338 = vmatpush.msra.mxu2 %v219_v10  ;;  %358 = vmatpush.msra.mxu3 %v220_v11  ;;  %v234_v20 = vld [vmem:[#allocation2 + $0x178] sm:$0xff]  ;;  %v231_v21 = vld [vmem:[#allocation2 + $0x160] sm:$0xff]  ;;  %v221_v24 = vld [vmem:[#allocation2 + $0x110] sm:$0xff]  ;;  %v3251_v10 = vrot.slane %v3197_v12, 2  ;;  %s2978_s4 = smul.u32 10, %s3609_s9 }
  0x1a   : > { %2801 = vmatpush.msk.msrb.mxu1 %vm252_vm0, %v242_v14  ;;  %2799 = vmatpush.msk.msrb.mxu0 %vm252_vm0, %v241_v17  ;;  %v222_v22 = vld [vmem:[#allocation2 + $0x118] sm:$0xff]  ;;  %v223_v23 = vld [vmem:[#allocation2 + $0x120] sm:$0xff]  ;;  %v224_v25 = vld [vmem:[#allocation2 + $0x128] sm:$0xff] }
  0x1b   : > { %2792 = vmatmul.msk.f32.vlgmr.msra.gmra.mxu0 %vm249_vm1, %v248_v13  ;;  %2794 = vmatmul.msk.f32.vlgmr.msra.gmra.mxu1 %vm249_vm1, %v248_v13  ;;  %v246_v26 = vld [vmem:[#allocation2 + $0x1d8] sm:$0xf]  ;;  %v206_v27 = vld [vmem:[#allocation2 + $0xa0] sm:$0xf]  ;;  %v207_v28 = vld [vmem:[#allocation2 + $0xa8] sm:$0xf]  ;;  %s180_s6 = sadd.s32 %s2979_s5, %s2978_s4 }
  0x1c   : > { %2796 = vmatmul.msk.f32.vlgmr.msra.gmra.mxu2 %vm249_vm1, %v248_v13  ;;  %2798 = vmatmul.msk.f32.vlgmr.msra.gmra.mxu3 %vm249_vm1, %v248_v13  ;;  %v245_v29 = vld [vmem:[#allocation2 + $0x1d0] sm:$0xf]  ;;  %v236_v30 = vld [vmem:[#allocation2 + $0x188] sm:$0xff]  ;;  %v197_v32 = vld [vmem:[#allocation2 + $0x58] sm:$0xff]  ;;  %s2789_s7 = sshll.u32 %s180_s6, 1 }
  0x1d   : > { %2803 = vmatpush.msk.msrb.mxu2 %vm252_vm0, %v243_v15  ;;  %2805 = vmatpush.msk.msrb.mxu3 %vm252_vm0, %v244_v16  ;;  %v196_v31 = vld [vmem:[#allocation2 + $0x50] sm:$0xff]  ;;  %v235_v33 = vld [vmem:[#allocation2 + $0x180] sm:$0xff]  ;;  %v226_v34 = vld [vmem:[#allocation2 + $0x138] sm:$0xff]  ;;  %s3562_s10 = scalar_lea.vmem %s3593_s2, %s2789_s7 }
  0x1e   : > { %397 = vmatpush.msrb.mxu1 %v232_v18  ;;  %377 = vmatpush.msrb.mxu0 %v231_v21  ;;  %v186_v35 = vld [vmem:[#allocation2] sm:$0xff]  ;;  %v225_v36 = vld [vmem:[#allocation2 + $0x130] sm:$0xff]  ;;  %v187_v37 = vld [vmem:[#allocation2 + $0x8] sm:$0xff] }
  0x1f   : > { %417 = vmatpush.msrb.mxu2 %v233_v19  ;;  %437 = vmatpush.msrb.mxu3 %v234_v20  ;;  %v209_v38 = vld [vmem:[#allocation2 + $0xb8] sm:$0xf]  ;;  %v210_v39 = vld [vmem:[#allocation2 + $0xc0] sm:$0xf]  ;;  %v211_v40 = vld [vmem:[#allocation2 + $0xc8] sm:$0xf] }
  0x20   : > { %398 = vmatpush.msrb.mxu1 %v222_v22  ;;  %378 = vmatpush.msrb.mxu0 %v221_v24  ;;  %v208_v41 = vld [vmem:[#allocation2 + $0xb0] sm:$0xf]  ;;  %v199_v42 = vld [vmem:[#allocation2 + $0x68] sm:$0xff]  ;;  %v201_v44 = vld [vmem:[#allocation2 + $0x78] sm:$0xff] }
  0x21   : > { %418 = vmatpush.msrb.mxu2 %v223_v23  ;;  %438 = vmatpush.msrb.mxu3 %v224_v25  ;;  %v200_v43 = vld [vmem:[#allocation2 + $0x70] sm:$0xff]  ;;  %v198_v45 = vld [vmem:[#allocation2 + $0x60] sm:$0xff]  ;;  %v189_v46 = vld [vmem:[#allocation2 + $0x18] sm:$0xff] }
  0x22   : > { %2809 = vmatpush.msk.msra.mxu1 %vm252_vm0, %v246_v26  ;;  %2807 = vmatpush.msk.msra.mxu0 %vm252_vm0, %v245_v29  ;;  %v190_v47 = vld [vmem:[#allocation2 + $0x20] sm:$0xff]  ;;  %v188_v48 = vld [vmem:[#allocation2 + $0x10] sm:$0xff]  ;;  %v191_v49 = vld [vmem:[#allocation2 + $0x28] sm:$0xff] }
  0x23   : > { %2800 = vmatmul.msk.f32.vlgmr.msrb.gmra.mxu0 %vm249_vm1, %v248_v13  ;;  %2802 = vmatmul.msk.f32.vlgmr.msrb.gmra.mxu1 %vm249_vm1, %v248_v13  ;;  %v213_v50 = vld [vmem:[#allocation2 + $0xd8] sm:$0xf]  ;;  %v214_v51 = vld [vmem:[#allocation2 + $0xe0] sm:$0xf]  ;;  %v215_v52 = vld [vmem:[#allocation2 + $0xe8] sm:$0xf] }
  0x24   : > { %2804 = vmatmul.msk.f32.vlgmr.msrb.gmra.mxu2 %vm249_vm1, %v248_v13  ;;  %2806 = vmatmul.msk.f32.vlgmr.msrb.gmra.mxu3 %vm249_vm1, %v248_v13  ;;  %v212_v53 = vld [vmem:[#allocation2 + $0xd0] sm:$0xf]  ;;  %v203_v54 = vld [vmem:[#allocation2 + $0x88] sm:$0xff]  ;;  %v205_v56 = vld [vmem:[#allocation2 + $0x98] sm:$0xff] }
  0x25   : > { %2811 = vmatpush.msk.msra.mxu2 %vm252_vm0, %v206_v27  ;;  %2813 = vmatpush.msk.msra.mxu3 %vm252_vm0, %v207_v28  ;;  %v204_v55 = vld [vmem:[#allocation2 + $0x90] sm:$0xff]  ;;  %v202_v57 = vld [vmem:[#allocation2 + $0x80] sm:$0xff]  ;;  %v193_v58 = vld [vmem:[#allocation2 + $0x38] sm:$0xff] }
  0x26   : > { %477 = vmatpush.msra.mxu1 %v236_v30  ;;  %457 = vmatpush.msra.mxu0 %v235_v33  ;;  %v194_v59 = vld [vmem:[#allocation2 + $0x40] sm:$0xff]  ;;  %v192_v60 = vld [vmem:[#allocation2 + $0x30] sm:$0xff]  ;;  %v195_v61 = vld [vmem:[#allocation2 + $0x48] sm:$0xff] }
  0x27   : > { %529 = vmatpush.msra.mxu2 %v196_v31  ;;  %549 = vmatpush.msra.mxu3 %v197_v32  ;;  %v737_v62 = vld [vmem:[#allocation2 + $0x288] sm:$0xf]  ;;  %v738_v63 = vld [vmem:[#allocation2 + $0x290] sm:$0xf]  ;;  %v739_v0 = vld [vmem:[#allocation2 + $0x298] sm:$0xf] }
  0x28   : > { %478 = vmatpush.msra.mxu1 %v226_v34  ;;  %458 = vmatpush.msra.mxu0 %v225_v36  ;;  %v736_v1 = vld [vmem:[#allocation2 + $0x280] sm:$0xf]  ;;  %v727_v2 = vld [vmem:[#allocation2 + $0x238] sm:$0xff]  ;;  %v729_v4 = vld [vmem:[#allocation2 + $0x248] sm:$0xff] }
  0x29   : > { %530 = vmatpush.msra.mxu2 %v186_v35  ;;  %550 = vmatpush.msra.mxu3 %v187_v37  ;;  %v728_v3 = vld [vmem:[#allocation2 + $0x240] sm:$0xff]  ;;  %v726_v5 = vld [vmem:[#allocation2 + $0x230] sm:$0xff]  ;;  %v717_v6 = vld [vmem:[#allocation2 + $0x1e8] sm:$0xff] }
  0x2a   : > { %2817 = vmatpush.msk.msrb.mxu1 %vm252_vm0, %v209_v38  ;;  %2815 = vmatpush.msk.msrb.mxu0 %vm252_vm0, %v208_v41  ;;  %v718_v7 = vld [vmem:[#allocation2 + $0x1f0] sm:$0xff]  ;;  %v716_v8 = vld [vmem:[#allocation2 + $0x1e0] sm:$0xff]  ;;  %v719_v9 = vld [vmem:[#allocation2 + $0x1f8] sm:$0xff] }
  0x2b   : > { %2808 = vmatmul.msk.f32.vlgmr.msra.gmra.mxu0 %vm249_vm1, %v248_v13  ;;  %2810 = vmatmul.msk.f32.vlgmr.msra.gmra.mxu1 %vm249_vm1, %v248_v13  ;;  %v741_v11 = vld [vmem:[#allocation2 + $0x2a8] sm:$0xf]  ;;  %v742_v13 = vld [vmem:[#allocation2 + $0x2b0] sm:$0xf]  ;;  %v743_v14 = vld [vmem:[#allocation2 + $0x2b8] sm:$0xf] }
  0x2c   : > { %2812 = vmatmul.msk.f32.vlgmr.msra.gmra.mxu2 %vm249_vm1, %v3197_v12  ;;  %2814 = vmatmul.msk.f32.vlgmr.msra.gmra.mxu3 %vm249_vm1, %v3197_v12  ;;  %v740_v15 = vld [vmem:[#allocation2 + $0x2a0] sm:$0xf]  ;;  %v733_v17 = vld [vmem:[#allocation2 + $0x268] sm:$0xff]  ;;  %v730_v18 = vld [vmem:[#allocation2 + $0x250] sm:$0xff] }
  0x2d   : > { %2819 = vmatpush.msk.msrb.mxu2 %vm252_vm0, %v210_v39  ;;  %2821 = vmatpush.msk.msrb.mxu3 %vm252_vm0, %v211_v40  ;;  %v732_v16 = vld [vmem:[#allocation2 + $0x260] sm:$0xff]  ;;  %v721_v19 = vld [vmem:[#allocation2 + $0x208] sm:$0xff]  ;;  %v722_v20 = vld [vmem:[#allocation2 + $0x210] sm:$0xff] }
  0x2e   : > { %589 = vmatpush.msrb.mxu1 %v199_v42  ;;  %569 = vmatpush.msrb.mxu0 %v198_v45  ;;  %v720_v21 = vld [vmem:[#allocation2 + $0x200] sm:$0xff]  ;;  %v723_v22 = vld [vmem:[#allocation2 + $0x218] sm:$0xff]  ;;  %v745_v23 = vld [vmem:[#allocation2 + $0x2c8] sm:$0xf] }
  0x2f   : > { %609 = vmatpush.msrb.mxu2 %v200_v43  ;;  %629 = vmatpush.msrb.mxu3 %v201_v44  ;;  %v1014_v24 = vld [vmem:[#allocation2 + $0x370] sm:$0xf]  ;;  %v1015_v25 = vld [vmem:[#allocation2 + $0x378] sm:$0xf]  ;;  %v744_v26 = vld [vmem:[#allocation2 + $0x2c0] sm:$0xf] }
  0x30   : > { %590 = vmatpush.msrb.mxu1 %v189_v46  ;;  %570 = vmatpush.msrb.mxu0 %v188_v48  ;;  %v735_v27 = vld [vmem:[#allocation2 + $0x278] sm:$0xff]  ;;  %v1004_v28 = vld [vmem:[#allocation2 + $0x320] sm:$0xff]  ;;  %v1005_v29 = vld [vmem:[#allocation2 + $0x328] sm:$0xff] }
  0x31   : > { %610 = vmatpush.msrb.mxu2 %v190_v47  ;;  %630 = vmatpush.msrb.mxu3 %v191_v49  ;;  %v734_v30 = vld [vmem:[#allocation2 + $0x270] sm:$0xff]  ;;  %v725_v31 = vld [vmem:[#allocation2 + $0x228] sm:$0xff]  ;;  %v724_v33 = vld [vmem:[#allocation2 + $0x220] sm:$0xff] }
  0x32   : > { %2825 = vmatpush.msk.msra.mxu1 %vm252_vm0, %v213_v50  ;;  %2823 = vmatpush.msk.msra.mxu0 %vm252_vm0, %v212_v53  ;;  %v994_v32 = vld [vmem:[#allocation2 + $0x2d0] sm:$0xff]  ;;  %v995_v34 = vld [vmem:[#allocation2 + $0x2d8] sm:$0xff]  ;;  %v3278_v35 = vld [vmem:[%s3192_s3 + $0x4] sm:$0xf] }
  0x33   : > { %2816 = vmatmul.msk.f32.vlgmr.msrb.gmra.mxu0 %vm249_vm1, %v3197_v12  ;;  %2818 = vmatmul.msk.f32.vlgmr.msrb.gmra.mxu1 %vm249_vm1, %v3197_v12  ;;  %v1017_v36 = vld [vmem:[#allocation2 + $0x388] sm:$0xf]  ;;  %v1018_v37 = vld [vmem:[#allocation2 + $0x390] sm:$0xf]  ;;  %v1019_v38 = vld [vmem:[#allocation2 + $0x398] sm:$0xf] }
  0x34   : > { %2820 = vmatmul.msk.f32.vlgmr.msrb.gmra.mxu2 %vm249_vm1, %v3197_v12  ;;  %2822 = vmatmul.msk.f32.vlgmr.msrb.gmra.mxu3 %vm249_vm1, %v3197_v12  ;;  %v1016_v39 = vld [vmem:[#allocation2 + $0x380] sm:$0xf]  ;;  %v1007_v40 = vld [vmem:[#allocation2 + $0x338] sm:$0xff]  ;;  %v1009_v42 = vld [vmem:[#allocation2 + $0x348] sm:$0xff] }
  0x35   : > { %2827 = vmatpush.msk.msra.mxu2 %vm252_vm0, %v214_v51  ;;  %2829 = vmatpush.msk.msra.mxu3 %vm252_vm0, %v215_v52  ;;  %v1008_v41 = vld [vmem:[#allocation2 + $0x340] sm:$0xff]  ;;  %v1006_v43 = vld [vmem:[#allocation2 + $0x330] sm:$0xff]  ;;  %v997_v44 = vld [vmem:[#allocation2 + $0x2e8] sm:$0xff] }
  0x36   : > { %669 = vmatpush.msra.mxu1 %v203_v54  ;;  %649 = vmatpush.msra.mxu0 %v202_v57  ;;  %v998_v45 = vld [vmem:[#allocation2 + $0x2f0] sm:$0xff]  ;;  %v996_v46 = vld [vmem:[#allocation2 + $0x2e0] sm:$0xff]  ;;  %v999_v47 = vld [vmem:[#allocation2 + $0x2f8] sm:$0xff] }
  0x37   : > { %689 = vmatpush.msra.mxu2 %v204_v55  ;;  %709 = vmatpush.msra.mxu3 %v205_v56  ;;  %v1021_v48 = vld [vmem:[#allocation2 + $0x3a8] sm:$0xf]  ;;  %v1022_v49 = vld [vmem:[#allocation2 + $0x3b0] sm:$0xf]  ;;  %v1023_v50 = vld [vmem:[#allocation2 + $0x3b8] sm:$0xf] }
  0x38   : > { %670 = vmatpush.msra.mxu1 %v193_v58  ;;  %650 = vmatpush.msra.mxu0 %v192_v60  ;;  %v1020_v51 = vld [vmem:[#allocation2 + $0x3a0] sm:$0xf]  ;;  %v1011_v52 = vld [vmem:[#allocation2 + $0x358] sm:$0xff]  ;;  %v1013_v54 = vld [vmem:[#allocation2 + $0x368] sm:$0xff] }
  0x39   : > { %690 = vmatpush.msra.mxu2 %v194_v59  ;;  %710 = vmatpush.msra.mxu3 %v195_v61  ;;  %v1012_v53 = vld [vmem:[#allocation2 + $0x360] sm:$0xff]  ;;  %v1010_v55 = vld [vmem:[#allocation2 + $0x350] sm:$0xff]  ;;  %v1001_v56 = vld [vmem:[#allocation2 + $0x308] sm:$0xff] }
  0x3a   : > { %2833 = vmatpush.msk.msrb.mxu1 %vm252_vm0, %v737_v62  ;;  %2831 = vmatpush.msk.msrb.mxu0 %vm252_vm0, %v736_v1  ;;  %v1002_v57 = vld [vmem:[#allocation2 + $0x310] sm:$0xff]  ;;  %v1000_v58 = vld [vmem:[#allocation2 + $0x300] sm:$0xff]  ;;  %v1003_v59 = vld [vmem:[#allocation2 + $0x318] sm:$0xff] }
  0x3b   : > { %2824 = vmatmul.msk.f32.vlgmr.msra.gmra.mxu0 %vm249_vm1, %v3197_v12  ;;  %2826 = vmatmul.msk.f32.vlgmr.msra.gmra.mxu1 %vm249_vm1, %v3197_v12  ;;  %v1289_v60 = vld [vmem:[#allocation2 + $0x468] sm:$0xf]  ;;  %v1290_v61 = vld [vmem:[#allocation2 + $0x470] sm:$0xf]  ;;  %v1291_v62 = vld [vmem:[#allocation2 + $0x478] sm:$0xf] }
  0x3c   : > { %2828 = vmatmul.msk.f32.vlgmr.msra.gmra.mxu2 %vm249_vm1, %v3197_v12  ;;  %2830 = vmatmul.msk.f32.vlgmr.msra.gmra.mxu3 %vm249_vm1, %v3197_v12  ;;  %v731_v12 = vld [vmem:[#allocation2 + $0x258] sm:$0xff]  ;;  %v1280_v1 = vld [vmem:[#allocation2 + $0x420] sm:$0xff] }
  0x3d   : > { %2835 = vmatpush.msk.msrb.mxu2 %vm252_vm0, %v738_v63  ;;  %2837 = vmatpush.msk.msrb.mxu3 %vm252_vm0, %v739_v0  ;;  %v1288_v63 = vld [vmem:[#allocation2 + $0x460] sm:$0xf]  ;;  %v1279_v0 = vld [vmem:[#allocation2 + $0x418] sm:$0xff] }
  0x3e   : > { %813 = vmatpush.msrb.mxu1 %v727_v2  ;;  %793 = vmatpush.msrb.mxu0 %v726_v5  ;;  %v1281_v2 = vld [vmem:[#allocation2 + $0x428] sm:$0xff]  ;;  %v1270_v5 = vld [vmem:[#allocation2 + $0x3d0] sm:$0xff] }
  0x3f   : > { %833 = vmatpush.msrb.mxu2 %v728_v3  ;;  %853 = vmatpush.msrb.mxu3 %v729_v4  ;;  %v1278_v3 = vld [vmem:[#allocation2 + $0x410] sm:$0xff]  ;;  %v1269_v4 = vld [vmem:[#allocation2 + $0x3c8] sm:$0xff] }
  0x40   : > { %814 = vmatpush.msrb.mxu1 %v717_v6  ;;  %794 = vmatpush.msrb.mxu0 %v716_v8  ;;  %v1268_v6 = vld [vmem:[#allocation2 + $0x3c0] sm:$0xff]  ;;  %v3317_v8 = vrot.slane %v3278_v35, 1 }
  0x41   : > { %834 = vmatpush.msrb.mxu2 %v718_v7  ;;  %854 = vmatpush.msrb.mxu3 %v719_v9  ;;  %v1271_v7 = vld [vmem:[#allocation2 + $0x3d8] sm:$0xff]  ;;  %v1293_v9 = vld [vmem:[#allocation2 + $0x488] sm:$0xf] }
  0x42   : > { %2841 = vmatpush.msk.msra.mxu1 %vm252_vm0, %v741_v11  ;;  %2839 = vmatpush.msk.msra.mxu0 %vm252_vm0, %v740_v15  ;;  %v1295_v11 = vld [vmem:[#allocation2 + $0x498] sm:$0xf]  ;;  %v1284_v15 = vld [vmem:[#allocation2 + $0x440] sm:$0xff] }
  0x43   : > { %2832 = vmatmul.msk.f32.vlgmr.msrb.gmra.mxu0 %vm249_vm1, %v3251_v10  ;;  %2834 = vmatmul.msk.f32.vlgmr.msrb.gmra.mxu1 %vm249_vm1, %v3251_v10 }
  0x44   : > { %2836 = vmatmul.msk.f32.vlgmr.msrb.gmra.mxu2 %vm249_vm1, %v3251_v10  ;;  %2838 = vmatmul.msk.f32.vlgmr.msrb.gmra.mxu3 %vm249_vm1, %v3251_v10 }
  0x45   : > { %2843 = vmatpush.msk.msra.mxu2 %vm252_vm0, %v742_v13  ;;  %2845 = vmatpush.msk.msra.mxu3 %vm252_vm0, %v743_v14  ;;  %v1292_v13 = vld [vmem:[#allocation2 + $0x480] sm:$0xf]  ;;  %v1283_v14 = vld [vmem:[#allocation2 + $0x438] sm:$0xff] }
  0x46   : > { %893 = vmatpush.msra.mxu1 %v731_v12  ;;  %873 = vmatpush.msra.mxu0 %v730_v18  ;;  %v1285_v12 = vld [vmem:[#allocation2 + $0x448] sm:$0xff]  ;;  %v1274_v18 = vld [vmem:[#allocation2 + $0x3f0] sm:$0xff] }
  0x47   : > { %913 = vmatpush.msra.mxu2 %v732_v16  ;;  %933 = vmatpush.msra.mxu3 %v733_v17  ;;  %v1282_v16 = vld [vmem:[#allocation2 + $0x430] sm:$0xff]  ;;  %v1273_v17 = vld [vmem:[#allocation2 + $0x3e8] sm:$0xff] }
  0x48   : > { %894 = vmatpush.msra.mxu1 %v721_v19  ;;  %874 = vmatpush.msra.mxu0 %v720_v21  ;;  %v1272_v19 = vld [vmem:[#allocation2 + $0x3e0] sm:$0xff]  ;;  %v1297_v21 = vld [vmem:[#allocation2 + $0x4a8] sm:$0xf] }
  0x49   : > { %914 = vmatpush.msra.mxu2 %v722_v20  ;;  %934 = vmatpush.msra.mxu3 %v723_v22  ;;  %v1275_v20 = vld [vmem:[#allocation2 + $0x3f8] sm:$0xff]  ;;  %v1562_v22 = vld [vmem:[#allocation2 + $0x550] sm:$0xf] }
  0x4a   : > { %2849 = vmatpush.msk.msrb.mxu1 %vm252_vm0, %v745_v23  ;;  %2847 = vmatpush.msk.msrb.mxu0 %vm252_vm0, %v744_v26  ;;  %v1563_v23 = vld [vmem:[#allocation2 + $0x558] sm:$0xf]  ;;  %v1552_v26 = vld [vmem:[#allocation2 + $0x500] sm:$0xff] }
  0x4b   : > { %2840 = vmatmul.msk.f32.vlgmr.msra.gmra.mxu0 %vm249_vm1, %v3251_v10  ;;  %2842 = vmatmul.msk.f32.vlgmr.msra.gmra.mxu1 %vm249_vm1, %v3251_v10 }
  0x4c   : > { %2844 = vmatmul.msk.f32.vlgmr.msra.gmra.mxu2 %vm249_vm1, %v3251_v10  ;;  %2846 = vmatmul.msk.f32.vlgmr.msra.gmra.mxu3 %vm249_vm1, %v3251_v10 }
  0x4d   : > { %2853 = vmatpush.msk.msrb.mxu2 %vm252_vm0, %v1014_v24  ;;  %2855 = vmatpush.msk.msrb.mxu3 %vm252_vm0, %v1015_v25  ;;  %v1296_v24 = vld [vmem:[#allocation2 + $0x4a0] sm:$0xf]  ;;  %v1287_v25 = vld [vmem:[#allocation2 + $0x458] sm:$0xff] }
  0x4e   : > { %973 = vmatpush.msrb.mxu1 %v735_v27  ;;  %953 = vmatpush.msrb.mxu0 %v734_v30  ;;  %v1553_v27 = vld [vmem:[#allocation2 + $0x508] sm:$0xff]  ;;  %v1542_v30 = vld [vmem:[#allocation2 + $0x4b0] sm:$0xff] }
  0x4f   : > { %1071 = vmatpush.msrb.mxu2 %v1004_v28  ;;  %1091 = vmatpush.msrb.mxu3 %v1005_v29  ;;  %v1286_v28 = vld [vmem:[#allocation2 + $0x450] sm:$0xff]  ;;  %v1277_v29 = vld [vmem:[#allocation2 + $0x408] sm:$0xff] }
  0x50   : > { %974 = vmatpush.msrb.mxu1 %v725_v31  ;;  %954 = vmatpush.msrb.mxu0 %v724_v33  ;;  %v1276_v31 = vld [vmem:[#allocation2 + $0x400] sm:$0xff]  ;;  %v3344_v33 = vrot.slane %v3278_v35, 2 }
  0x51   : > { %1072 = vmatpush.msrb.mxu2 %v994_v32  ;;  %1092 = vmatpush.msrb.mxu3 %v995_v34  ;;  %v1543_v32 = vld [vmem:[#allocation2 + $0x4b8] sm:$0xff]  ;;  %v1565_v34 = vld [vmem:[#allocation2 + $0x568] sm:$0xf] }
  0x52   : > { %2859 = vmatpush.msk.msra.mxu1 %vm252_vm0, %v1017_v36  ;;  %2857 = vmatpush.msk.msra.mxu0 %vm252_vm0, %v1016_v39  ;;  %v1566_v36 = vld [vmem:[#allocation2 + $0x570] sm:$0xf]  ;;  %v1556_v39 = vld [vmem:[#allocation2 + $0x520] sm:$0xff] }
  0x53   : > { %2848 = vmatmul.msk.f32.vlgmr.msrb.gmra.mxu0 %vm249_vm1, %v3251_v10  ;;  %2850 = vmatmul.msk.f32.vlgmr.msrb.gmra.mxu1 %vm249_vm1, %v3251_v10  ;;  %v1294_v10 = vld [vmem:[#allocation2 + $0x490] sm:$0xf] }
  0x54   : > { %2854 = vmatmul.msk.f32.vlgmr.msrb.gmra.mxu2 %vm249_vm1, %v3278_v35  ;;  %2856 = vmatmul.msk.f32.vlgmr.msrb.gmra.mxu3 %vm249_vm1, %v3278_v35 }
  0x55   : > { %2861 = vmatpush.msk.msra.mxu2 %vm252_vm0, %v1018_v37  ;;  %2863 = vmatpush.msk.msra.mxu3 %vm252_vm0, %v1019_v38  ;;  %v1567_v37 = vld [vmem:[#allocation2 + $0x578] sm:$0xf]  ;;  %v1564_v38 = vld [vmem:[#allocation2 + $0x560] sm:$0xf] }
  0x56   : > { %1131 = vmatpush.msra.mxu1 %v1007_v40  ;;  %1111 = vmatpush.msra.mxu0 %v1006_v43  ;;  %v1557_v40 = vld [vmem:[#allocation2 + $0x528] sm:$0xff]  ;;  %v1546_v43 = vld [vmem:[#allocation2 + $0x4d0] sm:$0xff] }
  0x57   : > { %1151 = vmatpush.msra.mxu2 %v1008_v41  ;;  %1171 = vmatpush.msra.mxu3 %v1009_v42  ;;  %v1554_v41 = vld [vmem:[#allocation2 + $0x510] sm:$0xff]  ;;  %v1545_v42 = vld [vmem:[#allocation2 + $0x4c8] sm:$0xff] }
  0x58   : > { %1132 = vmatpush.msra.mxu1 %v997_v44  ;;  %1112 = vmatpush.msra.mxu0 %v996_v46  ;;  %v1544_v44 = vld [vmem:[#allocation2 + $0x4c0] sm:$0xff]  ;;  %v1569_v46 = vld [vmem:[#allocation2 + $0x588] sm:$0xf] }
  0x59   : > { %1152 = vmatpush.msra.mxu2 %v998_v45  ;;  %1172 = vmatpush.msra.mxu3 %v999_v47  ;;  %v1547_v45 = vld [vmem:[#allocation2 + $0x4d8] sm:$0xff]  ;;  %v1570_v47 = vld [vmem:[#allocation2 + $0x590] sm:$0xf] }
  0x5a   : > { %2867 = vmatpush.msk.msrb.mxu1 %vm252_vm0, %v1021_v48  ;;  %2865 = vmatpush.msk.msrb.mxu0 %vm252_vm0, %v1020_v51  ;;  %v1571_v48 = vld [vmem:[#allocation2 + $0x598] sm:$0xf]  ;;  %v1560_v51 = vld [vmem:[#allocation2 + $0x540] sm:$0xff] }
  0x5b   : > { %2858 = vmatmul.msk.f32.vlgmr.msra.gmra.mxu0 %vm249_vm1, %v3278_v35  ;;  %2860 = vmatmul.msk.f32.vlgmr.msra.gmra.mxu1 %vm249_vm1, %v3278_v35 }
  0x5c   : > { %2862 = vmatmul.msk.f32.vlgmr.msra.gmra.mxu2 %vm249_vm1, %v3278_v35  ;;  %2864 = vmatmul.msk.f32.vlgmr.msra.gmra.mxu3 %vm249_vm1, %v3278_v35 }
  0x5d   : > { %2869 = vmatpush.msk.msrb.mxu2 %vm252_vm0, %v1022_v49  ;;  %2871 = vmatpush.msk.msrb.mxu3 %vm252_vm0, %v1023_v50  ;;  %v1568_v49 = vld [vmem:[#allocation2 + $0x580] sm:$0xf]  ;;  %v1559_v50 = vld [vmem:[#allocation2 + $0x538] sm:$0xff] }
  0x5e   : > { %1211 = vmatpush.msrb.mxu1 %v1011_v52  ;;  %1191 = vmatpush.msrb.mxu0 %v1010_v55  ;;  %v1561_v52 = vld [vmem:[#allocation2 + $0x548] sm:$0xff]  ;;  %v1550_v55 = vld [vmem:[#allocation2 + $0x4f0] sm:$0xff] }
  0x5f   : > { %1231 = vmatpush.msrb.mxu2 %v1012_v53  ;;  %1251 = vmatpush.msrb.mxu3 %v1013_v54  ;;  %v1558_v53 = vld [vmem:[#allocation2 + $0x530] sm:$0xff]  ;;  %v1549_v54 = vld [vmem:[#allocation2 + $0x4e8] sm:$0xff] }
  0x60   : > { %1212 = vmatpush.msrb.mxu1 %v1001_v56  ;;  %1192 = vmatpush.msrb.mxu0 %v1000_v58  ;;  %v1548_v56 = vld [vmem:[#allocation2 + $0x4e0] sm:$0xff]  ;;  %v1841_v58 = vld [vmem:[#allocation2 + $0x648] sm:$0xf] }
  0x61   : > { %1232 = vmatpush.msrb.mxu2 %v1002_v57  ;;  %1252 = vmatpush.msrb.mxu3 %v1003_v59  ;;  %v1551_v57 = vld [vmem:[#allocation2 + $0x4f8] sm:$0xff]  ;;  %v1842_v59 = vld [vmem:[#allocation2 + $0x650] sm:$0xf] }
  0x62   : > { %2875 = vmatpush.msk.msra.mxu1 %vm252_vm0, %v1289_v60  ;;  %2873 = vmatpush.msk.msra.mxu0 %vm252_vm0, %v1288_v63  ;;  %v1843_v60 = vld [vmem:[#allocation2 + $0x658] sm:$0xf]  ;;  %v1832_v63 = vld [vmem:[#allocation2 + $0x600] sm:$0xff] }
  0x63   : > { %2866 = vmatmul.msk.f32.vlgmr.msrb.gmra.mxu0 %vm249_vm1, %v3278_v35  ;;  %2868 = vmatmul.msk.f32.vlgmr.msrb.gmra.mxu1 %vm249_vm1, %v3278_v35 }
  0x64   : > { %2870 = vmatmul.msk.f32.vlgmr.msrb.gmra.mxu2 %vm249_vm1, %v3278_v35  ;;  %2872 = vmatmul.msk.f32.vlgmr.msrb.gmra.mxu3 %vm249_vm1, %v3278_v35  ;;  %v1555_v35 = vld [vmem:[#allocation2 + $0x518] sm:$0xff] }
  0x65   : > { %2877 = vmatpush.msk.msra.mxu2 %vm252_vm0, %v1290_v61  ;;  %2879 = vmatpush.msk.msra.mxu3 %vm252_vm0, %v1291_v62  ;;  %v1840_v61 = vld [vmem:[#allocation2 + $0x640] sm:$0xf]  ;;  %v1831_v62 = vld [vmem:[#allocation2 + $0x5f8] sm:$0xff] }
  0x66   : > { %1365 = vmatpush.msra.mxu1 %v1279_v0  ;;  %1345 = vmatpush.msra.mxu0 %v1278_v3  ;;  %v1833_v0 = vld [vmem:[#allocation2 + $0x608] sm:$0xff]  ;;  %v1822_v3 = vld [vmem:[#allocation2 + $0x5b0] sm:$0xff] }
  0x67   : > { %1385 = vmatpush.msra.mxu2 %v1280_v1  ;;  %1405 = vmatpush.msra.mxu3 %v1281_v2  ;;  %v1830_v1 = vld [vmem:[#allocation2 + $0x5f0] sm:$0xff]  ;;  %v1821_v2 = vld [vmem:[#allocation2 + $0x5a8] sm:$0xff] }
  0x68   : > { %1366 = vmatpush.msra.mxu1 %v1269_v4  ;;  %1346 = vmatpush.msra.mxu0 %v1268_v6  ;;  %v1820_v4 = vld [vmem:[#allocation2 + $0x5a0] sm:$0xff]  ;;  %v3383_v6 = vld [vmem:[%s3192_s3 + $0x8] sm:$0xf] }
  0x69   : > { %1386 = vmatpush.msra.mxu2 %v1270_v5  ;;  %1406 = vmatpush.msra.mxu3 %v1271_v7  ;;  %v1823_v5 = vld [vmem:[#allocation2 + $0x5b8] sm:$0xff]  ;;  %v1845_v7 = vld [vmem:[#allocation2 + $0x668] sm:$0xf] }
  0x6a   : > { %2883 = vmatpush.msk.msrb.mxu1 %vm252_vm0, %v1293_v9  ;;  %2881 = vmatpush.msk.msrb.mxu0 %vm252_vm0, %v1292_v13  ;;  %v1847_v9 = vld [vmem:[#allocation2 + $0x678] sm:$0xf]  ;;  %v1836_v13 = vld [vmem:[#allocation2 + $0x620] sm:$0xff] }
  0x6b   : > { %2874 = vmatmul.msk.f32.vlgmr.msra.gmra.mxu0 %vm249_vm1, %v3317_v8  ;;  %2876 = vmatmul.msk.f32.vlgmr.msra.gmra.mxu1 %vm249_vm1, %v3317_v8 }
  0x6c   : > { %2878 = vmatmul.msk.f32.vlgmr.msra.gmra.mxu2 %vm249_vm1, %v3317_v8  ;;  %2880 = vmatmul.msk.f32.vlgmr.msra.gmra.mxu3 %vm249_vm1, %v3317_v8 }
  0x6d   : > { %2885 = vmatpush.msk.msrb.mxu2 %vm252_vm0, %v1294_v10  ;;  %2887 = vmatpush.msk.msrb.mxu3 %vm252_vm0, %v1295_v11  ;;  %v1844_v10 = vld [vmem:[#allocation2 + $0x660] sm:$0xf]  ;;  %v1835_v11 = vld [vmem:[#allocation2 + $0x618] sm:$0xff] }
  0x6e   : > { %1445 = vmatpush.msrb.mxu1 %v1283_v14  ;;  %1425 = vmatpush.msrb.mxu0 %v1282_v16  ;;  %v1837_v14 = vld [vmem:[#allocation2 + $0x628] sm:$0xff]  ;;  %v1826_v16 = vld [vmem:[#allocation2 + $0x5d0] sm:$0xff] }
  0x6f   : > { %1465 = vmatpush.msrb.mxu2 %v1284_v15  ;;  %1485 = vmatpush.msrb.mxu3 %v1285_v12  ;;  %v1834_v15 = vld [vmem:[#allocation2 + $0x610] sm:$0xff]  ;;  %v1825_v12 = vld [vmem:[#allocation2 + $0x5c8] sm:$0xff] }
  0x70   : > { %1446 = vmatpush.msrb.mxu1 %v1273_v17  ;;  %1426 = vmatpush.msrb.mxu0 %v1272_v19  ;;  %v1824_v17 = vld [vmem:[#allocation2 + $0x5c0] sm:$0xff] }
  0x71   : > { %1466 = vmatpush.msrb.mxu2 %v1274_v18  ;;  %1486 = vmatpush.msrb.mxu3 %v1275_v20  ;;  %v1827_v18 = vld [vmem:[#allocation2 + $0x5d8] sm:$0xff] }
  0x72   : > { %2891 = vmatpush.msk.msra.mxu1 %vm252_vm0, %v1297_v21  ;;  %2889 = vmatpush.msk.msra.mxu0 %vm252_vm0, %v1296_v24  ;;  %v1849_v21 = vld [vmem:[#allocation2 + $0x688] sm:$0xf]  ;;  %v1848_v24 = vld [vmem:[#allocation2 + $0x680] sm:$0xf] }
  0x73   : > { %2882 = vmatmul.msk.f32.vlgmr.msrb.gmra.mxu0 %vm249_vm1, %v3317_v8  ;;  %2884 = vmatmul.msk.f32.vlgmr.msrb.gmra.mxu1 %vm249_vm1, %v3317_v8 }
  0x74   : > { %2886 = vmatmul.msk.f32.vlgmr.msrb.gmra.mxu2 %vm249_vm1, %v3317_v8  ;;  %2888 = vmatmul.msk.f32.vlgmr.msrb.gmra.mxu3 %vm249_vm1, %v3317_v8 }
  0x75   : > { %2893 = vmatpush.msk.msra.mxu2 %vm252_vm0, %v1562_v22  ;;  %2895 = vmatpush.msk.msra.mxu3 %vm252_vm0, %v1563_v23  ;;  %v2114_v22 = vld [vmem:[#allocation2 + $0x730] sm:$0xf]  ;;  %v2115_v23 = vld [vmem:[#allocation2 + $0x738] sm:$0xf] }
  0x76   : > { %1525 = vmatpush.msra.mxu1 %v1287_v25  ;;  %1505 = vmatpush.msra.mxu0 %v1286_v28  ;;  %v1839_v25 = vld [vmem:[#allocation2 + $0x638] sm:$0xff]  ;;  %v1838_v28 = vld [vmem:[#allocation2 + $0x630] sm:$0xff] }
  0x77   : > { %1619 = vmatpush.msra.mxu2 %v1552_v26  ;;  %1639 = vmatpush.msra.mxu3 %v1553_v27  ;;  %v2104_v26 = vld [vmem:[#allocation2 + $0x6e0] sm:$0xff]  ;;  %v2105_v27 = vld [vmem:[#allocation2 + $0x6e8] sm:$0xff] }
  0x78   : > { %1526 = vmatpush.msra.mxu1 %v1277_v29  ;;  %1506 = vmatpush.msra.mxu0 %v1276_v31  ;;  %v1829_v29 = vld [vmem:[#allocation2 + $0x5e8] sm:$0xff] }
  0x79   : > { %1620 = vmatpush.msra.mxu2 %v1542_v30  ;;  %1640 = vmatpush.msra.mxu3 %v1543_v32  ;;  %v2094_v30 = vld [vmem:[#allocation2 + $0x690] sm:$0xff] }
  0x7a   : > { %2899 = vmatpush.msk.msrb.mxu1 %vm252_vm0, %v1565_v34  ;;  %2897 = vmatpush.msk.msrb.mxu0 %vm252_vm0, %v1564_v38  ;;  %v2095_v34 = vld [vmem:[#allocation2 + $0x698] sm:$0xff]  ;;  %v3422_v38 = vrot.slane %v3383_v6, 1 }
  0x7b   : > { %2890 = vmatmul.msk.f32.vlgmr.msra.gmra.mxu0 %vm249_vm1, %v3317_v8  ;;  %2892 = vmatmul.msk.f32.vlgmr.msra.gmra.mxu1 %vm249_vm1, %v3317_v8  ;;  %v1846_v8 = vld [vmem:[#allocation2 + $0x670] sm:$0xf] }
  0x7c   : > { %2894 = vmatmul.msk.f32.vlgmr.msra.gmra.mxu2 %vm249_vm1, %v3344_v33  ;;  %2896 = vmatmul.msk.f32.vlgmr.msra.gmra.mxu3 %vm249_vm1, %v3344_v33 }
  0x7d   : > { %2901 = vmatpush.msk.msrb.mxu2 %vm252_vm0, %v1566_v36  ;;  %2903 = vmatpush.msk.msrb.mxu3 %vm252_vm0, %v1567_v37 }
  0x7e   : > { %1679 = vmatpush.msrb.mxu1 %v1555_v35  ;;  %1659 = vmatpush.msrb.mxu0 %v1554_v41  ;;  %v2117_v35 = vld [vmem:[#allocation2 + $0x748] sm:$0xf]  ;;  %v2116_v41 = vld [vmem:[#allocation2 + $0x740] sm:$0xf] }
  0x7f   : > { %1699 = vmatpush.msrb.mxu2 %v1556_v39  ;;  %1719 = vmatpush.msrb.mxu3 %v1557_v40  ;;  %v2118_v39 = vld [vmem:[#allocation2 + $0x750] sm:$0xf]  ;;  %v2119_v40 = vld [vmem:[#allocation2 + $0x758] sm:$0xf] }
  0x80   : > { %1680 = vmatpush.msrb.mxu1 %v1545_v42  ;;  %1660 = vmatpush.msrb.mxu0 %v1544_v44  ;;  %v2107_v42 = vld [vmem:[#allocation2 + $0x6f8] sm:$0xff]  ;;  %v2109_v44 = vld [vmem:[#allocation2 + $0x708] sm:$0xff] }
  0x81   : > { %1700 = vmatpush.msrb.mxu2 %v1546_v43  ;;  %1720 = vmatpush.msrb.mxu3 %v1547_v45  ;;  %v2108_v43 = vld [vmem:[#allocation2 + $0x700] sm:$0xff]  ;;  %v2106_v45 = vld [vmem:[#allocation2 + $0x6f0] sm:$0xff] }
  0x82   : > { %2907 = vmatpush.msk.msra.mxu1 %vm252_vm0, %v1569_v46  ;;  %2905 = vmatpush.msk.msra.mxu0 %vm252_vm0, %v1568_v49  ;;  %v2097_v46 = vld [vmem:[#allocation2 + $0x6a8] sm:$0xff] }
  0x83   : > { %2898 = vmatmul.msk.f32.vlgmr.msrb.gmra.mxu0 %vm249_vm1, %v3344_v33  ;;  %2900 = vmatmul.msk.f32.vlgmr.msrb.gmra.mxu1 %vm249_vm1, %v3344_v33 }
  0x84   : > { %2902 = vmatmul.msk.f32.vlgmr.msrb.gmra.mxu2 %vm249_vm1, %v3344_v33  ;;  %2904 = vmatmul.msk.f32.vlgmr.msrb.gmra.mxu3 %vm249_vm1, %v3344_v33 }
  0x85   : > { %2909 = vmatpush.msk.msra.mxu2 %vm252_vm0, %v1570_v47  ;;  %2911 = vmatpush.msk.msra.mxu3 %vm252_vm0, %v1571_v48  ;;  %v2098_v47 = vld [vmem:[#allocation2 + $0x6b0] sm:$0xff] }
  0x86   : > { %1759 = vmatpush.msra.mxu1 %v1559_v50  ;;  %1739 = vmatpush.msra.mxu0 %v1558_v53  ;;  %v2096_v50 = vld [vmem:[#allocation2 + $0x6a0] sm:$0xff] }
  0x87   : > { %1779 = vmatpush.msra.mxu2 %v1560_v51  ;;  %1799 = vmatpush.msra.mxu3 %v1561_v52  ;;  %v2099_v51 = vld [vmem:[#allocation2 + $0x6b8] sm:$0xff] }
  0x88   : > { %1760 = vmatpush.msra.mxu1 %v1549_v54  ;;  %1740 = vmatpush.msra.mxu0 %v1548_v56  ;;  %v2121_v54 = vld [vmem:[#allocation2 + $0x768] sm:$0xf]  ;;  %v2123_v56 = vld [vmem:[#allocation2 + $0x778] sm:$0xf] }
  0x89   : > { %1780 = vmatpush.msra.mxu2 %v1550_v55  ;;  %1800 = vmatpush.msra.mxu3 %v1551_v57  ;;  %v2122_v55 = vld [vmem:[#allocation2 + $0x770] sm:$0xf]  ;;  %v2120_v57 = vld [vmem:[#allocation2 + $0x760] sm:$0xf] }
  0x8a   : > { %2917 = vmatpush.msk.msrb.mxu1 %vm252_vm0, %v1841_v58  ;;  %2915 = vmatpush.msk.msrb.mxu0 %vm252_vm0, %v1840_v61  ;;  %v2111_v58 = vld [vmem:[#allocation2 + $0x718] sm:$0xff]  ;;  %v2110_v61 = vld [vmem:[#allocation2 + $0x710] sm:$0xff] }
  0x8b   : > { %2906 = vmatmul.msk.f32.vlgmr.msra.gmra.mxu0 %vm249_vm1, %v3344_v33  ;;  %2908 = vmatmul.msk.f32.vlgmr.msra.gmra.mxu1 %vm249_vm1, %v3344_v33 }
  0x8c   : > { %2910 = vmatmul.msk.f32.vlgmr.msra.gmra.mxu2 %vm249_vm1, %v3344_v33  ;;  %2912 = vmatmul.msk.f32.vlgmr.msra.gmra.mxu3 %vm249_vm1, %v3344_v33  ;;  %v1828_v33 = vld [vmem:[#allocation2 + $0x5e0] sm:$0xff] }
  0x8d   : > { %2919 = vmatpush.msk.msrb.mxu2 %vm252_vm0, %v1842_v59  ;;  %2921 = vmatpush.msk.msrb.mxu3 %vm252_vm0, %v1843_v60  ;;  %v2112_v59 = vld [vmem:[#allocation2 + $0x720] sm:$0xff]  ;;  %v2113_v60 = vld [vmem:[#allocation2 + $0x728] sm:$0xff] }
  0x8e   : > { %1917 = vmatpush.msrb.mxu1 %v1831_v62  ;;  %1897 = vmatpush.msrb.mxu0 %v1830_v1  ;;  %v2101_v62 = vld [vmem:[#allocation2 + $0x6c8] sm:$0xff] }
  0x8f   : > { %1937 = vmatpush.msrb.mxu2 %v1832_v63  ;;  %1957 = vmatpush.msrb.mxu3 %v1833_v0  ;;  %v2102_v63 = vld [vmem:[#allocation2 + $0x6d0] sm:$0xff] }
  0x90   : > { %1918 = vmatpush.msrb.mxu1 %v1821_v2  ;;  %1898 = vmatpush.msrb.mxu0 %v1820_v4  ;;  %v2100_v2 = vld [vmem:[#allocation2 + $0x6c0] sm:$0xff] }
  0x91   : > { %1938 = vmatpush.msrb.mxu2 %v1822_v3  ;;  %1958 = vmatpush.msrb.mxu3 %v1823_v5  ;;  %v2103_v3 = vld [vmem:[#allocation2 + $0x6d8] sm:$0xff] }
  0x92   : > { %2925 = vmatpush.msk.msra.mxu1 %vm252_vm0, %v1845_v7  ;;  %2923 = vmatpush.msk.msra.mxu0 %vm252_vm0, %v1844_v10 }
  0x93   : > { %2916 = vmatmul.msk.f32.vlgmr.msrb.gmra.mxu0 %vm249_vm1, %v3383_v6  ;;  %2918 = vmatmul.msk.f32.vlgmr.msrb.gmra.mxu1 %vm249_vm1, %v3383_v6 }
  0x94   : > { %2920 = vmatmul.msk.f32.vlgmr.msrb.gmra.mxu2 %vm249_vm1, %v3383_v6  ;;  %2922 = vmatmul.msk.f32.vlgmr.msrb.gmra.mxu3 %vm249_vm1, %v3383_v6 }
  0x95   : > { %2927 = vmatpush.msk.msra.mxu2 %vm252_vm0, %v1846_v8  ;;  %2929 = vmatpush.msk.msra.mxu3 %vm252_vm0, %v1847_v9 }
  0x96   : > { %1997 = vmatpush.msra.mxu1 %v1835_v11  ;;  %1977 = vmatpush.msra.mxu0 %v1834_v15  ;;  %v2389_v11 = vld [vmem:[#allocation2 + $0x828] sm:$0xf]  ;;  %v2388_v15 = vld [vmem:[#allocation2 + $0x820] sm:$0xf] }
  0x97   : > { %2017 = vmatpush.msra.mxu2 %v1836_v13  ;;  %2037 = vmatpush.msra.mxu3 %v1837_v14  ;;  %v2390_v13 = vld [vmem:[#allocation2 + $0x830] sm:$0xf]  ;;  %v2391_v14 = vld [vmem:[#allocation2 + $0x838] sm:$0xf] }
  0x98   : > { %v3397_v19 = vpop.f32.mrf.mxu0  ;;  %v3399_v20 = vpop.f32.mrf.mxu1  ;;  %1998 = vmatpush.msra.mxu1 %v1825_v12  ;;  %1978 = vmatpush.msra.mxu0 %v1824_v17  ;;  %v2379_v12 = vld [vmem:[#allocation2 + $0x7d8] sm:$0xff]  ;;  %v2381_v17 = vld [vmem:[#allocation2 + $0x7e8] sm:$0xff] }
  0x99   : > { %2018 = vmatpush.msra.mxu2 %v1826_v16  ;;  %2038 = vmatpush.msra.mxu3 %v1827_v18  ;;  %v2380_v16 = vld [vmem:[#allocation2 + $0x7e0] sm:$0xff]  ;;  %v2378_v18 = vld [vmem:[#allocation2 + $0x7d0] sm:$0xff] }
  0x9a   : > { %2933 = vmatpush.msk.msrb.mxu1 %vm252_vm0, %v1849_v21  ;;  %2931 = vmatpush.msk.msrb.mxu0 %vm252_vm0, %v1848_v24  ;;  %v2371_v24 = vld [vmem:[#allocation2 + $0x798] sm:$0xff] }
  0x9b   : > { %2924 = vmatmul.msk.f32.vlgmr.msra.gmra.mxu0 %vm249_vm1, %v3383_v6  ;;  %2926 = vmatmul.msk.f32.vlgmr.msra.gmra.mxu1 %vm249_vm1, %v3383_v6 }
  0x9c   : > { %2928 = vmatmul.msk.f32.vlgmr.msra.gmra.mxu2 %vm249_vm1, %v3383_v6  ;;  %2930 = vmatmul.msk.f32.vlgmr.msra.gmra.mxu3 %vm249_vm1, %v3383_v6 }
  0x9d   : > { %2935 = vmatpush.msk.msrb.mxu2 %vm252_vm0, %v2114_v22  ;;  %2937 = vmatpush.msk.msrb.mxu3 %vm252_vm0, %v2115_v23  ;;  %v2368_v23 = vld [vmem:[#allocation2 + $0x780] sm:$0xff] }
  0x9e   : > { %2077 = vmatpush.msrb.mxu1 %v1839_v25  ;;  %2057 = vmatpush.msrb.mxu0 %v1838_v28  ;;  %v3481_v25 = vrot.slane %v3383_v6, 2 }
  0x9f   : > { %v3413_v31 = vpop.f32.mrf.mxu2  ;;  %v3415_v32 = vpop.f32.mrf.mxu3  ;;  %2171 = vmatpush.msrb.mxu2 %v2104_v26  ;;  %2191 = vmatpush.msrb.mxu3 %v2105_v27 }
  0xa0   : > { %v3417_v36 = vpop.f32.mrf.mxu0  ;;  %v3419_v37 = vpop.f32.mrf.mxu1  ;;  %2078 = vmatpush.msrb.mxu1 %v1829_v29  ;;  %2058 = vmatpush.msrb.mxu0 %v1828_v33  ;;  %v2395_v33 = vld [vmem:[#allocation2 + $0x858] sm:$0xf] }
  0xa1   : > { %2172 = vmatpush.msrb.mxu2 %v2094_v30  ;;  %2192 = vmatpush.msrb.mxu3 %v2095_v34  ;;  %v2392_v34 = vld [vmem:[#allocation2 + $0x840] sm:$0xf] }
  0xa2   : > { %2941 = vmatpush.msk.msra.mxu1 %vm252_vm0, %v2117_v35  ;;  %2939 = vmatpush.msk.msra.mxu0 %vm252_vm0, %v2116_v41  ;;  %v2382_v35 = vld [vmem:[#allocation2 + $0x7f0] sm:$0xff] }
  0xa3   : > { %2932 = vmatmul.msk.f32.vlgmr.msrb.gmra.mxu0 %vm249_vm1, %v3383_v6  ;;  %2934 = vmatmul.msk.f32.vlgmr.msrb.gmra.mxu1 %vm249_vm1, %v3383_v6  ;;  %v2393_v6 = vld [vmem:[#allocation2 + $0x848] sm:$0xf] }
  0xa4   : > { %2936 = vmatmul.msk.f32.vlgmr.msrb.gmra.mxu2 %vm249_vm1, %v3422_v38  ;;  %2938 = vmatmul.msk.f32.vlgmr.msrb.gmra.mxu3 %vm249_vm1, %v3422_v38 }
  0xa5   : > { %2943 = vmatpush.msk.msra.mxu2 %vm252_vm0, %v2118_v39  ;;  %2945 = vmatpush.msk.msra.mxu3 %vm252_vm0, %v2119_v40  ;;  %v2373_v39 = vld [vmem:[#allocation2 + $0x7a8] sm:$0xff]  ;;  %v2374_v40 = vld [vmem:[#allocation2 + $0x7b0] sm:$0xff] }
  0xa6   : > { %2231 = vmatpush.msra.mxu1 %v2107_v42  ;;  %2211 = vmatpush.msra.mxu0 %v2106_v45 }
  0xa7   : > { %v3436_v48 = vpop.f32.mrf.mxu2  ;;  %v3438_v49 = vpop.f32.mrf.mxu3  ;;  %2251 = vmatpush.msra.mxu2 %v2108_v43  ;;  %2271 = vmatpush.msra.mxu3 %v2109_v44  ;;  %v2372_v43 = vld [vmem:[#allocation2 + $0x7a0] sm:$0xff]  ;;  %v2375_v44 = vld [vmem:[#allocation2 + $0x7b8] sm:$0xff] }
  0xa8   : > { %v3440_v52 = vpop.f32.mrf.mxu0  ;;  %v3442_v53 = vpop.f32.mrf.mxu1  ;;  %2232 = vmatpush.msra.mxu1 %v2097_v46  ;;  %2212 = vmatpush.msra.mxu0 %v2096_v50 }
  0xa9   : > { %2252 = vmatpush.msra.mxu2 %v2098_v47  ;;  %2272 = vmatpush.msra.mxu3 %v2099_v51  ;;  %v2397_v51 = vld [vmem:[#allocation2 + $0x868] sm:$0xf] }
  0xaa   : > { %2949 = vmatpush.msk.msrb.mxu1 %vm252_vm0, %v2121_v54  ;;  %2947 = vmatpush.msk.msrb.mxu0 %vm252_vm0, %v2120_v57  ;;  %v2396_v54 = vld [vmem:[#allocation2 + $0x860] sm:$0xf] }
  0xab   : > { %2940 = vmatmul.msk.f32.vlgmr.msra.gmra.mxu0 %vm249_vm1, %v3422_v38  ;;  %2942 = vmatmul.msk.f32.vlgmr.msra.gmra.mxu1 %vm249_vm1, %v3422_v38 }
  0xac   : > { %2944 = vmatmul.msk.f32.vlgmr.msra.gmra.mxu2 %vm249_vm1, %v3422_v38  ;;  %2946 = vmatmul.msk.f32.vlgmr.msra.gmra.mxu3 %vm249_vm1, %v3422_v38 }
  0xad   : > { %2951 = vmatpush.msk.msrb.mxu2 %vm252_vm0, %v2122_v55  ;;  %2953 = vmatpush.msk.msrb.mxu3 %vm252_vm0, %v2123_v56  ;;  %v2377_v55 = vld [vmem:[#allocation2 + $0x7c8] sm:$0xff]  ;;  %v2376_v56 = vld [vmem:[#allocation2 + $0x7c0] sm:$0xff] }
  0xae   : > { %2311 = vmatpush.msrb.mxu1 %v2111_v58  ;;  %2291 = vmatpush.msrb.mxu0 %v2110_v61 }
  0xaf   : > { %v532_v0 = vpop.f32.mrf.mxu2  ;;  %v552_v1 = vpop.f32.mrf.mxu3  ;;  %2331 = vmatpush.msrb.mxu2 %v2112_v59  ;;  %2351 = vmatpush.msrb.mxu3 %v2113_v60 }
  0xb0   : > { %v3457_v4 = vadd.f32 %v532_v0, %v3397_v19  ;;  %v3460_v5 = vadd.f32 %v552_v1, %v3399_v20  ;;  %v572_v7 = vpop.f32.mrf.mxu0  ;;  %v592_v8 = vpop.f32.mrf.mxu1  ;;  %2312 = vmatpush.msrb.mxu1 %v2101_v62  ;;  %2292 = vmatpush.msrb.mxu0 %v2100_v2  ;;  %v2369_v19 = vld [vmem:[#allocation2 + $0x788] sm:$0xff]  ;;  %v2370_v20 = vld [vmem:[#allocation2 + $0x790] sm:$0xff] }
  0xb1   : > { %v3463_v9 = vadd.f32 %v572_v7, %v3413_v31  ;;  %v3466_v10 = vadd.f32 %v592_v8, %v3415_v32  ;;  %2332 = vmatpush.msrb.mxu2 %v2102_v63  ;;  %2352 = vmatpush.msrb.mxu3 %v2103_v3  ;;  %v2394_v32 = vld [vmem:[#allocation2 + $0x850] sm:$0xf] }
  0xb2   : > { %2957 = vmatpush.msk.msra.mxu1 %vm252_vm0, %v2389_v11  ;;  %2955 = vmatpush.msk.msra.mxu0 %vm252_vm0, %v2388_v15 }
  0xb3   : > { %2948 = vmatmul.msk.f32.vlgmr.msrb.gmra.mxu0 %vm249_vm1, %v3422_v38  ;;  %2950 = vmatmul.msk.f32.vlgmr.msrb.gmra.mxu1 %vm249_vm1, %v3422_v38 }
  0xb4   : > { %2952 = vmatmul.msk.f32.vlgmr.msrb.gmra.mxu2 %vm249_vm1, %v3422_v38  ;;  %2954 = vmatmul.msk.f32.vlgmr.msrb.gmra.mxu3 %vm249_vm1, %v3422_v38  ;;  %v2385_v38 = vld [vmem:[#allocation2 + $0x808] sm:$0xff] }
  0xb5   : > { %2959 = vmatpush.msk.msra.mxu2 %vm252_vm0, %v2390_v13  ;;  %2961 = vmatpush.msk.msra.mxu3 %vm252_vm0, %v2391_v14 }
  0xb6   : > { %2465 = vmatpush.msra.mxu1 %v2379_v12  ;;  %2445 = vmatpush.msra.mxu0 %v2378_v18 }
  0xb7   : > { %v612_v21 = vpop.f32.mrf.mxu2  ;;  %v632_v22 = vpop.f32.mrf.mxu3  ;;  %2485 = vmatpush.msra.mxu2 %v2380_v16  ;;  %2505 = vmatpush.msra.mxu3 %v2381_v17 }
  0xb8   : > { %v3484_v26 = vadd.f32 %v612_v21, %v3417_v36  ;;  %v3487_v27 = vadd.f32 %v632_v22, %v3419_v37  ;;  %v652_v28 = vpop.f32.mrf.mxu0  ;;  %v672_v29 = vpop.f32.mrf.mxu1  ;;  %2466 = vmatpush.msra.mxu1 %v2369_v19  ;;  %2446 = vmatpush.msra.mxu0 %v2368_v23  ;;  %v2383_v36 = vld [vmem:[#allocation2 + $0x7f8] sm:$0xff]  ;;  %v2384_v37 = vld [vmem:[#allocation2 + $0x800] sm:$0xff] }
  0xb9   : > { %v3490_v30 = vadd.f32 %v652_v28, %v3436_v48  ;;  %v3493_v31 = vadd.f32 %v672_v29, %v3438_v49  ;;  %2486 = vmatpush.msra.mxu2 %v2370_v20  ;;  %2506 = vmatpush.msra.mxu3 %v2371_v24 }
  0xba   : > { %2965 = vmatpush.msk.msrb.mxu1 %vm252_vm0, %v2393_v6  ;;  %2963 = vmatpush.msk.msrb.mxu0 %vm252_vm0, %v2392_v34 }
  0xbb   : > { %2956 = vmatmul.msk.f32.vlgmr.msra.gmra.mxu0 %vm249_vm1, %v3481_v25  ;;  %2958 = vmatmul.msk.f32.vlgmr.msra.gmra.mxu1 %vm249_vm1, %v3481_v25 }
  0xbc   : > { %2960 = vmatmul.msk.f32.vlgmr.msra.gmra.mxu2 %vm249_vm1, %v3481_v25  ;;  %2962 = vmatmul.msk.f32.vlgmr.msra.gmra.mxu3 %vm249_vm1, %v3481_v25 }
  0xbd   : > { %2967 = vmatpush.msk.msrb.mxu2 %vm252_vm0, %v2394_v32  ;;  %2969 = vmatpush.msk.msrb.mxu3 %vm252_vm0, %v2395_v33 }
  0xbe   : > { %2545 = vmatpush.msrb.mxu1 %v2383_v36  ;;  %2525 = vmatpush.msrb.mxu0 %v2382_v35 }
  0xbf   : > { %v692_v41 = vpop.f32.mrf.mxu2  ;;  %v712_v42 = vpop.f32.mrf.mxu3  ;;  %2565 = vmatpush.msrb.mxu2 %v2384_v37  ;;  %2585 = vmatpush.msrb.mxu3 %v2385_v38 }
  0xc0   : > { %v693_v45 = vadd.f32 %v692_v41, %v3440_v52  ;;  %v713_v46 = vadd.f32 %v712_v42, %v3442_v53  ;;  %v796_v47 = vpop.f32.mrf.mxu0  ;;  %v816_v48 = vpop.f32.mrf.mxu1  ;;  %2546 = vmatpush.msrb.mxu1 %v2373_v39  ;;  %2526 = vmatpush.msrb.mxu0 %v2372_v43  ;;  %v2387_v52 = vld [vmem:[#allocation2 + $0x818] sm:$0xff]  ;;  %v2386_v53 = vld [vmem:[#allocation2 + $0x810] sm:$0xff] }
  0xc1   : > { %v979_v49 = vadd.f32 %v796_v47, %v3457_v4  ;;  %v980_v50 = vadd.f32 %v816_v48, %v3460_v5  ;;  %2566 = vmatpush.msrb.mxu2 %v2374_v40  ;;  %2586 = vmatpush.msrb.mxu3 %v2375_v44 }
  0xc2   : > { %2973 = vmatpush.msk.msra.mxu1 %vm252_vm0, %v2397_v51  ;;  %2971 = vmatpush.msk.msra.mxu0 %vm252_vm0, %v2396_v54 }
  0xc3   : > { %2964 = vmatmul.msk.f32.vlgmr.msrb.gmra.mxu0 %vm249_vm1, %v3481_v25  ;;  %2966 = vmatmul.msk.f32.vlgmr.msrb.gmra.mxu1 %vm249_vm1, %v3481_v25 }
  0xc4   : > { %2968 = vmatmul.msk.f32.vlgmr.msrb.gmra.mxu2 %vm249_vm1, %v3481_v25  ;;  %2970 = vmatmul.msk.f32.vlgmr.msrb.gmra.mxu3 %vm249_vm1, %v3481_v25 }
  0xc5   : > { %2625 = vmatpush.msra.mxu1 %v2387_v52  ;;  %2605 = vmatpush.msra.mxu0 %v2386_v53 }
  0xc7   : > { %v836_v57 = vpop.f32.mrf.mxu2  ;;  %v856_v58 = vpop.f32.mrf.mxu3  ;;  %2626 = vmatpush.msra.mxu1 %v2377_v55  ;;  %2606 = vmatpush.msra.mxu0 %v2376_v56 }
  0xc8   : > { %v981_v59 = vadd.f32 %v836_v57, %v3463_v9  ;;  %v982_v60 = vadd.f32 %v856_v58, %v3466_v10  ;;  %v876_v61 = vpop.f32.mrf.mxu0  ;;  %v896_v62 = vpop.f32.mrf.mxu1 }
  0xc9   : > { %v983_v63 = vadd.f32 %v876_v61, %v3484_v26  ;;  %v984_v0 = vadd.f32 %v896_v62, %v3487_v27 }
  0xcb   : > { %2972 = vmatmul.msk.f32.vlgmr.msra.gmra.mxu0 %vm249_vm1, %v3481_v25  ;;  %2974 = vmatmul.msk.f32.vlgmr.msra.gmra.mxu1 %vm249_vm1, %v3481_v25 }
  0xcf   : > { %v916_v1 = vpop.f32.mrf.mxu2  ;;  %v936_v2 = vpop.f32.mrf.mxu3 }
  0xd0   : > { %v985_v3 = vadd.f32 %v916_v1, %v3490_v30  ;;  %v986_v4 = vadd.f32 %v936_v2, %v3493_v31  ;;  %v956_v5 = vpop.f32.mrf.mxu0  ;;  %v976_v7 = vpop.f32.mrf.mxu1 }
  0xd1   : > { %v987_v8 = vadd.f32 %v956_v5, %v693_v45  ;;  %v988_v9 = vadd.f32 %v976_v7, %v713_v46 }
  0xd7   : > { %v1074_v10 = vpop.f32.mrf.mxu2  ;;  %v1094_v11 = vpop.f32.mrf.mxu3 }
  0xd8   : > { %v1257_v13 = vadd.f32 %v1074_v10, %v979_v49  ;;  %v1258_v14 = vadd.f32 %v1094_v11, %v980_v50  ;;  %v1114_v15 = vpop.f32.mrf.mxu0  ;;  %v1134_v12 = vpop.f32.mrf.mxu1 }
  0xd9   : > { %v1259_v16 = vadd.f32 %v1114_v15, %v981_v59  ;;  %v1260_v17 = vadd.f32 %v1134_v12, %v982_v60 }
  0xdf   : > { %v1154_v18 = vpop.f32.mrf.mxu2  ;;  %v1174_v19 = vpop.f32.mrf.mxu3 }
  0xe0   : > { %v1261_v20 = vadd.f32 %v1154_v18, %v983_v63  ;;  %v1262_v21 = vadd.f32 %v1174_v19, %v984_v0  ;;  %v1194_v22 = vpop.f32.mrf.mxu0  ;;  %v1214_v23 = vpop.f32.mrf.mxu1 }
  0xe1   : > { %v1263_v24 = vadd.f32 %v1194_v22, %v985_v3  ;;  %v1264_v25 = vadd.f32 %v1214_v23, %v986_v4 }
  0xe7   : > { %v1234_v26 = vpop.f32.mrf.mxu2  ;;  %v1254_v27 = vpop.f32.mrf.mxu3 }
  0xe8   : > { %v1265_v28 = vadd.f32 %v1234_v26, %v987_v8  ;;  %v1266_v29 = vadd.f32 %v1254_v27, %v988_v9  ;;  %v1348_v30 = vpop.f32.mrf.mxu0  ;;  %v1368_v31 = vpop.f32.mrf.mxu1 }
  0xe9   : > { %v1531_v6 = vadd.f32 %v1348_v30, %v1257_v13  ;;  %v1532_v32 = vadd.f32 %v1368_v31, %v1258_v14 }
  0xef   : > { %v1388_v33 = vpop.f32.mrf.mxu2  ;;  %v1408_v34 = vpop.f32.mrf.mxu3 }
  0xf0   : > { %v1533_v36 = vadd.f32 %v1388_v33, %v1259_v16  ;;  %v1534_v37 = vadd.f32 %v1408_v34, %v1260_v17  ;;  %v1428_v38 = vpop.f32.mrf.mxu0  ;;  %v1448_v35 = vpop.f32.mrf.mxu1 }
  0xf1   : > { %v1535_v39 = vadd.f32 %v1428_v38, %v1261_v20  ;;  %v1536_v40 = vadd.f32 %v1448_v35, %v1262_v21 }
  0xf7   : > { %v1468_v41 = vpop.f32.mrf.mxu2  ;;  %v1488_v42 = vpop.f32.mrf.mxu3 }
  0xf8   : > { %v3531_v43 = vadd.f32 %v1468_v41, %v1263_v24  ;;  %v3533_v44 = vadd.f32 %v1488_v42, %v1264_v25  ;;  %v1508_v45 = vpop.f32.mrf.mxu0  ;;  %v1528_v46 = vpop.f32.mrf.mxu1 }
  0xf9   : > { %v3535_v47 = vadd.f32 %v1508_v45, %v1265_v28  ;;  %v3537_v48 = vadd.f32 %v1528_v46, %v1266_v29 }
  0xff   : > { %v1622_v49 = vpop.f32.mrf.mxu2  ;;  %v1642_v50 = vpop.f32.mrf.mxu3 }
 0x100   : > { %v1662_v51 = vpop.f32.mrf.mxu0  ;;  %v1682_v54 = vpop.f32.mrf.mxu1  ;;  %v1806_v15 = vadd.f32 %v1642_v50, %v1532_v32  ;;  %v1805_v12 = vadd.f32 %v1622_v49, %v1531_v6 }
 0x101   : > { %v1807_v25 = vadd.f32 %v1662_v51, %v1533_v36  ;;  %v1808_v26 = vadd.f32 %v1682_v54, %v1534_v37 }
 0x107   : > { %v1702_v52 = vpop.f32.mrf.mxu2  ;;  %v1722_v53 = vpop.f32.mrf.mxu3 }
 0x108   : > { %v3539_v55 = vpop.f32.mrf.mxu0  ;;  %v3541_v56 = vpop.f32.mrf.mxu1  ;;  %v1810_v27 = vadd.f32 %v1722_v53, %v1536_v40  ;;  %v1809_v6 = vadd.f32 %v1702_v52, %v1535_v39 }
 0x109   : > { %v1811_v39 = vadd.f32 %v3539_v55, %v3531_v43  ;;  %v1812_v51 = vadd.f32 %v3541_v56, %v3533_v44 }
 0x10f   : > { %v3543_v57 = vpop.f32.mrf.mxu2  ;;  %v3545_v58 = vpop.f32.mrf.mxu3 }
 0x110   : > { %v1900_v59 = vpop.f32.mrf.mxu0  ;;  %v1920_v60 = vpop.f32.mrf.mxu1  ;;  %v1814_v53 = vadd.f32 %v3545_v58, %v3537_v48  ;;  %v1813_v44 = vadd.f32 %v3543_v57, %v3535_v47 }
 0x111   : > { %v2084_v16 = vadd.f32 %v1920_v60, %v1806_v15  ;;  %v2083_v17 = vadd.f32 %v1900_v59, %v1805_v12 }
 0x117   : > { %v1940_v61 = vpop.f32.mrf.mxu2  ;;  %v1960_v62 = vpop.f32.mrf.mxu3 }
 0x118   : > { %v1980_v63 = vpop.f32.mrf.mxu0  ;;  %v2000_v0 = vpop.f32.mrf.mxu1  ;;  %v2085_v30 = vadd.f32 %v1940_v61, %v1807_v25  ;;  %v2086_v31 = vadd.f32 %v1960_v62, %v1808_v26 }
 0x119   : > { %v2088_v32 = vadd.f32 %v2000_v0, %v1810_v27  ;;  %v2087_v35 = vadd.f32 %v1980_v63, %v1809_v6 }
 0x11f   : > { %v2020_v1 = vpop.f32.mrf.mxu2  ;;  %v2040_v2 = vpop.f32.mrf.mxu3 }
 0x120   : > { %v3547_v3 = vpop.f32.mrf.mxu0  ;;  %v2080_v4 = vpop.f32.mrf.mxu1  ;;  %v2089_v61 = vadd.f32 %v2020_v1, %v1811_v39  ;;  %v2090_v62 = vadd.f32 %v2040_v2, %v1812_v51 }
 0x121   : > { %v2092_v55 = vadd.f32 %v2080_v4, %v1814_v53  ;;  %v2091_v0 = vadd.f32 %v3547_v3, %v1813_v44 }
 0x127   : > { %v2174_v5 = vpop.f32.mrf.mxu2  ;;  %v2194_v7 = vpop.f32.mrf.mxu3 }
 0x128   : > { %v2214_v8 = vpop.f32.mrf.mxu0  ;;  %v2234_v9 = vpop.f32.mrf.mxu1  ;;  %v2358_v18 = vadd.f32 %v2194_v7, %v2084_v16  ;;  %v2357_v23 = vadd.f32 %v2174_v5, %v2083_v17 }
 0x129   : > { %v2359_v34 = vadd.f32 %v2214_v8, %v2085_v30  ;;  %v2360_v38 = vadd.f32 %v2234_v9, %v2086_v31 }
 0x12f   : > { %v2254_v10 = vpop.f32.mrf.mxu2  ;;  %v2274_v11 = vpop.f32.mrf.mxu3 }
 0x130   : > { %v2294_v13 = vpop.f32.mrf.mxu0  ;;  %v2314_v14 = vpop.f32.mrf.mxu1  ;;  %v2362_v41 = vadd.f32 %v2274_v11, %v2088_v32  ;;  %v2361_v49 = vadd.f32 %v2254_v10, %v2087_v35 }
 0x131   : > { %v2363_v58 = vadd.f32 %v2294_v13, %v2089_v61  ;;  %v2364_v63 = vadd.f32 %v2314_v14, %v2090_v62 }
 0x137   : > { %v2334_v19 = vpop.f32.mrf.mxu2  ;;  %v2354_v20 = vpop.f32.mrf.mxu3 }
 0x138   : > { %v2448_v21 = vpop.f32.mrf.mxu0  ;;  %v2468_v22 = vpop.f32.mrf.mxu1  ;;  %v2366_v5 = vadd.f32 %v2354_v20, %v2092_v55  ;;  %v2365_v47 = vadd.f32 %v2334_v19, %v2091_v0 }
 0x139   : > { %v2632_v24 = vadd.f32 %v2468_v22, %v2358_v18  ;;  %v2631_v28 = vadd.f32 %v2448_v21, %v2357_v23 }
 0x13b   : > { %v2651_v29 = vrot.slane %v2632_v24, 6 }
 0x13d   : > { %v2659_v33 = vsel %vm2658_vm2, %v2631_v28, %v2651_v29 }
 0x13f   : > { %v2488_v42 = vpop.f32.mrf.mxu2  ;;  %v2508_v45 = vpop.f32.mrf.mxu3 }
 0x140   : > { %v2633_v46 = vadd.f32 %v2488_v42, %v2359_v34  ;;  %v2634_v36 = vadd.f32 %v2508_v45, %v2360_v38  ;;  %v2528_v37 = vpop.f32.mrf.mxu0  ;;  %v2548_v40 = vpop.f32.mrf.mxu1 }
 0x141   : > { %v2636_v50 = vadd.f32 %v2548_v40, %v2362_v41  ;;  %v2635_v59 = vadd.f32 %v2528_v37, %v2361_v49 }
 0x142   : > { %v2652_v54 = vrot.slane %v2633_v46, 4  ;;  %v2653_v52 = vrot.slane %v2634_v36, 2 }
 0x143   : > { %v2654_v60 = vrot.slane %v2636_v50, 6 }
 0x144   : > { %v2661_v43 = vsel %vm2660_vm3, %v2652_v54, %v2653_v52 }
 0x145   : > { %v2662_v56 = vsel %vm252_vm0, %v2659_v33, %v2661_v43  ;;  %v2663_v48 = vsel %vm2658_vm2, %v2635_v59, %v2654_v60 }
 0x146   : > { %2670 = vst [vmem:[%s3562_s10] sm:$0xff] %v2662_v56 }
 0x147   : > { %v2568_v7 = vpop.f32.mrf.mxu2  ;;  %v2588_v1 = vpop.f32.mrf.mxu3 }
 0x148   : > { %v2637_v2 = vadd.f32 %v2568_v7, %v2363_v58  ;;  %v2638_v8 = vadd.f32 %v2588_v1, %v2364_v63  ;;  %v2608_v9 = vpop.f32.mrf.mxu0  ;;  %v2628_v10 = vpop.f32.mrf.mxu1 }
 0x149   : > { %v2640_v57 = vadd.f32 %v2628_v10, %v2366_v5  ;;  %v2639_v15 = vadd.f32 %v2608_v9, %v2365_v47 }
 0x14a   : > { %v2655_v4 = vrot.slane %v2637_v2, 4  ;;  %v2656_v11 = vrot.slane %v2638_v8, 2 }
 0x14b   : > { %v2657_v12 = vrot.slane %v2640_v57, 6 }
 0x14c   : > { %v2664_v13 = vsel %vm2660_vm3, %v2655_v4, %v2656_v11 }
 0x14d   : > { %v2665_v14 = vsel %vm252_vm0, %v2663_v48, %v2664_v13  ;;  %v2666_v3 = vsel %vm2658_vm2, %v2639_v15, %v2657_v12 }
 0x14e   : > { %2671 = vst [vmem:[%s3562_s10 + $0x8] sm:$0xff] %v2665_v14 }
 0x14f   : > { %2672 = vst [vmem:[%s3562_s10 + $0x10] sm:$0xf] %v2666_v3 }
 0x150 PF: > { %s13_s13 = sadd.s32 1, %s3105_s13   ;;  %s3596_s9 = smov %s3097_s11 }
 0x151   : > { %p10_p10 = scmp.ge.s32.totalorder %s13_s13, 6   ;;  %s3597_s10 = smov %s3101_s12 }
 0x152   : > { %s3598_s11 = smov %s3601_s15  ;;  %s3599_s12 = smov %s3605_s16 }
 0x153   :  { %12 = sbr.rel (!%p10_p10) target bundleno = 3 (0x3), region = 74 }
 0x158   :  { %2702 = vsyncpa [#allocation3], 1 }
 0x159   :  { %2704 = vsyncpa [#allocation3 + $0x1], 1 }

// kernel: dff_forward.8
= control target key start
LH: loop header
LB: loop body
LE: loop exit
PB: predicated region body
PF: predicated region fallthrough
CT: control target
= control target key end

     0   :  { %vm26_vm0 = vcmask 130048   ;;  %vm68_vm1 = vcmask 7168   ;;  %s141_s1 = inlined_call_operand.vmem [shape: f32[16,1], index: 1, kind: input, shape index: {}]   ;;  %s142_s0 = inlined_call_operand.vmem [shape: f32[32,16], index: 0, kind: input, shape index: {}]   ;;  %s143_s2 = inlined_call_operand.<no memory space> [shape: f32[1,1], index: 2, kind: input, shape index: {}]   ;;  %s144_s3 = inlined_call_operand.vmem [shape: f32[32,1], index: 3, kind: output, shape index: {}]  }
   0x1   :  { %v21_v0 = vld [vmem:[%s141_s1 + $0x8] sm:$0xff]  ;;  %v20_v1 = vld [vmem:[%s141_s1] sm:$0xff]  ;;  %v8_v2 = vstv %s143_s2  ;;  %v18_v3 = vld [vmem:[%s142_s0 + $0x10] sm:$0xff] }
   0x2   :  { %82 = vmatpush.msra.mxu2 %v21_v0  ;;  %83 = vmatpush.msra.mxu3 %v21_v0  ;;  %v19_v4 = vld [vmem:[%s142_s0 + $0x18] sm:$0xff]  ;;  %9 = vst [vmem:[#allocation2] sm:$0x1] %v8_v2  ;;  %v16_v5 = vld [vmem:[%s142_s0] sm:$0xff]  ;;  %v17_v6 = vld [vmem:[%s142_s0 + $0x8] sm:$0xff] }
   0x3   :  { %53 = vmatpush.msra.mxu0 %v21_v0  ;;  %81 = vmatpush.msra.mxu1 %v21_v0 }
   0x4   :  { %85 = vmatpush.msra.mxu2 %v20_v1  ;;  %86 = vmatpush.msra.mxu3 %v20_v1 }
   0x5   :  { %79 = vmatmul.msk.f32.vlgmr.msra.gmra.mxu2 %vm26_vm0, %v18_v3  ;;  %80 = vmatmul.msk.f32.vlgmr.msra.gmra.mxu3 %vm26_vm0, %v19_v4 }
   0x6   :  { %54 = vmatpush.msra.mxu0 %v20_v1  ;;  %84 = vmatpush.msra.mxu1 %v20_v1 }
   0x7   :  { %77 = vmatmul.msk.f32.vlgmr.msra.gmra.mxu0 %vm26_vm0, %v16_v5  ;;  %78 = vmatmul.msk.f32.vlgmr.msra.gmra.mxu1 %vm26_vm0, %v17_v6 }
   0x9   :  { %v87_v7 = vld [vmem:[#allocation2] ss:$0 sm:$0xff] }
  0x84   :  { %v56_v8 = vpop.f32.mrf.mxu0  ;;  %v59_v9 = vpop.f32.mrf.mxu1 }
  0x85   :  { %v57_v10 = vadd.f32 %v87_v7, %v56_v8  ;;  %v60_v11 = vadd.f32 %v87_v7, %v59_v9 }
  0x87   :  { %69 = vst.msk [vmem:[%s144_s3] sm:$0xff] %vm68_vm1, %v57_v10 }
  0x88   :  { %70 = vst.msk [vmem:[%s144_s3 + $0x8] sm:$0xff] %vm68_vm1, %v60_v11  ;;  %v62_v12 = vpop.f32.mrf.mxu2  ;;  %v65_v13 = vpop.f32.mrf.mxu3 }
  0x89   :  { %v63_v14 = vadd.f32 %v87_v7, %v62_v12  ;;  %v66_v15 = vadd.f32 %v87_v7, %v65_v13 }
  0x8b   :  { %71 = vst.msk [vmem:[%s144_s3 + $0x10] sm:$0xff] %vm68_vm1, %v63_v14 }
  0x8c   :  { %72 = vst.msk [vmem:[%s144_s3 + $0x18] sm:$0xff] %vm68_vm1, %v66_v15 }

// kernel: dff_forward.10
= control target key start
LH: loop header
LB: loop body
LE: loop exit
PB: predicated region body
PF: predicated region fallthrough
CT: control target
= control target key end

     0   :  { %s539_s9 = smov 0   ;;  %s541_s10 = smov 0   ;;  %s632_s0 = inlined_call_operand.vmem [shape: f32[2,10,10,1], index: 0, kind: input, shape index: {}]   ;;  %s633_s1 = inlined_call_operand.vmem [shape: f32[9,1,4], index: 1, kind: input, shape index: {}]   ;;  %s634_s2 = inlined_call_operand.vmem [shape: f32[2,8,8,4], index: 2, kind: output, shape index: {}]  }
   0x1   :  { %s543_s11 = smov 0   ;;  %s545_s12 = smov 0  }
   0x2   :  { %s547_s13 = smov 0  }
   0x3 LB: > { %s21_s14 = sadd.s32 1, %s513_s11  ;;  %s24_s15 = sadd.s32 1, %s517_s12  ;;  %s521_s13 = sphi %s547_s13, %s12_s13   ;;  %s517_s12 = sphi %s545_s12, %s638_s12   ;;  %s513_s11 = sphi %s543_s11, %s637_s11   ;;  %s509_s10 = sphi %s541_s10, %s636_s10   ;;  %s505_s9 = sphi %s539_s9, %s635_s9  }
   0x4   : > { %p22_p0 = scmp.ge.s32.totalorder %s21_s14, 8  ;;  %p408_p1 = scmp.ge.s32.totalorder %s521_s13, 1 }
   0x5   : > { %p126_p2 = scmp.lt.s32.totalorder %s521_s13, 17 }
   0x6   : > { %s640_s14 = smov (%p22_p0, %s21_s14), 0  ;;  %s642_s15 = smov (!%p22_p0, %s24_s15), %s517_s12 }
   0x7   : > { %p127_p3 = pnand %p408_p1, %p126_p2  ;;  %p26_p4 = scmp.ge.s32.totalorder %s642_s15, 2 }
   0x8   : > { %p151_p5 = scmp.lt.s32.totalorder (!%p127_p3), %s509_s10, 1  ;;  %s412_s17 = sshll.u32 (!%p127_p3), %s505_s9, 4 }
   0x9   : > { %s644_s15 = smov (%p26_p4, %s642_s15), 0  ;;  %130 = sbr.rel (%p127_p3) target bundleno = 165 (0xa5), region = 28 }
   0xa   : > { %p158_p6 = scmp.lt.s32.totalorder (!%p127_p3), %s505_s9, 7 }
   0xe   : > { %v523_v0 = vmov 0   ;;  %s646_s10 = smov (!%p151_p5, %s509_s10), 1  ;;  %v479_v9 = vld [vmem:[%s633_s1 + $0x1] ss:$0 sm:$0xff]  ;;  %v480_v11 = vld [vmem:[%s633_s1 + $0x2] ss:$0 sm:$0xff] }
   0xf   : > { %472 = vset.pattern.permute.xlu1 %v523_v0  ;;  %471 = vset.pattern.permute.xlu0 %v523_v0  ;;  %s429_s16 = smul.u32 160, %s646_s10  ;;  %v475_v13 = vld [vmem:[%s633_s1] ss:$0 sm:$0xff]  ;;  %v477_v16 = vld [vmem:[%s633_s1 + $0x4] ss:$0 sm:$0xff]  ;;  %vm193_vm0 = vcmask 1046528  }
  0x10   : > { %473 = vset.pattern.permute.xlu2 %v523_v0  ;;  %v478_v20 = vld [vmem:[%s633_s1 + $0x5] ss:$0 sm:$0xff]  ;;  %v474_v25 = vld [vmem:[%s633_s1 + $0x3] ss:$0 sm:$0xff]  ;;  %vm208_vm1 = vcmask 1045504   ;;  %s648_s9 = smov (!%p158_p6, %s505_s9), 7 }
  0x11   : > { %s155_s20 = scalar_lea.vmem %s632_s0, %s429_s16  ;;  %v481_v31 = vld [vmem:[%s633_s1 + $0x7] ss:$0 sm:$0xff]  ;;  %v482_v37 = vld [vmem:[%s633_s1 + $0x8] ss:$0 sm:$0xff]  ;;  %v476_v44 = vld [vmem:[%s633_s1 + $0x6] ss:$0 sm:$0xff] }
  0x12   : > { %s165_s21 = scalar_lea.vmem %s155_s20, %s412_s17  ;;  %s410_s19 = sshll.u32 %s646_s10, 3  ;;  %vm314_vm2 = vcmask 31744  }
  0x13   : > { %v416_v1 = vld [vmem:[%s165_s21 + $0x10] sm:$0xff]  ;;  %v166_v2 = vld [vmem:[%s165_s21] sm:$0xff]  ;;  %v417_v4 = vld [vmem:[%s165_s21 + $0x18] sm:$0x3]  ;;  %s161_s20 = sadd.s32 %s410_s19, %s648_s9 }
  0x14   : > { %223 = vperm.xlu1 %472, %v416_v1   ;;  %171 = vperm.xlu0 %471, %v166_v2   ;;  %v422_v3 = vld [vmem:[%s165_s21 + $0x20] sm:$0xff]  ;;  %v167_v5 = vld [vmem:[%s165_s21 + $0x8] sm:$0x3] }
  0x15   : > { %273 = vperm.xlu2 %473, %v422_v3   ;;  %v423_v6 = vld [vmem:[%s165_s21 + $0x28] sm:$0x3]  ;;  %s411_s21 = sshll.u32 %s161_s20, 3 }
  0x16   : > { %s163_s23 = scalar_lea.vmem %s634_s2, %s411_s21 }
  0x1c   : > { %235 = vperm.xlu1 %472, %v417_v4   ;;  %183 = vperm.xlu0 %471, %v167_v5  }
  0x1d   : > { %285 = vperm.xlu2 %473, %v423_v6  }
  0x6f   : > { %v274_v10 = vpop.permute.xlu2 %273 }
  0x70   : > { %v291_v42 = vmul.f32 %v481_v31, %v274_v10  ;;  %v305_v48 = vmul.f32 %v482_v37, %v274_v10  ;;  %v279_v54 = vmul.f32 %v476_v44, %v274_v10 }
  0x72   : > { %v295_v52 = vrot.slane %v291_v42, 1  ;;  %v309_v56 = vrot.slane %v305_v48, 2 }
  0x77   : > { %v286_v33 = vpop.permute.xlu2 %285 }
  0x78   : > { %v292_v43 = vmul.f32 %v481_v31, %v286_v33  ;;  %v306_v49 = vmul.f32 %v482_v37, %v286_v33 }
  0x7a   : > { %v296_v53 = vrot.slane %v292_v43, 1  ;;  %v310_v57 = vrot.slane %v306_v49, 2 }
  0x7c   : > { %v297_v59 = vsel %vm193_vm0, %v295_v52, %v296_v53  ;;  %v311_v61 = vsel %vm208_vm1, %v309_v56, %v310_v57 }
  0x86   : > { %v224_v7 = vpop.permute.xlu1 %223  ;;  %v172_v8 = vpop.permute.xlu0 %171 }
  0x87   : > { %v189_v12 = vmul.f32 %v479_v9, %v172_v8  ;;  %v204_v17 = vmul.f32 %v480_v11, %v172_v8  ;;  %v177_v26 = vmul.f32 %v475_v13, %v172_v8  ;;  %v241_v27 = vmul.f32 %v477_v16, %v224_v7 }
  0x88   : > { %v255_v34 = vmul.f32 %v478_v20, %v224_v7  ;;  %v229_v38 = vmul.f32 %v474_v25, %v224_v7 }
  0x89   : > { %v194_v22 = vrot.slane %v189_v12, 1  ;;  %v209_v29 = vrot.slane %v204_v17, 2  ;;  %v245_v40 = vrot.slane %v241_v27, 1 }
  0x8a   : > { %v259_v46 = vrot.slane %v255_v34, 2 }
  0x8e   : > { %v236_v14 = vpop.permute.xlu1 %235  ;;  %v184_v15 = vpop.permute.xlu0 %183 }
  0x8f   : > { %v190_v18 = vmul.f32 %v479_v9, %v184_v15  ;;  %v205_v19 = vmul.f32 %v480_v11, %v184_v15  ;;  %v242_v21 = vmul.f32 %v477_v16, %v236_v14  ;;  %v256_v28 = vmul.f32 %v478_v20, %v236_v14 }
  0x91   : > { %v195_v23 = vrot.slane %v190_v18, 1  ;;  %v210_v24 = vrot.slane %v205_v19, 2  ;;  %v246_v35 = vrot.slane %v242_v21, 1  ;;  %v260_v41 = vrot.slane %v256_v28, 2 }
  0x93   : > { %v196_v30 = vsel %vm193_vm0, %v194_v22, %v195_v23  ;;  %v211_v36 = vsel %vm208_vm1, %v209_v29, %v210_v24  ;;  %v247_v47 = vsel %vm193_vm0, %v245_v40, %v246_v35  ;;  %v261_v51 = vsel %vm208_vm1, %v259_v46, %v260_v41 }
  0x94   : > { %v198_v32 = vadd.f32 %v196_v30, %v177_v26 }
  0x96   : > { %v213_v39 = vadd.f32 %v211_v36, %v198_v32 }
  0x98   : > { %v230_v45 = vadd.f32 %v229_v38, %v213_v39 }
  0x9a   : > { %v249_v50 = vadd.f32 %v247_v47, %v230_v45 }
  0x9c   : > { %v263_v55 = vadd.f32 %v261_v51, %v249_v50 }
  0x9e   : > { %v280_v58 = vadd.f32 %v279_v54, %v263_v55 }
  0xa0   : > { %v299_v60 = vadd.f32 %v297_v59, %v280_v58 }
  0xa2   : > { %v313_v62 = vadd.f32 %v311_v61, %v299_v60 }
  0xa4   : > { %315 = vst.msk [vmem:[%s163_s23] sm:$0xff] %vm314_vm2, %v313_v62 }
  0xa5 PF: > { %s12_s13 = sadd.s32 1, %s521_s13   ;;  %s635_s9 = smov %s513_s11 }
  0xa6   : > { %p9_p7 = scmp.ge.s32.totalorder %s12_s13, 18   ;;  %s636_s10 = smov %s517_s12 }
  0xa7   : > { %s637_s11 = smov %s640_s14  ;;  %s638_s12 = smov %s644_s15 }
  0xa8   :  { %11 = sbr.rel (!%p9_p7) target bundleno = 3 (0x3), region = 69 }

// kernel: dff_forward.11
= control target key start
LH: loop header
LB: loop body
LE: loop exit
PB: predicated region body
PF: predicated region fallthrough
CT: control target
= control target key end

     0   :  { %s492_s9 = smov 0   ;;  %s494_s10 = smov 0   ;;  %s579_s0 = inlined_call_operand.vmem [shape: f32[2,6,6,1], index: 0, kind: input, shape index: {}]   ;;  %s580_s1 = inlined_call_operand.vmem [shape: f32[9,1,16], index: 1, kind: input, shape index: {}]   ;;  %s581_s2 = inlined_call_operand.vmem [shape: f32[2,4,4,16], index: 2, kind: output, shape index: {}]  }
   0x1   :  { %s496_s11 = smov 0   ;;  %s498_s12 = smov 0  }
   0x2   :  { %s500_s13 = smov 0  }
   0x3 LB: > { %s21_s14 = sadd.s32 1, %s466_s11  ;;  %s24_s15 = sadd.s32 1, %s470_s12  ;;  %s474_s13 = sphi %s500_s13, %s12_s13   ;;  %s470_s12 = sphi %s498_s12, %s585_s12   ;;  %s466_s11 = sphi %s496_s11, %s584_s11   ;;  %s462_s10 = sphi %s494_s10, %s583_s10   ;;  %s458_s9 = sphi %s492_s9, %s582_s9  }
   0x4   : > { %p22_p0 = scmp.ge.s32.totalorder %s21_s14, 4  ;;  %p364_p1 = scmp.ge.s32.totalorder %s474_s13, 1 }
   0x5   : > { %p126_p2 = scmp.lt.s32.totalorder %s474_s13, 9 }
   0x6   : > { %s587_s14 = smov (%p22_p0, %s21_s14), 0  ;;  %s589_s15 = smov (!%p22_p0, %s24_s15), %s470_s12 }
   0x7   : > { %p127_p3 = pnand %p364_p1, %p126_p2  ;;  %p26_p4 = scmp.ge.s32.totalorder %s589_s15, 2 }
   0x8   : > { %p151_p5 = scmp.lt.s32.totalorder (!%p127_p3), %s462_s10, 1  ;;  %s368_s17 = sshll.u32 (!%p127_p3), %s458_s9, 3 }
   0x9   : > { %s591_s15 = smov (%p26_p4, %s589_s15), 0  ;;  %130 = sbr.rel (%p127_p3) target bundleno = 158 (0x9e), region = 28 }
   0xa   : > { %p158_p6 = scmp.lt.s32.totalorder (!%p127_p3), %s458_s9, 3 }
   0xe   : > { %v476_v0 = vmov 0   ;;  %s593_s10 = smov (!%p151_p5, %s462_s10), 1  ;;  %v428_v4 = vld [vmem:[%s580_s1 + $0x1] ss:$0 sm:$0xff]  ;;  %v427_v5 = vld [vmem:[%s580_s1] ss:$0 sm:$0xff] }
   0xf   : > { %425 = vset.pattern.permute.xlu0 %v476_v0  ;;  %426 = vset.pattern.permute.xlu1 %v476_v0  ;;  %s383_s16 = smul.u32 48, %s593_s10  ;;  %v429_v6 = vld [vmem:[%s580_s1 + $0x2] ss:$0 sm:$0xff]  ;;  %v430_v13 = vld [vmem:[%s580_s1 + $0x3] ss:$0 sm:$0xff]  ;;  %s595_s9 = smov (!%p158_p6, %s458_s9), 3 }
  0x10   : > { %v431_v14 = vld [vmem:[%s580_s1 + $0x4] ss:$0 sm:$0xff]  ;;  %v432_v15 = vld [vmem:[%s580_s1 + $0x5] ss:$0 sm:$0xff]  ;;  %v434_v17 = vld [vmem:[%s580_s1 + $0x7] ss:$0 sm:$0xff] }
  0x11   : > { %s155_s20 = scalar_lea.vmem %s579_s0, %s383_s16  ;;  %v433_v24 = vld [vmem:[%s580_s1 + $0x6] ss:$0 sm:$0xff]  ;;  %v435_v27 = vld [vmem:[%s580_s1 + $0x8] ss:$0 sm:$0xff]  ;;  %vm270_vm0 = vcmask 125952  }
  0x12   : > { %s165_s21 = scalar_lea.vmem %s155_s20, %s368_s17  ;;  %s366_s17 = sshll.u32 %s593_s10, 2 }
  0x13   : > { %v166_v1 = vld [vmem:[%s165_s21] sm:$0x3f]  ;;  %v377_v2 = vld [vmem:[%s165_s21 + $0x10] sm:$0x3f]  ;;  %v372_v3 = vld [vmem:[%s165_s21 + $0x8] sm:$0x3f]  ;;  %s161_s20 = sadd.s32 %s366_s17, %s595_s9 }
  0x14   : > { %170 = vperm.xlu0 %425, %v166_v1   ;;  %242 = vperm.xlu1 %426, %v377_v2   ;;  %s367_s21 = sshll.u32 %s161_s20, 2 }
  0x15   : > { %s163_s23 = scalar_lea.vmem %s581_s2, %s367_s21 }
  0x1c   : > { %206 = vperm.xlu0 %425, %v372_v3  }
  0x86   : > { %v171_v7 = vpop.permute.xlu0 %170  ;;  %v243_v19 = vpop.permute.xlu1 %242 }
  0x87   : > { %v183_v8 = vmul.f32 %v428_v4, %v171_v7  ;;  %v176_v9 = vmul.f32 %v427_v5, %v171_v7  ;;  %v193_v11 = vmul.f32 %v429_v6, %v171_v7  ;;  %v255_v28 = vmul.f32 %v434_v17, %v243_v19 }
  0x88   : > { %v248_v31 = vmul.f32 %v433_v24, %v243_v19  ;;  %v265_v34 = vmul.f32 %v435_v27, %v243_v19 }
  0x89   : > { %v185_v10 = vrot.slane %v183_v8, 1  ;;  %v195_v16 = vrot.slane %v193_v11, 2  ;;  %v257_v33 = vrot.slane %v255_v28, 1 }
  0x8a   : > { %v267_v37 = vrot.slane %v265_v34, 2 }
  0x8b   : > { %v187_v12 = vadd.f32 %v185_v10, %v176_v9 }
  0x8d   : > { %v197_v20 = vadd.f32 %v195_v16, %v187_v12 }
  0x8e   : > { %v207_v18 = vpop.permute.xlu0 %206 }
  0x8f   : > { %v212_v21 = vmul.f32 %v430_v13, %v207_v18  ;;  %v219_v22 = vmul.f32 %v431_v14, %v207_v18  ;;  %v229_v23 = vmul.f32 %v432_v15, %v207_v18 }
  0x91   : > { %v213_v25 = vadd.f32 %v212_v21, %v197_v20  ;;  %v221_v26 = vrot.slane %v219_v22, 1  ;;  %v231_v30 = vrot.slane %v229_v23, 2 }
  0x93   : > { %v223_v29 = vadd.f32 %v221_v26, %v213_v25 }
  0x95   : > { %v233_v32 = vadd.f32 %v231_v30, %v223_v29 }
  0x97   : > { %v249_v35 = vadd.f32 %v248_v31, %v233_v32 }
  0x99   : > { %v259_v36 = vadd.f32 %v257_v33, %v249_v35 }
  0x9b   : > { %v269_v38 = vadd.f32 %v267_v37, %v259_v36 }
  0x9d   : > { %271 = vst.msk [vmem:[%s163_s23] sm:$0xf] %vm270_vm0, %v269_v38 }
  0x9e PF: > { %s12_s13 = sadd.s32 1, %s474_s13   ;;  %s582_s9 = smov %s466_s11 }
  0x9f   : > { %p9_p7 = scmp.ge.s32.totalorder %s12_s13, 10   ;;  %s583_s10 = smov %s470_s12 }
  0xa0   : > { %s584_s11 = smov %s587_s14  ;;  %s585_s12 = smov %s591_s15 }
  0xa1   :  { %11 = sbr.rel (!%p9_p7) target bundleno = 3 (0x3), region = 69 }

// kernel: dff_forward.13
= control target key start
LH: loop header
LB: loop body
LE: loop exit
PB: predicated region body
PF: predicated region fallthrough
CT: control target
= control target key end

     0   :  { %vm310_vm0 = vcmask 1043456   ;;  %vm1343_vm1 = vcmask 64512   ;;  %vm117_vm2 = vcmask 162816   ;;  %v5019_v35 = vmov 0   ;;  %s9049_s4 = inlined_call_operand.vmem [shape: f32[20,16], index: 4, kind: input, shape index: {}]   ;;  %s9050_s10 = inlined_call_operand.vmem [shape: f32[20,4], index: 10, kind: input, shape index: {}]   ;;  %s9051_s11 = inlined_call_operand.vmem [shape: f32[8,1], index: 11, kind: input, shape index: {}]   ;;  %s9052_s1 = inlined_call_operand.vmem [shape: f32[512,8], index: 1, kind: input, shape index: {}]   ;;  %s9053_s0 = inlined_call_operand.vmem [shape: f32[512,20], index: 0, kind: input, shape index: {}]   ;;  %s9054_s5 = inlined_call_operand.vmem [shape: f32[1,16], index: 5, kind: input, shape index: {}]   ;;  %s9055_s2 = inlined_call_operand.vmem [shape: f32[512,1], index: 2, kind: input, shape index: {}]   ;;  %s9056_s8 = inlined_call_operand.vmem [shape: f32[4,16,4], index: 8, kind: input, shape index: {}]   ;;  %s9057_s6 = inlined_call_operand.vmem [shape: f32[16,16], index: 6, kind: input, shape index: {}]   ;;  %s9058_s12 = inlined_call_operand.<no memory space> [shape: f32[1,1], index: 12, kind: input, shape index: {}]   ;;  %s9059_s7 = inlined_call_operand.vmem [shape: f32[1,16], index: 7, kind: input, shape index: {}]   ;;  %s9060_s3 = inlined_call_operand.vmem [shape: f32[512,1], index: 3, kind: input, shape index: {}]   ;;  %s9061_s9 = inlined_call_operand.vmem [shape: f32[4,1,4], index: 9, kind: input, shape index: {}]   ;;  %s9062_s13 = inlined_call_operand.vmem [shape: f32[512,4], index: 13, kind: output, shape index: {}]  }
   0x1   :  { %v112_v0 = vld [vmem:[%s9049_s4 + $0x10] sm:$0xf]  ;;  %v1338_v2 = vld [vmem:[%s9051_s11] sm:$0xff]  ;;  %v111_v4 = vld [vmem:[%s9049_s4 + $0x8] sm:$0xff]  ;;  %4998 = vset.pattern.permute.xlu0 %v5019_v35  ;;  %4997 = vset.pattern.permute.xlu2 %v5019_v35  ;;  %v18_v40 = vstv %s9058_s12  ;;  %vm593_vm3 = vcmask 130048   ;;  %vm4403_vm4 = vcmask 31744  }
   0x2   :  { %v1061_v1 = vld [vmem:[%s9050_s10 + $0x10] sm:$0xf]  ;;  %4472 = vmatpush.msk.msra.mxu0 %vm310_vm0, %v112_v0  ;;  %v1274_v3 = vld [vmem:[%s9052_s1] sm:$0xff]  ;;  %v1060_v5 = vld [vmem:[%s9050_s10 + $0x8] sm:$0xff]  ;;  %1551 = vmatpush.msra.mxu3 %v1338_v2  ;;  %19 = vst [vmem:[#allocation2] sm:$0x1] %v18_v40 }
   0x3   :  { %4601 = vmatpush.msk.msra.mxu2 %vm310_vm0, %v1061_v1  ;;  %v110_v6 = vld [vmem:[%s9049_s4] sm:$0xff]  ;;  %4666 = vmatmul.msk.f32.vlgmr.msra.gmra.mxu3 %vm1343_vm1, %v1274_v3  ;;  %v1275_v9 = vld [vmem:[%s9052_s1 + $0x8] sm:$0xff]  ;;  %v1276_v11 = vld [vmem:[%s9052_s1 + $0x10] sm:$0xff] }
   0x4   :  { %328 = vmatpush.msra.mxu0 %v111_v4  ;;  %v1059_v7 = vld [vmem:[%s9050_s10] sm:$0xff]  ;;  %v47_v10 = vld [vmem:[%s9053_s0 + $0x8] sm:$0xff]  ;;  %v48_v12 = vld [vmem:[%s9053_s0 + $0x10] sm:$0xff]  ;;  %4996 = vset.pattern.permute.xlu1 %v5019_v35 }
   0x5   :  { %v46_v8 = vld [vmem:[%s9053_s0] sm:$0xff]  ;;  %1079 = vmatpush.msra.mxu2 %v1060_v5  ;;  %v1277_v13 = vld [vmem:[%s9052_s1 + $0x18] sm:$0xff]  ;;  %v1279_v17 = vld [vmem:[%s9052_s1 + $0x28] sm:$0xff] }
   0x6   :  { %329 = vmatpush.msra.mxu0 %v110_v6  ;;  %v49_v14 = vld [vmem:[%s9053_s0 + $0x18] sm:$0xff]  ;;  %v1278_v15 = vld [vmem:[%s9052_s1 + $0x20] sm:$0xff]  ;;  %v51_v18 = vld [vmem:[%s9053_s0 + $0x28] sm:$0xff] }
   0x7   :  { %1080 = vmatpush.msra.mxu2 %v1059_v7  ;;  %4473 = vmatmul.msk.f32.vlgmr.msra.gmra.mxu0 %vm117_vm2, %v46_v8  ;;  %v50_v16 = vld [vmem:[%s9053_s0 + $0x20] sm:$0xff]  ;;  %v1280_v19 = vld [vmem:[%s9052_s1 + $0x30] sm:$0xff]  ;;  %v1281_v21 = vld [vmem:[%s9052_s1 + $0x38] sm:$0xff] }
   0x8   :  { %4602 = vmatmul.msk.f32.vlgmr.msra.gmra.mxu2 %vm117_vm2, %v46_v8  ;;  %v52_v20 = vld [vmem:[%s9053_s0 + $0x30] sm:$0xff]  ;;  %v53_v22 = vld [vmem:[%s9053_s0 + $0x38] sm:$0xff]  ;;  %v1282_v23 = vld [vmem:[%s9052_s1 + $0x40] sm:$0xff] }
   0x9   :  { %v54_v24 = vld [vmem:[%s9053_s0 + $0x40] sm:$0xff]  ;;  %v1283_v25 = vld [vmem:[%s9052_s1 + $0x48] sm:$0xff]  ;;  %v1284_v27 = vld [vmem:[%s9052_s1 + $0x50] sm:$0xff] }
   0xa   :  { %v55_v26 = vld [vmem:[%s9053_s0 + $0x48] sm:$0xff]  ;;  %v56_v28 = vld [vmem:[%s9053_s0 + $0x50] sm:$0xff]  ;;  %v1285_v29 = vld [vmem:[%s9052_s1 + $0x58] sm:$0xff] }
   0xb   :  { %4667 = vmatmul.msk.f32.gmra.mxu3 %vm1343_vm1, %v1275_v9  ;;  %v57_v30 = vld [vmem:[%s9053_s0 + $0x58] sm:$0xff]  ;;  %v1747_v31 = vld [vmem:[%s9055_s2 + $0x10] sm:$0xff]  ;;  %v1746_v32 = vld [vmem:[%s9055_s2 + $0x8] sm:$0xff] }
   0xc   :  { %v1745_v33 = vld [vmem:[%s9055_s2] sm:$0xff]  ;;  %3302 = vperm.xlu0 %4998, %v1747_v31   ;;  %3297 = vperm.xlu2 %4997, %v1746_v32   ;;  %v1874_v37 = vld [vmem:[%s9056_s8 + $0x8] sm:$0xff]  ;;  %v4929_v41 = vld [vmem:[%s9056_s8 + $0x38] sm:$0xff] }
   0xd   :  { %v1286_v34 = vld [vmem:[%s9052_s1 + $0x60] sm:$0xff]  ;;  %3292 = vperm.xlu1 %4996, %v1745_v33   ;;  %2085 = vmatpush.msrb.mxu3 %v1874_v37  ;;  %v588_v38 = vld [vmem:[%s9057_s6 + $0x8] sm:$0xff]  ;;  %v4795_v43 = vld [vmem:[%s9056_s8 + $0x18] sm:$0xff] }
   0xe   :  { %v58_v36 = vld [vmem:[%s9053_s0 + $0x60] sm:$0xff]  ;;  %v1287_v39 = vld [vmem:[%s9052_s1 + $0x68] sm:$0xff]  ;;  %800 = vmatpush.msra.mxu1 %v588_v38  ;;  %3760 = vmatpush.msrb.mxu2 %v4929_v41  ;;  %v1748_v46 = vld [vmem:[%s9055_s2 + $0x18] sm:$0xff] }
   0xf   :  { %4474 = vmatmul.msk.f32.gmra.mxu0 %vm117_vm2, %v47_v10  ;;  %v587_v42 = vld [vmem:[%s9057_s6] sm:$0xff]  ;;  %v1750_v44 = vld [vmem:[%s9055_s2 + $0x28] sm:$0xff]  ;;  %v1752_v50 = vld [vmem:[%s9055_s2 + $0x38] sm:$0xff] }
  0x10   :  { %4603 = vmatmul.msk.f32.gmra.mxu2 %vm117_vm2, %v47_v10  ;;  %801 = vmatpush.msra.mxu1 %v587_v42  ;;  %v1749_v45 = vld [vmem:[%s9055_s2 + $0x20] sm:$0xff]  ;;  %v59_v47 = vld [vmem:[%s9053_s0 + $0x68] sm:$0xff]  ;;  %v1751_v51 = vld [vmem:[%s9055_s2 + $0x30] sm:$0xff] }
  0x11   :  { %v4862_v48 = vld [vmem:[%s9056_s8 + $0x28] sm:$0xff]  ;;  %v1753_v49 = vld [vmem:[%s9055_s2 + $0x40] sm:$0xff]  ;;  %v1288_v52 = vld [vmem:[%s9052_s1 + $0x70] sm:$0xff] }
  0x12   :  { %2430 = vmatpush.msrb.mxu1 %v4795_v43  ;;  %3095 = vmatpush.msrb.mxu0 %v4862_v48  ;;  %v60_v53 = vld [vmem:[%s9053_s0 + $0x70] sm:$0xff]  ;;  %v1756_v54 = vld [vmem:[%s9055_s2 + $0x58] sm:$0xff]  ;;  %v1754_v56 = vld [vmem:[%s9055_s2 + $0x48] sm:$0xff] }
  0x13   :  { %4668 = vmatmul.msk.f32.gmra.mxu3 %vm1343_vm1, %v1276_v11  ;;  %v1755_v55 = vld [vmem:[%s9055_s2 + $0x50] sm:$0xff]  ;;  %v1289_v57 = vld [vmem:[%s9052_s1 + $0x78] sm:$0xff]  ;;  %v1758_v60 = vld [vmem:[%s9055_s2 + $0x68] sm:$0xff] }
  0x14   :  { %3317 = vperm.xlu0 %4998, %v1750_v44   ;;  %3312 = vperm.xlu2 %4997, %v1749_v45   ;;  %v61_v58 = vld [vmem:[%s9053_s0 + $0x78] sm:$0xff]  ;;  %v1759_v59 = vld [vmem:[%s9055_s2 + $0x70] sm:$0xff]  ;;  %v1757_v61 = vld [vmem:[%s9055_s2 + $0x60] sm:$0xff] }
  0x15   :  { %3307 = vperm.xlu1 %4996, %v1748_v46   ;;  %v1290_v62 = vld [vmem:[%s9052_s1 + $0x80] sm:$0xff]  ;;  %v1762_v5 = vld [vmem:[%s9055_s2 + $0x88] sm:$0xff]  ;;  %v1760_v7 = vld [vmem:[%s9055_s2 + $0x78] sm:$0xff] }
  0x16   :  { %v5327_v63 = vld [vmem:[%s9054_s5] ss:$0 sm:$0xff]  ;;  %v1291_v8 = vld [vmem:[%s9052_s1 + $0x88] sm:$0xff]  ;;  %v65_v31 = vld [vmem:[%s9053_s0 + $0x98] sm:$0xff] }
  0x17   :  { %4475 = vmatmul.msk.f32.gmra.mxu0 %vm117_vm2, %v48_v12  ;;  %v62_v1 = vld [vmem:[%s9053_s0 + $0x80] sm:$0xff]  ;;  %v63_v11 = vld [vmem:[%s9053_s0 + $0x88] sm:$0xff]  ;;  %v1771_v35 = vld [vmem:[%s9055_s2 + $0xd0] sm:$0xff] }
  0x18   :  { %4604 = vmatmul.msk.f32.gmra.mxu2 %vm117_vm2, %v48_v12  ;;  %v1761_v6 = vld [vmem:[%s9055_s2 + $0x80] sm:$0xff]  ;;  %v1774_v45 = vld [vmem:[%s9055_s2 + $0xe8] sm:$0xff] }
  0x19   :  { %v1769_v37 = vld [vmem:[%s9055_s2 + $0xc0] sm:$0xff]  ;;  %v1295_v48 = vld [vmem:[%s9052_s1 + $0xa8] sm:$0xff] }
  0x1a   :  { %v1294_v38 = vld [vmem:[%s9052_s1 + $0xa0] sm:$0xff] }
  0x1b   :  { %4669 = vmatmul.msk.f32.gmra.mxu3 %vm1343_vm1, %v1277_v13  ;;  %v66_v41 = vld [vmem:[%s9053_s0 + $0xa0] sm:$0xff] }
  0x1c   :  { %3332 = vperm.xlu0 %4998, %v1753_v49   ;;  %3327 = vperm.xlu2 %4997, %v1752_v50   ;;  %v1773_v46 = vld [vmem:[%s9055_s2 + $0xe0] sm:$0xff] }
  0x1d   :  { %3322 = vperm.xlu1 %4996, %v1751_v51   ;;  %v67_v51 = vld [vmem:[%s9053_s0 + $0xa8] sm:$0xff] }
  0x1f   :  { %4476 = vmatmul.msk.f32.gmra.mxu0 %vm117_vm2, %v49_v14 }
  0x20   :  { %4605 = vmatmul.msk.f32.gmra.mxu2 %vm117_vm2, %v49_v14 }
  0x23   :  { %4670 = vmatmul.msk.f32.gmra.mxu3 %vm1343_vm1, %v1278_v15  ;;  %v1765_v15 = vld [vmem:[%s9055_s2 + $0xa0] sm:$0xff] }
  0x24   :  { %3347 = vperm.xlu0 %4998, %v1756_v54   ;;  %3342 = vperm.xlu2 %4997, %v1755_v55   ;;  %v1777_v55 = vld [vmem:[%s9055_s2 + $0x100] sm:$0xff] }
  0x25   :  { %3337 = vperm.xlu1 %4996, %v1754_v56   ;;  %v1776_v56 = vld [vmem:[%s9055_s2 + $0xf8] sm:$0xff] }
  0x27   :  { %4477 = vmatmul.msk.f32.gmra.mxu0 %vm117_vm2, %v50_v16 }
  0x28   :  { %4606 = vmatmul.msk.f32.gmra.mxu2 %vm117_vm2, %v50_v16  ;;  %v1764_v16 = vld [vmem:[%s9055_s2 + $0x98] sm:$0xff] }
  0x2b   :  { %4671 = vmatmul.msk.f32.gmra.mxu3 %vm1343_vm1, %v1279_v17  ;;  %v1763_v17 = vld [vmem:[%s9055_s2 + $0x90] sm:$0xff] }
  0x2c   :  { %3362 = vperm.xlu0 %4998, %v1759_v59   ;;  %3357 = vperm.xlu2 %4997, %v1758_v60  }
  0x2d   :  { %3352 = vperm.xlu1 %4996, %v1757_v61   ;;  %v68_v61 = vld [vmem:[%s9053_s0 + $0xb0] sm:$0xff] }
  0x2f   :  { %4478 = vmatmul.msk.f32.gmra.mxu0 %vm117_vm2, %v51_v18 }
  0x30   :  { %4607 = vmatmul.msk.f32.gmra.mxu2 %vm117_vm2, %v51_v18  ;;  %v1292_v18 = vld [vmem:[%s9052_s1 + $0x90] sm:$0xff] }
  0x33   :  { %4672 = vmatmul.msk.f32.gmra.mxu3 %vm1343_vm1, %v1280_v19 }
  0x34   :  { %3377 = vperm.xlu0 %4998, %v1762_v5   ;;  %3372 = vperm.xlu2 %4997, %v1761_v6   ;;  %v1778_v5 = vld [vmem:[%s9055_s2 + $0x108] sm:$0xff]  ;;  %v1297_v6 = vld [vmem:[%s9052_s1 + $0xb8] sm:$0xff] }
  0x35   :  { %3367 = vperm.xlu1 %4996, %v1760_v7  }
  0x37   :  { %4479 = vmatmul.msk.f32.gmra.mxu0 %vm117_vm2, %v52_v20 }
  0x38   :  { %4608 = vmatmul.msk.f32.gmra.mxu2 %vm117_vm2, %v52_v20 }
  0x3b   :  { %4673 = vmatmul.msk.f32.gmra.mxu3 %vm1343_vm1, %v1281_v21  ;;  %v64_v21 = vld [vmem:[%s9053_s0 + $0x90] sm:$0xff] }
  0x3c   :  { %3392 = vperm.xlu0 %4998, %v1765_v15   ;;  %3387 = vperm.xlu2 %4997, %v1764_v16   ;;  %v1783_v15 = vld [vmem:[%s9055_s2 + $0x130] sm:$0xff]  ;;  %v1782_v16 = vld [vmem:[%s9055_s2 + $0x128] sm:$0xff] }
  0x3d   :  { %3382 = vperm.xlu1 %4996, %v1763_v17   ;;  %v1781_v17 = vld [vmem:[%s9055_s2 + $0x120] sm:$0xff] }
  0x3f   :  { %4480 = vmatmul.msk.f32.gmra.mxu0 %vm117_vm2, %v53_v22 }
  0x40   :  { %4609 = vmatmul.msk.f32.gmra.mxu2 %vm117_vm2, %v53_v22 }
  0x43   :  { %4674 = vmatmul.msk.f32.gmra.mxu3 %vm1343_vm1, %v1282_v23 }
  0x47   :  { %4481 = vmatmul.msk.f32.gmra.mxu0 %vm117_vm2, %v54_v24 }
  0x48   :  { %4610 = vmatmul.msk.f32.gmra.mxu2 %vm117_vm2, %v54_v24 }
  0x4b   :  { %4675 = vmatmul.msk.f32.gmra.mxu3 %vm1343_vm1, %v1283_v25  ;;  %v1768_v25 = vld [vmem:[%s9055_s2 + $0xb8] sm:$0xff] }
  0x4c   :  { %3407 = vperm.xlu0 %4998, %v1768_v25  }
  0x4f   :  { %4482 = vmatmul.msk.f32.gmra.mxu0 %vm117_vm2, %v55_v26 }
  0x50   :  { %4611 = vmatmul.msk.f32.gmra.mxu2 %vm117_vm2, %v55_v26  ;;  %v1767_v26 = vld [vmem:[%s9055_s2 + $0xb0] sm:$0xff] }
  0x51   :  { %3402 = vperm.xlu2 %4997, %v1767_v26  }
  0x53   :  { %4676 = vmatmul.msk.f32.gmra.mxu3 %vm1343_vm1, %v1284_v27  ;;  %v1766_v27 = vld [vmem:[%s9055_s2 + $0xa8] sm:$0xff] }
  0x54   :  { %3397 = vperm.xlu1 %4996, %v1766_v27   ;;  %3422 = vperm.xlu0 %4998, %v1771_v35   ;;  %v1786_v27 = vld [vmem:[%s9055_s2 + $0x148] sm:$0xff] }
  0x55   :  { %v71_v35 = vld [vmem:[%s9053_s0 + $0xc8] sm:$0xff] }
  0x57   :  { %4483 = vmatmul.msk.f32.gmra.mxu0 %vm117_vm2, %v56_v28 }
  0x58   :  { %4612 = vmatmul.msk.f32.gmra.mxu2 %vm117_vm2, %v56_v28  ;;  %v1293_v28 = vld [vmem:[%s9052_s1 + $0x98] sm:$0xff] }
  0x5b   :  { %4677 = vmatmul.msk.f32.gmra.mxu3 %vm1343_vm1, %v1285_v29 }
  0x5c   :  { %3412 = vperm.xlu1 %4996, %v1769_v37   ;;  %3437 = vperm.xlu0 %4998, %v1774_v45  }
  0x5f   :  { %4484 = vmatmul.msk.f32.gmra.mxu0 %vm117_vm2, %v57_v30 }
  0x60   :  { %4613 = vmatmul.msk.f32.gmra.mxu2 %vm117_vm2, %v57_v30 }
  0x63   :  { %4678 = vmatmul.msk.f32.gmra.mxu3 %vm1343_vm1, %v1286_v34 }
  0x64   :  { %3452 = vperm.xlu0 %4998, %v1777_v55   ;;  %v1790_v55 = vld [vmem:[%s9055_s2 + $0x168] sm:$0xff] }
  0x67   :  { %4485 = vmatmul.msk.f32.gmra.mxu0 %vm117_vm2, %v58_v36 }
  0x68   :  { %4614 = vmatmul.msk.f32.gmra.mxu2 %vm117_vm2, %v58_v36  ;;  %v1770_v36 = vld [vmem:[%s9055_s2 + $0xc8] sm:$0xff] }
  0x69   :  { %3417 = vperm.xlu2 %4997, %v1770_v36  }
  0x6b   :  { %4679 = vmatmul.msk.f32.gmra.mxu3 %vm1343_vm1, %v1287_v39 }
  0x6f   :  { %4486 = vmatmul.msk.f32.gmra.mxu0 %vm117_vm2, %v59_v47 }
  0x70   :  { %4615 = vmatmul.msk.f32.gmra.mxu2 %vm117_vm2, %v59_v47  ;;  %v1772_v47 = vld [vmem:[%s9055_s2 + $0xd8] sm:$0xff] }
  0x71   :  { %3432 = vperm.xlu2 %4997, %v1773_v46   ;;  %3427 = vperm.xlu1 %4996, %v1772_v47   ;;  %v72_v47 = vld [vmem:[%s9053_s0 + $0xd0] sm:$0xff] }
  0x73   :  { %4680 = vmatmul.msk.f32.gmra.mxu3 %vm1343_vm1, %v1288_v52 }
  0x77   :  { %4487 = vmatmul.msk.f32.gmra.mxu0 %vm117_vm2, %v60_v53 }
  0x78   :  { %4616 = vmatmul.msk.f32.gmra.mxu2 %vm117_vm2, %v60_v53 }
  0x79   :  { %3447 = vperm.xlu2 %4997, %v1776_v56   ;;  %v1301_v56 = vld [vmem:[%s9052_s1 + $0xd8] sm:$0xff] }
  0x7b   :  { %4681 = vmatmul.msk.f32.gmra.mxu3 %vm1343_vm1, %v1289_v57  ;;  %v1775_v57 = vld [vmem:[%s9055_s2 + $0xf0] sm:$0xff] }
  0x7c   :  { %3442 = vperm.xlu1 %4996, %v1775_v57  }
  0x7f   :  { %4488 = vmatmul.msk.f32.gmra.mxu0 %vm117_vm2, %v61_v58 }
  0x80   :  { %4617 = vmatmul.msk.f32.gmra.mxu2 %vm117_vm2, %v61_v58  ;;  %v1296_v58 = vld [vmem:[%s9052_s1 + $0xb0] sm:$0xff] }
  0x83   :  { %4682 = vmatmul.msk.f32.gmra.mxu3 %vm1343_vm1, %v1290_v62 }
  0x84   :  { %v331_v0 = vpop.f32.mrf.mxu0  ;;  %3457 = vperm.xlu1 %4996, %v1778_v5   ;;  %v1793_v5 = vld [vmem:[%s9055_s2 + $0x180] sm:$0xff] }
  0x85   :  { %v332_v2 = vadd.f32 %v5327_v63, %v331_v0 }
  0x86   :  { %v5334_v4 = vpop.f32.mrf.mxu3 }
  0x87   :  { %v523_v3 = vmax.f32 %v332_v2, 0.0  ;;  %4489 = vmatmul.msk.f32.gmra.mxu0 %vm117_vm2, %v62_v1  ;;  %v1780_v2 = vld [vmem:[%s9055_s2 + $0x118] sm:$0xff] }
  0x88   :  { %4618 = vmatmul.msk.f32.gmra.mxu2 %vm117_vm2, %v62_v1  ;;  %3467 = vperm.xlu0 %4998, %v1780_v2   ;;  %v1795_v2 = vld [vmem:[%s9055_s2 + $0x190] sm:$0xff] }
  0x89   :  { %4537 = vmatmul.msk.f32.vlgmr.msra.gmra.mxu1 %vm593_vm3, %v523_v3  ;;  %v1779_v3 = vld [vmem:[%s9055_s2 + $0x110] sm:$0xff] }
  0x8a   :  { %3462 = vperm.xlu2 %4997, %v1779_v3   ;;  %v1794_v3 = vld [vmem:[%s9055_s2 + $0x188] sm:$0xff] }
  0x8b   :  { %v5351_v9 = vpop.f32.mrf.mxu2  ;;  %4683 = vmatmul.msk.f32.gmra.mxu3 %vm1343_vm1, %v1291_v8 }
  0x8c   :  { %v334_v10 = vpop.f32.mrf.mxu0  ;;  %3472 = vperm.xlu1 %4996, %v1781_v17  }
  0x8d   :  { %v335_v12 = vadd.f32 %v5327_v63, %v334_v10  ;;  %v69_v10 = vld [vmem:[%s9053_s0 + $0xb8] sm:$0xff] }
  0x8e   :  { %v5358_v14 = vpop.f32.mrf.mxu3 }
  0x8f   :  { %v524_v13 = vmax.f32 %v335_v12, 0.0  ;;  %4490 = vmatmul.msk.f32.gmra.mxu0 %vm117_vm2, %v63_v11 }
  0x90   :  { %4619 = vmatmul.msk.f32.gmra.mxu2 %vm117_vm2, %v63_v11  ;;  %3482 = vperm.xlu0 %4998, %v1783_v15  }
  0x91   :  { %4538 = vmatmul.msk.f32.gmra.mxu1 %vm593_vm3, %v524_v13 }
  0x92   :  { %3477 = vperm.xlu2 %4997, %v1782_v16  }
  0x93   :  { %v5375_v19 = vpop.f32.mrf.mxu2  ;;  %4684 = vmatmul.msk.f32.gmra.mxu3 %vm1343_vm1, %v1292_v18  ;;  %v1298_v18 = vld [vmem:[%s9052_s1 + $0xc0] sm:$0xff] }
  0x94   :  { %v337_v20 = vpop.f32.mrf.mxu0 }
  0x95   :  { %v338_v22 = vadd.f32 %v5327_v63, %v337_v20 }
  0x96   :  { %v5382_v24 = vpop.f32.mrf.mxu3 }
  0x97   :  { %v525_v23 = vmax.f32 %v338_v22, 0.0  ;;  %4491 = vmatmul.msk.f32.gmra.mxu0 %vm117_vm2, %v64_v21  ;;  %v70_v22 = vld [vmem:[%s9053_s0 + $0xc0] sm:$0xff] }
  0x98   :  { %4620 = vmatmul.msk.f32.gmra.mxu2 %vm117_vm2, %v64_v21  ;;  %3497 = vperm.xlu0 %4998, %v1786_v27   ;;  %v75_v27 = vld [vmem:[%s9053_s0 + $0xe8] sm:$0xff] }
  0x99   :  { %4539 = vmatmul.msk.f32.gmra.mxu1 %vm593_vm3, %v525_v23 }
  0x9b   :  { %v5399_v29 = vpop.f32.mrf.mxu2  ;;  %4685 = vmatmul.msk.f32.gmra.mxu3 %vm1343_vm1, %v1293_v28  ;;  %v1785_v28 = vld [vmem:[%s9055_s2 + $0x140] sm:$0xff] }
  0x9c   :  { %v340_v30 = vpop.f32.mrf.mxu0  ;;  %3492 = vperm.xlu2 %4997, %v1785_v28  }
  0x9d   :  { %v341_v32 = vadd.f32 %v5327_v63, %v340_v30  ;;  %v1784_v30 = vld [vmem:[%s9055_s2 + $0x138] sm:$0xff] }
  0x9e   :  { %v5406_v34 = vpop.f32.mrf.mxu3  ;;  %3487 = vperm.xlu1 %4996, %v1784_v30  }
  0x9f   :  { %v526_v33 = vmax.f32 %v341_v32, 0.0  ;;  %4492 = vmatmul.msk.f32.gmra.mxu0 %vm117_vm2, %v65_v31 }
  0xa0   :  { %4621 = vmatmul.msk.f32.gmra.mxu2 %vm117_vm2, %v65_v31  ;;  %v1299_v31 = vld [vmem:[%s9052_s1 + $0xc8] sm:$0xff] }
  0xa1   :  { %4540 = vmatmul.msk.f32.gmra.mxu1 %vm593_vm3, %v526_v33 }
  0xa3   :  { %v5423_v39 = vpop.f32.mrf.mxu2  ;;  %4686 = vmatmul.msk.f32.gmra.mxu3 %vm1343_vm1, %v1294_v38 }
  0xa4   :  { %9091 = vst [vmem:[#allocation3_spill] sm:$0xff] %v5423_v39  ;;  %v343_v40 = vpop.f32.mrf.mxu0 }
  0xa5   :  { %v344_v42 = vadd.f32 %v5327_v63, %v343_v40  ;;  %v1789_v40 = vld [vmem:[%s9055_s2 + $0x160] sm:$0xff] }
  0xa6   :  { %v5430_v44 = vpop.f32.mrf.mxu3  ;;  %3512 = vperm.xlu0 %4998, %v1789_v40  }
  0xa7   :  { %v527_v43 = vmax.f32 %v344_v42, 0.0  ;;  %4493 = vmatmul.msk.f32.gmra.mxu0 %vm117_vm2, %v66_v41  ;;  %v1787_v42 = vld [vmem:[%s9055_s2 + $0x150] sm:$0xff] }
  0xa8   :  { %4622 = vmatmul.msk.f32.gmra.mxu2 %vm117_vm2, %v66_v41  ;;  %v1788_v41 = vld [vmem:[%s9055_s2 + $0x158] sm:$0xff]  ;;  %3502 = vperm.xlu1 %4996, %v1787_v42  }
  0xa9   :  { %4541 = vmatmul.msk.f32.gmra.mxu1 %vm593_vm3, %v527_v43  ;;  %v1300_v43 = vld [vmem:[%s9052_s1 + $0xd0] sm:$0xff]  ;;  %3507 = vperm.xlu2 %4997, %v1788_v41  }
  0xaa   :  { %v76_v41 = vld [vmem:[%s9053_s0 + $0xf0] sm:$0xff] }
  0xab   :  { %v5447_v49 = vpop.f32.mrf.mxu2  ;;  %4687 = vmatmul.msk.f32.gmra.mxu3 %vm1343_vm1, %v1295_v48 }
  0xac   :  { %9092 = vst [vmem:[#allocation4_spill] sm:$0xff] %v5447_v49  ;;  %v346_v50 = vpop.f32.mrf.mxu0 }
  0xad   :  { %v347_v52 = vadd.f32 %v5327_v63, %v346_v50 }
  0xae   :  { %v5454_v54 = vpop.f32.mrf.mxu3 }
  0xaf   :  { %v528_v53 = vmax.f32 %v347_v52, 0.0  ;;  %4494 = vmatmul.msk.f32.gmra.mxu0 %vm117_vm2, %v67_v51  ;;  %v1792_v52 = vld [vmem:[%s9055_s2 + $0x178] sm:$0xff] }
  0xb0   :  { %4623 = vmatmul.msk.f32.gmra.mxu2 %vm117_vm2, %v67_v51  ;;  %3527 = vperm.xlu0 %4998, %v1792_v52  }
  0xb1   :  { %4542 = vmatmul.msk.f32.gmra.mxu1 %vm593_vm3, %v528_v53  ;;  %v1791_v53 = vld [vmem:[%s9055_s2 + $0x170] sm:$0xff]  ;;  %3517 = vperm.xlu1 %4996, %v1790_v55   ;;  %v77_v55 = vld [vmem:[%s9053_s0 + $0xf8] sm:$0xff] }
  0xb2   :  { %3522 = vperm.xlu2 %4997, %v1791_v53  }
  0xb3   :  { %v5471_v59 = vpop.f32.mrf.mxu2  ;;  %4688 = vmatmul.msk.f32.gmra.mxu3 %vm1343_vm1, %v1296_v58 }
  0xb4   :  { %9093 = vst [vmem:[#allocation5_spill] sm:$0xff] %v5471_v59  ;;  %v349_v60 = vpop.f32.mrf.mxu0 }
  0xb5   :  { %v350_v62 = vadd.f32 %v5327_v63, %v349_v60  ;;  %v73_v60 = vld [vmem:[%s9053_s0 + $0xd8] sm:$0xff] }
  0xb6   :  { %v5478_v1 = vpop.f32.mrf.mxu3 }
  0xb7   :  { %v529_v0 = vmax.f32 %v350_v62, 0.0  ;;  %4495 = vmatmul.msk.f32.gmra.mxu0 %vm117_vm2, %v68_v61 }
  0xb8   :  { %4624 = vmatmul.msk.f32.gmra.mxu2 %vm117_vm2, %v68_v61  ;;  %3542 = vperm.xlu0 %4998, %v1795_v2   ;;  %v1806_v2 = vld [vmem:[%s9055_s2 + $0x1e8] sm:$0xff] }
  0xb9   :  { %4543 = vmatmul.msk.f32.gmra.mxu1 %vm593_vm3, %v529_v0  ;;  %3532 = vperm.xlu1 %4996, %v1793_v5  }
  0xba   :  { %3537 = vperm.xlu2 %4997, %v1794_v3  }
  0xbb   :  { %v5495_v7 = vpop.f32.mrf.mxu2  ;;  %4689 = vmatmul.msk.f32.gmra.mxu3 %vm1343_vm1, %v1297_v6  ;;  %v1302_v6 = vld [vmem:[%s9052_s1 + $0xe0] sm:$0xff] }
  0xbc   :  { %9094 = vst [vmem:[#allocation6_spill] sm:$0xff] %v5495_v7  ;;  %v352_v8 = vpop.f32.mrf.mxu0 }
  0xbd   :  { %v353_v11 = vadd.f32 %v5327_v63, %v352_v8  ;;  %v5615_v8 = vld [vmem:[#allocation2] ss:$0 sm:$0xff] }
  0xbe   :  { %v5502_v13 = vpop.f32.mrf.mxu3  ;;  %v1554_v16 = vadd.f32 %v5615_v8, %v5334_v4  ;;  %v1796_v4 = vld [vmem:[%s9055_s2 + $0x198] sm:$0xff]  ;;  %v1557_v30 = vadd.f32 %v5615_v8, %v5358_v14  ;;  %v1799_v14 = vld [vmem:[%s9055_s2 + $0x1b0] sm:$0xff] }
  0xbf   :  { %v530_v12 = vmax.f32 %v353_v11, 0.0  ;;  %4496 = vmatmul.msk.f32.gmra.mxu0 %vm117_vm2, %v69_v10 }
  0xc0   :  { %4625 = vmatmul.msk.f32.gmra.mxu2 %vm117_vm2, %v69_v10  ;;  %2627 = vperm.xlu0 %4998, %v1554_v16  }
  0xc1   :  { %4544 = vmatmul.msk.f32.gmra.mxu1 %vm593_vm3, %v530_v12  ;;  %v74_v12 = vld [vmem:[%s9053_s0 + $0xe0] sm:$0xff]  ;;  %3547 = vperm.xlu1 %4996, %v1796_v4  }
  0xc3   :  { %v5519_v20 = vpop.f32.mrf.mxu2  ;;  %4690 = vmatmul.msk.f32.gmra.mxu3 %vm1343_vm1, %v1298_v18 }
  0xc4   :  { %9095 = vst [vmem:[#allocation7_spill] sm:$0xff] %v5519_v20  ;;  %v355_v21 = vpop.f32.mrf.mxu0 }
  0xc5   :  { %v356_v23 = vadd.f32 %v5327_v63, %v355_v21  ;;  %v1303_v21 = vld [vmem:[%s9052_s1 + $0xe8] sm:$0xff] }
  0xc6   :  { %v5526_v26 = vpop.f32.mrf.mxu3 }
  0xc7   :  { %v531_v25 = vmax.f32 %v356_v23, 0.0  ;;  %4497 = vmatmul.msk.f32.gmra.mxu0 %vm117_vm2, %v70_v22 }
  0xc8   :  { %4626 = vmatmul.msk.f32.gmra.mxu2 %vm117_vm2, %v70_v22  ;;  %v1797_v22 = vld [vmem:[%s9055_s2 + $0x1a0] sm:$0xff]  ;;  %2632 = vperm.xlu0 %4998, %v1557_v30  }
  0xc9   :  { %4545 = vmatmul.msk.f32.gmra.mxu1 %vm593_vm3, %v531_v25  ;;  %3552 = vperm.xlu2 %4997, %v1797_v22   ;;  %v1802_v22 = vld [vmem:[%s9055_s2 + $0x1c8] sm:$0xff] }
  0xca   :  { %3562 = vperm.xlu1 %4996, %v1799_v14   ;;  %v1308_v14 = vld [vmem:[%s9052_s1 + $0x110] sm:$0xff] }
  0xcb   :  { %v5543_v32 = vpop.f32.mrf.mxu2  ;;  %4691 = vmatmul.msk.f32.gmra.mxu3 %vm1343_vm1, %v1299_v31 }
  0xcc   :  { %9096 = vst [vmem:[#allocation8_spill] sm:$0xff] %v5543_v32  ;;  %v358_v33 = vpop.f32.mrf.mxu0 }
  0xcd   :  { %v359_v36 = vadd.f32 %v5327_v63, %v358_v33 }
  0xce   :  { %v5550_v38 = vpop.f32.mrf.mxu3 }
  0xcf   :  { %v532_v37 = vmax.f32 %v359_v36, 0.0  ;;  %4498 = vmatmul.msk.f32.gmra.mxu0 %vm117_vm2, %v71_v35  ;;  %v1800_v36 = vld [vmem:[%s9055_s2 + $0x1b8] sm:$0xff] }
  0xd0   :  { %4627 = vmatmul.msk.f32.gmra.mxu2 %vm117_vm2, %v71_v35  ;;  %v1304_v35 = vld [vmem:[%s9052_s1 + $0xf0] sm:$0xff] }
  0xd1   :  { %4546 = vmatmul.msk.f32.gmra.mxu1 %vm593_vm3, %v532_v37  ;;  %3567 = vperm.xlu2 %4997, %v1800_v36  }
  0xd3   :  { %v5567_v45 = vpop.f32.mrf.mxu2  ;;  %4692 = vmatmul.msk.f32.gmra.mxu3 %vm1343_vm1, %v1300_v43  ;;  %v1560_v43 = vadd.f32 %v5615_v8, %v5382_v24  ;;  %v1798_v24 = vld [vmem:[%s9055_s2 + $0x1a8] sm:$0xff] }
  0xd4   :  { %9097 = vst [vmem:[#allocation9_spill] sm:$0xff] %v5567_v45  ;;  %v361_v46 = vpop.f32.mrf.mxu0  ;;  %3557 = vperm.xlu0 %4998, %v1798_v24  }
  0xd5   :  { %v362_v48 = vadd.f32 %v5327_v63, %v361_v46  ;;  %2637 = vperm.xlu1 %4996, %v1560_v43   ;;  %v80_v43 = vld [vmem:[%s9053_s0 + $0x110] sm:$0xff] }
  0xd6   :  { %v5574_v51 = vpop.f32.mrf.mxu3 }
  0xd7   :  { %v533_v50 = vmax.f32 %v362_v48, 0.0  ;;  %4499 = vmatmul.msk.f32.gmra.mxu0 %vm117_vm2, %v72_v47  ;;  %v1305_v48 = vld [vmem:[%s9052_s1 + $0xf8] sm:$0xff] }
  0xd8   :  { %4628 = vmatmul.msk.f32.gmra.mxu2 %vm117_vm2, %v72_v47 }
  0xd9   :  { %4547 = vmatmul.msk.f32.gmra.mxu1 %vm593_vm3, %v533_v50  ;;  %v1803_v50 = vld [vmem:[%s9055_s2 + $0x1d0] sm:$0xff] }
  0xda   :  { %3582 = vperm.xlu2 %4997, %v1803_v50  }
  0xdb   :  { %v5591_v57 = vpop.f32.mrf.mxu2  ;;  %4693 = vmatmul.msk.f32.gmra.mxu3 %vm1343_vm1, %v1301_v56 }
  0xdc   :  { %9098 = vst [vmem:[#allocation10_spill] sm:$0xff] %v5591_v57  ;;  %v364_v58 = vpop.f32.mrf.mxu0 }
  0xdd   :  { %v365_v61 = vadd.f32 %v5327_v63, %v364_v58  ;;  %v1563_v58 = vadd.f32 %v5615_v8, %v5406_v34  ;;  %v1801_v34 = vld [vmem:[%s9055_s2 + $0x1c0] sm:$0xff] }
  0xde   :  { %v5598_v0 = vpop.f32.mrf.mxu3  ;;  %3572 = vperm.xlu0 %4998, %v1801_v34  }
  0xdf   :  { %v534_v62 = vmax.f32 %v365_v61, 0.0  ;;  %4500 = vmatmul.msk.f32.gmra.mxu0 %vm117_vm2, %v73_v60  ;;  %2642 = vperm.xlu1 %4996, %v1563_v58  }
  0xe0   :  { %4629 = vmatmul.msk.f32.gmra.mxu2 %vm117_vm2, %v73_v60 }
  0xe1   :  { %4548 = vmatmul.msk.f32.gmra.mxu1 %vm593_vm3, %v534_v62  ;;  %v1306_v62 = vld [vmem:[%s9052_s1 + $0x100] sm:$0xff] }
  0xe2   :  { %3597 = vperm.xlu2 %4997, %v1806_v2  }
  0xe3   :  { %v5617_v10 = vpop.f32.mrf.mxu2  ;;  %4694 = vmatmul.msk.f32.gmra.mxu3 %vm1343_vm1, %v1302_v6  ;;  %v78_v6 = vld [vmem:[%s9053_s0 + $0x100] sm:$0xff] }
  0xe4   :  { %9099 = vst [vmem:[#allocation11_spill] sm:$0xff] %v5617_v10  ;;  %v367_v11 = vpop.f32.mrf.mxu0 }
  0xe5   :  { %v368_v15 = vadd.f32 %v5327_v63, %v367_v11 }
  0xe6   :  { %v5626_v18 = vpop.f32.mrf.mxu3 }
  0xe7   :  { %v535_v17 = vmax.f32 %v368_v15, 0.0  ;;  %4501 = vmatmul.msk.f32.gmra.mxu0 %vm117_vm2, %v74_v12  ;;  %v1566_v15 = vadd.f32 %v5615_v8, %v5430_v44  ;;  %v1804_v44 = vld [vmem:[%s9055_s2 + $0x1d8] sm:$0xff]  ;;  %3577 = vperm.xlu1 %4996, %v1802_v22  }
  0xe8   :  { %4630 = vmatmul.msk.f32.gmra.mxu2 %vm117_vm2, %v74_v12  ;;  %3587 = vperm.xlu0 %4998, %v1804_v44   ;;  %v82_v44 = vld [vmem:[%s9053_s0 + $0x120] sm:$0xff] }
  0xe9   :  { %4549 = vmatmul.msk.f32.gmra.mxu1 %vm593_vm3, %v535_v17 }
  0xea   :  { %2647 = vperm.xlu2 %4997, %v1566_v15   ;;  %v1310_v15 = vld [vmem:[%s9052_s1 + $0x120] sm:$0xff] }
  0xeb   :  { %v5640_v23 = vpop.f32.mrf.mxu2  ;;  %4695 = vmatmul.msk.f32.gmra.mxu3 %vm1343_vm1, %v1303_v21  ;;  %v1307_v21 = vld [vmem:[%s9052_s1 + $0x108] sm:$0xff] }
  0xec   :  { %9100 = vst [vmem:[#allocation12_spill] sm:$0xff] %v5640_v23  ;;  %v370_v25 = vpop.f32.mrf.mxu0 }
  0xed   :  { %v371_v28 = vadd.f32 %v5327_v63, %v370_v25 }
  0xee   :  { %v5649_v33 = vpop.f32.mrf.mxu3 }
  0xef   :  { %v536_v31 = vmax.f32 %v371_v28, 0.0  ;;  %4502 = vmatmul.msk.f32.gmra.mxu0 %vm117_vm2, %v75_v27 }
  0xf0   :  { %4631 = vmatmul.msk.f32.gmra.mxu2 %vm117_vm2, %v75_v27  ;;  %v79_v27 = vld [vmem:[%s9053_s0 + $0x108] sm:$0xff] }
  0xf1   :  { %4550 = vmatmul.msk.f32.gmra.mxu1 %vm593_vm3, %v536_v31  ;;  %v1569_v31 = vadd.f32 %v5615_v8, %v5454_v54  ;;  %v1807_v54 = vld [vmem:[%s9055_s2 + $0x1f0] sm:$0xff] }
  0xf2   :  { %3602 = vperm.xlu0 %4998, %v1807_v54  }
  0xf3   :  { %v5663_v37 = vpop.f32.mrf.mxu2  ;;  %4696 = vmatmul.msk.f32.gmra.mxu3 %vm1343_vm1, %v1304_v35  ;;  %2652 = vperm.xlu2 %4997, %v1569_v31  }
  0xf4   :  { %9101 = vst [vmem:[#allocation13_spill] sm:$0xff] %v5663_v37  ;;  %v373_v40 = vpop.f32.mrf.mxu0 }
  0xf5   :  { %v374_v42 = vadd.f32 %v5327_v63, %v373_v40  ;;  %v1805_v40 = vld [vmem:[%s9055_s2 + $0x1e0] sm:$0xff] }
  0xf6   :  { %v5672_v47 = vpop.f32.mrf.mxu3  ;;  %3592 = vperm.xlu1 %4996, %v1805_v40   ;;  %v1811_v40 = vld [vmem:[%s9060_s3 + $0x10] sm:$0xff] }
  0xf7   :  { %v537_v46 = vmax.f32 %v374_v42, 0.0  ;;  %4503 = vmatmul.msk.f32.gmra.mxu0 %vm117_vm2, %v76_v41 }
  0xf8   :  { %4632 = vmatmul.msk.f32.gmra.mxu2 %vm117_vm2, %v76_v41 }
  0xf9   :  { %4551 = vmatmul.msk.f32.gmra.mxu1 %vm593_vm3, %v537_v46 }
  0xfb   :  { %v5686_v52 = vpop.f32.mrf.mxu2  ;;  %4697 = vmatmul.msk.f32.gmra.mxu3 %vm1343_vm1, %v1305_v48  ;;  %v1572_v48 = vadd.f32 %v5615_v8, %v5478_v1  ;;  %v1808_v1 = vld [vmem:[%s9055_s2 + $0x1f8] sm:$0xff] }
  0xfc   :  { %9102 = vst [vmem:[#allocation14_spill] sm:$0xff] %v5686_v52  ;;  %v376_v53 = vpop.f32.mrf.mxu0 }
  0xfd   :  { %v377_v56 = vadd.f32 %v5327_v63, %v376_v53  ;;  %2657 = vperm.xlu0 %4998, %v1572_v48   ;;  %v1581_v48 = vadd.f32 %v5615_v8, %v5550_v38  ;;  %v1814_v38 = vld [vmem:[%s9060_s3 + $0x28] sm:$0xff] }
  0xfe   :  { %v5695_v61 = vpop.f32.mrf.mxu3  ;;  %3607 = vperm.xlu1 %4996, %v1808_v1   ;;  %v1312_v1 = vld [vmem:[%s9052_s1 + $0x130] sm:$0xff] }
  0xff   :  { %v538_v60 = vmax.f32 %v377_v56, 0.0  ;;  %4504 = vmatmul.msk.f32.gmra.mxu0 %vm117_vm2, %v77_v55  ;;  %v1809_v56 = vld [vmem:[%s9060_s3] sm:$0xff] }
 0x100   :  { %4633 = vmatmul.msk.f32.gmra.mxu2 %vm117_vm2, %v77_v55  ;;  %v1309_v55 = vld [vmem:[%s9052_s1 + $0x118] sm:$0xff]  ;;  %3957 = vperm.xlu2 %4997, %v1809_v56  }
 0x101   :  { %4552 = vmatmul.msk.f32.gmra.mxu1 %vm593_vm3, %v538_v60 }
 0x103   :  { %v5709_v3 = vpop.f32.mrf.mxu2  ;;  %4698 = vmatmul.msk.f32.gmra.mxu3 %vm1343_vm1, %v1306_v62  ;;  %v81_v62 = vld [vmem:[%s9053_s0 + $0x118] sm:$0xff] }
 0x104   :  { %9103 = vst [vmem:[#allocation15_spill] sm:$0xff] %v5709_v3  ;;  %v379_v5 = vpop.f32.mrf.mxu0 }
 0x105   :  { %v380_v11 = vadd.f32 %v5327_v63, %v379_v5  ;;  %v1575_v5 = vadd.f32 %v5615_v8, %v5502_v13  ;;  %v1810_v13 = vld [vmem:[%s9060_s3 + $0x8] sm:$0xff] }
 0x106   :  { %v5716_v12 = vpop.f32.mrf.mxu1  ;;  %v5720_v17 = vpop.f32.mrf.mxu3  ;;  %3962 = vperm.xlu0 %4998, %v1810_v13  }
 0x107   :  { %v539_v16 = vmax.f32 %v380_v11, 0.0  ;;  %4505 = vmatmul.msk.f32.gmra.mxu0 %vm117_vm2, %v78_v6  ;;  %2662 = vperm.xlu1 %4996, %v1575_v5   ;;  %v84_v5 = vld [vmem:[%s9053_s0 + $0x130] sm:$0xff] }
 0x108   :  { %4634 = vmatmul.msk.f32.gmra.mxu2 %vm117_vm2, %v78_v6 }
 0x109   :  { %4553 = vmatmul.msk.f32.gmra.mxu1 %vm593_vm3, %v539_v16  ;;  %v1812_v16 = vld [vmem:[%s9060_s3 + $0x18] sm:$0xff] }
 0x10a   :  { %3972 = vperm.xlu2 %4997, %v1812_v16   ;;  %v1584_v16 = vadd.f32 %v5615_v8, %v5574_v51  ;;  %v1816_v51 = vld [vmem:[%s9060_s3 + $0x38] sm:$0xff] }
 0x10b   :  { %v5734_v4 = vpop.f32.mrf.mxu2  ;;  %4699 = vmatmul.msk.f32.gmra.mxu3 %vm1343_vm1, %v1307_v21 }
 0x10c   :  { %9104 = vst [vmem:[#allocation16_spill] sm:$0xff] %v5734_v4  ;;  %v382_v25 = vpop.f32.mrf.mxu0 }
 0x10d   :  { %v383_v28 = vadd.f32 %v5327_v63, %v382_v25 }
 0x10e   :  { %v5741_v30 = vpop.f32.mrf.mxu1  ;;  %v5745_v36 = vpop.f32.mrf.mxu3 }
 0x10f   :  { %v540_v35 = vmax.f32 %v383_v28, 0.0  ;;  %4506 = vmatmul.msk.f32.gmra.mxu0 %vm117_vm2, %v79_v27  ;;  %v1578_v28 = vadd.f32 %v5615_v8, %v5526_v26  ;;  %v1813_v26 = vld [vmem:[%s9060_s3 + $0x20] sm:$0xff]  ;;  %3967 = vperm.xlu1 %4996, %v1811_v40  }
 0x110   :  { %4635 = vmatmul.msk.f32.gmra.mxu2 %vm117_vm2, %v79_v27  ;;  %3977 = vperm.xlu0 %4998, %v1813_v26  }
 0x111   :  { %4554 = vmatmul.msk.f32.gmra.mxu1 %vm593_vm3, %v540_v35 }
 0x112   :  { %2667 = vperm.xlu2 %4997, %v1578_v28  }
 0x113   :  { %v5759_v41 = vpop.f32.mrf.mxu2  ;;  %4700 = vmatmul.msk.f32.gmra.mxu3 %vm1343_vm1, %v1308_v14  ;;  %v1311_v14 = vld [vmem:[%s9052_s1 + $0x128] sm:$0xff] }
 0x114   :  { %9105 = vst [vmem:[#allocation17_spill] sm:$0xff] %v5759_v41  ;;  %v385_v42 = vpop.f32.mrf.mxu0 }
 0x115   :  { %v386_v46 = vadd.f32 %v5327_v63, %v385_v42 }
 0x116   :  { %v5768_v50 = vpop.f32.mrf.mxu1  ;;  %v5770_v53 = vpop.f32.mrf.mxu3 }
 0x117   :  { %v541_v24 = vmax.f32 %v386_v46, 0.0  ;;  %4507 = vmatmul.msk.f32.gmra.mxu0 %vm117_vm2, %v80_v43  ;;  %3982 = vperm.xlu1 %4996, %v1814_v38   ;;  %v86_v38 = vld [vmem:[%s9053_s0 + $0x140] sm:$0xff] }
 0x118   :  { %4636 = vmatmul.msk.f32.gmra.mxu2 %vm117_vm2, %v80_v43  ;;  %v83_v43 = vld [vmem:[%s9053_s0 + $0x128] sm:$0xff]  ;;  %2672 = vperm.xlu0 %4998, %v1581_v48   ;;  %v1314_v48 = vld [vmem:[%s9052_s1 + $0x140] sm:$0xff] }
 0x119   :  { %4555 = vmatmul.msk.f32.gmra.mxu1 %vm593_vm3, %v541_v24 }
 0x11b   :  { %v5784_v58 = vpop.f32.mrf.mxu2  ;;  %4701 = vmatmul.msk.f32.gmra.mxu3 %vm1343_vm1, %v1309_v55 }
 0x11c   :  { %9106 = vst [vmem:[#allocation18_spill] sm:$0xff] %v5784_v58  ;;  %v388_v60 = vpop.f32.mrf.mxu0 }
 0x11d   :  { %v389_v2 = vadd.f32 %v5327_v63, %v388_v60  ;;  %v1815_v60 = vld [vmem:[%s9060_s3 + $0x30] sm:$0xff] }
 0x11e   :  { %v5791_v34 = vpop.f32.mrf.mxu1  ;;  %v5795_v11 = vpop.f32.mrf.mxu3  ;;  %3987 = vperm.xlu2 %4997, %v1815_v60  }
 0x11f   :  { %v542_v6 = vmax.f32 %v389_v2, 0.0  ;;  %4508 = vmatmul.msk.f32.gmra.mxu0 %vm117_vm2, %v81_v62  ;;  %2677 = vperm.xlu1 %4996, %v1584_v16  }
 0x120   :  { %4637 = vmatmul.msk.f32.gmra.mxu2 %vm117_vm2, %v81_v62  ;;  %3992 = vperm.xlu0 %4998, %v1816_v51  }
 0x121   :  { %4556 = vmatmul.msk.f32.gmra.mxu1 %vm593_vm3, %v542_v6 }
 0x123   :  { %v5809_v21 = vpop.f32.mrf.mxu2  ;;  %4702 = vmatmul.msk.f32.gmra.mxu3 %vm1343_vm1, %v1310_v15 }
 0x124   :  { %9107 = vst [vmem:[#allocation19_spill] sm:$0xff] %v5809_v21  ;;  %v391_v22 = vpop.f32.mrf.mxu0 }
 0x125   :  { %v392_v25 = vadd.f32 %v5327_v63, %v391_v22 }
 0x126   :  { %v5816_v27 = vpop.f32.mrf.mxu1  ;;  %v5820_v35 = vpop.f32.mrf.mxu3 }
 0x127   :  { %v543_v31 = vmax.f32 %v392_v25, 0.0  ;;  %4509 = vmatmul.msk.f32.gmra.mxu0 %vm117_vm2, %v82_v44  ;;  %v1818_v25 = vld [vmem:[%s9060_s3 + $0x48] sm:$0xff] }
 0x128   :  { %4638 = vmatmul.msk.f32.gmra.mxu2 %vm117_vm2, %v82_v44  ;;  %v1313_v44 = vld [vmem:[%s9052_s1 + $0x138] sm:$0xff]  ;;  %4002 = vperm.xlu2 %4997, %v1818_v25   ;;  %v1821_v25 = vld [vmem:[%s9060_s3 + $0x60] sm:$0xff] }
 0x129   :  { %4557 = vmatmul.msk.f32.gmra.mxu1 %vm593_vm3, %v543_v31 }
 0x12b   :  { %v5834_v54 = vpop.f32.mrf.mxu2  ;;  %4703 = vmatmul.msk.f32.gmra.mxu3 %vm1343_vm1, %v1311_v14  ;;  %v85_v14 = vld [vmem:[%s9053_s0 + $0x138] sm:$0xff] }
 0x12c   :  { %9108 = vst [vmem:[#allocation20_spill] sm:$0xff] %v5834_v54  ;;  %v394_v42 = vpop.f32.mrf.mxu0 }
 0x12d   :  { %v395_v46 = vadd.f32 %v5327_v63, %v394_v42  ;;  %v1587_v42 = vadd.f32 %v5615_v8, %v5598_v0  ;;  %v1819_v0 = vld [vmem:[%s9060_s3 + $0x50] sm:$0xff] }
 0x12e   :  { %v5843_v24 = vpop.f32.mrf.mxu1  ;;  %v5845_v56 = vpop.f32.mrf.mxu3  ;;  %4007 = vperm.xlu0 %4998, %v1819_v0   ;;  %v1316_v0 = vld [vmem:[%s9052_s1 + $0x150] sm:$0xff] }
 0x12f   :  { %v544_v55 = vmax.f32 %v395_v46, 0.0  ;;  %4510 = vmatmul.msk.f32.gmra.mxu0 %vm117_vm2, %v83_v43 }
 0x130   :  { %4639 = vmatmul.msk.f32.gmra.mxu2 %vm117_vm2, %v83_v43  ;;  %2682 = vperm.xlu2 %4997, %v1587_v42  }
 0x131   :  { %4558 = vmatmul.msk.f32.gmra.mxu1 %vm593_vm3, %v544_v55  ;;  %v1817_v55 = vld [vmem:[%s9060_s3 + $0x40] sm:$0xff] }
 0x132   :  { %3997 = vperm.xlu1 %4996, %v1817_v55  }
 0x133   :  { %v5859_v62 = vpop.f32.mrf.mxu2  ;;  %4704 = vmatmul.msk.f32.gmra.mxu3 %vm1343_vm1, %v1312_v1 }
 0x134   :  { %9109 = vst [vmem:[#allocation21_spill] sm:$0xff] %v5859_v62  ;;  %v397_v2 = vpop.f32.mrf.mxu0 }
 0x135   :  { %v398_v6 = vadd.f32 %v5327_v63, %v397_v2 }
 0x136   :  { %v5866_v15 = vpop.f32.mrf.mxu1  ;;  %v5870_v22 = vpop.f32.mrf.mxu3 }
 0x137   :  { %v545_v13 = vmax.f32 %v398_v6, 0.0  ;;  %4511 = vmatmul.msk.f32.gmra.mxu0 %vm117_vm2, %v84_v5 }
 0x138   :  { %4640 = vmatmul.msk.f32.gmra.mxu2 %vm117_vm2, %v84_v5  ;;  %v1590_v5 = vadd.f32 %v5615_v8, %v5626_v18  ;;  %v1820_v18 = vld [vmem:[%s9060_s3 + $0x58] sm:$0xff]  ;;  %4017 = vperm.xlu2 %4997, %v1821_v25   ;;  %v1596_v25 = vadd.f32 %v5615_v8, %v5672_v47  ;;  %v1825_v47 = vld [vmem:[%s9060_s3 + $0x80] sm:$0xff] }
 0x139   :  { %4559 = vmatmul.msk.f32.gmra.mxu1 %vm593_vm3, %v545_v13 }
 0x13a   :  { %2687 = vperm.xlu0 %4998, %v1590_v5   ;;  %4012 = vperm.xlu1 %4996, %v1820_v18   ;;  %v88_v5 = vld [vmem:[%s9053_s0 + $0x150] sm:$0xff] }
 0x13b   :  { %v5884_v28 = vpop.f32.mrf.mxu2  ;;  %4705 = vmatmul.msk.f32.gmra.mxu3 %vm1343_vm1, %v1313_v44  ;;  %v1315_v44 = vld [vmem:[%s9052_s1 + $0x148] sm:$0xff] }
 0x13c   :  { %9110 = vst [vmem:[#allocation22_spill] sm:$0xff] %v5884_v28  ;;  %v400_v31 = vpop.f32.mrf.mxu0 }
 0x13d   :  { %v401_v40 = vadd.f32 %v5327_v63, %v400_v31 }
 0x13e   :  { %v5891_v26 = vpop.f32.mrf.mxu1  ;;  %v5895_v46 = vpop.f32.mrf.mxu3 }
 0x13f   :  { %v546_v43 = vmax.f32 %v401_v40, 0.0  ;;  %4512 = vmatmul.msk.f32.gmra.mxu0 %vm117_vm2, %v85_v14 }
 0x140   :  { %4641 = vmatmul.msk.f32.gmra.mxu2 %vm117_vm2, %v85_v14  ;;  %v87_v14 = vld [vmem:[%s9053_s0 + $0x148] sm:$0xff] }
 0x141   :  { %4560 = vmatmul.msk.f32.gmra.mxu1 %vm593_vm3, %v546_v43  ;;  %v1593_v43 = vadd.f32 %v5615_v8, %v5649_v33  ;;  %v1822_v33 = vld [vmem:[%s9060_s3 + $0x68] sm:$0xff] }
 0x142   :  { %4022 = vperm.xlu0 %4998, %v1822_v33   ;;  %v1599_v33 = vadd.f32 %v5615_v8, %v5695_v61  ;;  %v1826_v61 = vld [vmem:[%s9060_s3 + $0x88] sm:$0xff] }
 0x143   :  { %v5909_v1 = vpop.f32.mrf.mxu2  ;;  %4706 = vmatmul.msk.f32.gmra.mxu3 %vm1343_vm1, %v1314_v48  ;;  %2692 = vperm.xlu1 %4996, %v1593_v43  }
 0x144   :  { %9111 = vst [vmem:[#allocation23_spill] sm:$0xff] %v5909_v1  ;;  %v403_v60 = vpop.f32.mrf.mxu0 }
 0x145   :  { %v404_v2 = vadd.f32 %v5327_v63, %v403_v60  ;;  %v1824_v60 = vld [vmem:[%s9060_s3 + $0x78] sm:$0xff] }
 0x146   :  { %v5918_v6 = vpop.f32.mrf.mxu1  ;;  %v5920_v13 = vpop.f32.mrf.mxu3  ;;  %4032 = vperm.xlu2 %4997, %v1824_v60  }
 0x147   :  { %v547_v16 = vmax.f32 %v404_v2, 0.0  ;;  %4513 = vmatmul.msk.f32.gmra.mxu0 %vm117_vm2, %v86_v38 }
 0x148   :  { %4642 = vmatmul.msk.f32.gmra.mxu2 %vm117_vm2, %v86_v38 }
 0x149   :  { %4561 = vmatmul.msk.f32.gmra.mxu1 %vm593_vm3, %v547_v16 }
 0x14a   :  { %4037 = vperm.xlu0 %4998, %v1825_v47  }
 0x14b   :  { %v5934_v51 = vpop.f32.mrf.mxu2  ;;  %4707 = vmatmul.msk.f32.gmra.mxu3 %vm1343_vm1, %v1315_v44 }
 0x14c   :  { %9112 = vst [vmem:[#allocation24_spill] sm:$0xff] %v5934_v51  ;;  %v406_v31 = vpop.f32.mrf.mxu0 }
 0x14d   :  { %v407_v40 = vadd.f32 %v5327_v63, %v406_v31 }
 0x14e   :  { %v5941_v42 = vpop.f32.mrf.mxu1  ;;  %v5945_v55 = vpop.f32.mrf.mxu3  ;;  %2697 = vperm.xlu2 %4997, %v1596_v25   ;;  %v1318_v25 = vld [vmem:[%s9052_s1 + $0x160] sm:$0xff] }
 0x14f   :  { %v548_v48 = vmax.f32 %v407_v40, 0.0  ;;  %4514 = vmatmul.msk.f32.gmra.mxu0 %vm117_vm2, %v87_v14  ;;  %v1823_v40 = vld [vmem:[%s9060_s3 + $0x70] sm:$0xff] }
 0x150   :  { %4643 = vmatmul.msk.f32.gmra.mxu2 %vm117_vm2, %v87_v14  ;;  %v1317_v14 = vld [vmem:[%s9052_s1 + $0x158] sm:$0xff]  ;;  %4027 = vperm.xlu1 %4996, %v1823_v40   ;;  %v1873_v40 = vld [vmem:[%s9056_s8] sm:$0xff] }
 0x151   :  { %4562 = vmatmul.msk.f32.gmra.mxu1 %vm593_vm3, %v548_v48  ;;  %2086 = vmatpush.msrb.mxu3 %v1873_v40  ;;  %v1828_v40 = vld [vmem:[%s9060_s3 + $0x98] sm:$0xff] }
 0x152   :  { %2702 = vperm.xlu0 %4998, %v1599_v33   ;;  %v1602_v33 = vadd.f32 %v5615_v8, %v5720_v17  ;;  %v4794_v17 = vld [vmem:[%s9056_s8 + $0x10] sm:$0xff] }
 0x153   :  { %v5959_v38 = vpop.f32.mrf.mxu2  ;;  %4708 = vmatmul.msk.f32.gmra.mxu3 %vm1343_vm1, %v1316_v0  ;;  %v89_v0 = vld [vmem:[%s9053_s0 + $0x158] sm:$0xff]  ;;  %2431 = vmatpush.msrb.mxu1 %v4794_v17 }
 0x154   :  { %9113 = vst [vmem:[#allocation25_spill] sm:$0xff] %v5959_v38  ;;  %v409_v2 = vpop.f32.mrf.mxu0 }
 0x155   :  { %v410_v16 = vadd.f32 %v5327_v63, %v409_v2 }
 0x156   :  { %v5966_v44 = vpop.f32.mrf.mxu1  ;;  %v5970_v31 = vpop.f32.mrf.mxu3 }
 0x157   :  { %v549_v18 = vmax.f32 %v410_v16, 0.0  ;;  %4515 = vmatmul.msk.f32.gmra.mxu0 %vm117_vm2, %v88_v5 }
 0x158   :  { %4644 = vmatmul.msk.f32.gmra.mxu2 %vm117_vm2, %v88_v5  ;;  %4042 = vperm.xlu1 %4996, %v1826_v61   ;;  %v1830_v61 = vld [vmem:[%s9060_s3 + $0xa8] sm:$0xff] }
 0x159   :  { %4563 = vmatmul.msk.f32.gmra.mxu1 %vm593_vm3, %v549_v18  ;;  %v1827_v18 = vld [vmem:[%s9060_s3 + $0x90] sm:$0xff] }
 0x15a   :  { %4047 = vperm.xlu2 %4997, %v1827_v18   ;;  %4052 = vperm.xlu0 %4998, %v1828_v40   ;;  %v1320_v40 = vld [vmem:[%s9052_s1 + $0x170] sm:$0xff] }
 0x15b   :  { %v5984_v43 = vpop.f32.mrf.mxu2  ;;  %4709 = vmatmul.msk.f32.gmra.mxu3 %vm1343_vm1, %v1317_v14 }
 0x15c   :  { %9114 = vst [vmem:[#allocation26_spill] sm:$0xff] %v5984_v43  ;;  %v412_v48 = vpop.f32.mrf.mxu0 }
 0x15d   :  { %v413_v60 = vadd.f32 %v5327_v63, %v412_v48  ;;  %v90_v48 = vld [vmem:[%s9053_s0 + $0x160] sm:$0xff] }
 0x15e   :  { %v5993_v2 = vpop.f32.mrf.mxu1  ;;  %v5995_v16 = vpop.f32.mrf.mxu3 }
 0x15f   :  { %v550_v5 = vmax.f32 %v413_v60, 0.0  ;;  %4516 = vmatmul.msk.f32.gmra.mxu0 %vm117_vm2, %v89_v0 }
 0x160   :  { %4645 = vmatmul.msk.f32.gmra.mxu2 %vm117_vm2, %v89_v0  ;;  %2707 = vperm.xlu1 %4996, %v1602_v33  }
 0x161   :  { %4564 = vmatmul.msk.f32.gmra.mxu1 %vm593_vm3, %v550_v5 }
 0x162   :  { %4062 = vperm.xlu2 %4997, %v1830_v61  }
 0x163   :  { %v6009_v14 = vpop.f32.mrf.mxu2  ;;  %4710 = vmatmul.msk.f32.gmra.mxu3 %vm1343_vm1, %v1318_v25  ;;  %v1319_v25 = vld [vmem:[%s9052_s1 + $0x168] sm:$0xff] }
 0x164   :  { %9115 = vst [vmem:[#allocation27_spill] sm:$0xff] %v6009_v14  ;;  %v415_v47 = vpop.f32.mrf.mxu0 }
 0x165   :  { %v416_v0 = vadd.f32 %v5327_v63, %v415_v47  ;;  %v4928_v63 = vld [vmem:[%s9056_s8 + $0x30] sm:$0xff] }
 0x166   :  { %v6019_v60 = vpop.f32.mrf.mxu1  ;;  %v6023_v18 = vpop.f32.mrf.mxu3  ;;  %3761 = vmatpush.msrb.mxu2 %v4928_v63  ;;  %v6055_v63 = vld [vmem:[%s9054_s5] ss:$0 sm:$0xff] }
 0x167   :  { %v551_v5 = vmax.f32 %v416_v0, 0.0  ;;  %4517 = vmatmul.msk.f32.gmra.mxu0 %vm117_vm2, %v90_v48  ;;  %v91_v0 = vld [vmem:[%s9053_s0 + $0x168] sm:$0xff] }
 0x168   :  { %4646 = vmatmul.msk.f32.gmra.mxu2 %vm117_vm2, %v90_v48 }
 0x169   :  { %4565 = vmatmul.msk.f32.gmra.mxu1 %vm593_vm3, %v551_v5  ;;  %v4861_v5 = vld [vmem:[%s9056_s8 + $0x20] sm:$0xff] }
 0x16a   :  { %3096 = vmatpush.msrb.mxu0 %v4861_v5 }
 0x16b   :  { %v6043_v47 = vpop.f32.mrf.mxu2  ;;  %4711 = vmatmul.msk.f32.gmra.mxu3 %vm1343_vm1, %v1319_v25  ;;  %v1605_v25 = vadd.f32 %v5615_v8, %v5745_v36  ;;  %v1831_v36 = vld [vmem:[%s9060_s3 + $0xb0] sm:$0xff] }
 0x16c   :  { %9116 = vst [vmem:[#allocation28_spill] sm:$0xff] %v6043_v47  ;;  %v418_v48 = vpop.f32.mrf.mxu0  ;;  %4067 = vperm.xlu0 %4998, %v1831_v36   ;;  %v1832_v36 = vld [vmem:[%s9060_s3 + $0xb8] sm:$0xff] }
 0x16d   :  { %v419_v17 = vadd.f32 %v6055_v63, %v418_v48  ;;  %v1829_v48 = vld [vmem:[%s9060_s3 + $0xa0] sm:$0xff]  ;;  %2712 = vperm.xlu2 %4997, %v1605_v25   ;;  %v1608_v25 = vadd.f32 %v5615_v8, %v5770_v53 }
 0x16e   :  { %v6058_v33 = vpop.f32.mrf.mxu1  ;;  %v6062_v47 = vpop.f32.mrf.mxu3  ;;  %4057 = vperm.xlu1 %4996, %v1829_v48   ;;  %v1833_v48 = vld [vmem:[%s9060_s3 + $0xc0] sm:$0xff] }
 0x16f   :  { %v552_v61 = vmax.f32 %v419_v17, 0.0  ;;  %4518 = vmatmul.msk.f32.gmra.mxu0 %vm117_vm2, %v91_v0  ;;  %v92_v17 = vld [vmem:[%s9053_s0 + $0x170] sm:$0xff] }
 0x170   :  { %4647 = vmatmul.msk.f32.gmra.mxu2 %vm117_vm2, %v91_v0 }
 0x171   :  { %4566 = vmatmul.msk.f32.gmra.mxu1 %vm593_vm3, %v552_v61 }
 0x173   :  { %v6076_v5 = vpop.f32.mrf.mxu2  ;;  %4712 = vmatmul.msk.f32.gmra.mxu3 %vm1343_vm1, %v1320_v40  ;;  %v1321_v40 = vld [vmem:[%s9052_s1 + $0x178] sm:$0xff] }
 0x174   :  { %9117 = vst [vmem:[#allocation29_spill] sm:$0xff] %v6076_v5  ;;  %v421_v0 = vpop.f32.mrf.mxu0  ;;  %2717 = vperm.xlu0 %4998, %v1608_v25   ;;  %v1611_v5 = vadd.f32 %v5615_v8, %v5795_v11  ;;  %v1322_v25 = vld [vmem:[%s9052_s1 + $0x180] sm:$0xff]  ;;  %v1834_v11 = vld [vmem:[%s9060_s3 + $0xc8] sm:$0xff] }
 0x175   :  { %v422_v61 = vadd.f32 %v6055_v63, %v421_v0  ;;  %4077 = vperm.xlu2 %4997, %v1833_v48  }
 0x176   :  { %v6083_v14 = vpop.f32.mrf.mxu1  ;;  %v6085_v38 = vpop.f32.mrf.mxu3  ;;  %4072 = vperm.xlu1 %4996, %v1832_v36  }
 0x177   :  { %v553_v43 = vmax.f32 %v422_v61, 0.0  ;;  %4519 = vmatmul.msk.f32.gmra.mxu0 %vm117_vm2, %v92_v17 }
 0x178   :  { %4648 = vmatmul.msk.f32.gmra.mxu2 %vm117_vm2, %v92_v17 }
 0x179   :  { %4567 = vmatmul.msk.f32.gmra.mxu1 %vm593_vm3, %v553_v43  ;;  %v93_v43 = vld [vmem:[%s9053_s0 + $0x178] sm:$0xff] }
 0x17b   :  { %v6101_v0 = vpop.f32.mrf.mxu2  ;;  %4713 = vmatmul.msk.f32.gmra.mxu3 %vm1343_vm1, %v1321_v40  ;;  %v1836_v40 = vld [vmem:[%s9060_s3 + $0xd8] sm:$0xff] }
 0x17c   :  { %9118 = vst [vmem:[#allocation30_spill] sm:$0xff] %v6101_v0  ;;  %v424_v53 = vpop.f32.mrf.mxu0  ;;  %4082 = vperm.xlu0 %4998, %v1834_v11  }
 0x17d   :  { %v425_v17 = vadd.f32 %v6055_v63, %v424_v53  ;;  %4092 = vperm.xlu2 %4997, %v1836_v40  }
 0x17e   :  { %v6108_v61 = vpop.f32.mrf.mxu1  ;;  %v6112_v1 = vpop.f32.mrf.mxu3  ;;  %2722 = vperm.xlu1 %4996, %v1611_v5   ;;  %v1323_v5 = vld [vmem:[%s9052_s1 + $0x188] sm:$0xff] }
 0x17f   :  { %v554_v51 = vmax.f32 %v425_v17, 0.0  ;;  %4520 = vmatmul.msk.f32.gmra.mxu0 %vm117_vm2, %v93_v43  ;;  %v1614_v17 = vadd.f32 %v5615_v8, %v5820_v35  ;;  %v1837_v35 = vld [vmem:[%s9060_s3 + $0xe0] sm:$0xff] }
 0x180   :  { %4649 = vmatmul.msk.f32.gmra.mxu2 %vm117_vm2, %v93_v43 }
 0x181   :  { %4568 = vmatmul.msk.f32.gmra.mxu1 %vm593_vm3, %v554_v51  ;;  %v94_v51 = vld [vmem:[%s9053_s0 + $0x180] sm:$0xff] }
 0x183   :  { %v6126_v48 = vpop.f32.mrf.mxu2  ;;  %4714 = vmatmul.msk.f32.gmra.mxu3 %vm1343_vm1, %v1322_v25  ;;  %v1835_v25 = vld [vmem:[%s9060_s3 + $0xd0] sm:$0xff] }
 0x184   :  { %9119 = vst [vmem:[#allocation31_spill] sm:$0xff] %v6126_v48  ;;  %v427_v36 = vpop.f32.mrf.mxu0  ;;  %4097 = vperm.xlu0 %4998, %v1837_v35   ;;  %v1838_v35 = vld [vmem:[%s9060_s3 + $0xe8] sm:$0xff] }
 0x185   :  { %v428_v53 = vadd.f32 %v6055_v63, %v427_v36  ;;  %2727 = vperm.xlu2 %4997, %v1614_v17   ;;  %v1617_v17 = vadd.f32 %v5615_v8, %v5845_v56 }
 0x186   :  { %v6133_v43 = vpop.f32.mrf.mxu1  ;;  %v6137_v28 = vpop.f32.mrf.mxu3  ;;  %4087 = vperm.xlu1 %4996, %v1835_v25   ;;  %v1839_v25 = vld [vmem:[%s9060_s3 + $0xf0] sm:$0xff] }
 0x187   :  { %v555_v0 = vmax.f32 %v428_v53, 0.0  ;;  %4521 = vmatmul.msk.f32.gmra.mxu0 %vm117_vm2, %v94_v51 }
 0x188   :  { %4650 = vmatmul.msk.f32.gmra.mxu2 %vm117_vm2, %v94_v51 }
 0x189   :  { %4569 = vmatmul.msk.f32.gmra.mxu1 %vm593_vm3, %v555_v0  ;;  %v95_v0 = vld [vmem:[%s9053_s0 + $0x188] sm:$0xff] }
 0x18b   :  { %v6151_v40 = vpop.f32.mrf.mxu2  ;;  %4715 = vmatmul.msk.f32.gmra.mxu3 %vm1343_vm1, %v1323_v5  ;;  %v1324_v5 = vld [vmem:[%s9052_s1 + $0x190] sm:$0xff] }
 0x18c   :  { %9120 = vst [vmem:[#allocation32_spill] sm:$0xff] %v6151_v40  ;;  %v430_v11 = vpop.f32.mrf.mxu0  ;;  %2732 = vperm.xlu0 %4998, %v1617_v17   ;;  %v1620_v40 = vadd.f32 %v5615_v8, %v5870_v22  ;;  %v1325_v17 = vld [vmem:[%s9052_s1 + $0x198] sm:$0xff] }
 0x18d   :  { %v431_v36 = vadd.f32 %v6055_v63, %v430_v11  ;;  %4107 = vperm.xlu2 %4997, %v1839_v25   ;;  %v1840_v22 = vld [vmem:[%s9060_s3 + $0xf8] sm:$0xff] }
 0x18e   :  { %v6158_v51 = vpop.f32.mrf.mxu1  ;;  %v6160_v48 = vpop.f32.mrf.mxu3  ;;  %4102 = vperm.xlu1 %4996, %v1838_v35  }
 0x18f   :  { %v556_v53 = vmax.f32 %v431_v36, 0.0  ;;  %4522 = vmatmul.msk.f32.gmra.mxu0 %vm117_vm2, %v95_v0 }
 0x190   :  { %4651 = vmatmul.msk.f32.gmra.mxu2 %vm117_vm2, %v95_v0  ;;  %v96_v0 = vld [vmem:[%s9053_s0 + $0x190] sm:$0xff] }
 0x191   :  { %4570 = vmatmul.msk.f32.gmra.mxu1 %vm593_vm3, %v556_v53 }
 0x193   :  { %v6176_v11 = vpop.f32.mrf.mxu2  ;;  %4716 = vmatmul.msk.f32.gmra.mxu3 %vm1343_vm1, %v1324_v5  ;;  %v1842_v5 = vld [vmem:[%s9060_s3 + $0x108] sm:$0xff] }
 0x194   :  { %9121 = vst [vmem:[#allocation33_spill] sm:$0xff] %v6176_v11  ;;  %v433_v56 = vpop.f32.mrf.mxu0  ;;  %4112 = vperm.xlu0 %4998, %v1840_v22  }
 0x195   :  { %v434_v36 = vadd.f32 %v6055_v63, %v433_v56  ;;  %4122 = vperm.xlu2 %4997, %v1842_v5  }
 0x196   :  { %v6183_v53 = vpop.f32.mrf.mxu1  ;;  %v6187_v54 = vpop.f32.mrf.mxu3  ;;  %2737 = vperm.xlu1 %4996, %v1620_v40   ;;  %v1326_v40 = vld [vmem:[%s9052_s1 + $0x1a0] sm:$0xff] }
 0x197   :  { %v557_v62 = vmax.f32 %v434_v36, 0.0  ;;  %4523 = vmatmul.msk.f32.gmra.mxu0 %vm117_vm2, %v96_v0  ;;  %v1623_v36 = vadd.f32 %v5615_v8, %v5895_v46  ;;  %v1843_v46 = vld [vmem:[%s9060_s3 + $0x110] sm:$0xff] }
 0x198   :  { %4652 = vmatmul.msk.f32.gmra.mxu2 %vm117_vm2, %v96_v0 }
 0x199   :  { %4571 = vmatmul.msk.f32.gmra.mxu1 %vm593_vm3, %v557_v62  ;;  %v97_v62 = vld [vmem:[%s9053_s0 + $0x198] sm:$0xff] }
 0x19b   :  { %v6201_v25 = vpop.f32.mrf.mxu2  ;;  %4717 = vmatmul.msk.f32.gmra.mxu3 %vm1343_vm1, %v1325_v17  ;;  %v1841_v17 = vld [vmem:[%s9060_s3 + $0x100] sm:$0xff] }
 0x19c   :  { %9122 = vst [vmem:[#allocation34_spill] sm:$0xff] %v6201_v25  ;;  %v436_v35 = vpop.f32.mrf.mxu0  ;;  %4127 = vperm.xlu0 %4998, %v1843_v46   ;;  %v1844_v46 = vld [vmem:[%s9060_s3 + $0x118] sm:$0xff] }
 0x19d   :  { %v437_v56 = vadd.f32 %v6055_v63, %v436_v35  ;;  %2742 = vperm.xlu2 %4997, %v1623_v36   ;;  %v1626_v36 = vadd.f32 %v5615_v8, %v5920_v13 }
 0x19e   :  { %v6208_v0 = vpop.f32.mrf.mxu1  ;;  %v6212_v21 = vpop.f32.mrf.mxu3  ;;  %4117 = vperm.xlu1 %4996, %v1841_v17   ;;  %v1845_v17 = vld [vmem:[%s9060_s3 + $0x120] sm:$0xff] }
 0x19f   :  { %v558_v11 = vmax.f32 %v437_v56, 0.0  ;;  %4524 = vmatmul.msk.f32.gmra.mxu0 %vm117_vm2, %v97_v62 }
 0x1a0   :  { %4653 = vmatmul.msk.f32.gmra.mxu2 %vm117_vm2, %v97_v62 }
 0x1a1   :  { %4572 = vmatmul.msk.f32.gmra.mxu1 %vm593_vm3, %v558_v11  ;;  %v98_v11 = vld [vmem:[%s9053_s0 + $0x1a0] sm:$0xff] }
 0x1a3   :  { %v6226_v5 = vpop.f32.mrf.mxu2  ;;  %4718 = vmatmul.msk.f32.gmra.mxu3 %vm1343_vm1, %v1326_v40  ;;  %v1327_v40 = vld [vmem:[%s9052_s1 + $0x1a8] sm:$0xff] }
 0x1a4   :  { %9123 = vst [vmem:[#allocation35_spill] sm:$0xff] %v6226_v5  ;;  %v439_v22 = vpop.f32.mrf.mxu0  ;;  %2747 = vperm.xlu0 %4998, %v1626_v36   ;;  %v1629_v5 = vadd.f32 %v5615_v8, %v5945_v55  ;;  %v1328_v36 = vld [vmem:[%s9052_s1 + $0x1b0] sm:$0xff]  ;;  %v1846_v55 = vld [vmem:[%s9060_s3 + $0x128] sm:$0xff] }
 0x1a5   :  { %v440_v35 = vadd.f32 %v6055_v63, %v439_v22  ;;  %4137 = vperm.xlu2 %4997, %v1845_v17  }
 0x1a6   :  { %v6233_v62 = vpop.f32.mrf.mxu1  ;;  %v6235_v25 = vpop.f32.mrf.mxu3  ;;  %4132 = vperm.xlu1 %4996, %v1844_v46  }
 0x1a7   :  { %v559_v56 = vmax.f32 %v440_v35, 0.0  ;;  %4525 = vmatmul.msk.f32.gmra.mxu0 %vm117_vm2, %v98_v11 }
 0x1a8   :  { %4654 = vmatmul.msk.f32.gmra.mxu2 %vm117_vm2, %v98_v11  ;;  %v99_v11 = vld [vmem:[%s9053_s0 + $0x1a8] sm:$0xff] }
 0x1a9   :  { %4573 = vmatmul.msk.f32.gmra.mxu1 %vm593_vm3, %v559_v56 }
 0x1ab   :  { %v6251_v22 = vpop.f32.mrf.mxu2  ;;  %4719 = vmatmul.msk.f32.gmra.mxu3 %vm1343_vm1, %v1327_v40  ;;  %v1848_v40 = vld [vmem:[%s9060_s3 + $0x138] sm:$0xff] }
 0x1ac   :  { %9124 = vst [vmem:[#allocation36_spill] sm:$0xff] %v6251_v22  ;;  %v442_v13 = vpop.f32.mrf.mxu0  ;;  %4142 = vperm.xlu0 %4998, %v1846_v55  }
 0x1ad   :  { %v443_v35 = vadd.f32 %v6055_v63, %v442_v13  ;;  %4152 = vperm.xlu2 %4997, %v1848_v40  }
 0x1ae   :  { %v6258_v56 = vpop.f32.mrf.mxu1  ;;  %v6262_v41 = vpop.f32.mrf.mxu3  ;;  %2752 = vperm.xlu1 %4996, %v1629_v5   ;;  %v1329_v5 = vld [vmem:[%s9052_s1 + $0x1b8] sm:$0xff] }
 0x1af   :  { %v560_v58 = vmax.f32 %v443_v35, 0.0  ;;  %4526 = vmatmul.msk.f32.gmra.mxu0 %vm117_vm2, %v99_v11  ;;  %v1632_v35 = vadd.f32 %v5615_v8, %v5970_v31  ;;  %v1849_v31 = vld [vmem:[%s9060_s3 + $0x140] sm:$0xff] }
 0x1b0   :  { %4655 = vmatmul.msk.f32.gmra.mxu2 %vm117_vm2, %v99_v11 }
 0x1b1   :  { %4574 = vmatmul.msk.f32.gmra.mxu1 %vm593_vm3, %v560_v58  ;;  %v100_v58 = vld [vmem:[%s9053_s0 + $0x1b0] sm:$0xff] }
 0x1b3   :  { %v6276_v17 = vpop.f32.mrf.mxu2  ;;  %4720 = vmatmul.msk.f32.gmra.mxu3 %vm1343_vm1, %v1328_v36  ;;  %v1847_v36 = vld [vmem:[%s9060_s3 + $0x130] sm:$0xff] }
 0x1b4   :  { %9125 = vst [vmem:[#allocation37_spill] sm:$0xff] %v6276_v17  ;;  %v445_v46 = vpop.f32.mrf.mxu0  ;;  %4157 = vperm.xlu0 %4998, %v1849_v31   ;;  %v1850_v31 = vld [vmem:[%s9060_s3 + $0x148] sm:$0xff] }
 0x1b5   :  { %v446_v13 = vadd.f32 %v6055_v63, %v445_v46  ;;  %2757 = vperm.xlu2 %4997, %v1632_v35   ;;  %v1635_v35 = vadd.f32 %v5615_v8, %v5995_v16  ;;  %v102_v16 = vld [vmem:[%s9053_s0 + $0x1c0] sm:$0xff] }
 0x1b6   :  { %v6283_v11 = vpop.f32.mrf.mxu1  ;;  %v6287_v4 = vpop.f32.mrf.mxu3  ;;  %4147 = vperm.xlu1 %4996, %v1847_v36   ;;  %v1851_v36 = vld [vmem:[%s9060_s3 + $0x150] sm:$0xff] }
 0x1b7   :  { %v561_v22 = vmax.f32 %v446_v13, 0.0  ;;  %4527 = vmatmul.msk.f32.gmra.mxu0 %vm117_vm2, %v100_v58 }
 0x1b8   :  { %4656 = vmatmul.msk.f32.gmra.mxu2 %vm117_vm2, %v100_v58 }
 0x1b9   :  { %4575 = vmatmul.msk.f32.gmra.mxu1 %vm593_vm3, %v561_v22  ;;  %v101_v22 = vld [vmem:[%s9053_s0 + $0x1b8] sm:$0xff] }
 0x1bb   :  { %v6301_v40 = vpop.f32.mrf.mxu2  ;;  %4721 = vmatmul.msk.f32.gmra.mxu3 %vm1343_vm1, %v1329_v5  ;;  %v1330_v5 = vld [vmem:[%s9052_s1 + $0x1c0] sm:$0xff] }
 0x1bc   :  { %9126 = vst [vmem:[#allocation38_spill] sm:$0xff] %v6301_v40  ;;  %v448_v55 = vpop.f32.mrf.mxu0  ;;  %2762 = vperm.xlu0 %4998, %v1635_v35   ;;  %v1331_v35 = vld [vmem:[%s9052_s1 + $0x1c8] sm:$0xff] }
 0x1bd   :  { %v449_v46 = vadd.f32 %v6055_v63, %v448_v55  ;;  %4167 = vperm.xlu2 %4997, %v1851_v36  }
 0x1be   :  { %v6308_v58 = vpop.f32.mrf.mxu1  ;;  %v6310_v17 = vpop.f32.mrf.mxu3  ;;  %4162 = vperm.xlu1 %4996, %v1850_v31  }
 0x1bf   :  { %v562_v13 = vmax.f32 %v449_v46, 0.0  ;;  %4528 = vmatmul.msk.f32.gmra.mxu0 %vm117_vm2, %v101_v22 }
 0x1c0   :  { %4657 = vmatmul.msk.f32.gmra.mxu2 %vm117_vm2, %v101_v22 }
 0x1c1   :  { %4576 = vmatmul.msk.f32.gmra.mxu1 %vm593_vm3, %v562_v13  ;;  %v6335_v13 = vld [vmem:[#allocation2] ss:$0 sm:$0xff] }
 0x1c2   :  { %v1638_v40 = vadd.f32 %v6335_v13, %v6023_v18  ;;  %v1852_v18 = vld [vmem:[%s9060_s3 + $0x158] sm:$0xff]  ;;  %v1641_v3 = vadd.f32 %v6335_v13, %v6062_v47  ;;  %v1855_v47 = vld [vmem:[%s9060_s3 + $0x170] sm:$0xff]  ;;  %v1650_v7 = vadd.f32 %v6335_v13, %v6137_v28 }
 0x1c3   :  { %v6326_v55 = vpop.f32.mrf.mxu2  ;;  %4722 = vmatmul.msk.f32.gmra.mxu3 %vm1343_vm1, %v1330_v5  ;;  %v1854_v5 = vld [vmem:[%s9060_s3 + $0x168] sm:$0xff] }
 0x1c4   :  { %9127 = vst [vmem:[#allocation39_spill] sm:$0xff] %v6326_v55  ;;  %v451_v8 = vpop.f32.mrf.mxu0  ;;  %4172 = vperm.xlu0 %4998, %v1852_v18  }
 0x1c5   :  { %v452_v22 = vadd.f32 %v6055_v63, %v451_v8  ;;  %4182 = vperm.xlu2 %4997, %v1854_v5  }
 0x1c6   :  { %v6333_v46 = vpop.f32.mrf.mxu1  ;;  %v6339_v36 = vpop.f32.mrf.mxu3  ;;  %2767 = vperm.xlu1 %4996, %v1638_v40   ;;  %v1332_v40 = vld [vmem:[%s9052_s1 + $0x1d0] sm:$0xff] }
 0x1c7   :  { %v563_v55 = vmax.f32 %v452_v22, 0.0  ;;  %4529 = vmatmul.msk.f32.gmra.mxu0 %vm117_vm2, %v102_v16 }
 0x1c8   :  { %4658 = vmatmul.msk.f32.gmra.mxu2 %vm117_vm2, %v102_v16 }
 0x1c9   :  { %4577 = vmatmul.msk.f32.gmra.mxu1 %vm593_vm3, %v563_v55  ;;  %v103_v55 = vld [vmem:[%s9053_s0 + $0x1c8] sm:$0xff] }
 0x1cb   :  { %v6353_v31 = vpop.f32.mrf.mxu2  ;;  %4723 = vmatmul.msk.f32.gmra.mxu3 %vm1343_vm1, %v1331_v35  ;;  %v1853_v35 = vld [vmem:[%s9060_s3 + $0x160] sm:$0xff] }
 0x1cc   :  { %9128 = vst [vmem:[#allocation40_spill] sm:$0xff] %v6353_v31  ;;  %v454_v8 = vpop.f32.mrf.mxu0  ;;  %4187 = vperm.xlu0 %4998, %v1855_v47   ;;  %v1857_v47 = vld [vmem:[%s9060_s3 + $0x180] sm:$0xff] }
 0x1cd   :  { %v455_v16 = vadd.f32 %v6055_v63, %v454_v8  ;;  %2772 = vperm.xlu2 %4997, %v1641_v3   ;;  %v6384_v8 = vpop.permute.xlu1 %3292  ;;  %v6392_v3 = vpop.permute.xlu0 %3302 }
 0x1ce   :  { %v6360_v22 = vpop.f32.mrf.mxu1  ;;  %v6364_v37 = vpop.f32.mrf.mxu3  ;;  %4177 = vperm.xlu1 %4996, %v1853_v35   ;;  %v1333_v35 = vld [vmem:[%s9052_s1 + $0x1d8] sm:$0xff] }
 0x1cf   :  { %v564_v52 = vmax.f32 %v455_v16, 0.0  ;;  %4530 = vmatmul.msk.f32.gmra.mxu0 %vm117_vm2, %v103_v55 }
 0x1d0   :  { %4659 = vmatmul.msk.f32.gmra.mxu2 %vm117_vm2, %v103_v55 }
 0x1d1   :  { %4578 = vmatmul.msk.f32.gmra.mxu1 %vm593_vm3, %v564_v52  ;;  %v104_v52 = vld [vmem:[%s9053_s0 + $0x1d0] sm:$0xff] }
 0x1d3   :  { %v6378_v5 = vpop.f32.mrf.mxu2  ;;  %4724 = vmatmul.msk.f32.gmra.mxu3 %vm1343_vm1, %v1332_v40  ;;  %v1644_v40 = vadd.f32 %v6335_v13, %v6085_v38  ;;  %v6409_v38 = vpop.permute.xlu2 %3297 }
 0x1d4   :  { %9129 = vst [vmem:[#allocation41_spill] sm:$0xff] %v6378_v5  ;;  %v457_v18 = vpop.f32.mrf.mxu0 }
 0x1d5   :  { %v458_v55 = vadd.f32 %v6055_v63, %v457_v18  ;;  %v1856_v18 = vld [vmem:[%s9060_s3 + $0x178] sm:$0xff]  ;;  %4197 = vperm.xlu2 %4997, %v1857_v47   ;;  %2777 = vperm.xlu0 %4998, %v1644_v40   ;;  %v6418_v57 = vpop.permute.xlu1 %3307  ;;  %v1647_v47 = vadd.f32 %v6335_v13, %v6112_v1  ;;  %v1334_v40 = vld [vmem:[%s9052_s1 + $0x1e0] sm:$0xff]  ;;  %v1858_v1 = vld [vmem:[%s9060_s3 + $0x188] sm:$0xff] }
 0x1d6   :  { %v6387_v16 = vpop.f32.mrf.mxu1  ;;  %v6389_v23 = vpop.f32.mrf.mxu3  ;;  %4192 = vperm.xlu1 %4996, %v1856_v18   ;;  %9131 = vst [vmem:[#allocation43_spill] sm:$0xff] %v6418_v57 }
 0x1d7   :  { %v565_v31 = vmax.f32 %v458_v55, 0.0  ;;  %4531 = vmatmul.msk.f32.gmra.mxu0 %vm117_vm2, %v104_v52 }
 0x1d8   :  { %4660 = vmatmul.msk.f32.gmra.mxu2 %vm117_vm2, %v104_v52  ;;  %v105_v52 = vld [vmem:[%s9053_s0 + $0x1d8] sm:$0xff] }
 0x1d9   :  { %4579 = vmatmul.msk.f32.gmra.mxu1 %vm593_vm3, %v565_v31 }
 0x1db   :  { %v6407_v55 = vpop.f32.mrf.mxu2  ;;  %4725 = vmatmul.msk.f32.gmra.mxu3 %vm1343_vm1, %v1333_v35  ;;  %v1860_v35 = vld [vmem:[%s9060_s3 + $0x198] sm:$0xff]  ;;  %v6445_v32 = vpop.permute.xlu2 %3312 }
 0x1dc   :  { %9130 = vst [vmem:[#allocation42_spill] sm:$0xff] %v6407_v55  ;;  %v460_v31 = vpop.f32.mrf.mxu0 }
 0x1dd   :  { %v461_v5 = vadd.f32 %v6055_v63, %v460_v31  ;;  %4212 = vperm.xlu2 %4997, %v1860_v35   ;;  %4202 = vperm.xlu0 %4998, %v1858_v1   ;;  %9134 = vst [vmem:[#allocation46_spill] sm:$0xff] %v6445_v32  ;;  %v1859_v1 = vld [vmem:[%s9060_s3 + $0x190] sm:$0xff] }
 0x1de   :  { %v6416_v10 = vpop.f32.mrf.mxu1  ;;  %v6422_v55 = vpop.f32.mrf.mxu3  ;;  %2782 = vperm.xlu1 %4996, %v1647_v47  }
 0x1df   :  { %v566_v18 = vmax.f32 %v461_v5, 0.0  ;;  %4532 = vmatmul.msk.f32.gmra.mxu0 %vm117_vm2, %v105_v52  ;;  %v6436_v5 = vpop.permute.xlu0 %3317  ;;  %v6455_v47 = vpop.permute.xlu1 %3322 }
 0x1e0   :  { %4661 = vmatmul.msk.f32.gmra.mxu2 %vm117_vm2, %v105_v52  ;;  %9132 = vst [vmem:[#allocation44_spill] sm:$0xff] %v6436_v5 }
 0x1e1   :  { %4580 = vmatmul.msk.f32.gmra.mxu1 %vm593_vm3, %v566_v18  ;;  %v106_v18 = vld [vmem:[%s9053_s0 + $0x1e0] sm:$0xff]  ;;  %9135 = vst [vmem:[#allocation47_spill] sm:$0xff] %v6455_v47 }
 0x1e3   :  { %v6438_v31 = vpop.f32.mrf.mxu2  ;;  %4726 = vmatmul.msk.f32.gmra.mxu3 %vm1343_vm1, %v1334_v40  ;;  %v1335_v40 = vld [vmem:[%s9052_s1 + $0x1e8] sm:$0xff] }
 0x1e4   :  { %9133 = vst [vmem:[#allocation45_spill] sm:$0xff] %v6438_v31  ;;  %v463_v52 = vpop.f32.mrf.mxu0 }
 0x1e5   :  { %v464_v45 = vadd.f32 %v6055_v63, %v463_v52  ;;  %2787 = vperm.xlu2 %4997, %v1650_v7   ;;  %v6481_v7 = vpop.permute.xlu2 %3327 }
 0x1e6   :  { %v6447_v20 = vpop.f32.mrf.mxu1  ;;  %v6451_v35 = vpop.f32.mrf.mxu3  ;;  %4207 = vperm.xlu1 %4996, %v1859_v1   ;;  %9138 = vst [vmem:[#allocation50_spill] sm:$0xff] %v6481_v7  ;;  %v1336_v1 = vld [vmem:[%s9052_s1 + $0x1f0] sm:$0xff] }
 0x1e7   :  { %v567_v31 = vmax.f32 %v464_v45, 0.0  ;;  %4533 = vmatmul.msk.f32.gmra.mxu0 %vm117_vm2, %v106_v18  ;;  %v1861_v45 = vld [vmem:[%s9060_s3 + $0x1a0] sm:$0xff]  ;;  %v6469_v52 = vpop.permute.xlu0 %3332 }
 0x1e8   :  { %4662 = vmatmul.msk.f32.gmra.mxu2 %vm117_vm2, %v106_v18  ;;  %9137 = vst [vmem:[#allocation49_spill] sm:$0xff] %v6469_v52  ;;  %v107_v18 = vld [vmem:[%s9053_s0 + $0x1e8] sm:$0xff]  ;;  %4217 = vperm.xlu0 %4998, %v1861_v45  }
 0x1e9   :  { %4581 = vmatmul.msk.f32.gmra.mxu1 %vm593_vm3, %v567_v31  ;;  %v1862_v45 = vld [vmem:[%s9060_s3 + $0x1a8] sm:$0xff] }
 0x1eb   :  { %v6467_v28 = vpop.f32.mrf.mxu2  ;;  %4727 = vmatmul.msk.f32.gmra.mxu3 %vm1343_vm1, %v1335_v40  ;;  %v1653_v40 = vadd.f32 %v6335_v13, %v6160_v48  ;;  %v108_v48 = vld [vmem:[%s9053_s0 + $0x1f0] sm:$0xff] }
 0x1ec   :  { %9136 = vst [vmem:[#allocation48_spill] sm:$0xff] %v6467_v28  ;;  %v466_v31 = vpop.f32.mrf.mxu0 }
 0x1ed   :  { %v467_v47 = vadd.f32 %v6055_v63, %v466_v31  ;;  %v6496_v31 = vpop.permute.xlu1 %3337 }
 0x1ee   :  { %v6476_v5 = vpop.f32.mrf.mxu1  ;;  %v6478_v32 = vpop.f32.mrf.mxu3  ;;  %9139 = vst [vmem:[#allocation51_spill] sm:$0xff] %v6496_v31  ;;  %4222 = vperm.xlu1 %4996, %v1862_v45   ;;  %v1656_v31 = vadd.f32 %v6335_v13, %v6187_v54  ;;  %v1864_v54 = vld [vmem:[%s9060_s3 + $0x1b8] sm:$0xff] }
 0x1ef   :  { %v568_v59 = vmax.f32 %v467_v47, 0.0  ;;  %4534 = vmatmul.msk.f32.gmra.mxu0 %vm117_vm2, %v107_v18  ;;  %v1863_v47 = vld [vmem:[%s9060_s3 + $0x1b0] sm:$0xff]  ;;  %v6505_v52 = vpop.permute.xlu0 %3347  ;;  %v6525_v45 = vpop.permute.xlu2 %3342 }
 0x1f0   :  { %4663 = vmatmul.msk.f32.gmra.mxu2 %vm117_vm2, %v107_v18  ;;  %4227 = vperm.xlu2 %4997, %v1863_v47   ;;  %9141 = vst [vmem:[#allocation53_spill] sm:$0xff] %v6505_v52 }
 0x1f1   :  { %4582 = vmatmul.msk.f32.gmra.mxu1 %vm593_vm3, %v568_v59  ;;  %2792 = vperm.xlu0 %4998, %v1653_v40   ;;  %v1337_v40 = vld [vmem:[%s9052_s1 + $0x1f8] sm:$0xff]  ;;  %9142 = vst [vmem:[#allocation54_spill] sm:$0xff] %v6525_v45 }
 0x1f3   :  { %v6498_v28 = vpop.f32.mrf.mxu2  ;;  %4728 = vmatmul.msk.f32.gmra.mxu3 %vm1343_vm1, %v1336_v1  ;;  %v1866_v1 = vld [vmem:[%s9060_s3 + $0x1c8] sm:$0xff] }
 0x1f4   :  { %9140 = vst [vmem:[#allocation52_spill] sm:$0xff] %v6498_v28  ;;  %v469_v59 = vpop.f32.mrf.mxu0 }
 0x1f5   :  { %v470_v18 = vadd.f32 %v6055_v63, %v469_v59  ;;  %v6530_v59 = vld [vmem:[%s9059_s7] ss:$0 sm:$0xff]  ;;  %v6538_v52 = vpop.permute.xlu1 %3352 }
 0x1f6   :  { %v6507_v7 = vpop.f32.mrf.mxu1  ;;  %v6511_v47 = vpop.f32.mrf.mxu3  ;;  %2797 = vperm.xlu1 %4996, %v1656_v31   ;;  %9144 = vst [vmem:[#allocation56_spill] sm:$0xff] %v6538_v52  ;;  %v804_v49 = vadd.f32 %v6530_v59, %v5716_v12  ;;  %v1659_v31 = vadd.f32 %v6335_v13, %v6212_v21  ;;  %v1865_v12 = vld [vmem:[%s9060_s3 + $0x1c0] sm:$0xff] }
 0x1f7   :  { %v569_v28 = vmax.f32 %v470_v18, 0.0  ;;  %4535 = vmatmul.msk.f32.gmra.mxu0 %vm117_vm2, %v108_v48  ;;  %v109_v18 = vld [vmem:[%s9053_s0 + $0x1f8] sm:$0xff] }
 0x1f8   :  { %4664 = vmatmul.msk.f32.gmra.mxu2 %vm117_vm2, %v108_v48  ;;  %4242 = vperm.xlu2 %4997, %v1866_v1   ;;  %v6560_v21 = vmax.f32 %v804_v49, 0.0 }
 0x1f9   :  { %4583 = vmatmul.msk.f32.gmra.mxu1 %vm593_vm3, %v569_v28  ;;  %4232 = vperm.xlu0 %4998, %v1864_v54   ;;  %v1867_v54 = vld [vmem:[%s9060_s3 + $0x1d0] sm:$0xff] }
 0x1fb   :  { %v6532_v28 = vpop.f32.mrf.mxu2  ;;  %4729 = vmatmul.msk.f32.gmra.mxu3 %vm1343_vm1, %v1337_v40 }
 0x1fc   :  { %9143 = vst [vmem:[#allocation55_spill] sm:$0xff] %v6532_v28  ;;  %v472_v48 = vpop.f32.mrf.mxu0  ;;  %v6550_v28 = vpop.permute.xlu0 %3362 }
 0x1fd   :  { %v473_v45 = vadd.f32 %v6055_v63, %v472_v48  ;;  %9145 = vst [vmem:[#allocation57_spill] sm:$0xff] %v6550_v28  ;;  %v6564_v48 = vpop.permute.xlu2 %3357  ;;  %v807_v28 = vadd.f32 %v6530_v59, %v5741_v30  ;;  %v6573_v49 = vpop.permute.xlu1 %3367  ;;  %v1868_v30 = vld [vmem:[%s9060_s3 + $0x1d8] sm:$0xff] }
 0x1fe   :  { %v6543_v57 = vpop.f32.mrf.mxu1  ;;  %v6547_v40 = vpop.f32.mrf.mxu3  ;;  %4237 = vperm.xlu1 %4996, %v1865_v12   ;;  %9147 = vst [vmem:[#allocation59_spill] sm:$0xff] %v6564_v48 }
 0x1ff   :  { %v570_v1 = vmax.f32 %v473_v45, 0.0  ;;  %4536 = vmatmul.msk.f32.gmra.mxu0 %vm117_vm2, %v109_v18  ;;  %9148 = vst [vmem:[#allocation60_spill] sm:$0xff] %v6573_v49  ;;  %v6587_v12 = vmax.f32 %v807_v28, 0.0  ;;  %v1665_v28 = vadd.f32 %v6335_v13, %v6262_v41  ;;  %v1869_v41 = vld [vmem:[%s9060_s3 + $0x1e0] sm:$0xff] }
 0x200   :  { %4665 = vmatmul.msk.f32.gmra.mxu2 %vm117_vm2, %v109_v18  ;;  %2802 = vperm.xlu2 %4997, %v1659_v31   ;;  %v1662_v31 = vadd.f32 %v6335_v13, %v6235_v25 }
 0x201   :  { %4584 = vmatmul.msk.f32.gmra.mxu1 %vm593_vm3, %v570_v1  ;;  %4247 = vperm.xlu0 %4998, %v1867_v54  }
 0x203   :  { %v6562_v45 = vpop.f32.mrf.mxu2  ;;  %4730 = vmatmul.msk.f32.vlgmr.msrb.gmra.mxu3 %vm593_vm3, %v6560_v21 }
 0x204   :  { %9146 = vst [vmem:[#allocation58_spill] sm:$0xff] %v6562_v45  ;;  %v475_v18 = vpop.f32.mrf.mxu0  ;;  %v6589_v54 = vpop.permute.xlu0 %3377 }
 0x205   :  { %v476_v1 = vadd.f32 %v6055_v63, %v475_v18  ;;  %9149 = vst [vmem:[#allocation61_spill] sm:$0xff] %v6589_v54  ;;  %v6596_v49 = vpop.permute.xlu2 %3372 }
 0x206   :  { %v6571_v52 = vpop.f32.mrf.mxu1  ;;  %v6575_v45 = vpop.f32.mrf.mxu3  ;;  %4252 = vperm.xlu1 %4996, %v1868_v30   ;;  %9151 = vst [vmem:[#allocation63_spill] sm:$0xff] %v6596_v49 }
 0x207   :  { %v571_v39 = vmax.f32 %v476_v1, 0.0  ;;  %4864 = vmatmul.msk.f32.vlgmr.msrb.gmra.mxu0 %vm593_vm3, %v6560_v21  ;;  %v6612_v30 = vpop.permute.xlu1 %3382 }
 0x208   :  { %4931 = vmatmul.msk.f32.vlgmr.msrb.gmra.mxu2 %vm593_vm3, %v6560_v21  ;;  %9152 = vst [vmem:[#allocation64_spill] sm:$0xff] %v6612_v30  ;;  %4257 = vperm.xlu2 %4997, %v1869_v41  }
 0x209   :  { %4585 = vmatmul.msk.f32.gmra.mxu1 %vm593_vm3, %v571_v39  ;;  %2807 = vperm.xlu0 %4998, %v1662_v31   ;;  %v810_v39 = vadd.f32 %v6530_v59, %v5768_v50  ;;  %v1671_v31 = vadd.f32 %v6335_v13, %v6310_v17 }
 0x20b   :  { %v6591_v18 = vpop.f32.mrf.mxu2  ;;  %4731 = vmatmul.msk.f32.gmra.mxu3 %vm593_vm3, %v6587_v12  ;;  %v6618_v50 = vmax.f32 %v810_v39, 0.0  ;;  %v1668_v39 = vadd.f32 %v6335_v13, %v6287_v4 }
 0x20c   :  { %9150 = vst [vmem:[#allocation62_spill] sm:$0xff] %v6591_v18  ;;  %v478_v25 = vpop.f32.mrf.mxu0 }
 0x20d   :  { %v479_v1 = vadd.f32 %v6055_v63, %v478_v25 }
 0x20e   :  { %v6600_v48 = vpop.f32.mrf.mxu1  ;;  %v6604_v18 = vpop.f32.mrf.mxu3  ;;  %2812 = vperm.xlu1 %4996, %v1665_v28   ;;  %v1674_v28 = vadd.f32 %v6335_v13, %v6339_v36 }
 0x20f   :  { %v572_v54 = vmax.f32 %v479_v1, 0.0  ;;  %4865 = vmatmul.msk.f32.gmra.mxu0 %vm593_vm3, %v6587_v12  ;;  %v6622_v1 = vpop.permute.xlu0 %3392 }
 0x210   :  { %4932 = vmatmul.msk.f32.gmra.mxu2 %vm593_vm3, %v6587_v12  ;;  %9154 = vst [vmem:[#allocation66_spill] sm:$0xff] %v6622_v1  ;;  %2817 = vperm.xlu2 %4997, %v1668_v39   ;;  %v816_v1 = vadd.f32 %v6530_v59, %v5816_v27 }
 0x211   :  { %4586 = vmatmul.msk.f32.gmra.mxu1 %vm593_vm3, %v572_v54  ;;  %2822 = vperm.xlu0 %4998, %v1671_v31   ;;  %v813_v54 = vadd.f32 %v6530_v59, %v5791_v34  ;;  %v6639_v31 = vpop.permute.xlu2 %3387  ;;  %v6648_v34 = vpop.permute.xlu1 %3397 }
 0x212   :  { %9155 = vst [vmem:[#allocation67_spill] sm:$0xff] %v6639_v31 }
 0x213   :  { %v6620_v25 = vpop.f32.mrf.mxu2  ;;  %4732 = vmatmul.msk.f32.gmra.mxu3 %vm593_vm3, %v6618_v50  ;;  %v6646_v4 = vmax.f32 %v813_v54, 0.0  ;;  %9156 = vst [vmem:[#allocation68_spill] sm:$0xff] %v6648_v34  ;;  %v1677_v54 = vadd.f32 %v6335_v13, %v6364_v37  ;;  %v6674_v37 = vmax.f32 %v816_v1, 0.0  ;;  %v1686_v1 = vadd.f32 %v6335_v13, %v6451_v35 }
 0x214   :  { %9153 = vst [vmem:[#allocation65_spill] sm:$0xff] %v6620_v25  ;;  %v481_v17 = vpop.f32.mrf.mxu0 }
 0x215   :  { %v482_v30 = vadd.f32 %v6055_v63, %v481_v17  ;;  %v1680_v17 = vadd.f32 %v6335_v13, %v6389_v23 }
 0x216   :  { %v6631_v49 = vpop.f32.mrf.mxu1  ;;  %v6635_v25 = vpop.f32.mrf.mxu3  ;;  %2827 = vperm.xlu1 %4996, %v1674_v28   ;;  %v1683_v28 = vadd.f32 %v6335_v13, %v6422_v55 }
 0x217   :  { %v573_v41 = vmax.f32 %v482_v30, 0.0  ;;  %4866 = vmatmul.msk.f32.gmra.mxu0 %vm593_vm3, %v6618_v50  ;;  %v6657_v31 = vpop.permute.xlu0 %3407 }
 0x218   :  { %4933 = vmatmul.msk.f32.gmra.mxu2 %vm593_vm3, %v6618_v50  ;;  %9158 = vst [vmem:[#allocation70_spill] sm:$0xff] %v6657_v31  ;;  %2832 = vperm.xlu2 %4997, %v1677_v54   ;;  %v1692_v54 = vadd.f32 %v6335_v13, %v6511_v47 }
 0x219   :  { %4587 = vmatmul.msk.f32.gmra.mxu1 %vm593_vm3, %v573_v41  ;;  %2837 = vperm.xlu0 %4998, %v1680_v17   ;;  %v1689_v17 = vadd.f32 %v6335_v13, %v6478_v32  ;;  %v6672_v27 = vpop.permute.xlu2 %3402 }
 0x21a   :  { %9159 = vst [vmem:[#allocation71_spill] sm:$0xff] %v6672_v27 }
 0x21b   :  { %v6650_v36 = vpop.f32.mrf.mxu2  ;;  %4733 = vmatmul.msk.f32.gmra.mxu3 %vm593_vm3, %v6646_v4 }
 0x21c   :  { %9157 = vst [vmem:[#allocation69_spill] sm:$0xff] %v6650_v36  ;;  %v484_v30 = vpop.f32.mrf.mxu0 }
 0x21d   :  { %v485_v23 = vadd.f32 %v6055_v63, %v484_v30 }
 0x21e   :  { %v6661_v39 = vpop.f32.mrf.mxu1  ;;  %v1706_v36 = vpop.f32.mrf.mxu3  ;;  %2842 = vperm.xlu1 %4996, %v1683_v28  }
 0x21f   :  { %v574_v41 = vmax.f32 %v485_v23, 0.0  ;;  %4867 = vmatmul.msk.f32.gmra.mxu0 %vm593_vm3, %v6646_v4  ;;  %v6680_v23 = vpop.permute.xlu1 %3412 }
 0x220   :  { %4934 = vmatmul.msk.f32.gmra.mxu2 %vm593_vm3, %v6646_v4  ;;  %9161 = vst [vmem:[#allocation73_spill] sm:$0xff] %v6680_v23  ;;  %2847 = vperm.xlu2 %4997, %v1686_v1  }
 0x221   :  { %4588 = vmatmul.msk.f32.gmra.mxu1 %vm593_vm3, %v574_v41  ;;  %2852 = vperm.xlu0 %4998, %v1689_v17   ;;  %v819_v41 = vadd.f32 %v6530_v59, %v5843_v24  ;;  %v6693_v17 = vpop.permute.xlu0 %3422  ;;  %v6704_v47 = vpop.permute.xlu2 %3417 }
 0x222   :  { %9162 = vst [vmem:[#allocation74_spill] sm:$0xff] %v6693_v17  ;;  %v822_v17 = vadd.f32 %v6530_v59, %v5866_v15 }
 0x223   :  { %v6676_v30 = vpop.f32.mrf.mxu2  ;;  %4734 = vmatmul.msk.f32.gmra.mxu3 %vm593_vm3, %v6674_v37  ;;  %v6700_v24 = vmax.f32 %v819_v41, 0.0  ;;  %9164 = vst [vmem:[#allocation76_spill] sm:$0xff] %v6704_v47  ;;  %v1695_v41 = vadd.f32 %v6335_v13, %v6547_v40 }
 0x224   :  { %9160 = vst [vmem:[#allocation72_spill] sm:$0xff] %v6676_v30  ;;  %v487_v55 = vpop.f32.mrf.mxu0  ;;  %v6725_v15 = vmax.f32 %v822_v17, 0.0  ;;  %v1704_v17 = vadd.f32 %v6335_v13, %v6635_v25 }
 0x225   :  { %v488_v32 = vadd.f32 %v6055_v63, %v487_v55  ;;  %v1698_v55 = vadd.f32 %v6335_v13, %v6575_v45 }
 0x226   :  { %v6687_v31 = vpop.f32.mrf.mxu1  ;;  %v1709_v30 = vpop.f32.mrf.mxu3  ;;  %2857 = vperm.xlu1 %4996, %v1692_v54   ;;  %v1701_v54 = vadd.f32 %v6335_v13, %v6604_v18 }
 0x227   :  { %v575_v28 = vmax.f32 %v488_v32, 0.0  ;;  %4868 = vmatmul.msk.f32.gmra.mxu0 %vm593_vm3, %v6674_v37  ;;  %v6715_v1 = vpop.permute.xlu1 %3427 }
 0x228   :  { %4935 = vmatmul.msk.f32.gmra.mxu2 %vm593_vm3, %v6674_v37  ;;  %9165 = vst [vmem:[#allocation77_spill] sm:$0xff] %v6715_v1  ;;  %2862 = vperm.xlu2 %4997, %v1695_v41   ;;  %v1710_v41 = vadd.f32 %v6335_v13, %v1709_v30 }
 0x229   :  { %4589 = vmatmul.msk.f32.gmra.mxu1 %vm593_vm3, %v575_v28  ;;  %2867 = vperm.xlu0 %4998, %v1698_v55   ;;  %v1707_v55 = vadd.f32 %v6335_v13, %v1706_v36  ;;  %v6727_v40 = vpop.permute.xlu0 %3437 }
 0x22a   :  { %9166 = vst [vmem:[#allocation78_spill] sm:$0xff] %v6727_v40 }
 0x22b   :  { %v6702_v35 = vpop.f32.mrf.mxu2  ;;  %4735 = vmatmul.msk.f32.gmra.mxu3 %vm593_vm3, %v6700_v24 }
 0x22c   :  { %9163 = vst [vmem:[#allocation75_spill] sm:$0xff] %v6702_v35  ;;  %v490_v32 = vpop.f32.mrf.mxu0 }
 0x22d   :  { %v491_v45 = vadd.f32 %v6055_v63, %v490_v32 }
 0x22e   :  { %v6713_v28 = vpop.f32.mrf.mxu1  ;;  %v1712_v47 = vpop.f32.mrf.mxu3  ;;  %2872 = vperm.xlu1 %4996, %v1701_v54  }
 0x22f   :  { %v576_v35 = vmax.f32 %v491_v45, 0.0  ;;  %4869 = vmatmul.msk.f32.gmra.mxu0 %vm593_vm3, %v6700_v24  ;;  %v6734_v45 = vpop.permute.xlu2 %3432 }
 0x230   :  { %4936 = vmatmul.msk.f32.gmra.mxu2 %vm593_vm3, %v6700_v24  ;;  %9168 = vst [vmem:[#allocation80_spill] sm:$0xff] %v6734_v45  ;;  %2877 = vperm.xlu2 %4997, %v1704_v17  }
 0x231   :  { %4590 = vmatmul.msk.f32.gmra.mxu1 %vm593_vm3, %v576_v35  ;;  %2882 = vperm.xlu0 %4998, %v1707_v55   ;;  %v825_v35 = vadd.f32 %v6530_v59, %v5891_v26  ;;  %v6755_v30 = vpop.permute.xlu0 %3452 }
 0x232   :  { %9172 = vst [vmem:[#allocation84_spill] sm:$0xff] %v6755_v30 }
 0x233   :  { %v6729_v32 = vpop.f32.mrf.mxu2  ;;  %4736 = vmatmul.msk.f32.gmra.mxu3 %vm593_vm3, %v6725_v15  ;;  %v6751_v26 = vmax.f32 %v825_v35, 0.0 }
 0x234   :  { %9167 = vst [vmem:[#allocation79_spill] sm:$0xff] %v6729_v32  ;;  %v493_v18 = vpop.f32.mrf.mxu0 }
 0x235   :  { %v494_v36 = vadd.f32 %v6055_v63, %v493_v18  ;;  %v6748_v18 = vpop.permute.xlu1 %3442 }
 0x236   :  { %v6740_v40 = vpop.f32.mrf.mxu1  ;;  %v1715_v32 = vpop.f32.mrf.mxu3  ;;  %9170 = vst [vmem:[#allocation82_spill] sm:$0xff] %v6748_v18  ;;  %2887 = vperm.xlu1 %4996, %v1710_v41   ;;  %v828_v18 = vadd.f32 %v6530_v59, %v5918_v6 }
 0x237   :  { %9169 = vst [vmem:[#allocation81_spill] sm:$0xff] %v6740_v40  ;;  %v577_v54 = vmax.f32 %v494_v36, 0.0  ;;  %4870 = vmatmul.msk.f32.gmra.mxu0 %vm593_vm3, %v6725_v15  ;;  %v1716_v55 = vadd.f32 %v6335_v13, %v1715_v32  ;;  %v6767_v41 = vpop.permute.xlu2 %3447 }
 0x238   :  { %4937 = vmatmul.msk.f32.gmra.mxu2 %vm593_vm3, %v6725_v15  ;;  %9174 = vst [vmem:[#allocation86_spill] sm:$0xff] %v6767_v41 }
 0x239   :  { %4591 = vmatmul.msk.f32.gmra.mxu1 %vm593_vm3, %v577_v54  ;;  %2897 = vperm.xlu0 %4998, %v1716_v55   ;;  %v1713_v54 = vadd.f32 %v6335_v13, %v1712_v47 }
 0x23b   :  { %v6753_v25 = vpop.f32.mrf.mxu2  ;;  %4737 = vmatmul.msk.f32.gmra.mxu3 %vm593_vm3, %v6751_v26  ;;  %2892 = vperm.xlu2 %4997, %v1713_v54  }
 0x23c   :  { %9171 = vst [vmem:[#allocation83_spill] sm:$0xff] %v6753_v25  ;;  %v496_v36 = vpop.f32.mrf.mxu0 }
 0x23d   :  { %v497_v32 = vadd.f32 %v6055_v63, %v496_v36  ;;  %v6773_v63 = vmax.f32 %v828_v18, 0.0  ;;  %v6775_v6 = vpop.permute.xlu1 %3457  ;;  %v831_v18 = vadd.f32 %v6530_v59, %v5941_v42 }
 0x23e   :  { %v6763_v35 = vpop.f32.mrf.mxu1  ;;  %v1718_v45 = vpop.f32.mrf.mxu3  ;;  %9175 = vst [vmem:[#allocation87_spill] sm:$0xff] %v6775_v6 }
 0x23f   :  { %9173 = vst [vmem:[#allocation85_spill] sm:$0xff] %v6763_v35  ;;  %v578_v17 = vmax.f32 %v497_v32, 0.0  ;;  %4871 = vmatmul.msk.f32.gmra.mxu0 %vm593_vm3, %v6751_v26  ;;  %v1719_v25 = vadd.f32 %v6335_v13, %v1718_v45  ;;  %v6784_v45 = vld [vmem:[%s9054_s5] ss:$0 sm:$0xff] }
 0x240   :  { %4938 = vmatmul.msk.f32.gmra.mxu2 %vm593_vm3, %v6751_v26 }
 0x241   :  { %4592 = vmatmul.msk.f32.gmra.mxu1 %vm593_vm3, %v578_v17  ;;  %2902 = vperm.xlu1 %4996, %v1719_v25  }
 0x243   :  { %v6777_v47 = vpop.f32.mrf.mxu2  ;;  %4738 = vmatmul.msk.f32.gmra.mxu3 %vm593_vm3, %v6773_v63 }
 0x244   :  { %9176 = vst [vmem:[#allocation88_spill] sm:$0xff] %v6777_v47  ;;  %v499_v55 = vpop.f32.mrf.mxu0  ;;  %v6797_v47 = vpop.permute.xlu2 %3462 }
 0x245   :  { %v500_v36 = vadd.f32 %v6784_v45, %v499_v55  ;;  %9178 = vst [vmem:[#allocation90_spill] sm:$0xff] %v6797_v47  ;;  %v6799_v55 = vmax.f32 %v831_v18, 0.0 }
 0x246   :  { %v6789_v32 = vpop.f32.mrf.mxu1  ;;  %v1721_v17 = vpop.f32.mrf.mxu3 }
 0x247   :  { %9177 = vst [vmem:[#allocation89_spill] sm:$0xff] %v6789_v32  ;;  %v579_v54 = vmax.f32 %v500_v36, 0.0  ;;  %4872 = vmatmul.msk.f32.gmra.mxu0 %vm593_vm3, %v6773_v63  ;;  %v1722_v25 = vadd.f32 %v6335_v13, %v1721_v17  ;;  %v834_v17 = vadd.f32 %v6530_v59, %v5966_v44 }
 0x248   :  { %4939 = vmatmul.msk.f32.gmra.mxu2 %vm593_vm3, %v6773_v63 }
 0x249   :  { %4593 = vmatmul.msk.f32.gmra.mxu1 %vm593_vm3, %v579_v54  ;;  %2907 = vperm.xlu2 %4997, %v1722_v25   ;;  %v6816_v25 = vpop.permute.xlu0 %3467 }
 0x24a   :  { %9181 = vst [vmem:[#allocation93_spill] sm:$0xff] %v6816_v25 }
 0x24b   :  { %v6801_v42 = vpop.f32.mrf.mxu2  ;;  %4739 = vmatmul.msk.f32.gmra.mxu3 %vm593_vm3, %v6799_v55 }
 0x24c   :  { %9179 = vst [vmem:[#allocation91_spill] sm:$0xff] %v6801_v42  ;;  %v502_v36 = vpop.f32.mrf.mxu0 }
 0x24d   :  { %v503_v6 = vadd.f32 %v6784_v45, %v502_v36  ;;  %v6818_v36 = vmax.f32 %v834_v17, 0.0 }
 0x24e   :  { %v6808_v30 = vpop.f32.mrf.mxu1  ;;  %v1724_v54 = vpop.f32.mrf.mxu3 }
 0x24f   :  { %9180 = vst [vmem:[#allocation92_spill] sm:$0xff] %v6808_v30  ;;  %v580_v41 = vmax.f32 %v503_v6, 0.0  ;;  %4873 = vmatmul.msk.f32.gmra.mxu0 %vm593_vm3, %v6799_v55  ;;  %v1725_v18 = vadd.f32 %v6335_v13, %v1724_v54  ;;  %v837_v54 = vadd.f32 %v6530_v59, %v5993_v2 }
 0x250   :  { %4940 = vmatmul.msk.f32.gmra.mxu2 %vm593_vm3, %v6799_v55 }
 0x251   :  { %4594 = vmatmul.msk.f32.gmra.mxu1 %vm593_vm3, %v580_v41  ;;  %2912 = vperm.xlu0 %4998, %v1725_v18   ;;  %v6835_v18 = vpop.permute.xlu1 %3472 }
 0x252   :  { %9184 = vst [vmem:[#allocation96_spill] sm:$0xff] %v6835_v18 }
 0x253   :  { %v6820_v44 = vpop.f32.mrf.mxu2  ;;  %4740 = vmatmul.msk.f32.gmra.mxu3 %vm593_vm3, %v6818_v36 }
 0x254   :  { %9182 = vst [vmem:[#allocation94_spill] sm:$0xff] %v6820_v44  ;;  %v505_v6 = vpop.f32.mrf.mxu0 }
 0x255   :  { %v506_v42 = vadd.f32 %v6784_v45, %v505_v6  ;;  %v6837_v6 = vmax.f32 %v837_v54, 0.0 }
 0x256   :  { %v6827_v47 = vpop.f32.mrf.mxu1  ;;  %v1727_v41 = vpop.f32.mrf.mxu3 }
 0x257   :  { %9183 = vst [vmem:[#allocation95_spill] sm:$0xff] %v6827_v47  ;;  %v581_v1 = vmax.f32 %v506_v42, 0.0  ;;  %4874 = vmatmul.msk.f32.gmra.mxu0 %vm593_vm3, %v6818_v36  ;;  %v1728_v17 = vadd.f32 %v6335_v13, %v1727_v41  ;;  %v840_v41 = vadd.f32 %v6530_v59, %v6019_v60 }
 0x258   :  { %4941 = vmatmul.msk.f32.gmra.mxu2 %vm593_vm3, %v6818_v36 }
 0x259   :  { %4595 = vmatmul.msk.f32.gmra.mxu1 %vm593_vm3, %v581_v1  ;;  %2917 = vperm.xlu1 %4996, %v1728_v17   ;;  %v6854_v17 = vpop.permute.xlu2 %3477 }
 0x25a   :  { %9187 = vst [vmem:[#allocation99_spill] sm:$0xff] %v6854_v17 }
 0x25b   :  { %v6839_v2 = vpop.f32.mrf.mxu2  ;;  %4741 = vmatmul.msk.f32.gmra.mxu3 %vm593_vm3, %v6837_v6 }
 0x25c   :  { %9185 = vst [vmem:[#allocation97_spill] sm:$0xff] %v6839_v2  ;;  %v508_v42 = vpop.f32.mrf.mxu0 }
 0x25d   :  { %v509_v44 = vadd.f32 %v6784_v45, %v508_v42  ;;  %v6856_v42 = vmax.f32 %v840_v41, 0.0 }
 0x25e   :  { %v6846_v25 = vpop.f32.mrf.mxu1  ;;  %v1730_v1 = vpop.f32.mrf.mxu3 }
 0x25f   :  { %9186 = vst [vmem:[#allocation98_spill] sm:$0xff] %v6846_v25  ;;  %v582_v23 = vmax.f32 %v509_v44, 0.0  ;;  %4875 = vmatmul.msk.f32.gmra.mxu0 %vm593_vm3, %v6837_v6  ;;  %v1731_v54 = vadd.f32 %v6335_v13, %v1730_v1  ;;  %v843_v1 = vadd.f32 %v6530_v59, %v6058_v33 }
 0x260   :  { %4942 = vmatmul.msk.f32.gmra.mxu2 %vm593_vm3, %v6837_v6 }
 0x261   :  { %4596 = vmatmul.msk.f32.gmra.mxu1 %vm593_vm3, %v582_v23  ;;  %2922 = vperm.xlu2 %4997, %v1731_v54   ;;  %v6873_v54 = vpop.permute.xlu0 %3482 }
 0x262   :  { %9190 = vst [vmem:[#allocation102_spill] sm:$0xff] %v6873_v54 }
 0x263   :  { %v6858_v60 = vpop.f32.mrf.mxu2  ;;  %4742 = vmatmul.msk.f32.gmra.mxu3 %vm593_vm3, %v6856_v42 }
 0x264   :  { %9188 = vst [vmem:[#allocation100_spill] sm:$0xff] %v6858_v60  ;;  %v511_v44 = vpop.f32.mrf.mxu0 }
 0x265   :  { %v512_v2 = vadd.f32 %v6784_v45, %v511_v44  ;;  %v6875_v44 = vmax.f32 %v843_v1, 0.0 }
 0x266   :  { %v6865_v18 = vpop.f32.mrf.mxu1  ;;  %v1733_v23 = vpop.f32.mrf.mxu3 }
 0x267   :  { %9189 = vst [vmem:[#allocation101_spill] sm:$0xff] %v6865_v18  ;;  %v583_v27 = vmax.f32 %v512_v2, 0.0  ;;  %4876 = vmatmul.msk.f32.gmra.mxu0 %vm593_vm3, %v6856_v42  ;;  %v1734_v41 = vadd.f32 %v6335_v13, %v1733_v23  ;;  %v846_v23 = vadd.f32 %v6530_v59, %v6083_v14  ;;  %v864_v18 = vadd.f32 %v6530_v59, %v6233_v62 }
 0x268   :  { %4943 = vmatmul.msk.f32.gmra.mxu2 %vm593_vm3, %v6856_v42 }
 0x269   :  { %4597 = vmatmul.msk.f32.gmra.mxu1 %vm593_vm3, %v583_v27  ;;  %2927 = vperm.xlu0 %4998, %v1734_v41   ;;  %v6891_v41 = vpop.permute.xlu1 %3487 }
 0x26a   :  { %9193 = vst [vmem:[#allocation105_spill] sm:$0xff] %v6891_v41 }
 0x26b   :  { %v6877_v33 = vpop.f32.mrf.mxu2  ;;  %4743 = vmatmul.msk.f32.gmra.mxu3 %vm593_vm3, %v6875_v44 }
 0x26c   :  { %9191 = vst [vmem:[#allocation103_spill] sm:$0xff] %v6877_v33  ;;  %v514_v2 = vpop.f32.mrf.mxu0 }
 0x26d   :  { %v515_v60 = vadd.f32 %v6784_v45, %v514_v2  ;;  %v6894_v2 = vmax.f32 %v846_v23, 0.0  ;;  %v6911_v23 = vpop.permute.xlu2 %3492 }
 0x26e   :  { %v6884_v17 = vpop.f32.mrf.mxu1  ;;  %v1736_v27 = vpop.f32.mrf.mxu3  ;;  %9196 = vst [vmem:[#allocation108_spill] sm:$0xff] %v6911_v23 }
 0x26f   :  { %9192 = vst [vmem:[#allocation104_spill] sm:$0xff] %v6884_v17  ;;  %v584_v34 = vmax.f32 %v515_v60, 0.0  ;;  %4877 = vmatmul.msk.f32.gmra.mxu0 %vm593_vm3, %v6875_v44  ;;  %v1737_v1 = vadd.f32 %v6335_v13, %v1736_v27  ;;  %v849_v27 = vadd.f32 %v6530_v59, %v6108_v61  ;;  %v1871_v61 = vld [vmem:[%s9060_s3 + $0x1f0] sm:$0xff] }
 0x270   :  { %4944 = vmatmul.msk.f32.gmra.mxu2 %vm593_vm3, %v6875_v44 }
 0x271   :  { %4598 = vmatmul.msk.f32.gmra.mxu1 %vm593_vm3, %v584_v34  ;;  %2932 = vperm.xlu1 %4996, %v1737_v1   ;;  %v6913_v1 = vmax.f32 %v849_v27, 0.0  ;;  %v852_v27 = vadd.f32 %v6530_v59, %v6133_v43 }
 0x273   :  { %v6896_v14 = vpop.f32.mrf.mxu2  ;;  %4744 = vmatmul.msk.f32.gmra.mxu3 %vm593_vm3, %v6894_v2 }
 0x274   :  { %9194 = vst [vmem:[#allocation106_spill] sm:$0xff] %v6896_v14  ;;  %v517_v60 = vpop.f32.mrf.mxu0  ;;  %v6924_v14 = vpop.permute.xlu0 %3497 }
 0x275   :  { %v518_v33 = vadd.f32 %v6784_v45, %v517_v60  ;;  %9199 = vst [vmem:[#allocation111_spill] sm:$0xff] %v6924_v14 }
 0x276   :  { %v6903_v54 = vpop.f32.mrf.mxu1  ;;  %v1739_v41 = vpop.f32.mrf.mxu3 }
 0x277   :  { %9195 = vst [vmem:[#allocation107_spill] sm:$0xff] %v6903_v54  ;;  %v585_v17 = vmax.f32 %v518_v33, 0.0  ;;  %4878 = vmatmul.msk.f32.gmra.mxu0 %vm593_vm3, %v6894_v2  ;;  %v1740_v34 = vadd.f32 %v6335_v13, %v1739_v41  ;;  %v6918_v33 = vpop.permute.xlu1 %3502 }
 0x278   :  { %4945 = vmatmul.msk.f32.gmra.mxu2 %vm593_vm3, %v6894_v2  ;;  %9197 = vst [vmem:[#allocation109_spill] sm:$0xff] %v6918_v33 }
 0x279   :  { %4599 = vmatmul.msk.f32.gmra.mxu1 %vm593_vm3, %v585_v17  ;;  %2937 = vperm.xlu2 %4997, %v1740_v34  }
 0x27a   :  { %4267 = vperm.xlu1 %4996, %v1871_v61  }
 0x27b   :  { %v6920_v60 = vpop.f32.mrf.mxu2  ;;  %4745 = vmatmul.msk.f32.gmra.mxu3 %vm593_vm3, %v6913_v1 }
 0x27c   :  { %9198 = vst [vmem:[#allocation110_spill] sm:$0xff] %v6920_v60  ;;  %v520_v41 = vpop.f32.mrf.mxu0  ;;  %v6937_v60 = vmax.f32 %v852_v27, 0.0  ;;  %v6960_v27 = vpop.permute.xlu2 %3507 }
 0x27d   :  { %v521_v17 = vadd.f32 %v6784_v45, %v520_v41  ;;  %v855_v41 = vadd.f32 %v6530_v59, %v6158_v51  ;;  %9204 = vst [vmem:[#allocation116_spill] sm:$0xff] %v6960_v27 }
 0x27e   :  { %v6929_v23 = vpop.f32.mrf.mxu1  ;;  %v1742_v34 = vpop.f32.mrf.mxu3 }
 0x27f   :  { %9200 = vst [vmem:[#allocation112_spill] sm:$0xff] %v6929_v23  ;;  %v586_v54 = vmax.f32 %v521_v17, 0.0  ;;  %4879 = vmatmul.msk.f32.gmra.mxu0 %vm593_vm3, %v6913_v1  ;;  %v1743_v61 = vadd.f32 %v6335_v13, %v1742_v34  ;;  %v6949_v13 = vpop.permute.xlu0 %3512  ;;  %v6964_v51 = vmax.f32 %v855_v41, 0.0  ;;  %v6976_v14 = vpop.permute.xlu1 %3517 }
 0x280   :  { %4946 = vmatmul.msk.f32.gmra.mxu2 %vm593_vm3, %v6913_v1  ;;  %9203 = vst [vmem:[#allocation115_spill] sm:$0xff] %v6949_v13  ;;  %v858_v13 = vadd.f32 %v6530_v59, %v6183_v53  ;;  %v1872_v53 = vld [vmem:[%s9060_s3 + $0x1f8] sm:$0xff] }
 0x281   :  { %4600 = vmatmul.msk.f32.gmra.mxu1 %vm593_vm3, %v586_v54  ;;  %2942 = vperm.xlu0 %4998, %v1743_v61   ;;  %v1870_v54 = vld [vmem:[%s9060_s3 + $0x1e8] sm:$0xff]  ;;  %9206 = vst [vmem:[#allocation118_spill] sm:$0xff] %v6976_v14 }
 0x282   :  { %v6988_v41 = vmax.f32 %v858_v13, 0.0  ;;  %4272 = vperm.xlu2 %4997, %v1872_v53  }
 0x283   :  { %v6939_v45 = vpop.f32.mrf.mxu2  ;;  %4746 = vmatmul.msk.f32.gmra.mxu3 %vm593_vm3, %v6937_v60 }
 0x284   :  { %9201 = vst [vmem:[#allocation113_spill] sm:$0xff] %v6939_v45  ;;  %v6943_v43 = vpop.f32.mrf.mxu0 }
 0x286   :  { %v6947_v17 = vpop.f32.mrf.mxu1  ;;  %v6951_v34 = vpop.f32.mrf.mxu3 }
 0x287   :  { %9202 = vst [vmem:[#allocation114_spill] sm:$0xff] %v6947_v17  ;;  %4880 = vmatmul.msk.f32.gmra.mxu0 %vm593_vm3, %v6937_v60 }
 0x288   :  { %4947 = vmatmul.msk.f32.gmra.mxu2 %vm593_vm3, %v6937_v60 }
 0x289   :  { %4797 = vmatmul.msk.f32.vlgmr.msrb.gmra.mxu1 %vm593_vm3, %v6560_v21  ;;  %4262 = vperm.xlu0 %4998, %v1870_v54   ;;  %v6984_v21 = vpop.permute.xlu0 %3527  ;;  %v6993_v54 = vpop.permute.xlu2 %3522 }
 0x28a   :  { %9207 = vst [vmem:[#allocation119_spill] sm:$0xff] %v6984_v21  ;;  %v861_v21 = vadd.f32 %v6530_v59, %v6208_v0 }
 0x28b   :  { %v6966_v61 = vpop.f32.mrf.mxu2  ;;  %4747 = vmatmul.msk.f32.gmra.mxu3 %vm593_vm3, %v6964_v51  ;;  %9208 = vst [vmem:[#allocation120_spill] sm:$0xff] %v6993_v54  ;;  %v7011_v54 = vpop.permute.xlu1 %3532 }
 0x28c   :  { %v6970_v45 = vpop.f32.mrf.mxu0  ;;  %9210 = vst [vmem:[#allocation122_spill] sm:$0xff] %v7011_v54  ;;  %v7015_v53 = vmax.f32 %v861_v21, 0.0 }
 0x28e   :  { %v6974_v33 = vpop.f32.mrf.mxu1  ;;  %v6978_v27 = vpop.f32.mrf.mxu3 }
 0x28f   :  { %9205 = vst [vmem:[#allocation117_spill] sm:$0xff] %v6974_v33  ;;  %4881 = vmatmul.msk.f32.gmra.mxu0 %vm593_vm3, %v6964_v51 }
 0x290   :  { %4948 = vmatmul.msk.f32.gmra.mxu2 %vm593_vm3, %v6964_v51 }
 0x291   :  { %4798 = vmatmul.msk.f32.gmra.mxu1 %vm593_vm3, %v6587_v12  ;;  %v7017_v17 = vpop.permute.xlu0 %3542  ;;  %v7025_v23 = vpop.permute.xlu2 %3537 }
 0x292   :  { %9211 = vst [vmem:[#allocation123_spill] sm:$0xff] %v7017_v17 }
 0x293   :  { %v6995_v14 = vpop.f32.mrf.mxu2  ;;  %4748 = vmatmul.msk.f32.gmra.mxu3 %vm593_vm3, %v6988_v41  ;;  %9212 = vst [vmem:[#allocation124_spill] sm:$0xff] %v7025_v23  ;;  %v7041_v21 = vpop.permute.xlu1 %3547 }
 0x294   :  { %v6999_v33 = vpop.f32.mrf.mxu0  ;;  %9214 = vst [vmem:[#allocation126_spill] sm:$0xff] %v7041_v21 }
 0x296   :  { %v7003_v12 = vpop.f32.mrf.mxu1  ;;  %v7005_v13 = vpop.f32.mrf.mxu3 }
 0x297   :  { %9209 = vst [vmem:[#allocation121_spill] sm:$0xff] %v7003_v12  ;;  %4882 = vmatmul.msk.f32.gmra.mxu0 %vm593_vm3, %v6988_v41 }
 0x298   :  { %4949 = vmatmul.msk.f32.gmra.mxu2 %vm593_vm3, %v6988_v41 }
 0x299   :  { %4799 = vmatmul.msk.f32.gmra.mxu1 %vm593_vm3, %v6618_v50  ;;  %v7039_v50 = vmax.f32 %v864_v18, 0.0  ;;  %v7049_v23 = vpop.permute.xlu0 %2627  ;;  %v7055_v30 = vpop.permute.xlu2 %3552 }
 0x29a   :  { %9216 = vst [vmem:[#allocation128_spill] sm:$0xff] %v7055_v30 }
 0x29b   :  { %v7019_v0 = vpop.f32.mrf.mxu2  ;;  %4749 = vmatmul.msk.f32.gmra.mxu3 %vm593_vm3, %v7015_v53  ;;  %v7073_v30 = vpop.permute.xlu1 %3562 }
 0x29c   :  { %v7023_v12 = vpop.f32.mrf.mxu0  ;;  %9219 = vst [vmem:[#allocation131_spill] sm:$0xff] %v7073_v30 }
 0x29e   :  { %v7029_v54 = vpop.f32.mrf.mxu1  ;;  %v7031_v25 = vpop.f32.mrf.mxu3 }
 0x29f   :  { %9213 = vst [vmem:[#allocation125_spill] sm:$0xff] %v7029_v54  ;;  %4883 = vmatmul.msk.f32.gmra.mxu0 %vm593_vm3, %v7015_v53  ;;  %v867_v54 = vadd.f32 %v6530_v59, %v6258_v56 }
 0x2a0   :  { %4950 = vmatmul.msk.f32.gmra.mxu2 %vm593_vm3, %v7015_v53 }
 0x2a1   :  { %4800 = vmatmul.msk.f32.gmra.mxu1 %vm593_vm3, %v6646_v4  ;;  %v7065_v18 = vmax.f32 %v867_v54, 0.0  ;;  %v7079_v35 = vpop.permute.xlu0 %2632 }
 0x2a3   :  { %v7043_v17 = vpop.f32.mrf.mxu2  ;;  %4750 = vmatmul.msk.f32.gmra.mxu3 %vm593_vm3, %v7039_v50  ;;  %9217 = vst [vmem:[#allocation129_spill] sm:$0xff] %v7065_v18 }
 0x2a4   :  { %v7047_v62 = vpop.f32.mrf.mxu0 }
 0x2a6   :  { %v7053_v47 = vpop.f32.mrf.mxu1  ;;  %v7057_v4 = vpop.f32.mrf.mxu3 }
 0x2a7   :  { %9215 = vst [vmem:[#allocation127_spill] sm:$0xff] %v7053_v47  ;;  %4884 = vmatmul.msk.f32.gmra.mxu0 %vm593_vm3, %v7039_v50  ;;  %v870_v47 = vadd.f32 %v6530_v59, %v6283_v11 }
 0x2a8   :  { %4951 = vmatmul.msk.f32.gmra.mxu2 %vm593_vm3, %v7039_v50 }
 0x2a9   :  { %4801 = vmatmul.msk.f32.gmra.mxu1 %vm593_vm3, %v6674_v37  ;;  %v7087_v37 = vpop.permute.xlu2 %3567  ;;  %v7091_v54 = vmax.f32 %v870_v47, 0.0 }
 0x2aa   :  { %9221 = vst [vmem:[#allocation133_spill] sm:$0xff] %v7087_v37 }
 0x2ab   :  { %v7067_v21 = vpop.f32.mrf.mxu2  ;;  %4751 = vmatmul.msk.f32.gmra.mxu3 %vm593_vm3, %v7065_v18  ;;  %9222 = vst [vmem:[#allocation134_spill] sm:$0xff] %v7091_v54 }
 0x2ac   :  { %v7071_v56 = vpop.f32.mrf.mxu0 }
 0x2ad   :  { %9218 = vst [vmem:[#allocation130_spill] sm:$0xff] %v7071_v56 }
 0x2ae   :  { %v7077_v32 = vpop.f32.mrf.mxu1  ;;  %v7081_v40 = vpop.f32.mrf.mxu3 }
 0x2af   :  { %9220 = vst [vmem:[#allocation132_spill] sm:$0xff] %v7077_v32  ;;  %4885 = vmatmul.msk.f32.gmra.mxu0 %vm593_vm3, %v7065_v18  ;;  %v873_v32 = vadd.f32 %v6530_v59, %v6308_v58 }
 0x2b0   :  { %4952 = vmatmul.msk.f32.gmra.mxu2 %vm593_vm3, %v7065_v18  ;;  %v7103_v18 = vpop.permute.xlu1 %2637 }
 0x2b1   :  { %4802 = vmatmul.msk.f32.gmra.mxu1 %vm593_vm3, %v6700_v24  ;;  %v7111_v24 = vpop.permute.xlu0 %3557  ;;  %v7115_v47 = vmax.f32 %v873_v32, 0.0  ;;  %v7117_v58 = vpop.permute.xlu2 %3582 }
 0x2b2   :  { %9226 = vst [vmem:[#allocation138_spill] sm:$0xff] %v7111_v24 }
 0x2b3   :  { %v7093_v11 = vpop.f32.mrf.mxu2  ;;  %4752 = vmatmul.msk.f32.gmra.mxu3 %vm593_vm3, %v7091_v54  ;;  %9227 = vst [vmem:[#allocation139_spill] sm:$0xff] %v7115_v47 }
 0x2b4   :  { %v7097_v30 = vpop.f32.mrf.mxu0  ;;  %9228 = vst [vmem:[#allocation140_spill] sm:$0xff] %v7117_v58 }
 0x2b5   :  { %9223 = vst [vmem:[#allocation135_spill] sm:$0xff] %v7097_v30  ;;  %v876_v30 = vadd.f32 %v6530_v59, %v6333_v46 }
 0x2b6   :  { %v7101_v56 = vpop.f32.mrf.mxu1  ;;  %v7105_v37 = vpop.f32.mrf.mxu3 }
 0x2b7   :  { %9224 = vst [vmem:[#allocation136_spill] sm:$0xff] %v7101_v56  ;;  %4886 = vmatmul.msk.f32.gmra.mxu0 %vm593_vm3, %v7091_v54  ;;  %v7139_v32 = vmax.f32 %v876_v30, 0.0 }
 0x2b8   :  { %9225 = vst [vmem:[#allocation137_spill] sm:$0xff] %v7105_v37  ;;  %4953 = vmatmul.msk.f32.gmra.mxu2 %vm593_vm3, %v7091_v54 }
 0x2b9   :  { %4803 = vmatmul.msk.f32.gmra.mxu1 %vm593_vm3, %v6725_v15  ;;  %v7135_v15 = vpop.permute.xlu1 %2642  ;;  %9232 = vst [vmem:[#allocation144_spill] sm:$0xff] %v7139_v32  ;;  %v7141_v46 = vpop.permute.xlu0 %3572 }
 0x2ba   :  { %9233 = vst [vmem:[#allocation145_spill] sm:$0xff] %v7141_v46 }
 0x2bb   :  { %v7119_v56 = vpop.f32.mrf.mxu2  ;;  %4753 = vmatmul.msk.f32.gmra.mxu3 %vm593_vm3, %v7115_v47 }
 0x2bc   :  { %v7127_v54 = vpop.f32.mrf.mxu0 }
 0x2bd   :  { %9230 = vst [vmem:[#allocation142_spill] sm:$0xff] %v7127_v54  ;;  %v879_v54 = vadd.f32 %v6530_v59, %v6360_v22 }
 0x2be   :  { %v7125_v37 = vpop.f32.mrf.mxu1  ;;  %v7129_v24 = vpop.f32.mrf.mxu3 }
 0x2bf   :  { %9229 = vst [vmem:[#allocation141_spill] sm:$0xff] %v7125_v37  ;;  %4887 = vmatmul.msk.f32.gmra.mxu0 %vm593_vm3, %v7115_v47  ;;  %v7147_v37 = vpop.permute.xlu2 %3597  ;;  %v7163_v30 = vmax.f32 %v879_v54, 0.0 }
 0x2c0   :  { %9231 = vst [vmem:[#allocation143_spill] sm:$0xff] %v7129_v24  ;;  %4954 = vmatmul.msk.f32.gmra.mxu2 %vm593_vm3, %v7115_v47 }
 0x2c1   :  { %4804 = vmatmul.msk.f32.gmra.mxu1 %vm593_vm3, %v6751_v26  ;;  %9234 = vst [vmem:[#allocation146_spill] sm:$0xff] %v7147_v37  ;;  %v7165_v37 = vpop.permute.xlu1 %3577  ;;  %v7171_v46 = vpop.permute.xlu0 %3587 }
 0x2c2   :  { %9238 = vst [vmem:[#allocation150_spill] sm:$0xff] %v7163_v30 }
 0x2c3   :  { %v7143_v58 = vpop.f32.mrf.mxu2  ;;  %4754 = vmatmul.msk.f32.gmra.mxu3 %vm593_vm3, %v7139_v32  ;;  %9239 = vst [vmem:[#allocation151_spill] sm:$0xff] %v7165_v37 }
 0x2c4   :  { %v7159_v26 = vpop.f32.mrf.mxu0  ;;  %9241 = vst [vmem:[#allocation153_spill] sm:$0xff] %v7171_v46 }
 0x2c5   :  { %9237 = vst [vmem:[#allocation149_spill] sm:$0xff] %v7159_v26 }
 0x2c6   :  { %v7151_v47 = vpop.f32.mrf.mxu1  ;;  %v7153_v24 = vpop.f32.mrf.mxu3 }
 0x2c7   :  { %9235 = vst [vmem:[#allocation147_spill] sm:$0xff] %v7151_v47  ;;  %4888 = vmatmul.msk.f32.gmra.mxu0 %vm593_vm3, %v7139_v32  ;;  %v882_v47 = vadd.f32 %v6530_v59, %v6387_v16  ;;  %v7177_v26 = vpop.permute.xlu2 %2647 }
 0x2c8   :  { %9236 = vst [vmem:[#allocation148_spill] sm:$0xff] %v7153_v24  ;;  %4955 = vmatmul.msk.f32.gmra.mxu2 %vm593_vm3, %v7139_v32 }
 0x2c9   :  { %4805 = vmatmul.msk.f32.gmra.mxu1 %vm593_vm3, %v6773_v63  ;;  %v7187_v54 = vmax.f32 %v882_v47, 0.0  ;;  %v7195_v37 = vpop.permute.xlu1 %3592 }
 0x2ca   :  { %9247 = vst [vmem:[#allocation159_spill] sm:$0xff] %v7195_v37 }
 0x2cb   :  { %v7167_v22 = vpop.f32.mrf.mxu2  ;;  %4755 = vmatmul.msk.f32.gmra.mxu3 %vm593_vm3, %v7163_v30  ;;  %9244 = vst [vmem:[#allocation156_spill] sm:$0xff] %v7187_v54 }
 0x2cc   :  { %9240 = vst [vmem:[#allocation152_spill] sm:$0xff] %v7167_v22  ;;  %v7189_v46 = vpop.f32.mrf.mxu0 }
 0x2cd   :  { %9245 = vst [vmem:[#allocation157_spill] sm:$0xff] %v7189_v46 }
 0x2ce   :  { %v7175_v32 = vpop.f32.mrf.mxu1  ;;  %v7181_v63 = vpop.f32.mrf.mxu3 }
 0x2cf   :  { %9242 = vst [vmem:[#allocation154_spill] sm:$0xff] %v7175_v32  ;;  %4889 = vmatmul.msk.f32.gmra.mxu0 %vm593_vm3, %v7163_v30  ;;  %v885_v32 = vadd.f32 %v6530_v59, %v6416_v10 }
 0x2d0   :  { %9243 = vst [vmem:[#allocation155_spill] sm:$0xff] %v7181_v63  ;;  %4956 = vmatmul.msk.f32.gmra.mxu2 %vm593_vm3, %v7163_v30  ;;  %v7201_v30 = vpop.permute.xlu0 %3602 }
 0x2d1   :  { %4806 = vmatmul.msk.f32.gmra.mxu1 %vm593_vm3, %v6799_v55  ;;  %9249 = vst [vmem:[#allocation161_spill] sm:$0xff] %v7201_v30  ;;  %v7207_v55 = vpop.permute.xlu2 %2652  ;;  %v7211_v47 = vmax.f32 %v885_v32, 0.0 }
 0x2d3   :  { %v7191_v16 = vpop.f32.mrf.mxu2  ;;  %4756 = vmatmul.msk.f32.gmra.mxu3 %vm593_vm3, %v7187_v54  ;;  %9250 = vst [vmem:[#allocation162_spill] sm:$0xff] %v7211_v47 }
 0x2d4   :  { %9246 = vst [vmem:[#allocation158_spill] sm:$0xff] %v7191_v16  ;;  %v7219_v30 = vpop.f32.mrf.mxu0  ;;  %v7225_v16 = vpop.permute.xlu1 %3607 }
 0x2d5   :  { %9253 = vst [vmem:[#allocation165_spill] sm:$0xff] %v7219_v30 }
 0x2d6   :  { %v7199_v63 = vpop.f32.mrf.mxu1  ;;  %v7213_v37 = vpop.f32.mrf.mxu3  ;;  %9255 = vst [vmem:[#allocation167_spill] sm:$0xff] %v7225_v16  ;;  %v891_v16 = vadd.f32 %v6530_v59, %v6476_v5 }
 0x2d7   :  { %9248 = vst [vmem:[#allocation160_spill] sm:$0xff] %v7199_v63  ;;  %4890 = vmatmul.msk.f32.gmra.mxu0 %vm593_vm3, %v7187_v54  ;;  %v888_v63 = vadd.f32 %v6530_v59, %v6447_v20 }
 0x2d8   :  { %4957 = vmatmul.msk.f32.gmra.mxu2 %vm593_vm3, %v7187_v54  ;;  %9251 = vst [vmem:[#allocation163_spill] sm:$0xff] %v7213_v37 }
 0x2d9   :  { %4807 = vmatmul.msk.f32.gmra.mxu1 %vm593_vm3, %v6818_v36  ;;  %v7231_v36 = vpop.permute.xlu0 %2657  ;;  %v7235_v32 = vmax.f32 %v888_v63, 0.0  ;;  %v7259_v63 = vmax.f32 %v891_v16, 0.0 }
 0x2db   :  { %v7215_v10 = vpop.f32.mrf.mxu2  ;;  %4757 = vmatmul.msk.f32.gmra.mxu3 %vm593_vm3, %v7211_v47  ;;  %9256 = vst [vmem:[#allocation168_spill] sm:$0xff] %v7235_v32 }
 0x2dc   :  { %9252 = vst [vmem:[#allocation164_spill] sm:$0xff] %v7215_v10  ;;  %v7237_v10 = vpop.permute.xlu2 %3957  ;;  %v7249_v30 = vpop.f32.mrf.mxu0 }
 0x2dd   :  { %9260 = vst [vmem:[#allocation172_spill] sm:$0xff] %v7249_v30  ;;  %v894_v30 = vadd.f32 %v6530_v59, %v6507_v7 }
 0x2de   :  { %v7223_v54 = vpop.f32.mrf.mxu1  ;;  %9262 = vst [vmem:[#allocation174_spill] sm:$0xff] %v7259_v63 }
 0x2df   :  { %9254 = vst [vmem:[#allocation166_spill] sm:$0xff] %v7223_v54  ;;  %4891 = vmatmul.msk.f32.gmra.mxu0 %vm593_vm3, %v7211_v47  ;;  %v7241_v54 = vpop.f32.mrf.mxu3  ;;  %v7283_v16 = vmax.f32 %v894_v30, 0.0 }
 0x2e0   :  { %4958 = vmatmul.msk.f32.gmra.mxu2 %vm593_vm3, %v7211_v47  ;;  %9258 = vst [vmem:[#allocation170_spill] sm:$0xff] %v7241_v54 }
 0x2e1   :  { %4808 = vmatmul.msk.f32.gmra.mxu1 %vm593_vm3, %v6837_v6  ;;  %v7255_v6 = vpop.permute.xlu1 %2662  ;;  %9267 = vst [vmem:[#allocation179_spill] sm:$0xff] %v7283_v16 }
 0x2e2   :  { %9261 = vst [vmem:[#allocation173_spill] sm:$0xff] %v7255_v6 }
 0x2e3   :  { %v7239_v20 = vpop.f32.mrf.mxu2  ;;  %4758 = vmatmul.msk.f32.gmra.mxu3 %vm593_vm3, %v7235_v32 }
 0x2e4   :  { %9257 = vst [vmem:[#allocation169_spill] sm:$0xff] %v7239_v20  ;;  %v7261_v20 = vpop.permute.xlu0 %3962 }
 0x2e6   :  { %v7247_v47 = vpop.f32.mrf.mxu1 }
 0x2e7   :  { %9259 = vst [vmem:[#allocation171_spill] sm:$0xff] %v7247_v47  ;;  %4892 = vmatmul.msk.f32.gmra.mxu0 %vm593_vm3, %v7235_v32  ;;  %v7267_v47 = vpop.permute.xlu2 %3972 }
 0x2e8   :  { %4959 = vmatmul.msk.f32.gmra.mxu2 %vm593_vm3, %v7235_v32  ;;  %v7271_v32 = vpop.f32.mrf.mxu3 }
 0x2e9   :  { %4809 = vmatmul.msk.f32.gmra.mxu1 %vm593_vm3, %v6856_v42  ;;  %9264 = vst [vmem:[#allocation176_spill] sm:$0xff] %v7271_v32  ;;  %v7279_v42 = vpop.f32.mrf.mxu0  ;;  %v897_v32 = vadd.f32 %v6530_v59, %v6543_v57 }
 0x2ea   :  { %9266 = vst [vmem:[#allocation178_spill] sm:$0xff] %v7279_v42 }
 0x2eb   :  { %v7263_v5 = vpop.f32.mrf.mxu2  ;;  %4759 = vmatmul.msk.f32.gmra.mxu3 %vm593_vm3, %v7259_v63  ;;  %v7307_v30 = vmax.f32 %v897_v32, 0.0  ;;  %v7332_v32 = vld [vmem:[%s9061_s9] ss:$0 sm:$0xff] }
 0x2ec   :  { %9263 = vst [vmem:[#allocation175_spill] sm:$0xff] %v7263_v5  ;;  %v7285_v5 = vpop.permute.xlu1 %3967 }
 0x2ed   :  { %9272 = vst [vmem:[#allocation184_spill] sm:$0xff] %v7307_v30 }
 0x2ee   :  { %v7273_v54 = vpop.f32.mrf.mxu1 }
 0x2ef   :  { %9265 = vst [vmem:[#allocation177_spill] sm:$0xff] %v7273_v54  ;;  %4893 = vmatmul.msk.f32.gmra.mxu0 %vm593_vm3, %v7259_v63  ;;  %v7291_v54 = vpop.permute.xlu0 %3977  ;;  %v7297_v42 = vpop.permute.xlu2 %2667 }
 0x2f0   :  { %4960 = vmatmul.msk.f32.gmra.mxu2 %vm593_vm3, %v7259_v63  ;;  %9270 = vst [vmem:[#allocation182_spill] sm:$0xff] %v7297_v42 }
 0x2f1   :  { %4810 = vmatmul.msk.f32.gmra.mxu1 %vm593_vm3, %v6875_v44  ;;  %v7301_v44 = vpop.f32.mrf.mxu3 }
 0x2f2   :  { %9271 = vst [vmem:[#allocation183_spill] sm:$0xff] %v7301_v44  ;;  %v900_v44 = vadd.f32 %v6530_v59, %v6571_v52 }
 0x2f3   :  { %v7287_v7 = vpop.f32.mrf.mxu2  ;;  %4760 = vmatmul.msk.f32.gmra.mxu3 %vm593_vm3, %v7283_v16 }
 0x2f4   :  { %9268 = vst [vmem:[#allocation180_spill] sm:$0xff] %v7287_v7  ;;  %v7309_v7 = vpop.f32.mrf.mxu0  ;;  %v7336_v52 = vmax.f32 %v900_v44, 0.0  ;;  %v7359_v44 = vld [vmem:[%s9061_s9 + $0x3] ss:$0 sm:$0xff] }
 0x2f5   :  { %9273 = vst [vmem:[#allocation185_spill] sm:$0xff] %v7309_v7 }
 0x2f6   :  { %v7295_v63 = vpop.f32.mrf.mxu1  ;;  %9277 = vst [vmem:[#allocation189_spill] sm:$0xff] %v7336_v52 }
 0x2f7   :  { %9269 = vst [vmem:[#allocation181_spill] sm:$0xff] %v7295_v63  ;;  %4894 = vmatmul.msk.f32.gmra.mxu0 %vm593_vm3, %v7283_v16  ;;  %v7315_v63 = vpop.permute.xlu1 %3982 }
 0x2f8   :  { %4961 = vmatmul.msk.f32.gmra.mxu2 %vm593_vm3, %v7283_v16  ;;  %v7321_v16 = vpop.permute.xlu0 %2672 }
 0x2f9   :  { %4811 = vmatmul.msk.f32.gmra.mxu1 %vm593_vm3, %v6894_v2  ;;  %9276 = vst [vmem:[#allocation188_spill] sm:$0xff] %v7321_v16  ;;  %v7327_v2 = vpop.permute.xlu2 %3987  ;;  %v7338_v59 = vpop.f32.mrf.mxu3 }
 0x2fa   :  { %9278 = vst [vmem:[#allocation190_spill] sm:$0xff] %v7338_v59 }
 0x2fb   :  { %v7311_v57 = vpop.f32.mrf.mxu2  ;;  %4761 = vmatmul.msk.f32.gmra.mxu3 %vm593_vm3, %v7307_v30 }
 0x2fc   :  { %9274 = vst [vmem:[#allocation186_spill] sm:$0xff] %v7311_v57  ;;  %v7350_v57 = vld [vmem:[%s9061_s9 + $0x1] ss:$0 sm:$0xff]  ;;  %v7361_v59 = vpop.f32.mrf.mxu0 }
 0x2fd   :  { %9280 = vst [vmem:[#allocation192_spill] sm:$0xff] %v7361_v59 }
 0x2fe   :  { %v7319_v37 = vpop.f32.mrf.mxu1 }
 0x2ff   :  { %9275 = vst [vmem:[#allocation187_spill] sm:$0xff] %v7319_v37  ;;  %4895 = vmatmul.msk.f32.gmra.mxu0 %vm593_vm3, %v7307_v30  ;;  %v7343_v37 = vld [vmem:[%s9061_s9 + $0x2] ss:$0 sm:$0xff]  ;;  %v7370_v46 = vpop.permute.xlu1 %2677 }
 0x300   :  { %4962 = vmatmul.msk.f32.gmra.mxu2 %vm593_vm3, %v7307_v30  ;;  %9281 = vst [vmem:[#allocation193_spill] sm:$0xff] %v7370_v46  ;;  %v7379_v59 = vpop.permute.xlu0 %3992 }
 0x301   :  { %4812 = vmatmul.msk.f32.gmra.mxu1 %vm593_vm3, %v6913_v1  ;;  %v2089_v1 = vadd.f32 %v7332_v32, %v6951_v34  ;;  %v3099_v34 = vadd.f32 %v7343_v37, %v6943_v43  ;;  %9282 = vst [vmem:[#allocation194_spill] sm:$0xff] %v7379_v59  ;;  %v7394_v59 = vpop.f32.mrf.mxu3 }
 0x303   :  { %v7345_v30 = vpop.f32.mrf.mxu2  ;;  %4762 = vmatmul.msk.f32.gmra.mxu3 %vm593_vm3, %v7336_v52  ;;  %v2280_v22 = vmul.f32 %v2089_v1, %v5351_v9  ;;  %v3610_v24 = vmul.f32 %v6384_v8, %v3099_v34  ;;  %v3102_v8 = vadd.f32 %v7343_v37, %v6970_v45 }
 0x304   :  { %9279 = vst [vmem:[#allocation191_spill] sm:$0xff] %v7345_v30  ;;  %v7366_v30 = vld [vmem:[%s9059_s7] ss:$0 sm:$0xff] }
 0x305   :  { %v903_v7 = vadd.f32 %v7366_v30, %v6600_v48  ;;  %v3764_v48 = vadd.f32 %v7359_v44, %v6966_v61  ;;  %v906_v61 = vadd.f32 %v7366_v30, %v6631_v49  ;;  %v3611_v1 = vmul.f32 %v6409_v38, %v3102_v8 }
 0x306   :  { %v2433_v16 = vpop.f32.mrf.mxu1 }
 0x307   :  { %v2434_v42 = vadd.f32 %v7350_v57, %v2433_v16  ;;  %4896 = vmatmul.msk.f32.gmra.mxu0 %vm593_vm3, %v7336_v52  ;;  %v7387_v43 = vmax.f32 %v903_v7, 0.0  ;;  %v7389_v16 = vpop.permute.xlu2 %4002  ;;  %v4275_v9 = vmul.f32 %v7237_v10, %v3764_v48  ;;  %v7424_v10 = vmax.f32 %v906_v61, 0.0 }
 0x308   :  { %4963 = vmatmul.msk.f32.gmra.mxu2 %vm593_vm3, %v7336_v52 }
 0x309   :  { %v2945_v46 = vmul.f32 %v7049_v23, %v2434_v42  ;;  %4813 = vmatmul.msk.f32.gmra.mxu1 %vm593_vm3, %v6937_v60  ;;  %v2092_v23 = vadd.f32 %v7332_v32, %v6978_v27  ;;  %v7412_v27 = vpop.permute.xlu1 %3997 }
 0x30b   :  { %v3009_v6 = vadd.f32 %v2945_v46, %v2280_v22  ;;  %v7392_v52 = vpop.f32.mrf.mxu2  ;;  %4763 = vmatmul.msk.f32.gmra.mxu3 %vm593_vm3, %v7387_v43  ;;  %v7405_v46 = vpop.f32.mrf.mxu0  ;;  %v2281_v49 = vmul.f32 %v2092_v23, %v5375_v19 }
 0x30c   :  { %v7440_v23 = vpop.f32.mrf.mxu3 }
 0x30d   :  { %v3674_v60 = vadd.f32 %v3610_v24, %v3009_v6  ;;  %v3767_v24 = vadd.f32 %v7359_v44, %v6995_v14  ;;  %v7426_v6 = vpop.permute.xlu0 %4007 }
 0x30e   :  { %v2436_v42 = vpop.f32.mrf.mxu1 }
 0x30f   :  { %v4339_v22 = vadd.f32 %v4275_v9, %v3674_v60  ;;  %v2437_v7 = vadd.f32 %v7350_v57, %v2436_v42  ;;  %4897 = vmatmul.msk.f32.gmra.mxu0 %vm593_vm3, %v7387_v43  ;;  %v7433_v14 = vpop.permute.xlu2 %2682  ;;  %v4276_v48 = vmul.f32 %v7261_v20, %v3767_v24  ;;  %v909_v9 = vadd.f32 %v7366_v30, %v6661_v39 }
 0x310   :  { %4964 = vmatmul.msk.f32.gmra.mxu2 %vm593_vm3, %v7387_v43  ;;  %v3105_v60 = vadd.f32 %v7343_v37, %v6999_v33  ;;  %v3770_v39 = vadd.f32 %v7359_v44, %v7019_v0 }
 0x311   :  { %4404 = vst.msk [vmem:[%s9062_s13] sm:$0xff] %vm4403_vm4, %v4339_v22  ;;  %v2946_v45 = vmul.f32 %v7079_v35, %v2437_v7  ;;  %4814 = vmatmul.msk.f32.gmra.mxu1 %vm593_vm3, %v6964_v51  ;;  %v2095_v35 = vadd.f32 %v7332_v32, %v7005_v13  ;;  %v7461_v8 = vmax.f32 %v909_v9, 0.0  ;;  %v7463_v22 = vpop.permute.xlu1 %4012 }
 0x312   :  { %v4277_v24 = vmul.f32 %v7285_v5, %v3770_v39 }
 0x313   :  { %v3010_v19 = vadd.f32 %v2946_v45, %v2281_v49  ;;  %v7429_v34 = vpop.f32.mrf.mxu2  ;;  %4764 = vmatmul.msk.f32.gmra.mxu3 %vm593_vm3, %v7424_v10  ;;  %v2282_v13 = vmul.f32 %v2095_v35, %v5399_v29  ;;  %v7452_v20 = vpop.f32.mrf.mxu0  ;;  %v3612_v29 = vmul.f32 %v6392_v3, %v3105_v60  ;;  %v912_v45 = vadd.f32 %v7366_v30, %v6687_v31 }
 0x314   :  { %v3108_v3 = vadd.f32 %v7343_v37, %v7023_v12  ;;  %v7484_v5 = vpop.f32.mrf.mxu3  ;;  %v3773_v31 = vadd.f32 %v7359_v44, %v7043_v17 }
 0x315   :  { %v3675_v51 = vadd.f32 %v3611_v1, %v3010_v19  ;;  %v7470_v49 = vpop.permute.xlu0 %2687  ;;  %v7498_v9 = vmax.f32 %v912_v45, 0.0 }
 0x316   :  { %v2439_v38 = vpop.f32.mrf.mxu1  ;;  %v4278_v39 = vmul.f32 %v7267_v47, %v3773_v31  ;;  %v9285_v47 = vld [vmem:[#allocation4_spill] sm:$0xff] }
 0x317   :  { %v4340_v61 = vadd.f32 %v4276_v48, %v3675_v51  ;;  %v2440_v42 = vadd.f32 %v7350_v57, %v2439_v38  ;;  %4898 = vmatmul.msk.f32.gmra.mxu0 %vm593_vm3, %v7424_v10  ;;  %v7477_v19 = vpop.permute.xlu2 %4017  ;;  %v9284_v38 = vld [vmem:[#allocation43_spill] sm:$0xff] }
 0x318   :  { %4965 = vmatmul.msk.f32.gmra.mxu2 %vm593_vm3, %v7424_v10  ;;  %v3613_v60 = vmul.f32 %v9284_v38, %v3108_v3 }
 0x319   :  { %4405 = vst.msk [vmem:[%s9062_s13 + $0x8] sm:$0xff] %vm4403_vm4, %v4340_v61  ;;  %v2947_v33 = vmul.f32 %v7103_v18, %v2440_v42  ;;  %4815 = vmatmul.msk.f32.gmra.mxu1 %vm593_vm3, %v6988_v41  ;;  %v2098_v18 = vadd.f32 %v7332_v32, %v7031_v25  ;;  %v9283_v25 = vld [vmem:[#allocation3_spill] sm:$0xff]  ;;  %v7507_v17 = vpop.permute.xlu1 %2692 }
 0x31b   :  { %v3011_v7 = vadd.f32 %v2947_v33, %v2282_v13  ;;  %v7466_v0 = vpop.f32.mrf.mxu2  ;;  %4765 = vmatmul.msk.f32.gmra.mxu3 %vm593_vm3, %v7461_v8  ;;  %v2283_v51 = vmul.f32 %v2098_v18, %v9283_v25  ;;  %v7501_v61 = vpop.f32.mrf.mxu0  ;;  %v915_v33 = vadd.f32 %v7366_v30, %v6713_v28  ;;  %v3776_v28 = vadd.f32 %v7359_v44, %v7067_v21 }
 0x31c   :  { %v7537_v3 = vpop.f32.mrf.mxu3 }
 0x31d   :  { %v3676_v41 = vadd.f32 %v3612_v29, %v3011_v7  ;;  %v7514_v7 = vpop.permute.xlu0 %4022  ;;  %v4279_v21 = vmul.f32 %v7291_v54, %v3776_v28  ;;  %v9290_v54 = vld [vmem:[#allocation5_spill] sm:$0xff]  ;;  %v9293_v28 = vld [vmem:[#allocation44_spill] sm:$0xff] }
 0x31e   :  { %v2442_v1 = vpop.f32.mrf.mxu1 }
 0x31f   :  { %v4341_v48 = vadd.f32 %v4277_v24, %v3676_v41  ;;  %v2443_v35 = vadd.f32 %v7350_v57, %v2442_v1  ;;  %4899 = vmatmul.msk.f32.gmra.mxu0 %vm593_vm3, %v7461_v8  ;;  %v3111_v24 = vadd.f32 %v7343_v37, %v7047_v62  ;;  %v7535_v1 = vmax.f32 %v915_v33, 0.0 }
 0x320   :  { %4966 = vmatmul.msk.f32.gmra.mxu2 %vm593_vm3, %v7461_v8 }
 0x321   :  { %4406 = vst.msk [vmem:[%s9062_s13 + $0x10] sm:$0xff] %vm4403_vm4, %v4341_v48  ;;  %v2948_v12 = vmul.f32 %v7135_v15, %v2443_v35  ;;  %4816 = vmatmul.msk.f32.gmra.mxu1 %vm593_vm3, %v7015_v53  ;;  %v2101_v15 = vadd.f32 %v7332_v32, %v7057_v4  ;;  %v7523_v4 = vpop.permute.xlu2 %4032  ;;  %v9287_v48 = vld [vmem:[#allocation46_spill] sm:$0xff] }
 0x322   :  { %9286 = vst [vmem:[#allocation3_spill] sm:$0xff] %v7535_v1  ;;  %v3614_v35 = vmul.f32 %v9287_v48, %v3111_v24  ;;  %v3779_v24 = vadd.f32 %v7359_v44, %v7093_v11 }
 0x323   :  { %v3012_v42 = vadd.f32 %v2948_v12, %v2283_v51  ;;  %v7503_v13 = vpop.f32.mrf.mxu2  ;;  %4766 = vmatmul.msk.f32.gmra.mxu3 %vm593_vm3, %v7498_v9  ;;  %v2284_v45 = vmul.f32 %v2101_v15, %v9285_v47  ;;  %v7547_v31 = vpop.f32.mrf.mxu0  ;;  %v9288_v12 = vld [vmem:[#allocation81_spill] sm:$0xff] }
 0x324   :  { %v918_v38 = vadd.f32 %v7366_v30, %v9288_v12  ;;  %v7579_v11 = vpop.f32.mrf.mxu3 }
 0x325   :  { %v3677_v53 = vadd.f32 %v3613_v60, %v3012_v42  ;;  %v7551_v42 = vpop.permute.xlu1 %4027 }
 0x326   :  { %v2445_v29 = vpop.f32.mrf.mxu1  ;;  %v7572_v47 = vmax.f32 %v918_v38, 0.0 }
 0x327   :  { %v4342_v18 = vadd.f32 %v4278_v39, %v3677_v53  ;;  %v2446_v41 = vadd.f32 %v7350_v57, %v2445_v29  ;;  %4900 = vmatmul.msk.f32.gmra.mxu0 %vm593_vm3, %v7498_v9  ;;  %v9289_v39 = vld [vmem:[#allocation130_spill] sm:$0xff] }
 0x328   :  { %4967 = vmatmul.msk.f32.gmra.mxu2 %vm593_vm3, %v7498_v9  ;;  %v3114_v15 = vadd.f32 %v7343_v37, %v9289_v39  ;;  %9292 = vst [vmem:[#allocation43_spill] sm:$0xff] %v7572_v47 }
 0x329   :  { %4407 = vst.msk [vmem:[%s9062_s13 + $0x18] sm:$0xff] %vm4403_vm4, %v4342_v18  ;;  %v2949_v62 = vmul.f32 %v7177_v26, %v2446_v41  ;;  %4817 = vmatmul.msk.f32.gmra.mxu1 %vm593_vm3, %v7039_v50  ;;  %v2104_v26 = vadd.f32 %v7332_v32, %v7081_v40  ;;  %v7560_v40 = vpop.permute.xlu0 %4037  ;;  %v9291_v41 = vld [vmem:[#allocation129_spill] sm:$0xff] }
 0x32b   :  { %v3013_v25 = vadd.f32 %v2949_v62, %v2284_v45  ;;  %v7540_v51 = vpop.f32.mrf.mxu2  ;;  %4767 = vmatmul.msk.f32.gmra.mxu3 %vm593_vm3, %v7535_v1  ;;  %v2285_v29 = vmul.f32 %v2104_v26, %v9290_v54  ;;  %v7574_v45 = vpop.permute.xlu2 %2697  ;;  %v3615_v62 = vmul.f32 %v9293_v28, %v3114_v15  ;;  %v9298_v54 = vld [vmem:[#allocation6_spill] sm:$0xff] }
 0x32c   :  { %v7590_v15 = vpop.f32.mrf.mxu0 }
 0x32d   :  { %v3678_v50 = vadd.f32 %v3614_v35, %v3013_v25  ;;  %v4280_v25 = vmul.f32 %v7315_v63, %v3779_v24  ;;  %v7597_v63 = vpop.permute.xlu1 %4042  ;;  %v3782_v24 = vadd.f32 %v7359_v44, %v7119_v56 }
 0x32e   :  { %v2448_v60 = vpop.f32.mrf.mxu1 }
 0x32f   :  { %v4343_v53 = vadd.f32 %v4279_v21, %v3678_v50  ;;  %v2449_v33 = vadd.f32 %v7350_v57, %v2448_v60  ;;  %4901 = vmatmul.msk.f32.gmra.mxu0 %vm593_vm3, %v7535_v1  ;;  %v9296_v50 = vld [vmem:[#allocation85_spill] sm:$0xff]  ;;  %v9297_v60 = vld [vmem:[#allocation135_spill] sm:$0xff] }
 0x330   :  { %4968 = vmatmul.msk.f32.gmra.mxu2 %vm593_vm3, %v7535_v1  ;;  %v921_v12 = vadd.f32 %v7366_v30, %v9296_v50  ;;  %v3117_v39 = vadd.f32 %v7343_v37, %v9297_v60 }
 0x331   :  { %4408 = vst.msk [vmem:[%s9062_s13 + $0x20] sm:$0xff] %vm4403_vm4, %v4343_v53  ;;  %v2950_v18 = vmul.f32 %v7207_v55, %v2449_v33  ;;  %4818 = vmatmul.msk.f32.gmra.mxu1 %vm593_vm3, %v9291_v41  ;;  %v9295_v55 = vld [vmem:[#allocation137_spill] sm:$0xff]  ;;  %v9299_v41 = vld [vmem:[#allocation134_spill] sm:$0xff] }
 0x332   :  { %v2107_v21 = vadd.f32 %v7332_v32, %v9295_v55  ;;  %v7609_v28 = vmax.f32 %v921_v12, 0.0  ;;  %v9304_v12 = vld [vmem:[#allocation89_spill] sm:$0xff] }
 0x333   :  { %v3014_v48 = vadd.f32 %v2950_v18, %v2285_v29  ;;  %v7577_v35 = vpop.f32.mrf.mxu2  ;;  %4768 = vmatmul.msk.f32.gmra.mxu3 %vm593_vm3, %v7572_v47  ;;  %v7618_v56 = vpop.permute.xlu2 %4047  ;;  %v924_v60 = vadd.f32 %v7366_v30, %v9304_v12 }
 0x334   :  { %9294 = vst [vmem:[#allocation4_spill] sm:$0xff] %v7577_v35  ;;  %v2286_v29 = vmul.f32 %v2107_v21, %v9298_v54 }
 0x335   :  { %v3679_v26 = vadd.f32 %v3615_v62, %v3014_v48  ;;  %9300 = vst [vmem:[#allocation46_spill] sm:$0xff] %v7609_v28  ;;  %v7611_v62 = vpop.permute.xlu0 %2702  ;;  %v9301_v48 = vld [vmem:[#allocation47_spill] sm:$0xff] }
 0x336   :  { %v2451_v38 = vpop.f32.mrf.mxu1 }
 0x337   :  { %v4344_v53 = vadd.f32 %v4280_v25, %v3679_v26  ;;  %v2452_v33 = vadd.f32 %v7350_v57, %v2451_v38  ;;  %4902 = vmatmul.msk.f32.gmra.mxu0 %vm593_vm3, %v7572_v47  ;;  %v3616_v25 = vmul.f32 %v9301_v48, %v3117_v39  ;;  %v4281_v26 = vmul.f32 %v7327_v2, %v3782_v24  ;;  %v9306_v2 = vld [vmem:[#allocation7_spill] sm:$0xff]  ;;  %v7637_v48 = vpop.f32.mrf.mxu0 }
 0x338   :  { %4969 = vmatmul.msk.f32.gmra.mxu2 %vm593_vm3, %v7572_v47 }
 0x339   :  { %4409 = vst.msk [vmem:[%s9062_s13 + $0x28] sm:$0xff] %vm4403_vm4, %v4344_v53  ;;  %v2951_v18 = vmul.f32 %v7231_v36, %v2452_v33  ;;  %4819 = vmatmul.msk.f32.gmra.mxu1 %vm593_vm3, %v9299_v41  ;;  %v9303_v36 = vld [vmem:[#allocation143_spill] sm:$0xff]  ;;  %v7625_v53 = vpop.f32.mrf.mxu3  ;;  %v9305_v33 = vld [vmem:[#allocation142_spill] sm:$0xff]  ;;  %v3785_v41 = vadd.f32 %v7359_v44, %v7143_v58 }
 0x33a   :  { %v2110_v50 = vadd.f32 %v7332_v32, %v9303_v36  ;;  %v3120_v54 = vadd.f32 %v7343_v37, %v9305_v33  ;;  %v7646_v36 = vmax.f32 %v924_v60, 0.0  ;;  %v9314_v60 = vld [vmem:[#allocation92_spill] sm:$0xff] }
 0x33b   :  { %v3015_v55 = vadd.f32 %v2951_v18, %v2286_v29  ;;  %v7614_v21 = vpop.f32.mrf.mxu2  ;;  %4769 = vmatmul.msk.f32.gmra.mxu3 %vm593_vm3, %v7609_v28 }
 0x33c   :  { %9302 = vst [vmem:[#allocation81_spill] sm:$0xff] %v7614_v21  ;;  %v2287_v24 = vmul.f32 %v2110_v50, %v9306_v2  ;;  %v9310_v50 = vld [vmem:[#allocation50_spill] sm:$0xff]  ;;  %v7662_v21 = vpop.permute.xlu2 %4062 }
 0x33d   :  { %v3680_v38 = vadd.f32 %v3616_v25, %v3015_v55  ;;  %v9307_v25 = vld [vmem:[#allocation173_spill] sm:$0xff]  ;;  %9309 = vst [vmem:[#allocation130_spill] sm:$0xff] %v7646_v36  ;;  %v3617_v12 = vmul.f32 %v9310_v50, %v3120_v54  ;;  %v7655_v33 = vpop.permute.xlu0 %4052 }
 0x33e   :  { %v2454_v39 = vpop.f32.mrf.mxu1  ;;  %9315 = vst [vmem:[#allocation129_spill] sm:$0xff] %v7662_v21  ;;  %v9316_v54 = vld [vmem:[#allocation149_spill] sm:$0xff] }
 0x33f   :  { %v4345_v29 = vadd.f32 %v4281_v26, %v3680_v38  ;;  %v2455_v18 = vadd.f32 %v7350_v57, %v2454_v39  ;;  %4903 = vmatmul.msk.f32.gmra.mxu0 %vm593_vm3, %v7609_v28  ;;  %v9308_v26 = vld [vmem:[#allocation139_spill] sm:$0xff]  ;;  %v7648_v38 = vpop.permute.xlu1 %2707 }
 0x340   :  { %4970 = vmatmul.msk.f32.gmra.mxu2 %vm593_vm3, %v7609_v28  ;;  %v927_v28 = vadd.f32 %v7366_v30, %v9314_v60 }
 0x341   :  { %4410 = vst.msk [vmem:[%s9062_s13 + $0x30] sm:$0xff] %vm4403_vm4, %v4345_v29  ;;  %v2952_v55 = vmul.f32 %v9307_v25, %v2455_v18  ;;  %4820 = vmatmul.msk.f32.gmra.mxu1 %vm593_vm3, %v9308_v26  ;;  %v9312_v29 = vld [vmem:[#allocation194_spill] sm:$0xff]  ;;  %v9313_v18 = vld [vmem:[#allocation148_spill] sm:$0xff] }
 0x342   :  { %v4282_v2 = vmul.f32 %v9312_v29, %v3785_v41  ;;  %v2113_v25 = vadd.f32 %v7332_v32, %v9313_v18  ;;  %v7669_v41 = vpop.f32.mrf.mxu3  ;;  %v9318_v29 = vld [vmem:[#allocation152_spill] sm:$0xff]  ;;  %v7683_v60 = vmax.f32 %v927_v28, 0.0  ;;  %v9326_v28 = vld [vmem:[#allocation95_spill] sm:$0xff] }
 0x343   :  { %v3016_v39 = vadd.f32 %v2952_v55, %v2287_v24  ;;  %v7651_v58 = vpop.f32.mrf.mxu2  ;;  %4770 = vmatmul.msk.f32.gmra.mxu3 %vm593_vm3, %v7646_v36  ;;  %v3123_v24 = vadd.f32 %v7343_v37, %v9316_v54  ;;  %v3788_v18 = vadd.f32 %v7359_v44, %v9318_v29  ;;  %v9322_v54 = vld [vmem:[#allocation49_spill] sm:$0xff]  ;;  %v930_v21 = vadd.f32 %v7366_v30, %v9326_v28  ;;  %v9332_v28 = vld [vmem:[#allocation150_spill] sm:$0xff] }
 0x344   :  { %9311 = vst [vmem:[#allocation5_spill] sm:$0xff] %v7651_v58 }
 0x345   :  { %v3681_v26 = vadd.f32 %v3617_v12, %v3016_v39  ;;  %v9317_v12 = vld [vmem:[#allocation8_spill] sm:$0xff]  ;;  %9321 = vst [vmem:[#allocation44_spill] sm:$0xff] %v7683_v60  ;;  %v3618_v58 = vmul.f32 %v9322_v54, %v3123_v24  ;;  %v7699_v54 = vpop.permute.xlu0 %4067 }
 0x346   :  { %v2457_v47 = vpop.f32.mrf.mxu1  ;;  %v2288_v39 = vmul.f32 %v2113_v25, %v9317_v12  ;;  %9327 = vst [vmem:[#allocation135_spill] sm:$0xff] %v7699_v54 }
 0x347   :  { %v4346_v55 = vadd.f32 %v4282_v2, %v3681_v26  ;;  %v2458_v50 = vadd.f32 %v7350_v57, %v2457_v47  ;;  %4904 = vmatmul.msk.f32.gmra.mxu0 %vm593_vm3, %v7646_v36  ;;  %v9319_v2 = vld [vmem:[#allocation182_spill] sm:$0xff]  ;;  %v9320_v26 = vld [vmem:[#allocation144_spill] sm:$0xff]  ;;  %v7692_v29 = vpop.permute.xlu1 %4057 }
 0x348   :  { %4971 = vmatmul.msk.f32.gmra.mxu2 %vm593_vm3, %v7646_v36  ;;  %v7686_v36 = vpop.f32.mrf.mxu0 }
 0x349   :  { %4411 = vst.msk [vmem:[%s9062_s13 + $0x38] sm:$0xff] %vm4403_vm4, %v4346_v55  ;;  %v2953_v47 = vmul.f32 %v9319_v2, %v2458_v50  ;;  %4821 = vmatmul.msk.f32.gmra.mxu1 %vm593_vm3, %v9320_v26  ;;  %v4283_v55 = vmul.f32 %v7412_v27, %v3788_v18  ;;  %v9325_v50 = vld [vmem:[#allocation155_spill] sm:$0xff]  ;;  %v7708_v27 = vpop.permute.xlu2 %2712 }
 0x34a   :  { %9323 = vst [vmem:[#allocation137_spill] sm:$0xff] %v7686_v36  ;;  %v2116_v2 = vadd.f32 %v7332_v32, %v9325_v50 }
 0x34b   :  { %v3017_v25 = vadd.f32 %v2953_v47, %v2288_v39  ;;  %v7688_v12 = vpop.f32.mrf.mxu2  ;;  %4771 = vmatmul.msk.f32.gmra.mxu3 %vm593_vm3, %v7683_v60  ;;  %v9328_v39 = vld [vmem:[#allocation157_spill] sm:$0xff] }
 0x34c   :  { %9324 = vst [vmem:[#allocation85_spill] sm:$0xff] %v7688_v12  ;;  %v3126_v47 = vadd.f32 %v7343_v37, %v9328_v39  ;;  %v7722_v39 = vpop.f32.mrf.mxu3 }
 0x34d   :  { %v3682_v26 = vadd.f32 %v3618_v58, %v3017_v25  ;;  %v9329_v58 = vld [vmem:[#allocation9_spill] sm:$0xff]  ;;  %v9330_v25 = vld [vmem:[#allocation158_spill] sm:$0xff]  ;;  %9334 = vst [vmem:[#allocation134_spill] sm:$0xff] %v7722_v39 }
 0x34e   :  { %v2460_v24 = vpop.f32.mrf.mxu1  ;;  %v2289_v18 = vmul.f32 %v2116_v2, %v9329_v58  ;;  %v3791_v50 = vadd.f32 %v7359_v44, %v9330_v25 }
 0x34f   :  { %v4347_v12 = vadd.f32 %v4283_v55, %v3682_v26  ;;  %v2461_v1 = vadd.f32 %v7350_v57, %v2460_v24  ;;  %4905 = vmatmul.msk.f32.gmra.mxu0 %vm593_vm3, %v7683_v60  ;;  %v9331_v55 = vld [vmem:[#allocation188_spill] sm:$0xff]  ;;  %v7720_v24 = vmax.f32 %v930_v21, 0.0  ;;  %v9339_v21 = vld [vmem:[#allocation98_spill] sm:$0xff]  ;;  %v7736_v36 = vpop.permute.xlu1 %4072 }
 0x350   :  { %4972 = vmatmul.msk.f32.gmra.mxu2 %vm593_vm3, %v7683_v60  ;;  %v9335_v60 = vld [vmem:[#allocation51_spill] sm:$0xff]  ;;  %v4284_v25 = vmul.f32 %v7389_v16, %v3791_v50  ;;  %v933_v35 = vadd.f32 %v7366_v30, %v9339_v21  ;;  %9340 = vst [vmem:[#allocation89_spill] sm:$0xff] %v7736_v36  ;;  %v7745_v16 = vpop.permute.xlu0 %2717 }
 0x351   :  { %4412 = vst.msk [vmem:[%s9062_s13 + $0x40] sm:$0xff] %vm4403_vm4, %v4347_v12  ;;  %v2954_v26 = vmul.f32 %v9331_v55, %v2461_v1  ;;  %4822 = vmatmul.msk.f32.gmra.mxu1 %vm593_vm3, %v9332_v28  ;;  %v3619_v54 = vmul.f32 %v9335_v60, %v3126_v47  ;;  %v9337_v12 = vld [vmem:[#allocation163_spill] sm:$0xff]  ;;  %v7732_v55 = vpop.f32.mrf.mxu0  ;;  %v9341_v60 = vld [vmem:[#allocation165_spill] sm:$0xff] }
 0x352   :  { %9333 = vst [vmem:[#allocation6_spill] sm:$0xff] %v7720_v24  ;;  %v2119_v1 = vadd.f32 %v7332_v32, %v9337_v12  ;;  %v3129_v47 = vadd.f32 %v7343_v37, %v9341_v60  ;;  %v7757_v21 = vmax.f32 %v933_v35, 0.0  ;;  %v7759_v60 = vpop.permute.xlu2 %4077  ;;  %v9352_v35 = vld [vmem:[#allocation101_spill] sm:$0xff] }
 0x353   :  { %v3018_v2 = vadd.f32 %v2954_v26, %v2289_v18  ;;  %v7725_v58 = vpop.f32.mrf.mxu2  ;;  %4772 = vmatmul.msk.f32.gmra.mxu3 %vm593_vm3, %v7720_v24  ;;  %9338 = vst [vmem:[#allocation143_spill] sm:$0xff] %v7732_v55  ;;  %v936_v36 = vadd.f32 %v7366_v30, %v9352_v35  ;;  %v9353_v55 = vld [vmem:[#allocation172_spill] sm:$0xff]  ;;  %v9360_v35 = vld [vmem:[#allocation53_spill] sm:$0xff] }
 0x354   :  { %9336 = vst [vmem:[#allocation47_spill] sm:$0xff] %v7725_v58 }
 0x355   :  { %v3683_v28 = vadd.f32 %v3619_v54, %v3018_v2  ;;  %v9342_v54 = vld [vmem:[#allocation10_spill] sm:$0xff]  ;;  %v9343_v2 = vld [vmem:[#allocation164_spill] sm:$0xff]  ;;  %9346 = vst [vmem:[#allocation142_spill] sm:$0xff] %v7757_v21 }
 0x356   :  { %v2463_v39 = vpop.f32.mrf.mxu1  ;;  %v2290_v50 = vmul.f32 %v2119_v1, %v9342_v54  ;;  %v3794_v12 = vadd.f32 %v7359_v44, %v9343_v2  ;;  %9347 = vst [vmem:[#allocation7_spill] sm:$0xff] %v7759_v60  ;;  %v7764_v2 = vpop.f32.mrf.mxu3 }
 0x357   :  { %v4348_v18 = vadd.f32 %v4284_v25, %v3683_v28  ;;  %v2464_v26 = vadd.f32 %v7350_v57, %v2463_v39  ;;  %4906 = vmatmul.msk.f32.gmra.mxu0 %vm593_vm3, %v7720_v24  ;;  %v9344_v25 = vld [vmem:[#allocation193_spill] sm:$0xff]  ;;  %v9345_v28 = vld [vmem:[#allocation156_spill] sm:$0xff]  ;;  %9350 = vst [vmem:[#allocation139_spill] sm:$0xff] %v7764_v2 }
 0x358   :  { %4973 = vmatmul.msk.f32.gmra.mxu2 %vm593_vm3, %v7720_v24  ;;  %v9348_v24 = vld [vmem:[#allocation54_spill] sm:$0xff] }
 0x359   :  { %4413 = vst.msk [vmem:[%s9062_s13 + $0x48] sm:$0xff] %vm4403_vm4, %v4348_v18  ;;  %v2955_v39 = vmul.f32 %v9344_v25, %v2464_v26  ;;  %4823 = vmatmul.msk.f32.gmra.mxu1 %vm593_vm3, %v9345_v28  ;;  %v3620_v58 = vmul.f32 %v9348_v24, %v3129_v47  ;;  %v4285_v18 = vmul.f32 %v7426_v6, %v3794_v12  ;;  %v9351_v26 = vld [vmem:[#allocation170_spill] sm:$0xff]  ;;  %v7775_v47 = vpop.f32.mrf.mxu0  ;;  %v7782_v6 = vpop.permute.xlu1 %2722 }
 0x35a   :  { %v2122_v25 = vadd.f32 %v7332_v32, %v9351_v26  ;;  %v3132_v24 = vadd.f32 %v7343_v37, %v9353_v55  ;;  %9354 = vst [vmem:[#allocation50_spill] sm:$0xff] %v7775_v47 }
 0x35b   :  { %v3019_v1 = vadd.f32 %v2955_v39, %v2290_v50  ;;  %v7762_v54 = vpop.f32.mrf.mxu2  ;;  %4773 = vmatmul.msk.f32.gmra.mxu3 %vm593_vm3, %v7757_v21 }
 0x35c   :  { %9349 = vst [vmem:[#allocation173_spill] sm:$0xff] %v7762_v54  ;;  %v4093_v54 = vpop.permute.xlu2 %4092 }
 0x35d   :  { %v3684_v28 = vadd.f32 %v3620_v58, %v3019_v1  ;;  %v9355_v58 = vld [vmem:[#allocation11_spill] sm:$0xff]  ;;  %v9356_v1 = vld [vmem:[#allocation169_spill] sm:$0xff] }
 0x35e   :  { %v2466_v60 = vpop.f32.mrf.mxu1  ;;  %v2291_v12 = vmul.f32 %v2122_v25, %v9355_v58  ;;  %v3797_v26 = vadd.f32 %v7359_v44, %v9356_v1 }
 0x35f   :  { %v4349_v50 = vadd.f32 %v4285_v18, %v3684_v28  ;;  %v2467_v39 = vadd.f32 %v7350_v57, %v2466_v60  ;;  %4907 = vmatmul.msk.f32.gmra.mxu0 %vm593_vm3, %v7757_v21  ;;  %v9357_v60 = vld [vmem:[#allocation162_spill] sm:$0xff]  ;;  %v7794_v18 = vmax.f32 %v936_v36, 0.0  ;;  %v7796_v28 = vpop.permute.xlu0 %4082  ;;  %v9362_v36 = vld [vmem:[#allocation104_spill] sm:$0xff] }
 0x360   :  { %4974 = vmatmul.msk.f32.gmra.mxu2 %vm593_vm3, %v7757_v21  ;;  %9359 = vst [vmem:[#allocation148_spill] sm:$0xff] %v7796_v28  ;;  %v3621_v21 = vmul.f32 %v9360_v35, %v3132_v24  ;;  %v939_v47 = vadd.f32 %v7366_v30, %v9362_v36  ;;  %v7807_v28 = vpop.f32.mrf.mxu3 }
 0x361   :  { %4414 = vst.msk [vmem:[%s9062_s13 + $0x50] sm:$0xff] %vm4403_vm4, %v4349_v50  ;;  %v2956_v55 = vmul.f32 %v7433_v14, %v2467_v39  ;;  %4824 = vmatmul.msk.f32.gmra.mxu1 %vm593_vm3, %v9357_v60  ;;  %v4286_v50 = vmul.f32 %v7463_v22, %v3797_v26  ;;  %v9361_v14 = vld [vmem:[#allocation176_spill] sm:$0xff]  ;;  %v9366_v26 = vld [vmem:[#allocation175_spill] sm:$0xff] }
 0x362   :  { %9358 = vst [vmem:[#allocation194_spill] sm:$0xff] %v7794_v18  ;;  %v2125_v39 = vadd.f32 %v7332_v32, %v9361_v14  ;;  %v9365_v22 = vld [vmem:[#allocation12_spill] sm:$0xff]  ;;  %v7830_v14 = vmax.f32 %v939_v47, 0.0  ;;  %v9371_v47 = vld [vmem:[#allocation107_spill] sm:$0xff] }
 0x363   :  { %v3020_v25 = vadd.f32 %v2956_v55, %v2291_v12  ;;  %v3844_v58 = vpop.f32.mrf.mxu2  ;;  %4774 = vmatmul.msk.f32.gmra.mxu3 %vm593_vm3, %v7794_v18  ;;  %v9364_v55 = vld [vmem:[#allocation178_spill] sm:$0xff] }
 0x364   :  { %v3845_v1 = vadd.f32 %v7359_v44, %v3844_v58  ;;  %v3135_v35 = vadd.f32 %v7343_v37, %v9364_v55  ;;  %9368 = vst [vmem:[#allocation149_spill] sm:$0xff] %v7830_v14 }
 0x365   :  { %v3685_v60 = vadd.f32 %v3621_v21, %v3020_v25  ;;  %v2292_v21 = vmul.f32 %v2125_v39, %v9365_v22  ;;  %v3800_v25 = vadd.f32 %v7359_v44, %v9366_v26  ;;  %v9369_v39 = vld [vmem:[#allocation56_spill] sm:$0xff] }
 0x366   :  { %v7809_v24 = vmul.f32 %v4093_v54, %v3845_v1  ;;  %v2469_v12 = vpop.f32.mrf.mxu1  ;;  %v7821_v54 = vpop.f32.mrf.mxu0  ;;  %v3622_v36 = vmul.f32 %v9369_v39, %v3135_v35 }
 0x367   :  { %v4350_v58 = vadd.f32 %v4286_v50, %v3685_v60  ;;  %v2470_v2 = vadd.f32 %v7350_v57, %v2469_v12  ;;  %4908 = vmatmul.msk.f32.gmra.mxu0 %vm593_vm3, %v7794_v18  ;;  %v9367_v50 = vld [vmem:[#allocation168_spill] sm:$0xff]  ;;  %v7832_v60 = vpop.permute.xlu1 %4087  ;;  %v4098_v26 = vpop.permute.xlu0 %4097 }
 0x368   :  { %9363 = vst [vmem:[#allocation92_spill] sm:$0xff] %v7809_v24  ;;  %4975 = vmatmul.msk.f32.gmra.mxu2 %vm593_vm3, %v7794_v18  ;;  %v942_v18 = vadd.f32 %v7366_v30, %v9371_v47 }
 0x369   :  { %4415 = vst.msk [vmem:[%s9062_s13 + $0x58] sm:$0xff] %vm4403_vm4, %v4350_v58  ;;  %v2957_v1 = vmul.f32 %v7470_v49, %v2470_v2  ;;  %4825 = vmatmul.msk.f32.gmra.mxu1 %vm593_vm3, %v9367_v50  ;;  %v4287_v58 = vmul.f32 %v7477_v19, %v3800_v25  ;;  %v9370_v49 = vld [vmem:[#allocation183_spill] sm:$0xff]  ;;  %v7850_v19 = vpop.f32.mrf.mxu3  ;;  %v9374_v25 = vld [vmem:[#allocation13_spill] sm:$0xff] }
 0x36a   :  { %v2128_v2 = vadd.f32 %v7332_v32, %v9370_v49  ;;  %v7864_v49 = vmax.f32 %v942_v18, 0.0  ;;  %v9379_v18 = vld [vmem:[#allocation112_spill] sm:$0xff] }
 0x36b   :  { %v3021_v12 = vadd.f32 %v2957_v1, %v2292_v21  ;;  %v3847_v55 = vpop.f32.mrf.mxu2  ;;  %4775 = vmatmul.msk.f32.gmra.mxu3 %vm593_vm3, %v7830_v14  ;;  %v9373_v21 = vld [vmem:[#allocation185_spill] sm:$0xff] }
 0x36c   :  { %v3848_v22 = vadd.f32 %v7359_v44, %v3847_v55  ;;  %v3138_v1 = vadd.f32 %v7343_v37, %v9373_v21 }
 0x36d   :  { %v3686_v50 = vadd.f32 %v3622_v36, %v3021_v12  ;;  %v2293_v36 = vmul.f32 %v2128_v2, %v9374_v25  ;;  %v9375_v12 = vld [vmem:[#allocation180_spill] sm:$0xff] }
 0x36e   :  { %v7843_v24 = vmul.f32 %v4098_v26, %v3848_v22  ;;  %v2472_v35 = vpop.f32.mrf.mxu1  ;;  %v3803_v22 = vadd.f32 %v7359_v44, %v9375_v12 }
 0x36f   :  { %v4351_v39 = vadd.f32 %v4287_v58, %v3686_v50  ;;  %v2473_v55 = vadd.f32 %v7350_v57, %v2472_v35  ;;  %4909 = vmatmul.msk.f32.gmra.mxu0 %vm593_vm3, %v7830_v14  ;;  %v9376_v58 = vld [vmem:[#allocation174_spill] sm:$0xff]  ;;  %v9377_v50 = vld [vmem:[#allocation59_spill] sm:$0xff]  ;;  %v7867_v35 = vpop.f32.mrf.mxu0  ;;  %v4103_v12 = vpop.permute.xlu1 %4102 }
 0x370   :  { %9372 = vst [vmem:[#allocation8_spill] sm:$0xff] %v7843_v24  ;;  %4976 = vmatmul.msk.f32.gmra.mxu2 %vm593_vm3, %v7830_v14  ;;  %v3623_v47 = vmul.f32 %v9377_v50, %v3138_v1  ;;  %v945_v14 = vadd.f32 %v7366_v30, %v9379_v18 }
 0x371   :  { %4416 = vst.msk [vmem:[%s9062_s13 + $0x60] sm:$0xff] %vm4403_vm4, %v4351_v39  ;;  %v2958_v26 = vmul.f32 %v7507_v17, %v2473_v55  ;;  %4826 = vmatmul.msk.f32.gmra.mxu1 %vm593_vm3, %v9376_v58  ;;  %v4288_v39 = vmul.f32 %v7514_v7, %v3803_v22  ;;  %v9378_v17 = vld [vmem:[#allocation190_spill] sm:$0xff] }
 0x372   :  { %v2131_v55 = vadd.f32 %v7332_v32, %v9378_v17  ;;  %v9381_v7 = vld [vmem:[#allocation14_spill] sm:$0xff]  ;;  %v7898_v17 = vpop.f32.mrf.mxu3 }
 0x373   :  { %v3022_v2 = vadd.f32 %v2958_v26, %v2293_v36  ;;  %v3850_v21 = vpop.f32.mrf.mxu2  ;;  %4776 = vmatmul.msk.f32.gmra.mxu3 %vm593_vm3, %v7864_v49  ;;  %v9380_v36 = vld [vmem:[#allocation192_spill] sm:$0xff] }
 0x374   :  { %v3851_v25 = vadd.f32 %v7359_v44, %v3850_v21  ;;  %v3141_v26 = vadd.f32 %v7343_v37, %v9380_v36  ;;  %v2294_v22 = vmul.f32 %v2131_v55, %v9381_v7  ;;  %v2134_v36 = vadd.f32 %v7332_v32, %v7394_v59  ;;  %v9386_v59 = vld [vmem:[#allocation15_spill] sm:$0xff] }
 0x375   :  { %v3687_v58 = vadd.f32 %v3623_v47, %v3022_v2  ;;  %v9382_v47 = vld [vmem:[#allocation186_spill] sm:$0xff] }
 0x376   :  { %v7877_v1 = vmul.f32 %v4103_v12, %v3851_v25  ;;  %v2475_v50 = vpop.f32.mrf.mxu1  ;;  %v3806_v2 = vadd.f32 %v7359_v44, %v9382_v47  ;;  %v9383_v12 = vld [vmem:[#allocation179_spill] sm:$0xff]  ;;  %v3144_v47 = vadd.f32 %v7343_v37, %v7405_v46 }
 0x377   :  { %v4352_v21 = vadd.f32 %v4288_v39, %v3687_v58  ;;  %v2476_v24 = vadd.f32 %v7350_v57, %v2475_v50  ;;  %4910 = vmatmul.msk.f32.gmra.mxu0 %vm593_vm3, %v7864_v49  ;;  %v7896_v39 = vmax.f32 %v945_v14, 0.0  ;;  %v9384_v58 = vld [vmem:[#allocation57_spill] sm:$0xff] }
 0x378   :  { %4977 = vmatmul.msk.f32.gmra.mxu2 %vm593_vm3, %v7864_v49  ;;  %v3624_v18 = vmul.f32 %v9384_v58, %v3141_v26  ;;  %v4289_v50 = vmul.f32 %v7551_v42, %v3806_v2  ;;  %v2295_v42 = vmul.f32 %v2134_v36, %v9386_v59  ;;  %v9387_v2 = vld [vmem:[#allocation191_spill] sm:$0xff] }
 0x379   :  { %4417 = vst.msk [vmem:[%s9062_s13 + $0x68] sm:$0xff] %vm4403_vm4, %v4352_v21  ;;  %v2959_v25 = vmul.f32 %v7574_v45, %v2476_v24  ;;  %4827 = vmatmul.msk.f32.gmra.mxu1 %vm593_vm3, %v9383_v12  ;;  %v7906_v21 = vpop.f32.mrf.mxu0  ;;  %v9385_v24 = vld [vmem:[#allocation114_spill] sm:$0xff]  ;;  %v9388_v12 = vld [vmem:[#allocation184_spill] sm:$0xff] }
 0x37a   :  { %v948_v14 = vadd.f32 %v7366_v30, %v9385_v24  ;;  %v2137_v24 = vadd.f32 %v7332_v32, %v7440_v23  ;;  %v7948_v23 = vpop.permute.xlu2 %2727 }
 0x37b   :  { %v3023_v55 = vadd.f32 %v2959_v25, %v2294_v22  ;;  %4777 = vmatmul.msk.f32.gmra.mxu3 %vm593_vm3, %v7896_v39  ;;  %v3809_v25 = vadd.f32 %v7359_v44, %v9387_v2 }
 0x37c   :  { %v7927_v58 = vmax.f32 %v948_v14, 0.0  ;;  %v3147_v14 = vadd.f32 %v7343_v37, %v7452_v20 }
 0x37d   :  { %v3688_v45 = vadd.f32 %v3624_v18, %v3023_v55  ;;  %v9389_v18 = vld [vmem:[#allocation60_spill] sm:$0xff]  ;;  %v4290_v36 = vmul.f32 %v7523_v4, %v3809_v25  ;;  %v3812_v25 = vadd.f32 %v7359_v44, %v7392_v52 }
 0x37e   :  { %v2478_v7 = vpop.f32.mrf.mxu1  ;;  %v3625_v55 = vmul.f32 %v9389_v18, %v3144_v47  ;;  %v9391_v4 = vld [vmem:[#allocation16_spill] sm:$0xff]  ;;  %v9393_v18 = vld [vmem:[#allocation63_spill] sm:$0xff] }
 0x37f   :  { %v4353_v26 = vadd.f32 %v4289_v50, %v3688_v45  ;;  %v2479_v22 = vadd.f32 %v7350_v57, %v2478_v7  ;;  %4911 = vmatmul.msk.f32.gmra.mxu0 %vm593_vm3, %v7896_v39  ;;  %v7930_v45 = vpop.f32.mrf.mxu3  ;;  %v2296_v2 = vmul.f32 %v2137_v24, %v9391_v4  ;;  %v4291_v52 = vmul.f32 %v7560_v40, %v3812_v25  ;;  %v9395_v40 = vld [vmem:[#allocation17_spill] sm:$0xff] }
 0x380   :  { %4978 = vmatmul.msk.f32.gmra.mxu2 %vm593_vm3, %v7896_v39  ;;  %v3815_v4 = vadd.f32 %v7359_v44, %v7429_v34 }
 0x381   :  { %4418 = vst.msk [vmem:[%s9062_s13 + $0x70] sm:$0xff] %vm4403_vm4, %v4353_v26  ;;  %v2960_v46 = vmul.f32 %v7611_v62, %v2479_v22  ;;  %4828 = vmatmul.msk.f32.gmra.mxu1 %vm593_vm3, %v9388_v12  ;;  %v9390_v62 = vld [vmem:[#allocation117_spill] sm:$0xff]  ;;  %v7941_v47 = vpop.f32.mrf.mxu0 }
 0x382   :  { %v951_v26 = vadd.f32 %v7366_v30, %v9390_v62  ;;  %v4292_v34 = vmul.f32 %v7597_v63, %v3815_v4 }
 0x383   :  { %v3024_v50 = vadd.f32 %v2960_v46, %v2295_v42  ;;  %4778 = vmatmul.msk.f32.gmra.mxu3 %vm593_vm3, %v7927_v58  ;;  %v9392_v46 = vld [vmem:[#allocation189_spill] sm:$0xff] }
 0x384   :  { %v7960_v12 = vmax.f32 %v951_v26, 0.0  ;;  %v3150_v26 = vadd.f32 %v7343_v37, %v7501_v61 }
 0x385   :  { %v3689_v7 = vadd.f32 %v3625_v55, %v3024_v50  ;;  %v3626_v55 = vmul.f32 %v9393_v18, %v3147_v14 }
 0x386   :  { %v2481_v22 = vpop.f32.mrf.mxu1 }
 0x387   :  { %v4354_v59 = vadd.f32 %v4290_v36, %v3689_v7  ;;  %v2482_v42 = vadd.f32 %v7350_v57, %v2481_v22  ;;  %4912 = vmatmul.msk.f32.gmra.mxu0 %vm593_vm3, %v7927_v58  ;;  %v2140_v36 = vadd.f32 %v7332_v32, %v7484_v5  ;;  %v9394_v7 = vld [vmem:[#allocation121_spill] sm:$0xff]  ;;  %v7970_v62 = vpop.f32.mrf.mxu3  ;;  %v7979_v5 = vpop.permute.xlu0 %2732 }
 0x388   :  { %4979 = vmatmul.msk.f32.gmra.mxu2 %vm593_vm3, %v7927_v58 }
 0x389   :  { %4419 = vst.msk [vmem:[%s9062_s13 + $0x78] sm:$0xff] %vm4403_vm4, %v4354_v59  ;;  %v2961_v20 = vmul.f32 %v7648_v38, %v2482_v42  ;;  %4829 = vmatmul.msk.f32.gmra.mxu1 %vm593_vm3, %v9392_v46  ;;  %v954_v38 = vadd.f32 %v7366_v30, %v9394_v7  ;;  %v2297_v42 = vmul.f32 %v2140_v36, %v9395_v40  ;;  %v9396_v46 = vld [vmem:[#allocation61_spill] sm:$0xff] }
 0x38a   :  { %v3627_v18 = vmul.f32 %v9396_v46, %v3150_v26  ;;  %v3818_v26 = vadd.f32 %v7359_v44, %v7466_v0 }
 0x38b   :  { %v3025_v50 = vadd.f32 %v2961_v20, %v2296_v2  ;;  %4779 = vmatmul.msk.f32.gmra.mxu3 %vm593_vm3, %v7960_v12  ;;  %v7984_v2 = vpop.f32.mrf.mxu0  ;;  %v7993_v25 = vmax.f32 %v954_v38, 0.0  ;;  %v7995_v20 = vpop.permute.xlu2 %4107 }
 0x38d   :  { %v3690_v24 = vadd.f32 %v3626_v55, %v3025_v50  ;;  %v2143_v50 = vadd.f32 %v7332_v32, %v7537_v3  ;;  %v9398_v3 = vld [vmem:[#allocation18_spill] sm:$0xff] }
 0x38e   :  { %v2484_v22 = vpop.f32.mrf.mxu1 }
 0x38f   :  { %v4355_v14 = vadd.f32 %v4291_v52, %v3690_v24  ;;  %v2485_v59 = vadd.f32 %v7350_v57, %v2484_v22  ;;  %4913 = vmatmul.msk.f32.gmra.mxu0 %vm593_vm3, %v7960_v12  ;;  %v3153_v24 = vadd.f32 %v7343_v37, %v7547_v31  ;;  %v8010_v22 = vpop.f32.mrf.mxu3  ;;  %v2298_v63 = vmul.f32 %v2143_v50, %v9398_v3  ;;  %v8028_v40 = vpop.permute.xlu0 %4112 }
 0x390   :  { %4980 = vmatmul.msk.f32.gmra.mxu2 %vm593_vm3, %v7960_v12 }
 0x391   :  { %4420 = vst.msk [vmem:[%s9062_s13 + $0x80] sm:$0xff] %vm4403_vm4, %v4355_v14  ;;  %v2962_v61 = vmul.f32 %v7708_v27, %v2485_v59  ;;  %4830 = vmatmul.msk.f32.gmra.mxu1 %vm593_vm3, %v7387_v43  ;;  %v9397_v27 = vld [vmem:[#allocation125_spill] sm:$0xff]  ;;  %v8024_v14 = vpop.permute.xlu1 %2737 }
 0x392   :  { %v957_v36 = vadd.f32 %v7366_v30, %v9397_v27 }
 0x393   :  { %v3026_v55 = vadd.f32 %v2962_v61, %v2297_v42  ;;  %4780 = vmatmul.msk.f32.gmra.mxu3 %vm593_vm3, %v7993_v25  ;;  %v9399_v42 = vld [vmem:[#allocation64_spill] sm:$0xff]  ;;  %v8031_v61 = vpop.f32.mrf.mxu0  ;;  %v8035_v46 = vpop.permute.xlu2 %4122 }
 0x394   :  { %v8026_v59 = vmax.f32 %v957_v36, 0.0  ;;  %v3628_v4 = vmul.f32 %v9399_v42, %v3153_v24 }
 0x395   :  { %v3691_v52 = vadd.f32 %v3627_v18, %v3026_v55  ;;  %v9400_v55 = vld [vmem:[#allocation127_spill] sm:$0xff] }
 0x396   :  { %v2487_v43 = vpop.f32.mrf.mxu1 }
 0x397   :  { %v4356_v7 = vadd.f32 %v4292_v34, %v3691_v52  ;;  %v2488_v38 = vadd.f32 %v7350_v57, %v2487_v43  ;;  %4914 = vmatmul.msk.f32.gmra.mxu0 %vm593_vm3, %v7993_v25  ;;  %v960_v34 = vadd.f32 %v7366_v30, %v9400_v55  ;;  %v3156_v52 = vadd.f32 %v7343_v37, %v7590_v15 }
 0x398   :  { %4981 = vmatmul.msk.f32.gmra.mxu2 %vm593_vm3, %v7993_v25  ;;  %v3159_v55 = vadd.f32 %v7343_v37, %v7637_v48 }
 0x399   :  { %4421 = vst.msk [vmem:[%s9062_s13 + $0x88] sm:$0xff] %vm4403_vm4, %v4356_v7  ;;  %v2963_v31 = vmul.f32 %v7745_v16, %v2488_v38  ;;  %4831 = vmatmul.msk.f32.gmra.mxu1 %vm593_vm3, %v7424_v10  ;;  %v4293_v16 = vmul.f32 %v7618_v56, %v3818_v26  ;;  %v2146_v10 = vadd.f32 %v7332_v32, %v7579_v11  ;;  %v9401_v56 = vld [vmem:[#allocation19_spill] sm:$0xff]  ;;  %v8059_v24 = vmax.f32 %v960_v34, 0.0  ;;  %v8061_v7 = vpop.f32.mrf.mxu3  ;;  %v8064_v26 = vpop.permute.xlu1 %4117 }
 0x39a   :  { %v3821_v11 = vadd.f32 %v7359_v44, %v7503_v13  ;;  %v9402_v38 = vld [vmem:[#allocation67_spill] sm:$0xff]  ;;  %v8068_v13 = vpop.permute.xlu0 %4127 }
 0x39b   :  { %v3027_v0 = vadd.f32 %v2963_v31, %v2298_v63  ;;  %4781 = vmatmul.msk.f32.gmra.mxu3 %vm593_vm3, %v8026_v59  ;;  %v2299_v43 = vmul.f32 %v2146_v10, %v9401_v56  ;;  %v3629_v3 = vmul.f32 %v9402_v38, %v3156_v52  ;;  %v3824_v52 = vadd.f32 %v7359_v44, %v7540_v51 }
 0x39c   :  { %v4294_v31 = vmul.f32 %v7655_v33, %v3821_v11 }
 0x39d   :  { %v3692_v18 = vadd.f32 %v3628_v4, %v3027_v0  ;;  %v9403_v4 = vld [vmem:[#allocation132_spill] sm:$0xff]  ;;  %v4295_v51 = vmul.f32 %v7692_v29, %v3824_v52 }
 0x39e   :  { %v2490_v50 = vpop.f32.mrf.mxu1  ;;  %v963_v0 = vadd.f32 %v7366_v30, %v9403_v4 }
 0x39f   :  { %v4357_v27 = vadd.f32 %v4293_v16, %v3692_v18  ;;  %v2491_v36 = vadd.f32 %v7350_v57, %v2490_v50  ;;  %4915 = vmatmul.msk.f32.gmra.mxu0 %vm593_vm3, %v8026_v59  ;;  %v8077_v16 = vpop.f32.mrf.mxu2  ;;  %v8079_v18 = vpop.permute.xlu2 %2742 }
 0x3a0   :  { %4982 = vmatmul.msk.f32.gmra.mxu2 %vm593_vm3, %v8026_v59 }
 0x3a1   :  { %4422 = vst.msk [vmem:[%s9062_s13 + $0x90] sm:$0xff] %vm4403_vm4, %v4357_v27  ;;  %v2964_v15 = vmul.f32 %v7782_v6, %v2491_v36  ;;  %4832 = vmatmul.msk.f32.gmra.mxu1 %vm593_vm3, %v7461_v8  ;;  %v2149_v6 = vadd.f32 %v7332_v32, %v7625_v53  ;;  %v8073_v8 = vpop.f32.mrf.mxu0  ;;  %v9404_v53 = vld [vmem:[#allocation20_spill] sm:$0xff]  ;;  %v8098_v27 = vmax.f32 %v963_v0, 0.0  ;;  %v9406_v36 = vld [vmem:[#allocation66_spill] sm:$0xff]  ;;  %v8101_v11 = vpop.f32.mrf.mxu3 }
 0x3a2   :  { %v3630_v56 = vmul.f32 %v9406_v36, %v3159_v55  ;;  %v9410_v55 = vld [vmem:[#allocation4_spill] sm:$0xff]  ;;  %v8146_v36 = vld [vmem:[%s9061_s9] ss:$0 sm:$0xff] }
 0x3a3   :  { %v3028_v63 = vadd.f32 %v2964_v15, %v2299_v43  ;;  %4782 = vmatmul.msk.f32.gmra.mxu3 %vm593_vm3, %v8059_v24  ;;  %v2300_v50 = vmul.f32 %v2149_v6, %v9404_v53  ;;  %9405 = vst [vmem:[#allocation152_spill] sm:$0xff] %v8098_v27  ;;  %v2152_v15 = vadd.f32 %v7332_v32, %v7669_v41  ;;  %v9408_v6 = vld [vmem:[#allocation137_spill] sm:$0xff]  ;;  %v9413_v53 = vld [vmem:[#allocation68_spill] sm:$0xff] }
 0x3a4   :  { %v9409_v41 = vld [vmem:[#allocation21_spill] sm:$0xff] }
 0x3a5   :  { %v3693_v42 = vadd.f32 %v3629_v3, %v3028_v63  ;;  %v9407_v3 = vld [vmem:[#allocation136_spill] sm:$0xff] }
 0x3a6   :  { %v2493_v10 = vpop.f32.mrf.mxu1 }
 0x3a7   :  { %v4358_v34 = vadd.f32 %v4294_v31, %v3693_v42  ;;  %v2494_v33 = vadd.f32 %v7350_v57, %v2493_v10  ;;  %4916 = vmatmul.msk.f32.gmra.mxu0 %vm593_vm3, %v8059_v24  ;;  %v8112_v31 = vpop.permute.xlu0 %2747  ;;  %v3162_v42 = vadd.f32 %v7343_v37, %v9408_v6  ;;  %v8121_v32 = vpop.f32.mrf.mxu2  ;;  %v2301_v10 = vmul.f32 %v2152_v15, %v9409_v41  ;;  %v9416_v15 = vld [vmem:[#allocation141_spill] sm:$0xff]  ;;  %v9417_v6 = vld [vmem:[#allocation143_spill] sm:$0xff] }
 0x3a8   :  { %4983 = vmatmul.msk.f32.gmra.mxu2 %vm593_vm3, %v8059_v24  ;;  %v3827_v37 = vadd.f32 %v7359_v44, %v9410_v55 }
 0x3a9   :  { %4423 = vst.msk [vmem:[%s9062_s13 + $0x98] sm:$0xff] %vm4403_vm4, %v4358_v34  ;;  %v2965_v48 = vmul.f32 %v7948_v23, %v2494_v33  ;;  %4833 = vmatmul.msk.f32.gmra.mxu1 %vm593_vm3, %v7498_v9  ;;  %v8108_v23 = vpop.permute.xlu1 %4132  ;;  %v966_v9 = vadd.f32 %v7366_v30, %v9407_v3  ;;  %v8116_v4 = vpop.f32.mrf.mxu0  ;;  %v9411_v34 = vld [vmem:[#allocation3_spill] sm:$0xff] }
 0x3aa   :  { %v8125_v30 = vpop.permute.xlu2 %4137  ;;  %v8157_v3 = vpop.f32.mrf.mxu3 }
 0x3ab   :  { %v3029_v43 = vadd.f32 %v2965_v48, %v2300_v50  ;;  %4783 = vmatmul.msk.f32.gmra.mxu3 %vm593_vm3, %v8098_v27  ;;  %v8137_v33 = vmax.f32 %v966_v9, 0.0  ;;  %v3631_v50 = vmul.f32 %v9413_v53, %v3162_v42  ;;  %v9414_v48 = vld [vmem:[#allocation129_spill] sm:$0xff] }
 0x3ac   :  { %v4296_v44 = vmul.f32 %v9414_v48, %v3827_v37  ;;  %v9419_v37 = vld [vmem:[#allocation22_spill] sm:$0xff]  ;;  %v9420_v53 = vld [vmem:[#allocation81_spill] sm:$0xff] }
 0x3ad   :  { %v3694_v38 = vadd.f32 %v3630_v56, %v3029_v43  ;;  %9412 = vst [vmem:[#allocation182_spill] sm:$0xff] %v8137_v33  ;;  %v9415_v56 = vld [vmem:[#allocation134_spill] sm:$0xff] }
 0x3ae   :  { %v2496_v63 = vpop.f32.mrf.mxu1 }
 0x3af   :  { %v4359_v0 = vadd.f32 %v4295_v51, %v3694_v38  ;;  %v2497_v29 = vadd.f32 %v7350_v57, %v2496_v63  ;;  %4917 = vmatmul.msk.f32.gmra.mxu0 %vm593_vm3, %v8098_v27  ;;  %v8153_v51 = vld [vmem:[%s9059_s7] ss:$0 sm:$0xff]  ;;  %v8162_v63 = vld [vmem:[%s9061_s9 + $0x2] ss:$0 sm:$0xff]  ;;  %v8178_v55 = vpop.permute.xlu0 %4142 }
 0x3b0   :  { %4984 = vmatmul.msk.f32.gmra.mxu2 %vm593_vm3, %v8098_v27  ;;  %v969_v38 = vadd.f32 %v8153_v51, %v9416_v15  ;;  %v3165_v42 = vadd.f32 %v8162_v63, %v9417_v6  ;;  %9418 = vst [vmem:[#allocation144_spill] sm:$0xff] %v8178_v55  ;;  %v9424_v15 = vld [vmem:[#allocation71_spill] sm:$0xff]  ;;  %v9428_v55 = vld [vmem:[#allocation50_spill] sm:$0xff] }
 0x3b1   :  { %4424 = vst.msk [vmem:[%s9062_s13 + $0xa0] sm:$0xff] %vm4403_vm4, %v4359_v0  ;;  %v2966_v57 = vmul.f32 %v7979_v5, %v2497_v29  ;;  %4834 = vmatmul.msk.f32.gmra.mxu1 %vm593_vm3, %v9411_v34  ;;  %v2155_v5 = vadd.f32 %v8146_v36, %v9415_v56  ;;  %v8169_v29 = vld [vmem:[%s9061_s9 + $0x1] ss:$0 sm:$0xff]  ;;  %v8184_v34 = vld [vmem:[%s9061_s9 + $0x3] ss:$0 sm:$0xff]  ;;  %v3168_v27 = vadd.f32 %v8162_v63, %v9428_v55 }
 0x3b2   :  { %v8197_v56 = vmax.f32 %v969_v38, 0.0 }
 0x3b3   :  { %v3030_v52 = vadd.f32 %v2966_v57, %v2301_v10  ;;  %4784 = vmatmul.msk.f32.gmra.mxu3 %vm593_vm3, %v8137_v33  ;;  %v8174_v10 = vpop.permute.xlu1 %2752  ;;  %v2302_v57 = vmul.f32 %v2155_v5, %v9419_v37  ;;  %v8199_v5 = vpop.f32.mrf.mxu2  ;;  %v9425_v37 = vld [vmem:[#allocation135_spill] sm:$0xff] }
 0x3b4   :  { %9422 = vst [vmem:[#allocation49_spill] sm:$0xff] %v8197_v56 }
 0x3b5   :  { %v3695_v43 = vadd.f32 %v3631_v50, %v3030_v52  ;;  %v3830_v50 = vadd.f32 %v8184_v34, %v9420_v53  ;;  %v8188_v52 = vpop.f32.mrf.mxu0 }
 0x3b6   :  { %v2499_v9 = vpop.f32.mrf.mxu1 }
 0x3b7   :  { %v4360_v0 = vadd.f32 %v4296_v44, %v3695_v43  ;;  %v2500_v41 = vadd.f32 %v8169_v29, %v2499_v9  ;;  %4918 = vmatmul.msk.f32.gmra.mxu0 %vm593_vm3, %v8137_v33  ;;  %v9421_v44 = vld [vmem:[#allocation43_spill] sm:$0xff]  ;;  %v8201_v43 = vpop.permute.xlu2 %4152  ;;  %v3632_v9 = vmul.f32 %v9424_v15, %v3165_v42  ;;  %v4297_v53 = vmul.f32 %v9425_v37, %v3830_v50  ;;  %v9430_v15 = vld [vmem:[#allocation5_spill] sm:$0xff] }
 0x3b8   :  { %4985 = vmatmul.msk.f32.gmra.mxu2 %vm593_vm3, %v8137_v33  ;;  %9423 = vst [vmem:[#allocation155_spill] sm:$0xff] %v8201_v43  ;;  %v9427_v33 = vld [vmem:[#allocation147_spill] sm:$0xff] }
 0x3b9   :  { %4425 = vst.msk [vmem:[%s9062_s13 + $0xa8] sm:$0xff] %vm4403_vm4, %v4360_v0  ;;  %v2967_v48 = vmul.f32 %v8024_v14, %v2500_v41  ;;  %4835 = vmatmul.msk.f32.gmra.mxu1 %vm593_vm3, %v9421_v44  ;;  %v9426_v0 = vld [vmem:[#allocation139_spill] sm:$0xff]  ;;  %v972_v38 = vadd.f32 %v8153_v51, %v9427_v33  ;;  %v3833_v33 = vadd.f32 %v8184_v34, %v9430_v15 }
 0x3ba   :  { %v2158_v14 = vadd.f32 %v8146_v36, %v9426_v0  ;;  %v9429_v50 = vld [vmem:[#allocation23_spill] sm:$0xff]  ;;  %v9435_v0 = vld [vmem:[#allocation70_spill] sm:$0xff] }
 0x3bb   :  { %v3031_v6 = vadd.f32 %v2967_v48, %v2302_v57  ;;  %4785 = vmatmul.msk.f32.gmra.mxu3 %vm593_vm3, %v8197_v56  ;;  %v8216_v57 = vpop.f32.mrf.mxu3  ;;  %v8232_v37 = vmax.f32 %v972_v38, 0.0  ;;  %v2161_v38 = vadd.f32 %v8146_v36, %v7807_v28  ;;  %v9439_v28 = vld [vmem:[#allocation85_spill] sm:$0xff] }
 0x3bc   :  { %v2303_v48 = vmul.f32 %v2158_v14, %v9429_v50  ;;  %v3633_v14 = vmul.f32 %v9435_v0, %v3168_v27  ;;  %v8239_v50 = vpop.f32.mrf.mxu2 }
 0x3bd   :  { %v3696_v41 = vadd.f32 %v3632_v9, %v3031_v6  ;;  %v9431_v9 = vld [vmem:[#allocation46_spill] sm:$0xff]  ;;  %v8230_v6 = vpop.permute.xlu1 %4147  ;;  %9433 = vst [vmem:[#allocation157_spill] sm:$0xff] %v8232_v37 }
 0x3be   :  { %v2502_v44 = vpop.f32.mrf.mxu1  ;;  %9432 = vst [vmem:[#allocation95_spill] sm:$0xff] %v8230_v6 }
 0x3bf   :  { %v4361_v43 = vadd.f32 %v4297_v53, %v3696_v41  ;;  %v2503_v42 = vadd.f32 %v8169_v29, %v2502_v44  ;;  %4919 = vmatmul.msk.f32.gmra.mxu0 %vm593_vm3, %v8197_v56  ;;  %v8234_v53 = vpop.permute.xlu0 %4157  ;;  %v8237_v41 = vpop.f32.mrf.mxu0 }
 0x3c0   :  { %4986 = vmatmul.msk.f32.gmra.mxu2 %vm593_vm3, %v8197_v56  ;;  %9434 = vst [vmem:[#allocation9_spill] sm:$0xff] %v8234_v53 }
 0x3c1   :  { %4426 = vst.msk [vmem:[%s9062_s13 + $0xb0] sm:$0xff] %vm4403_vm4, %v4361_v43  ;;  %v2968_v55 = vmul.f32 %v8079_v18, %v2503_v42  ;;  %4836 = vmatmul.msk.f32.gmra.mxu1 %vm593_vm3, %v9431_v9  ;;  %v8243_v18 = vpop.permute.xlu2 %2757  ;;  %v9436_v43 = vld [vmem:[#allocation89_spill] sm:$0xff]  ;;  %v9437_v9 = vld [vmem:[#allocation154_spill] sm:$0xff] }
 0x3c2   :  { %v4298_v42 = vmul.f32 %v9436_v43, %v3833_v33  ;;  %v975_v53 = vadd.f32 %v8153_v51, %v9437_v9  ;;  %v9438_v33 = vld [vmem:[#allocation24_spill] sm:$0xff]  ;;  %v9442_v9 = vld [vmem:[#allocation73_spill] sm:$0xff] }
 0x3c3   :  { %v3032_v44 = vadd.f32 %v2968_v55, %v2303_v48  ;;  %4786 = vmatmul.msk.f32.gmra.mxu3 %vm593_vm3, %v8232_v37  ;;  %v3171_v48 = vadd.f32 %v8162_v63, %v7821_v54  ;;  %v2304_v43 = vmul.f32 %v2161_v38, %v9438_v33 }
 0x3c5   :  { %v3697_v15 = vadd.f32 %v3633_v14, %v3032_v44  ;;  %v3836_v14 = vadd.f32 %v8184_v34, %v9439_v28  ;;  %v9440_v44 = vld [vmem:[#allocation130_spill] sm:$0xff]  ;;  %v8272_v33 = vpop.permute.xlu1 %4162 }
 0x3c6   :  { %v2505_v27 = vpop.f32.mrf.mxu1  ;;  %9443 = vst [vmem:[#allocation188_spill] sm:$0xff] %v8272_v33 }
 0x3c7   :  { %v4362_v55 = vadd.f32 %v4298_v42, %v3697_v15  ;;  %v2506_v0 = vadd.f32 %v8169_v29, %v2505_v27  ;;  %4920 = vmatmul.msk.f32.gmra.mxu0 %vm593_vm3, %v8232_v37  ;;  %v8267_v42 = vmax.f32 %v975_v53, 0.0  ;;  %v8269_v15 = vpop.f32.mrf.mxu3  ;;  %v3634_v27 = vmul.f32 %v9442_v9, %v3171_v48  ;;  %v8276_v28 = vpop.permute.xlu0 %2762 }
 0x3c8   :  { %4987 = vmatmul.msk.f32.gmra.mxu2 %vm593_vm3, %v8232_v37  ;;  %v8285_v48 = vpop.f32.mrf.mxu2  ;;  %v3174_v9 = vadd.f32 %v8162_v63, %v7867_v35 }
 0x3c9   :  { %4427 = vst.msk [vmem:[%s9062_s13 + $0xb8] sm:$0xff] %vm4403_vm4, %v4362_v55  ;;  %v2969_v54 = vmul.f32 %v8112_v31, %v2506_v0  ;;  %4837 = vmatmul.msk.f32.gmra.mxu1 %vm593_vm3, %v9440_v44  ;;  %v9444_v55 = vld [vmem:[#allocation7_spill] sm:$0xff]  ;;  %v2164_v31 = vadd.f32 %v8146_v36, %v7850_v19  ;;  %v8281_v0 = vpop.f32.mrf.mxu0  ;;  %v9445_v44 = vld [vmem:[#allocation160_spill] sm:$0xff]  ;;  %v9447_v19 = vld [vmem:[#allocation25_spill] sm:$0xff] }
 0x3ca   :  { %9441 = vst [vmem:[#allocation158_spill] sm:$0xff] %v8267_v42  ;;  %v4299_v37 = vmul.f32 %v9444_v55, %v3836_v14  ;;  %v978_v56 = vadd.f32 %v8153_v51, %v9445_v44  ;;  %v9450_v44 = vld [vmem:[#allocation76_spill] sm:$0xff] }
 0x3cb   :  { %v3033_v38 = vadd.f32 %v2969_v54, %v2304_v43  ;;  %4787 = vmatmul.msk.f32.gmra.mxu3 %vm593_vm3, %v8267_v42  ;;  %v8287_v54 = vpop.permute.xlu2 %4167 }
 0x3cc   :  { %9446 = vst [vmem:[#allocation150_spill] sm:$0xff] %v8287_v54 }
 0x3cd   :  { %v3698_v53 = vadd.f32 %v3634_v27, %v3033_v38  ;;  %v2305_v27 = vmul.f32 %v2164_v31, %v9447_v19  ;;  %v9448_v38 = vld [vmem:[#allocation47_spill] sm:$0xff]  ;;  %v9451_v31 = vld [vmem:[#allocation148_spill] sm:$0xff] }
 0x3ce   :  { %v2508_v43 = vpop.f32.mrf.mxu1  ;;  %v3839_v55 = vadd.f32 %v8184_v34, %v9448_v38 }
 0x3cf   :  { %v4363_v33 = vadd.f32 %v4299_v37, %v3698_v53  ;;  %v2509_v14 = vadd.f32 %v8169_v29, %v2508_v43  ;;  %4921 = vmatmul.msk.f32.gmra.mxu0 %vm593_vm3, %v8267_v42  ;;  %v9449_v37 = vld [vmem:[#allocation44_spill] sm:$0xff]  ;;  %v8306_v53 = vmax.f32 %v978_v56, 0.0  ;;  %v3635_v43 = vmul.f32 %v9450_v44, %v3174_v9  ;;  %v8318_v6 = vpop.permute.xlu0 %4172 }
 0x3d0   :  { %4988 = vmatmul.msk.f32.gmra.mxu2 %vm593_vm3, %v8267_v42  ;;  %v8309_v42 = vpop.f32.mrf.mxu3  ;;  %v4300_v19 = vmul.f32 %v9451_v31, %v3839_v55  ;;  %9453 = vst [vmem:[#allocation51_spill] sm:$0xff] %v8318_v6  ;;  %v3177_v9 = vadd.f32 %v8162_v63, %v7906_v21  ;;  %v9455_v55 = vld [vmem:[#allocation26_spill] sm:$0xff]  ;;  %v9456_v31 = vld [vmem:[#allocation173_spill] sm:$0xff] }
 0x3d1   :  { %4428 = vst.msk [vmem:[%s9062_s13 + $0xc0] sm:$0xff] %vm4403_vm4, %v4363_v33  ;;  %v2970_v35 = vmul.f32 %v8174_v10, %v2509_v14  ;;  %4838 = vmatmul.msk.f32.gmra.mxu1 %vm593_vm3, %v9449_v37  ;;  %v2167_v33 = vadd.f32 %v8146_v36, %v7898_v17  ;;  %v2768_v10 = vpop.permute.xlu1 %2767  ;;  %v9452_v14 = vld [vmem:[#allocation166_spill] sm:$0xff]  ;;  %v8327_v17 = vpop.f32.mrf.mxu2  ;;  %v3842_v21 = vadd.f32 %v8184_v34, %v9456_v31 }
 0x3d2   :  { %v981_v37 = vadd.f32 %v8153_v51, %v9452_v14 }
 0x3d3   :  { %v3034_v54 = vadd.f32 %v2970_v35, %v2305_v27  ;;  %4788 = vmatmul.msk.f32.gmra.mxu3 %vm593_vm3, %v8306_v53  ;;  %v8322_v27 = vpop.f32.mrf.mxu0 }
 0x3d4   :  { %v8343_v14 = vmax.f32 %v981_v37, 0.0  ;;  %v3180_v37 = vadd.f32 %v8162_v63, %v7941_v47 }
 0x3d5   :  { %v3699_v38 = vadd.f32 %v3635_v43, %v3034_v54  ;;  %v8331_v54 = vpop.permute.xlu2 %4182  ;;  %v2306_v43 = vmul.f32 %v2167_v33, %v9455_v55  ;;  %v4301_v33 = vmul.f32 %v7832_v60, %v3842_v21  ;;  %v2170_v55 = vadd.f32 %v8146_v36, %v7930_v45 }
 0x3d6   :  { %v2511_v56 = vpop.f32.mrf.mxu1  ;;  %9454 = vst [vmem:[#allocation163_spill] sm:$0xff] %v8331_v54 }
 0x3d7   :  { %v4364_v35 = vadd.f32 %v4300_v19, %v3699_v38  ;;  %v2512_v44 = vadd.f32 %v8169_v29, %v2511_v56  ;;  %4922 = vmatmul.msk.f32.gmra.mxu0 %vm593_vm3, %v8306_v53  ;;  %v9457_v38 = vld [vmem:[#allocation6_spill] sm:$0xff]  ;;  %9458 = vst [vmem:[#allocation98_spill] sm:$0xff] %v8343_v14  ;;  %v8364_v45 = vpop.permute.xlu0 %4187 }
 0x3d8   :  { %4989 = vmatmul.msk.f32.gmra.mxu2 %vm593_vm3, %v8306_v53  ;;  %v9459_v56 = vld [vmem:[#allocation74_spill] sm:$0xff]  ;;  %9462 = vst [vmem:[#allocation10_spill] sm:$0xff] %v8364_v45  ;;  %v9466_v45 = vld [vmem:[#allocation177_spill] sm:$0xff] }
 0x3d9   :  { %4429 = vst.msk [vmem:[%s9062_s13 + $0xc8] sm:$0xff] %vm4403_vm4, %v4364_v35  ;;  %v2971_v19 = vmul.f32 %v8243_v18, %v2512_v44  ;;  %4839 = vmatmul.msk.f32.gmra.mxu1 %vm593_vm3, %v9457_v38  ;;  %v3636_v6 = vmul.f32 %v9459_v56, %v3177_v9  ;;  %v9460_v35 = vld [vmem:[#allocation171_spill] sm:$0xff]  ;;  %v8353_v44 = vpop.f32.mrf.mxu3  ;;  %v8360_v60 = vpop.permute.xlu1 %4177 }
 0x3da   :  { %v984_v18 = vadd.f32 %v8153_v51, %v9460_v35  ;;  %9461 = vst [vmem:[#allocation165_spill] sm:$0xff] %v8360_v60  ;;  %v9465_v35 = vld [vmem:[#allocation77_spill] sm:$0xff] }
 0x3db   :  { %v3035_v54 = vadd.f32 %v2971_v19, %v2306_v43  ;;  %4789 = vmatmul.msk.f32.gmra.mxu3 %vm593_vm3, %v8343_v14  ;;  %v8367_v21 = vpop.f32.mrf.mxu0  ;;  %v9464_v19 = vld [vmem:[#allocation142_spill] sm:$0xff] }
 0x3dc   :  { %v8376_v56 = vmax.f32 %v984_v18, 0.0  ;;  %v3183_v18 = vadd.f32 %v8162_v63, %v7984_v2 }
 0x3dd   :  { %v3700_v31 = vadd.f32 %v3636_v6, %v3035_v54  ;;  %v9463_v6 = vld [vmem:[#allocation27_spill] sm:$0xff] }
 0x3de   :  { %v2514_v38 = vpop.f32.mrf.mxu1  ;;  %v2307_v54 = vmul.f32 %v2170_v55, %v9463_v6  ;;  %v2173_v6 = vadd.f32 %v8146_v36, %v7970_v62  ;;  %v9468_v62 = vld [vmem:[#allocation28_spill] sm:$0xff] }
 0x3df   :  { %v4365_v9 = vadd.f32 %v4301_v33, %v3700_v31  ;;  %v2515_v43 = vadd.f32 %v8169_v29, %v2514_v38  ;;  %4923 = vmatmul.msk.f32.gmra.mxu0 %vm593_vm3, %v8343_v14  ;;  %v8378_v33 = vpop.f32.mrf.mxu2  ;;  %v2773_v31 = vpop.permute.xlu2 %2772  ;;  %v3637_v38 = vmul.f32 %v9465_v35, %v3180_v37 }
 0x3e0   :  { %4990 = vmatmul.msk.f32.gmra.mxu2 %vm593_vm3, %v8343_v14 }
 0x3e1   :  { %4430 = vst.msk [vmem:[%s9062_s13 + $0xd0] sm:$0xff] %vm4403_vm4, %v4365_v9  ;;  %v2972_v47 = vmul.f32 %v8276_v28, %v2515_v43  ;;  %4840 = vmatmul.msk.f32.gmra.mxu1 %vm593_vm3, %v9464_v19  ;;  %v987_v28 = vadd.f32 %v8153_v51, %v9466_v45  ;;  %v9467_v19 = vld [vmem:[#allocation92_spill] sm:$0xff]  ;;  %v8393_v37 = vpop.f32.mrf.mxu3  ;;  %v9469_v45 = vld [vmem:[#allocation194_spill] sm:$0xff] }
 0x3e3   :  { %v3036_v55 = vadd.f32 %v2972_v47, %v2307_v54  ;;  %4790 = vmatmul.msk.f32.gmra.mxu3 %vm593_vm3, %v8376_v56  ;;  %v2308_v54 = vmul.f32 %v2173_v6, %v9468_v62  ;;  %v8404_v47 = vpop.permute.xlu1 %4192  ;;  %v8406_v35 = vmax.f32 %v987_v28, 0.0  ;;  %v9474_v62 = vld [vmem:[#allocation181_spill] sm:$0xff] }
 0x3e4   :  { %9470 = vst [vmem:[#allocation164_spill] sm:$0xff] %v8404_v47  ;;  %v990_v28 = vadd.f32 %v8153_v51, %v9474_v62  ;;  %v9478_v62 = vld [vmem:[#allocation78_spill] sm:$0xff] }
 0x3e5   :  { %v3701_v9 = vadd.f32 %v3637_v38, %v3036_v55  ;;  %9471 = vst [vmem:[#allocation193_spill] sm:$0xff] %v8406_v35  ;;  %v2778_v38 = vpop.permute.xlu0 %2777  ;;  %v9472_v55 = vld [vmem:[#allocation80_spill] sm:$0xff] }
 0x3e6   :  { %v2517_v43 = vpop.f32.mrf.mxu1 }
 0x3e7   :  { %v4366_v60 = vadd.f32 %v9467_v19, %v3701_v9  ;;  %v2518_v14 = vadd.f32 %v8169_v29, %v2517_v43  ;;  %4924 = vmatmul.msk.f32.gmra.mxu0 %vm593_vm3, %v8376_v56  ;;  %v3638_v9 = vmul.f32 %v9472_v55, %v3183_v18  ;;  %v8409_v43 = vpop.f32.mrf.mxu0  ;;  %v8411_v6 = vpop.f32.mrf.mxu2  ;;  %v3186_v18 = vadd.f32 %v8162_v63, %v8031_v61  ;;  %v9475_v55 = vld [vmem:[#allocation8_spill] sm:$0xff] }
 0x3e8   :  { %4991 = vmatmul.msk.f32.gmra.mxu2 %vm593_vm3, %v8376_v56  ;;  %v8436_v61 = vmax.f32 %v990_v28, 0.0 }
 0x3e9   :  { %4431 = vst.msk [vmem:[%s9062_s13 + $0xd8] sm:$0xff] %vm4403_vm4, %v4366_v60  ;;  %v2973_v2 = vmul.f32 %v2768_v10, %v2518_v14  ;;  %4841 = vmatmul.msk.f32.gmra.mxu1 %vm593_vm3, %v9469_v45  ;;  %v8415_v60 = vpop.permute.xlu2 %4197  ;;  %v2176_v10 = vadd.f32 %v8146_v36, %v8010_v22 }
 0x3ea   :  { %9473 = vst [vmem:[#allocation156_spill] sm:$0xff] %v8415_v60  ;;  %v9476_v60 = vld [vmem:[#allocation29_spill] sm:$0xff] }
 0x3eb   :  { %v3037_v19 = vadd.f32 %v2973_v2, %v2308_v54  ;;  %4791 = vmatmul.msk.f32.gmra.mxu3 %vm593_vm3, %v8406_v35  ;;  %v2309_v22 = vmul.f32 %v2176_v10, %v9476_v60  ;;  %v2783_v47 = vpop.permute.xlu1 %2782  ;;  %v2179_v10 = vadd.f32 %v8146_v36, %v8061_v7  ;;  %v9481_v7 = vld [vmem:[#allocation30_spill] sm:$0xff] }
 0x3ed   :  { %v3702_v14 = vadd.f32 %v3638_v9, %v3037_v19  ;;  %v9477_v19 = vld [vmem:[#allocation149_spill] sm:$0xff]  ;;  %v8443_v60 = vpop.permute.xlu0 %4202 }
 0x3ee   :  { %v2520_v45 = vpop.f32.mrf.mxu1 }
 0x3ef   :  { %v4367_v54 = vadd.f32 %v9475_v55, %v3702_v14  ;;  %v2521_v2 = vadd.f32 %v8169_v29, %v2520_v45  ;;  %4925 = vmatmul.msk.f32.gmra.mxu0 %vm593_vm3, %v8406_v35  ;;  %v8438_v14 = vpop.f32.mrf.mxu3  ;;  %v3639_v45 = vmul.f32 %v9478_v62, %v3186_v18 }
 0x3f0   :  { %4992 = vmatmul.msk.f32.gmra.mxu2 %vm593_vm3, %v8406_v35 }
 0x3f1   :  { %4432 = vst.msk [vmem:[%s9062_s13 + $0xe0] sm:$0xff] %vm4403_vm4, %v4367_v54  ;;  %v2974_v9 = vmul.f32 %v2773_v31, %v2521_v2  ;;  %4842 = vmatmul.msk.f32.gmra.mxu1 %vm593_vm3, %v9477_v19  ;;  %v8447_v31 = vpop.f32.mrf.mxu0  ;;  %v9479_v2 = vld [vmem:[#allocation187_spill] sm:$0xff]  ;;  %v8451_v19 = vpop.f32.mrf.mxu2 }
 0x3f2   :  { %v993_v28 = vadd.f32 %v8153_v51, %v9479_v2  ;;  %v8453_v18 = vpop.permute.xlu2 %4212  ;;  %v2310_v51 = vmul.f32 %v2179_v10, %v9481_v7  ;;  %v2182_v10 = vadd.f32 %v8146_v36, %v8101_v11 }
 0x3f3   :  { %v3038_v55 = vadd.f32 %v2974_v9, %v2309_v22  ;;  %4792 = vmatmul.msk.f32.gmra.mxu3 %vm593_vm3, %v8436_v61  ;;  %9480 = vst [vmem:[#allocation54_spill] sm:$0xff] %v8453_v18  ;;  %v3189_v22 = vadd.f32 %v8162_v63, %v8073_v8 }
 0x3f5   :  { %v3703_v54 = vadd.f32 %v3639_v45, %v3038_v55  ;;  %v3854_v45 = vadd.f32 %v8184_v34, %v8077_v16 }
 0x3f6   :  { %v2523_v35 = vpop.f32.mrf.mxu1 }
 0x3f7   :  { %v4368_v9 = vadd.f32 %v7877_v1, %v3703_v54  ;;  %v2524_v62 = vadd.f32 %v8169_v29, %v2523_v35  ;;  %4926 = vmatmul.msk.f32.gmra.mxu0 %vm593_vm3, %v8436_v61  ;;  %v8472_v1 = vmax.f32 %v993_v28, 0.0  ;;  %v9482_v35 = vld [vmem:[#allocation82_spill] sm:$0xff]  ;;  %v8475_v2 = vpop.f32.mrf.mxu3  ;;  %v4305_v16 = vmul.f32 %v7995_v20, %v3854_v45  ;;  %v9484_v45 = vld [vmem:[#allocation31_spill] sm:$0xff] }
 0x3f8   :  { %4993 = vmatmul.msk.f32.gmra.mxu2 %vm593_vm3, %v8436_v61  ;;  %v3640_v55 = vmul.f32 %v9482_v35, %v3189_v22  ;;  %v3192_v28 = vadd.f32 %v8162_v63, %v8116_v4  ;;  %v3857_v35 = vadd.f32 %v8184_v34, %v8121_v32  ;;  %v3195_v32 = vadd.f32 %v8162_v63, %v8188_v52  ;;  %v9487_v52 = vld [vmem:[#allocation84_spill] sm:$0xff] }
 0x3f9   :  { %4433 = vst.msk [vmem:[%s9062_s13 + $0xe8] sm:$0xff] %vm4403_vm4, %v4368_v9  ;;  %v2975_v8 = vmul.f32 %v2778_v38, %v2524_v62  ;;  %4843 = vmatmul.msk.f32.gmra.mxu1 %vm593_vm3, %v7864_v49  ;;  %v8482_v38 = vpop.permute.xlu1 %4207  ;;  %v8484_v49 = vpop.permute.xlu0 %4217 }
 0x3fa   :  { %9483 = vst [vmem:[#allocation170_spill] sm:$0xff] %v8484_v49  ;;  %v8488_v22 = vpop.f32.mrf.mxu0  ;;  %v8493_v20 = vpop.f32.mrf.mxu2 }
 0x3fb   :  { %v3039_v54 = vadd.f32 %v2975_v8, %v2310_v51  ;;  %4793 = vmatmul.msk.f32.gmra.mxu3 %vm593_vm3, %v8472_v1  ;;  %v2788_v11 = vpop.permute.xlu2 %2787  ;;  %v2311_v8 = vmul.f32 %v2182_v10, %v9484_v45  ;;  %v2185_v10 = vadd.f32 %v8146_v36, %v8157_v3 }
 0x3fd   :  { %v3704_v9 = vadd.f32 %v3640_v55, %v3039_v54  ;;  %v9485_v55 = vld [vmem:[#allocation86_spill] sm:$0xff] }
 0x3fe   :  { %v2526_v62 = vpop.f32.mrf.mxu1  ;;  %v3641_v54 = vmul.f32 %v9485_v55, %v3192_v28  ;;  %v3860_v28 = vadd.f32 %v8184_v34, %v8199_v5  ;;  %v2188_v55 = vadd.f32 %v8146_v36, %v8216_v57 }
 0x3ff   :  { %v4369_v7 = vadd.f32 %v4305_v16, %v3704_v9  ;;  %v2527_v51 = vadd.f32 %v8169_v29, %v2526_v62  ;;  %4927 = vmatmul.msk.f32.gmra.mxu0 %vm593_vm3, %v8472_v1  ;;  %v4306_v9 = vmul.f32 %v8028_v40, %v3857_v35 }
 0x400   :  { %4994 = vmatmul.msk.f32.gmra.mxu2 %vm593_vm3, %v8472_v1 }
 0x401   :  { %4434 = vst.msk [vmem:[%s9062_s13 + $0xf0] sm:$0xff] %vm4403_vm4, %v4369_v7  ;;  %v2976_v4 = vmul.f32 %v2783_v47, %v2527_v51  ;;  %4844 = vmatmul.msk.f32.gmra.mxu1 %vm593_vm3, %v7896_v39  ;;  %v8513_v47 = vpop.permute.xlu1 %4222  ;;  %v2793_v51 = vpop.permute.xlu0 %2792  ;;  %v9486_v39 = vld [vmem:[#allocation32_spill] sm:$0xff] }
 0x402   :  { %v2312_v18 = vmul.f32 %v2185_v10, %v9486_v39  ;;  %v3863_v10 = vadd.f32 %v8184_v34, %v8239_v50  ;;  %v2191_v39 = vadd.f32 %v8146_v36, %v8269_v15 }
 0x403   :  { %v3040_v16 = vadd.f32 %v2976_v4, %v2311_v8  ;;  %v8524_v3 = vpop.permute.xlu2 %4227  ;;  %v3642_v8 = vmul.f32 %v9487_v52, %v3195_v32  ;;  %v4307_v4 = vmul.f32 %v8064_v26, %v3860_v28  ;;  %v8545_v32 = vpop.f32.mrf.mxu3 }
 0x404   :  { %v4308_v50 = vmul.f32 %v8035_v46, %v3863_v10  ;;  %v3866_v46 = vadd.f32 %v8184_v34, %v8285_v48  ;;  %v2194_v48 = vadd.f32 %v8146_v36, %v8309_v42 }
 0x405   :  { %v3705_v62 = vadd.f32 %v3641_v54, %v3040_v16  ;;  %v3198_v16 = vadd.f32 %v8162_v63, %v8237_v41  ;;  %v9489_v41 = vld [vmem:[#allocation87_spill] sm:$0xff] }
 0x406   :  { %v2529_v45 = vpop.f32.mrf.mxu1 }
 0x407   :  { %v4370_v49 = vadd.f32 %v4306_v9, %v3705_v62  ;;  %v2530_v7 = vadd.f32 %v8169_v29, %v2529_v45  ;;  %v9488_v9 = vld [vmem:[#allocation33_spill] sm:$0xff]  ;;  %v3643_v62 = vmul.f32 %v9489_v41, %v3198_v16 }
 0x409   :  { %4435 = vst.msk [vmem:[%s9062_s13 + $0xf8] sm:$0xff] %vm4403_vm4, %v4370_v49  ;;  %v2977_v40 = vmul.f32 %v2788_v11, %v2530_v7  ;;  %4845 = vmatmul.msk.f32.gmra.mxu1 %vm593_vm3, %v7927_v58  ;;  %v2313_v58 = vmul.f32 %v2188_v55, %v9488_v9  ;;  %v2798_v57 = vpop.permute.xlu1 %2797 }
 0x40b   :  { %v3041_v35 = vadd.f32 %v2977_v40, %v2312_v18  ;;  %v8542_v18 = vpop.permute.xlu0 %4232  ;;  %v8547_v7 = vpop.permute.xlu2 %4242 }
 0x40d   :  { %v3706_v5 = vadd.f32 %v3642_v8, %v3041_v35  ;;  %v8557_v35 = vpop.f32.mrf.mxu2 }
 0x40e   :  { %v2532_v54 = vpop.f32.mrf.mxu1 }
 0x40f   :  { %v4371_v49 = vadd.f32 %v4307_v4, %v3706_v5  ;;  %v2533_v11 = vadd.f32 %v8169_v29, %v2532_v54  ;;  %v9490_v4 = vld [vmem:[#allocation34_spill] sm:$0xff] }
 0x410   :  { %v2314_v55 = vmul.f32 %v2191_v39, %v9490_v4  ;;  %v9493_v39 = vld [vmem:[#allocation93_spill] sm:$0xff] }
 0x411   :  { %4436 = vst.msk [vmem:[%s9062_s13 + $0x100] sm:$0xff] %vm4403_vm4, %v4371_v49  ;;  %v2978_v26 = vmul.f32 %v2793_v51, %v2533_v11  ;;  %4846 = vmatmul.msk.f32.gmra.mxu1 %vm593_vm3, %v7960_v12  ;;  %v8552_v51 = vpop.f32.mrf.mxu0  ;;  %v3201_v12 = vadd.f32 %v8162_v63, %v8281_v0  ;;  %v9491_v0 = vld [vmem:[#allocation90_spill] sm:$0xff]  ;;  %v8569_v16 = vpop.permute.xlu1 %4237  ;;  %v4309_v11 = vmul.f32 %v8068_v13, %v3866_v46 }
 0x412   :  { %v3869_v13 = vadd.f32 %v8184_v34, %v8327_v17 }
 0x413   :  { %v3042_v45 = vadd.f32 %v2978_v26, %v2313_v58  ;;  %v3644_v5 = vmul.f32 %v9491_v0, %v3201_v12  ;;  %v8571_v49 = vpop.permute.xlu0 %4247  ;;  %v8576_v58 = vpop.f32.mrf.mxu3  ;;  %v3204_v26 = vadd.f32 %v8162_v63, %v8322_v27 }
 0x414   :  { %v2803_v41 = vpop.permute.xlu2 %2802  ;;  %v4310_v12 = vmul.f32 %v8108_v23, %v3869_v13  ;;  %v3872_v23 = vadd.f32 %v8184_v34, %v8378_v33  ;;  %v2200_v33 = vadd.f32 %v8146_v36, %v8393_v37  ;;  %v9497_v37 = vld [vmem:[#allocation152_spill] sm:$0xff] }
 0x415   :  { %v3707_v28 = vadd.f32 %v3643_v62, %v3042_v45  ;;  %v9492_v45 = vld [vmem:[#allocation35_spill] sm:$0xff]  ;;  %v8592_v27 = vpop.f32.mrf.mxu2 }
 0x416   :  { %v2535_v40 = vpop.f32.mrf.mxu1 }
 0x417   :  { %v4372_v52 = vadd.f32 %v4308_v50, %v3707_v28  ;;  %v2536_v8 = vadd.f32 %v8169_v29, %v2535_v40  ;;  %v2315_v50 = vmul.f32 %v2194_v48, %v9492_v45  ;;  %v3645_v28 = vmul.f32 %v9493_v39, %v3204_v26 }
 0x418   :  { %v4311_v26 = vmul.f32 %v8125_v30, %v3872_v23  ;;  %v3210_v45 = vadd.f32 %v8162_v63, %v8409_v43  ;;  %v9498_v43 = vld [vmem:[#allocation99_spill] sm:$0xff] }
 0x419   :  { %4437 = vst.msk [vmem:[%s9062_s13 + $0x108] sm:$0xff] %vm4403_vm4, %v4372_v52  ;;  %v2979_v15 = vmul.f32 %v2798_v57, %v2536_v8  ;;  %4847 = vmatmul.msk.f32.gmra.mxu1 %vm593_vm3, %v7993_v25  ;;  %v8581_v62 = vpop.f32.mrf.mxu0  ;;  %v2197_v52 = vadd.f32 %v8146_v36, %v8353_v44  ;;  %v8598_v8 = vpop.permute.xlu1 %4252 }
 0x41b   :  { %v3043_v54 = vadd.f32 %v2979_v15, %v2314_v55  ;;  %v3207_v55 = vadd.f32 %v8162_v63, %v8367_v21  ;;  %v2808_v15 = vpop.permute.xlu0 %2807  ;;  %v8603_v0 = vpop.f32.mrf.mxu3 }
 0x41d   :  { %v3708_v9 = vadd.f32 %v3644_v5, %v3043_v54  ;;  %v9494_v5 = vld [vmem:[#allocation36_spill] sm:$0xff] }
 0x41e   :  { %v2538_v10 = vpop.f32.mrf.mxu1  ;;  %v2316_v54 = vmul.f32 %v2197_v52, %v9494_v5  ;;  %v3213_v5 = vadd.f32 %v8162_v63, %v8447_v31 }
 0x41f   :  { %v4373_v25 = vadd.f32 %v4309_v11, %v3708_v9  ;;  %v2539_v57 = vadd.f32 %v8169_v29, %v2538_v10  ;;  %v9495_v11 = vld [vmem:[#allocation96_spill] sm:$0xff]  ;;  %v8617_v10 = vpop.f32.mrf.mxu2 }
 0x420   :  { %v3646_v48 = vmul.f32 %v9495_v11, %v3207_v55  ;;  %v9500_v11 = vld [vmem:[#allocation38_spill] sm:$0xff] }
 0x421   :  { %4438 = vst.msk [vmem:[%s9062_s13 + $0x110] sm:$0xff] %vm4403_vm4, %v4373_v25  ;;  %v2980_v42 = vmul.f32 %v2803_v41, %v2539_v57  ;;  %4848 = vmatmul.msk.f32.gmra.mxu1 %vm593_vm3, %v8026_v59  ;;  %v8614_v21 = vpop.f32.mrf.mxu0  ;;  %v8622_v57 = vpop.permute.xlu2 %4257 }
 0x422   :  { %v2813_v13 = vpop.permute.xlu1 %2812 }
 0x423   :  { %v3044_v40 = vadd.f32 %v2980_v42, %v2315_v50  ;;  %v9496_v42 = vld [vmem:[#allocation37_spill] sm:$0xff] }
 0x424   :  { %v2317_v39 = vmul.f32 %v2200_v33, %v9496_v42  ;;  %v9502_v33 = vld [vmem:[#allocation102_spill] sm:$0xff] }
 0x425   :  { %v3709_v17 = vadd.f32 %v3645_v28, %v3044_v40  ;;  %v3875_v28 = vadd.f32 %v8184_v34, %v8411_v6  ;;  %v8636_v40 = vpop.f32.mrf.mxu3  ;;  %v2203_v6 = vadd.f32 %v8146_v36, %v8438_v14  ;;  %v3648_v31 = vmul.f32 %v9502_v33, %v3213_v5  ;;  %v9508_v33 = vld [vmem:[#allocation40_spill] sm:$0xff] }
 0x426   :  { %v2541_v4 = vpop.f32.mrf.mxu1 }
 0x427   :  { %v4374_v46 = vadd.f32 %v4310_v12, %v3709_v17  ;;  %v2542_v59 = vadd.f32 %v8169_v29, %v2541_v4  ;;  %v3647_v12 = vmul.f32 %v9498_v43, %v3210_v45  ;;  %v9499_v4 = vld [vmem:[#allocation144_spill] sm:$0xff]  ;;  %v9503_v45 = vld [vmem:[#allocation95_spill] sm:$0xff] }
 0x428   :  { %v4312_v55 = vmul.f32 %v9499_v4, %v3875_v28  ;;  %v3881_v4 = vadd.f32 %v8184_v34, %v8493_v20 }
 0x429   :  { %4439 = vst.msk [vmem:[%s9062_s13 + $0x118] sm:$0xff] %vm4403_vm4, %v4374_v46  ;;  %v2981_v44 = vmul.f32 %v2808_v15, %v2542_v59  ;;  %4849 = vmatmul.msk.f32.gmra.mxu1 %vm593_vm3, %v8059_v24  ;;  %v8639_v17 = vpop.f32.mrf.mxu0  ;;  %v8644_v59 = vpop.f32.mrf.mxu2 }
 0x42b   :  { %v3045_v9 = vadd.f32 %v2981_v44, %v2316_v54  ;;  %v2818_v44 = vpop.permute.xlu2 %2817 }
 0x42d   :  { %v3710_v25 = vadd.f32 %v3646_v48, %v3045_v9  ;;  %v2318_v48 = vmul.f32 %v2203_v6, %v9500_v11  ;;  %v3878_v9 = vadd.f32 %v8184_v34, %v8451_v19  ;;  %v3219_v11 = vadd.f32 %v8162_v63, %v8552_v51 }
 0x42e   :  { %v2544_v41 = vpop.f32.mrf.mxu1 }
 0x42f   :  { %v4375_v24 = vadd.f32 %v4311_v26, %v3710_v25  ;;  %v2545_v50 = vadd.f32 %v8169_v29, %v2544_v41  ;;  %v9501_v26 = vld [vmem:[#allocation182_spill] sm:$0xff]  ;;  %v8659_v41 = vpop.f32.mrf.mxu3 }
 0x431   :  { %4440 = vst.msk [vmem:[%s9062_s13 + $0x120] sm:$0xff] %vm4403_vm4, %v4375_v24  ;;  %v2982_v30 = vmul.f32 %v2813_v13, %v2545_v50  ;;  %4850 = vmatmul.msk.f32.gmra.mxu1 %vm593_vm3, %v9497_v37  ;;  %v4313_v24 = vmul.f32 %v9503_v45, %v3878_v9  ;;  %v2206_v50 = vadd.f32 %v8146_v36, %v8475_v2  ;;  %v8664_v13 = vpop.f32.mrf.mxu0  ;;  %v2823_v37 = vpop.permute.xlu0 %2822  ;;  %v9509_v45 = vld [vmem:[#allocation157_spill] sm:$0xff] }
 0x432   :  { %v8669_v43 = vpop.f32.mrf.mxu2 }
 0x433   :  { %v3046_v52 = vadd.f32 %v2982_v30, %v2317_v39  ;;  %v3216_v39 = vadd.f32 %v8162_v63, %v8488_v22  ;;  %v9506_v22 = vld [vmem:[#allocation105_spill] sm:$0xff] }
 0x435   :  { %v3711_v46 = vadd.f32 %v3647_v12, %v3046_v52  ;;  %v9504_v12 = vld [vmem:[#allocation39_spill] sm:$0xff]  ;;  %v3649_v6 = vmul.f32 %v9506_v22, %v3216_v39 }
 0x436   :  { %v2547_v15 = vpop.f32.mrf.mxu1  ;;  %v2319_v52 = vmul.f32 %v2206_v50, %v9504_v12 }
 0x437   :  { %v4376_v54 = vadd.f32 %v4312_v55, %v3711_v46  ;;  %v2548_v23 = vadd.f32 %v8169_v29, %v2547_v15  ;;  %v9505_v55 = vld [vmem:[#allocation49_spill] sm:$0xff]  ;;  %v9507_v15 = vld [vmem:[#allocation155_spill] sm:$0xff] }
 0x438   :  { %v4314_v5 = vmul.f32 %v9507_v15, %v3881_v4  ;;  %v2833_v4 = vpop.permute.xlu2 %2832  ;;  %v9514_v15 = vld [vmem:[#allocation111_spill] sm:$0xff] }
 0x439   :  { %4441 = vst.msk [vmem:[%s9062_s13 + $0x128] sm:$0xff] %vm4403_vm4, %v4376_v54  ;;  %v2983_v14 = vmul.f32 %v2818_v44, %v2548_v23  ;;  %4851 = vmatmul.msk.f32.gmra.mxu1 %vm593_vm3, %v9501_v26  ;;  %v2209_v54 = vadd.f32 %v8146_v36, %v8545_v32  ;;  %v8684_v44 = vpop.f32.mrf.mxu3  ;;  %v8689_v26 = vpop.f32.mrf.mxu0 }
 0x43a   :  { %v8700_v51 = vpop.f32.mrf.mxu2 }
 0x43b   :  { %v3047_v25 = vadd.f32 %v2983_v14, %v2318_v48  ;;  %v2828_v14 = vpop.permute.xlu1 %2827 }
 0x43d   :  { %v3712_v19 = vadd.f32 %v3648_v31, %v3047_v25  ;;  %v2320_v31 = vmul.f32 %v2209_v54, %v9508_v33  ;;  %v3884_v25 = vadd.f32 %v8184_v34, %v8557_v35 }
 0x43e   :  { %v2550_v42 = vpop.f32.mrf.mxu1 }
 0x43f   :  { %v4377_v28 = vadd.f32 %v4313_v24, %v3712_v19  ;;  %v2551_v30 = vadd.f32 %v8169_v29, %v2550_v42  ;;  %v9510_v24 = vld [vmem:[#allocation108_spill] sm:$0xff]  ;;  %v9511_v42 = vld [vmem:[#allocation9_spill] sm:$0xff] }
 0x440   :  { %v3650_v50 = vmul.f32 %v9510_v24, %v3219_v11  ;;  %v4315_v39 = vmul.f32 %v9511_v42, %v3884_v25  ;;  %v2838_v25 = vpop.permute.xlu0 %2837  ;;  %v3890_v24 = vadd.f32 %v8184_v34, %v8617_v10  ;;  %v2218_v10 = vadd.f32 %v8146_v36, %v8636_v40 }
 0x441   :  { %4442 = vst.msk [vmem:[%s9062_s13 + $0x130] sm:$0xff] %vm4403_vm4, %v4377_v28  ;;  %v2984_v2 = vmul.f32 %v2823_v37, %v2551_v30  ;;  %4852 = vmatmul.msk.f32.gmra.mxu1 %vm593_vm3, %v9505_v55  ;;  %v2212_v28 = vadd.f32 %v8146_v36, %v8576_v58  ;;  %v3222_v37 = vadd.f32 %v8162_v63, %v8581_v62  ;;  %v9512_v55 = vld [vmem:[#allocation41_spill] sm:$0xff]  ;;  %v8720_v62 = vpop.f32.mrf.mxu0 }
 0x443   :  { %v3048_v46 = vadd.f32 %v2984_v2, %v2319_v52  ;;  %v8709_v2 = vpop.f32.mrf.mxu3  ;;  %v2321_v22 = vmul.f32 %v2212_v28, %v9512_v55  ;;  %v9518_v28 = vld [vmem:[#allocation150_spill] sm:$0xff]  ;;  %v2843_v55 = vpop.permute.xlu1 %2842 }
 0x445   :  { %v3713_v23 = vadd.f32 %v3649_v6, %v3048_v46  ;;  %v3887_v6 = vadd.f32 %v8184_v34, %v8592_v27  ;;  %v9513_v46 = vld [vmem:[#allocation158_spill] sm:$0xff]  ;;  %v2215_v27 = vadd.f32 %v8146_v36, %v8603_v0 }
 0x446   :  { %v2553_v20 = vpop.f32.mrf.mxu1 }
 0x447   :  { %v4378_v48 = vadd.f32 %v4314_v5, %v3713_v23  ;;  %v2554_v9 = vadd.f32 %v8169_v29, %v2553_v20  ;;  %v3651_v5 = vmul.f32 %v9514_v15, %v3222_v37  ;;  %v8723_v23 = vpop.f32.mrf.mxu2  ;;  %v9515_v20 = vld [vmem:[#allocation188_spill] sm:$0xff] }
 0x448   :  { %v4316_v11 = vmul.f32 %v9515_v20, %v3887_v6  ;;  %v9521_v15 = vld [vmem:[#allocation116_spill] sm:$0xff]  ;;  %v9522_v20 = vld [vmem:[#allocation51_spill] sm:$0xff] }
 0x449   :  { %4443 = vst.msk [vmem:[%s9062_s13 + $0x138] sm:$0xff] %vm4403_vm4, %v4378_v48  ;;  %v2985_v32 = vmul.f32 %v2828_v14, %v2554_v9  ;;  %4853 = vmatmul.msk.f32.gmra.mxu1 %vm593_vm3, %v9509_v45  ;;  %v3225_v14 = vadd.f32 %v8162_v63, %v8614_v21  ;;  %v9517_v21 = vld [vmem:[#allocation109_spill] sm:$0xff] }
 0x44b   :  { %v3049_v19 = vadd.f32 %v2985_v32, %v2320_v31  ;;  %v9516_v32 = vld [vmem:[#allocation42_spill] sm:$0xff] }
 0x44c   :  { %v2322_v45 = vmul.f32 %v2215_v27, %v9516_v32  ;;  %v2221_v27 = vadd.f32 %v8146_v36, %v8659_v41 }
 0x44d   :  { %v3714_v35 = vadd.f32 %v3650_v50, %v3049_v19  ;;  %v8740_v50 = vpop.f32.mrf.mxu3  ;;  %v3652_v19 = vmul.f32 %v9517_v21, %v3225_v14  ;;  %v3231_v14 = vadd.f32 %v8162_v63, %v8664_v13  ;;  %v9524_v13 = vld [vmem:[#allocation115_spill] sm:$0xff] }
 0x44e   :  { %v2556_v30 = vpop.f32.mrf.mxu1 }
 0x44f   :  { %v4379_v12 = vadd.f32 %v4315_v39, %v3714_v35  ;;  %v2557_v52 = vadd.f32 %v8169_v29, %v2556_v30  ;;  %v8743_v39 = vpop.f32.mrf.mxu0  ;;  %v4317_v35 = vmul.f32 %v9518_v28, %v3890_v24  ;;  %v8748_v37 = vpop.f32.mrf.mxu2  ;;  %v3654_v21 = vmul.f32 %v9524_v13, %v3231_v14 }
 0x450   :  { %v2858_v14 = vpop.permute.xlu1 %2857 }
 0x451   :  { %4444 = vst.msk [vmem:[%s9062_s13 + $0x140] sm:$0xff] %vm4403_vm4, %v4379_v12  ;;  %v2986_v58 = vmul.f32 %v2833_v4, %v2557_v52  ;;  %4854 = vmatmul.msk.f32.gmra.mxu1 %vm593_vm3, %v9513_v46  ;;  %v3228_v52 = vadd.f32 %v8162_v63, %v8639_v17  ;;  %v9520_v46 = vld [vmem:[#allocation98_spill] sm:$0xff] }
 0x453   :  { %v3050_v54 = vadd.f32 %v2986_v58, %v2321_v22  ;;  %v9519_v22 = vld [vmem:[#allocation45_spill] sm:$0xff]  ;;  %v3893_v58 = vadd.f32 %v8184_v34, %v8644_v59  ;;  %v3653_v17 = vmul.f32 %v9521_v15, %v3228_v52 }
 0x454   :  { %v2323_v6 = vmul.f32 %v2218_v10, %v9519_v22 }
 0x455   :  { %v3715_v48 = vadd.f32 %v3651_v5, %v3050_v54  ;;  %v8763_v54 = vpop.f32.mrf.mxu3 }
 0x456   :  { %v2559_v9 = vpop.f32.mrf.mxu1 }
 0x457   :  { %v4380_v33 = vadd.f32 %v4316_v11, %v3715_v48  ;;  %v2560_v31 = vadd.f32 %v8169_v29, %v2559_v9  ;;  %v4318_v11 = vmul.f32 %v9522_v20, %v3893_v58  ;;  %v8768_v48 = vpop.f32.mrf.mxu0  ;;  %v8773_v32 = vpop.f32.mrf.mxu2  ;;  %v9527_v58 = vld [vmem:[#allocation193_spill] sm:$0xff]  ;;  %v2227_v20 = vadd.f32 %v8146_v36, %v8709_v2 }
 0x459   :  { %4445 = vst.msk [vmem:[%s9062_s13 + $0x148] sm:$0xff] %vm4403_vm4, %v4380_v33  ;;  %v2987_v0 = vmul.f32 %v2838_v25, %v2560_v31  ;;  %4855 = vmatmul.msk.f32.gmra.mxu1 %vm593_vm3, %v8306_v53  ;;  %v2848_v25 = vpop.permute.xlu2 %2847 }
 0x45b   :  { %v3051_v42 = vadd.f32 %v2987_v0, %v2322_v45  ;;  %v9523_v45 = vld [vmem:[#allocation48_spill] sm:$0xff]  ;;  %v3896_v0 = vadd.f32 %v8184_v34, %v8669_v43 }
 0x45c   :  { %v2324_v24 = vmul.f32 %v2221_v27, %v9523_v45  ;;  %v3237_v27 = vadd.f32 %v8162_v63, %v8720_v62  ;;  %v3902_v45 = vadd.f32 %v8184_v34, %v8723_v23  ;;  %v2230_v23 = vadd.f32 %v8146_v36, %v8740_v50 }
 0x45d   :  { %v3716_v30 = vadd.f32 %v3652_v19, %v3051_v42  ;;  %v9525_v42 = vld [vmem:[#allocation165_spill] sm:$0xff] }
 0x45e   :  { %v2562_v12 = vpop.f32.mrf.mxu1  ;;  %v4319_v28 = vmul.f32 %v9525_v42, %v3896_v0 }
 0x45f   :  { %v4381_v53 = vadd.f32 %v4317_v35, %v3716_v30  ;;  %v2563_v4 = vadd.f32 %v8169_v29, %v2562_v12  ;;  %v2224_v35 = vadd.f32 %v8146_v36, %v8684_v44  ;;  %v8788_v30 = vpop.f32.mrf.mxu3  ;;  %v3234_v12 = vadd.f32 %v8162_v63, %v8689_v26  ;;  %v8804_v26 = vpop.f32.mrf.mxu2 }
 0x461   :  { %4446 = vst.msk [vmem:[%s9062_s13 + $0x150] sm:$0xff] %vm4403_vm4, %v4381_v53  ;;  %v2988_v40 = vmul.f32 %v2843_v55, %v2563_v4  ;;  %4856 = vmatmul.msk.f32.gmra.mxu1 %vm593_vm3, %v9520_v46  ;;  %v2853_v4 = vpop.permute.xlu0 %2852  ;;  %v9526_v55 = vld [vmem:[#allocation52_spill] sm:$0xff] }
 0x462   :  { %v2325_v22 = vmul.f32 %v2224_v35, %v9526_v55  ;;  %v3240_v35 = vadd.f32 %v8162_v63, %v8743_v39  ;;  %v9534_v39 = vld [vmem:[#allocation119_spill] sm:$0xff] }
 0x463   :  { %v3052_v5 = vadd.f32 %v2988_v40, %v2323_v6  ;;  %v3899_v6 = vadd.f32 %v8184_v34, %v8700_v51  ;;  %v9528_v40 = vld [vmem:[#allocation118_spill] sm:$0xff] }
 0x464   :  { %v3655_v46 = vmul.f32 %v9528_v40, %v3234_v12  ;;  %v9533_v12 = vld [vmem:[#allocation58_spill] sm:$0xff]  ;;  %v3657_v55 = vmul.f32 %v9534_v39, %v3240_v35  ;;  %v2233_v40 = vadd.f32 %v8146_v36, %v8763_v54  ;;  %v9540_v35 = vld [vmem:[#allocation124_spill] sm:$0xff] }
 0x465   :  { %v3717_v59 = vadd.f32 %v3653_v17, %v3052_v5  ;;  %v9529_v17 = vld [vmem:[#allocation163_spill] sm:$0xff]  ;;  %v9537_v54 = vld [vmem:[#allocation122_spill] sm:$0xff] }
 0x466   :  { %v2565_v9 = vpop.f32.mrf.mxu1  ;;  %v4320_v5 = vmul.f32 %v9529_v17, %v3899_v6  ;;  %v3243_v17 = vadd.f32 %v8162_v63, %v8768_v48  ;;  %v9538_v63 = vld [vmem:[#allocation156_spill] sm:$0xff] }
 0x467   :  { %v4382_v33 = vadd.f32 %v4318_v11, %v3717_v59  ;;  %v2566_v31 = vadd.f32 %v8169_v29, %v2565_v9  ;;  %v8825_v13 = vpop.f32.mrf.mxu2 }
 0x469   :  { %4447 = vst.msk [vmem:[%s9062_s13 + $0x158] sm:$0xff] %vm4403_vm4, %v4382_v33  ;;  %v2989_v41 = vmul.f32 %v2848_v25, %v2566_v31  ;;  %4857 = vmatmul.msk.f32.gmra.mxu1 %vm593_vm3, %v8376_v56  ;;  %v8793_v56 = vpop.f32.mrf.mxu0  ;;  %v8813_v33 = vpop.f32.mrf.mxu3  ;;  %v9530_v31 = vld [vmem:[#allocation55_spill] sm:$0xff] }
 0x46a   :  { %v2326_v25 = vmul.f32 %v2227_v20, %v9530_v31 }
 0x46b   :  { %v3053_v19 = vadd.f32 %v2989_v41, %v2324_v24  ;;  %v9531_v24 = vld [vmem:[#allocation120_spill] sm:$0xff] }
 0x46c   :  { %v3656_v0 = vmul.f32 %v9531_v24, %v3237_v27  ;;  %v3908_v27 = vadd.f32 %v8184_v34, %v8773_v32 }
 0x46d   :  { %v3718_v10 = vadd.f32 %v3654_v21, %v3053_v19  ;;  %v9532_v21 = vld [vmem:[#allocation10_spill] sm:$0xff] }
 0x46e   :  { %v2568_v43 = vpop.f32.mrf.mxu1  ;;  %v4321_v19 = vmul.f32 %v9532_v21, %v3902_v45  ;;  %v4323_v48 = vmul.f32 %v9538_v63, %v3908_v27  ;;  %v8868_v45 = vld [vmem:[%s9061_s9 + $0x2] ss:$0 sm:$0xff] }
 0x46f   :  { %v4383_v52 = vadd.f32 %v4319_v28, %v3718_v10  ;;  %v2569_v53 = vadd.f32 %v8169_v29, %v2568_v43 }
 0x471   :  { %4448 = vst.msk [vmem:[%s9062_s13 + $0x160] sm:$0xff] %vm4403_vm4, %v4383_v52  ;;  %v2990_v44 = vmul.f32 %v2853_v4, %v2569_v53  ;;  %4858 = vmatmul.msk.f32.gmra.mxu1 %vm593_vm3, %v9527_v58  ;;  %v3248_v62 = vpop.f32.mrf.mxu0  ;;  %v2327_v52 = vmul.f32 %v2230_v23, %v9533_v12  ;;  %v3905_v53 = vadd.f32 %v8184_v34, %v8748_v37  ;;  %v2241_v4 = vpop.f32.mrf.mxu3 }
 0x472   :  { %v3249_v39 = vadd.f32 %v8868_v45, %v3248_v62 }
 0x473   :  { %v3054_v15 = vadd.f32 %v2990_v44, %v2325_v22  ;;  %v9535_v44 = vld [vmem:[#allocation164_spill] sm:$0xff] }
 0x474   :  { %v4322_v58 = vmul.f32 %v9535_v44, %v3905_v53 }
 0x475   :  { %v3719_v51 = vadd.f32 %v3655_v46, %v3054_v15  ;;  %v3916_v46 = vpop.f32.mrf.mxu2 }
 0x476   :  { %v2571_v11 = vpop.f32.mrf.mxu1 }
 0x477   :  { %v4384_v59 = vadd.f32 %v4320_v5, %v3719_v51  ;;  %v2572_v9 = vadd.f32 %v8169_v29, %v2571_v11  ;;  %v9536_v51 = vld [vmem:[#allocation62_spill] sm:$0xff] }
 0x478   :  { %v2328_v11 = vmul.f32 %v2233_v40, %v9536_v51 }
 0x479   :  { %4449 = vst.msk [vmem:[%s9062_s13 + $0x168] sm:$0xff] %vm4403_vm4, %v4384_v59  ;;  %v2991_v2 = vmul.f32 %v2858_v14, %v2572_v9  ;;  %4859 = vmatmul.msk.f32.gmra.mxu1 %vm593_vm3, %v8436_v61  ;;  %v2863_v61 = vpop.permute.xlu2 %2862  ;;  %v3251_v6 = vpop.f32.mrf.mxu0  ;;  %v3658_v59 = vmul.f32 %v9537_v54, %v3243_v17 }
 0x47a   :  { %v2244_v14 = vpop.f32.mrf.mxu3 }
 0x47b   :  { %v3055_v41 = vadd.f32 %v2991_v2, %v2326_v25  ;;  %v3246_v2 = vadd.f32 %v8868_v45, %v8793_v56 }
 0x47d   :  { %v3720_v42 = vadd.f32 %v3656_v0, %v3055_v41  ;;  %v8875_v0 = vld [vmem:[%s9061_s9 + $0x1] ss:$0 sm:$0xff]  ;;  %v3919_v21 = vpop.f32.mrf.mxu2 }
 0x47e   :  { %v2574_v28 = vpop.f32.mrf.mxu1 }
 0x47f   :  { %v4385_v10 = vadd.f32 %v4321_v19, %v3720_v42  ;;  %v2575_v43 = vadd.f32 %v8169_v29, %v2574_v28  ;;  %v9539_v19 = vld [vmem:[#allocation65_spill] sm:$0xff]  ;;  %v8882_v42 = vld [vmem:[%s9061_s9 + $0x3] ss:$0 sm:$0xff] }
 0x480   :  { %v3911_v56 = vadd.f32 %v8882_v42, %v8804_v26  ;;  %v3917_v63 = vadd.f32 %v8882_v42, %v3916_v46 }
 0x481   :  { %4450 = vst.msk [vmem:[%s9062_s13 + $0x170] sm:$0xff] %vm4403_vm4, %v4385_v10  ;;  %v2992_v50 = vmul.f32 %v2863_v61, %v2575_v43  ;;  %4860 = vmatmul.msk.f32.gmra.mxu1 %vm593_vm3, %v8472_v1  ;;  %v2868_v1 = vpop.permute.xlu0 %2867  ;;  %v3254_v31 = vpop.f32.mrf.mxu0  ;;  %v3659_v10 = vmul.f32 %v9540_v35, %v3246_v2 }
 0x482   :  { %v4324_v61 = vmul.f32 %v8443_v60, %v3911_v56  ;;  %v2247_v53 = vpop.f32.mrf.mxu3 }
 0x483   :  { %v3056_v22 = vadd.f32 %v2992_v50, %v2327_v52 }
 0x485   :  { %v3721_v37 = vadd.f32 %v3657_v55, %v3056_v22  ;;  %v2878_v22 = vpop.permute.xlu2 %2877 }
 0x486   :  { %v2577_v15 = vpop.f32.mrf.mxu1 }
 0x487   :  { %v4386_v5 = vadd.f32 %v4322_v58, %v3721_v37  ;;  %v2578_v20 = vadd.f32 %v8169_v29, %v2577_v15  ;;  %v8861_v29 = vld [vmem:[%s9061_s9] ss:$0 sm:$0xff]  ;;  %v9541_v58 = vld [vmem:[#allocation69_spill] sm:$0xff]  ;;  %v3914_v37 = vadd.f32 %v8882_v42, %v8825_v13  ;;  %v9542_v15 = vld [vmem:[#allocation123_spill] sm:$0xff] }
 0x488   :  { %v2236_v34 = vadd.f32 %v8861_v29, %v8788_v30  ;;  %v2873_v30 = vpop.permute.xlu1 %2872  ;;  %v2239_v12 = vadd.f32 %v8861_v29, %v8813_v33  ;;  %v3922_v33 = vpop.f32.mrf.mxu2  ;;  %v3660_v17 = vmul.f32 %v9542_v15, %v3249_v39  ;;  %v9549_v15 = vld [vmem:[#allocation79_spill] sm:$0xff] }
 0x489   :  { %4451 = vst.msk [vmem:[%s9062_s13 + $0x178] sm:$0xff] %vm4403_vm4, %v4386_v5  ;;  %v2993_v36 = vmul.f32 %v2868_v1, %v2578_v20  ;;  %v3257_v44 = vpop.f32.mrf.mxu0  ;;  %v4325_v5 = vmul.f32 %v8482_v38, %v3914_v37  ;;  %v2242_v20 = vadd.f32 %v8861_v29, %v2241_v4 }
 0x48a   :  { %v2329_v23 = vmul.f32 %v2236_v34, %v9539_v19  ;;  %v2330_v40 = vmul.f32 %v2239_v12, %v9541_v58  ;;  %v2250_v54 = vpop.f32.mrf.mxu3  ;;  %v3255_v19 = vadd.f32 %v8868_v45, %v3254_v31  ;;  %v9548_v31 = vld [vmem:[#allocation170_spill] sm:$0xff] }
 0x48b   :  { %v3057_v9 = vadd.f32 %v2993_v36, %v2328_v11  ;;  %v3252_v11 = vadd.f32 %v8868_v45, %v3251_v6  ;;  %v2883_v36 = vpop.permute.xlu0 %2882 }
 0x48d   :  { %v3722_v32 = vadd.f32 %v3658_v59, %v3057_v9  ;;  %v9543_v59 = vld [vmem:[#allocation72_spill] sm:$0xff] }
 0x48e   :  { %v2580_v25 = vpop.f32.mrf.mxu1  ;;  %v2331_v9 = vmul.f32 %v2242_v20, %v9543_v59 }
 0x48f   :  { %v4387_v24 = vadd.f32 %v4323_v48, %v3722_v32  ;;  %v2581_v41 = vadd.f32 %v8875_v0, %v2580_v25  ;;  %v9544_v48 = vld [vmem:[#allocation126_spill] sm:$0xff] }
 0x490   :  { %v3661_v34 = vmul.f32 %v9544_v48, %v3252_v11  ;;  %v3925_v6 = vpop.f32.mrf.mxu2  ;;  %v9545_v25 = vld [vmem:[#allocation54_spill] sm:$0xff]  ;;  %v2888_v56 = vpop.permute.xlu1 %2887  ;;  %v2251_v11 = vadd.f32 %v8861_v29, %v2250_v54  ;;  %v9551_v48 = vld [vmem:[#allocation83_spill] sm:$0xff] }
 0x491   :  { %4452 = vst.msk [vmem:[%s9062_s13 + $0x180] sm:$0xff] %vm4403_vm4, %v4387_v24  ;;  %v2994_v28 = vmul.f32 %v2873_v30, %v2581_v41  ;;  %v3260_v4 = vpop.f32.mrf.mxu0  ;;  %v4326_v2 = vmul.f32 %v9545_v25, %v3917_v63  ;;  %v2245_v24 = vadd.f32 %v8861_v29, %v2244_v14  ;;  %v9547_v14 = vld [vmem:[#allocation128_spill] sm:$0xff]  ;;  %v9552_v54 = vld [vmem:[#allocation131_spill] sm:$0xff] }
 0x492   :  { %v3662_v12 = vmul.f32 %v9547_v14, %v3255_v19  ;;  %v3261_v59 = vadd.f32 %v8868_v45, %v3260_v4  ;;  %v9554_v14 = vld [vmem:[#allocation133_spill] sm:$0xff] }
 0x493   :  { %v3058_v43 = vadd.f32 %v2994_v28, %v2329_v23  ;;  %v9546_v28 = vld [vmem:[#allocation75_spill] sm:$0xff]  ;;  %v2898_v63 = vpop.permute.xlu0 %2897 }
 0x494   :  { %v2332_v35 = vmul.f32 %v2245_v24, %v9546_v28  ;;  %v3664_v25 = vmul.f32 %v9552_v54, %v3261_v59 }
 0x495   :  { %v3723_v52 = vadd.f32 %v3659_v10, %v3058_v43  ;;  %v3920_v10 = vadd.f32 %v8882_v42, %v3919_v21  ;;  %v3258_v21 = vadd.f32 %v8868_v45, %v3257_v44 }
 0x496   :  { %v2583_v50 = vpop.f32.mrf.mxu1 }
 0x497   :  { %v4388_v26 = vadd.f32 %v4324_v61, %v3723_v52  ;;  %v2584_v55 = vadd.f32 %v8875_v0, %v2583_v50  ;;  %v2253_v61 = vpop.f32.mrf.mxu3  ;;  %v4327_v39 = vmul.f32 %v9548_v31, %v3920_v10 }
 0x498   :  { %v2254_v24 = vadd.f32 %v8861_v29, %v2253_v61 }
 0x499   :  { %4453 = vst.msk [vmem:[%s9062_s13 + $0x188] sm:$0xff] %vm4403_vm4, %v4388_v26  ;;  %v2995_v60 = vmul.f32 %v2878_v22, %v2584_v55  ;;  %v3263_v50 = vpop.f32.mrf.mxu0  ;;  %v2248_v26 = vadd.f32 %v8861_v29, %v2247_v53  ;;  %v3928_v22 = vpop.f32.mrf.mxu2  ;;  %v9550_v53 = vld [vmem:[#allocation138_spill] sm:$0xff] }
 0x49a   :  { %v3663_v20 = vmul.f32 %v9550_v53, %v3258_v21 }
 0x49b   :  { %v3059_v62 = vadd.f32 %v2995_v60, %v2330_v40  ;;  %v2893_v60 = vpop.permute.xlu2 %2892  ;;  %v2913_v59 = vpop.permute.xlu0 %2912 }
 0x49d   :  { %v3724_v1 = vadd.f32 %v3660_v17, %v3059_v62  ;;  %v2333_v17 = vmul.f32 %v2248_v26, %v9549_v15  ;;  %v3923_v62 = vadd.f32 %v8882_v42, %v3922_v33 }
 0x49e   :  { %v2586_v51 = vpop.f32.mrf.mxu1 }
 0x49f   :  { %v4389_v27 = vadd.f32 %v4325_v5, %v3724_v1  ;;  %v2587_v13 = vadd.f32 %v8875_v0, %v2586_v51  ;;  %v2256_v51 = vpop.f32.mrf.mxu3  ;;  %v4328_v44 = vmul.f32 %v8513_v47, %v3923_v62  ;;  %v9556_v62 = vld [vmem:[#allocation145_spill] sm:$0xff] }
 0x4a0   :  { %v2257_v31 = vadd.f32 %v8861_v29, %v2256_v51 }
 0x4a1   :  { %4454 = vst.msk [vmem:[%s9062_s13 + $0x190] sm:$0xff] %vm4403_vm4, %v4389_v27  ;;  %v2996_v38 = vmul.f32 %v2883_v36, %v2587_v13  ;;  %v3266_v13 = vpop.f32.mrf.mxu0 }
 0x4a3   :  { %v3060_v32 = vadd.f32 %v2996_v38, %v2331_v9  ;;  %v3931_v38 = vpop.f32.mrf.mxu2  ;;  %v2908_v21 = vpop.permute.xlu2 %2907 }
 0x4a4   :  { %v3932_v15 = vadd.f32 %v8882_v42, %v3931_v38 }
 0x4a5   :  { %v3725_v41 = vadd.f32 %v3661_v34, %v3060_v32  ;;  %v2334_v34 = vmul.f32 %v2251_v11, %v9551_v48  ;;  %v3926_v32 = vadd.f32 %v8882_v42, %v3925_v6  ;;  %v9558_v48 = vld [vmem:[#allocation151_spill] sm:$0xff] }
 0x4a6   :  { %v2589_v30 = vpop.f32.mrf.mxu1 }
 0x4a7   :  { %v4390_v46 = vadd.f32 %v4326_v2, %v3725_v41  ;;  %v2590_v23 = vadd.f32 %v8875_v0, %v2589_v30  ;;  %v4329_v4 = vmul.f32 %v8524_v3, %v3926_v32  ;;  %v2259_v30 = vpop.f32.mrf.mxu3 }
 0x4a8   :  { %v2260_v51 = vadd.f32 %v8861_v29, %v2259_v30 }
 0x4a9   :  { %4455 = vst.msk [vmem:[%s9062_s13 + $0x198] sm:$0xff] %vm4403_vm4, %v4390_v46  ;;  %v2997_v43 = vmul.f32 %v2888_v56, %v2590_v23  ;;  %v3264_v46 = vadd.f32 %v8868_v45, %v3263_v50  ;;  %v2903_v56 = vpop.permute.xlu1 %2902  ;;  %v3269_v28 = vpop.f32.mrf.mxu0 }
 0x4ab   :  { %v3061_v52 = vadd.f32 %v2997_v43, %v2332_v35  ;;  %v9553_v35 = vld [vmem:[#allocation88_spill] sm:$0xff]  ;;  %v3929_v43 = vadd.f32 %v8882_v42, %v3928_v22  ;;  %v3934_v61 = vpop.f32.mrf.mxu2 }
 0x4ac   :  { %v2335_v10 = vmul.f32 %v2254_v24, %v9553_v35 }
 0x4ad   :  { %v3726_v55 = vadd.f32 %v3662_v12, %v3061_v52  ;;  %v3665_v12 = vmul.f32 %v9554_v14, %v3264_v46  ;;  %v4330_v50 = vmul.f32 %v8542_v18, %v3929_v43 }
 0x4ae   :  { %v2592_v58 = vpop.f32.mrf.mxu1 }
 0x4af   :  { %v4391_v40 = vadd.f32 %v4327_v39, %v3726_v55  ;;  %v2593_v37 = vadd.f32 %v8875_v0, %v2592_v58  ;;  %v3267_v55 = vadd.f32 %v8868_v45, %v3266_v13 }
 0x4b1   :  { %4456 = vst.msk [vmem:[%s9062_s13 + $0x1a0] sm:$0xff] %vm4403_vm4, %v4391_v40  ;;  %v2998_v5 = vmul.f32 %v2893_v60, %v2593_v37  ;;  %v2262_v40 = vpop.f32.mrf.mxu3  ;;  %v9555_v37 = vld [vmem:[#allocation91_spill] sm:$0xff]  ;;  %v2918_v46 = vpop.permute.xlu1 %2917 }
 0x4b2   :  { %v2336_v60 = vmul.f32 %v2257_v31, %v9555_v37  ;;  %v9562_v37 = vld [vmem:[#allocation153_spill] sm:$0xff] }
 0x4b3   :  { %v3062_v1 = vadd.f32 %v2998_v5, %v2333_v17  ;;  %v3272_v17 = vpop.f32.mrf.mxu0  ;;  %v3666_v5 = vmul.f32 %v9556_v62, %v3267_v55  ;;  %v2928_v55 = vpop.permute.xlu0 %2927 }
 0x4b5   :  { %v3727_v27 = vadd.f32 %v3663_v20, %v3062_v1  ;;  %v3937_v20 = vpop.f32.mrf.mxu2  ;;  %v4331_v1 = vmul.f32 %v8569_v16, %v3932_v15 }
 0x4b6   :  { %v2595_v36 = vpop.f32.mrf.mxu1 }
 0x4b7   :  { %v4392_v33 = vadd.f32 %v4328_v44, %v3727_v27  ;;  %v2596_v9 = vadd.f32 %v8875_v0, %v2595_v36  ;;  %v3270_v27 = vadd.f32 %v8868_v45, %v3269_v28  ;;  %v9560_v28 = vld [vmem:[#allocation140_spill] sm:$0xff] }
 0x4b9   :  { %4457 = vst.msk [vmem:[%s9062_s13 + $0x1a8] sm:$0xff] %vm4403_vm4, %v4392_v33  ;;  %v2999_v47 = vmul.f32 %v2898_v63, %v2596_v9  ;;  %v9557_v33 = vld [vmem:[#allocation94_spill] sm:$0xff]  ;;  %v3935_v63 = vadd.f32 %v8882_v42, %v3934_v61  ;;  %v2265_v38 = vpop.f32.mrf.mxu3 }
 0x4ba   :  { %v2337_v9 = vmul.f32 %v2260_v51, %v9557_v33  ;;  %v2266_v61 = vadd.f32 %v8861_v29, %v2265_v38  ;;  %v9564_v33 = vld [vmem:[#allocation159_spill] sm:$0xff] }
 0x4bb   :  { %v3063_v2 = vadd.f32 %v2999_v47, %v2334_v34  ;;  %v3667_v34 = vmul.f32 %v9558_v48, %v3270_v27  ;;  %v3275_v47 = vpop.f32.mrf.mxu0  ;;  %v4332_v54 = vmul.f32 %v8547_v7, %v3935_v63 }
 0x4bc   :  { %v3276_v31 = vadd.f32 %v8868_v45, %v3275_v47 }
 0x4bd   :  { %v3728_v41 = vadd.f32 %v3664_v25, %v3063_v2  ;;  %v2263_v25 = vadd.f32 %v8861_v29, %v2262_v40 }
 0x4be   :  { %v2598_v19 = vpop.f32.mrf.mxu1 }
 0x4bf   :  { %v4393_v23 = vadd.f32 %v4329_v4, %v3728_v41  ;;  %v2599_v6 = vadd.f32 %v8875_v0, %v2598_v19  ;;  %v3940_v4 = vpop.f32.mrf.mxu2  ;;  %v3273_v41 = vadd.f32 %v8868_v45, %v3272_v17 }
 0x4c0   :  { %v3941_v40 = vadd.f32 %v8882_v42, %v3940_v4  ;;  %v9565_v4 = vld [vmem:[#allocation106_spill] sm:$0xff] }
 0x4c1   :  { %4458 = vst.msk [vmem:[%s9062_s13 + $0x1b0] sm:$0xff] %vm4403_vm4, %v4393_v23  ;;  %v3000_v3 = vmul.f32 %v2903_v56, %v2599_v6  ;;  %v9559_v23 = vld [vmem:[#allocation97_spill] sm:$0xff]  ;;  %v3938_v56 = vadd.f32 %v8882_v42, %v3937_v20  ;;  %v3668_v35 = vmul.f32 %v9560_v28, %v3273_v41  ;;  %v2268_v43 = vpop.f32.mrf.mxu3 }
 0x4c2   :  { %v2338_v6 = vmul.f32 %v2263_v25, %v9559_v23  ;;  %v2269_v17 = vadd.f32 %v8861_v29, %v2268_v43  ;;  %v2933_v25 = vpop.permute.xlu1 %2932 }
 0x4c3   :  { %v3064_v52 = vadd.f32 %v3000_v3, %v2335_v10  ;;  %v4333_v3 = vmul.f32 %v8571_v49, %v3938_v56 }
 0x4c5   :  { %v3729_v39 = vadd.f32 %v3665_v12, %v3064_v52  ;;  %v3278_v12 = vpop.f32.mrf.mxu0 }
 0x4c6   :  { %v2601_v26 = vpop.f32.mrf.mxu1  ;;  %v3279_v20 = vadd.f32 %v8868_v45, %v3278_v12  ;;  %v9567_v12 = vld [vmem:[#allocation110_spill] sm:$0xff] }
 0x4c7   :  { %v4394_v58 = vadd.f32 %v4330_v50, %v3729_v39  ;;  %v2602_v22 = vadd.f32 %v8875_v0, %v2601_v26  ;;  %v2923_v50 = vpop.permute.xlu2 %2922 }
 0x4c9   :  { %4459 = vst.msk [vmem:[%s9062_s13 + $0x1b8] sm:$0xff] %vm4403_vm4, %v4394_v58  ;;  %v3001_v18 = vmul.f32 %v2908_v21, %v2602_v22  ;;  %v3943_v58 = vpop.f32.mrf.mxu2  ;;  %v9561_v22 = vld [vmem:[#allocation100_spill] sm:$0xff] }
 0x4ca   :  { %v2339_v21 = vmul.f32 %v2266_v61, %v9561_v22  ;;  %v4268_v22 = vpop.permute.xlu1 %4267 }
 0x4cb   :  { %v3065_v53 = vadd.f32 %v3001_v18, %v2336_v60  ;;  %v3669_v60 = vmul.f32 %v9562_v37, %v3276_v31  ;;  %v4334_v18 = vmul.f32 %v8598_v8, %v3941_v40 }
 0x4cd   :  { %v3730_v44 = vadd.f32 %v3666_v5, %v3065_v53  ;;  %v2271_v5 = vpop.f32.mrf.mxu3 }
 0x4ce   :  { %v2604_v11 = vpop.f32.mrf.mxu1  ;;  %v2272_v38 = vadd.f32 %v8861_v29, %v2271_v5  ;;  %v9569_v5 = vld [vmem:[#allocation113_spill] sm:$0xff] }
 0x4cf   :  { %v4395_v13 = vadd.f32 %v4331_v1, %v3730_v44  ;;  %v2605_v36 = vadd.f32 %v8875_v0, %v2604_v11  ;;  %v3281_v44 = vpop.f32.mrf.mxu0  ;;  %v9563_v11 = vld [vmem:[#allocation103_spill] sm:$0xff] }
 0x4d0   :  { %v2340_v27 = vmul.f32 %v2269_v17, %v9563_v11 }
 0x4d1   :  { %4460 = vst.msk [vmem:[%s9062_s13 + $0x1c0] sm:$0xff] %vm4403_vm4, %v4395_v13  ;;  %v3002_v16 = vmul.f32 %v2913_v59, %v2605_v36  ;;  %v3944_v13 = vadd.f32 %v8882_v42, %v3943_v58  ;;  %v2943_v36 = vpop.permute.xlu0 %2942  ;;  %v3946_v59 = vpop.f32.mrf.mxu2 }
 0x4d2   :  { %v3947_v41 = vadd.f32 %v8882_v42, %v3946_v59 }
 0x4d3   :  { %v3066_v32 = vadd.f32 %v3002_v16, %v2337_v9  ;;  %v3670_v9 = vmul.f32 %v9564_v33, %v3279_v20  ;;  %v4335_v16 = vmul.f32 %v8622_v57, %v3944_v13 }
 0x4d5   :  { %v3731_v2 = vadd.f32 %v3667_v34, %v3066_v32  ;;  %v3282_v32 = vadd.f32 %v8868_v45, %v3281_v44 }
 0x4d6   :  { %v2607_v24 = vpop.f32.mrf.mxu1 }
 0x4d7   :  { %v4396_v30 = vadd.f32 %v4332_v54, %v3731_v2  ;;  %v2608_v19 = vadd.f32 %v8875_v0, %v2607_v24  ;;  %v2274_v2 = vpop.f32.mrf.mxu3  ;;  %v2341_v24 = vmul.f32 %v2272_v38, %v9565_v4 }
 0x4d8   :  { %v2275_v28 = vadd.f32 %v8861_v29, %v2274_v2 }
 0x4d9   :  { %4461 = vst.msk [vmem:[%s9062_s13 + $0x1c8] sm:$0xff] %vm4403_vm4, %v4396_v30  ;;  %v3003_v7 = vmul.f32 %v2918_v46, %v2608_v19  ;;  %v3284_v30 = vpop.f32.mrf.mxu0  ;;  %v9566_v19 = vld [vmem:[#allocation146_spill] sm:$0xff]  ;;  %v3949_v56 = vpop.f32.mrf.mxu2 }
 0x4da   :  { %v3671_v46 = vmul.f32 %v9566_v19, %v3282_v32  ;;  %v3285_v43 = vadd.f32 %v8868_v45, %v3284_v30 }
 0x4db   :  { %v3067_v10 = vadd.f32 %v3003_v7, %v2338_v6  ;;  %v4263_v6 = vpop.permute.xlu0 %4262 }
 0x4dc   :  { %v4336_v7 = vmul.f32 %v4263_v6, %v3947_v41 }
 0x4dd   :  { %v3732_v14 = vadd.f32 %v3668_v35, %v3067_v10 }
 0x4de   :  { %v2610_v52 = vpop.f32.mrf.mxu1 }
 0x4df   :  { %v4397_v39 = vadd.f32 %v4333_v3, %v3732_v14  ;;  %v2611_v26 = vadd.f32 %v8875_v0, %v2610_v52  ;;  %v2938_v14 = vpop.permute.xlu2 %2937  ;;  %v2342_v52 = vmul.f32 %v2275_v28, %v9567_v12 }
 0x4e1   :  { %4462 = vst.msk [vmem:[%s9062_s13 + $0x1d0] sm:$0xff] %vm4403_vm4, %v4397_v39  ;;  %v3004_v49 = vmul.f32 %v2923_v50, %v2611_v26  ;;  %v3950_v50 = vadd.f32 %v8882_v42, %v3949_v56  ;;  %v2277_v39 = vpop.f32.mrf.mxu3  ;;  %v9568_v26 = vld [vmem:[#allocation161_spill] sm:$0xff] }
 0x4e3   :  { %v3068_v15 = vadd.f32 %v3004_v49, %v2339_v21  ;;  %v3287_v21 = vpop.f32.mrf.mxu0  ;;  %v4337_v40 = vmul.f32 %v4268_v22, %v3950_v50  ;;  %v2278_v49 = vadd.f32 %v8861_v29, %v2277_v39 }
 0x4e5   :  { %v3733_v62 = vadd.f32 %v3669_v60, %v3068_v15  ;;  %v3952_v60 = vpop.f32.mrf.mxu2 }
 0x4e6   :  { %v2613_v53 = vpop.f32.mrf.mxu1  ;;  %v3953_v20 = vadd.f32 %v8882_v42, %v3952_v60 }
 0x4e7   :  { %v4398_v1 = vadd.f32 %v4334_v18, %v3733_v62  ;;  %v2614_v51 = vadd.f32 %v8875_v0, %v2613_v53  ;;  %v3288_v18 = vadd.f32 %v8868_v45, %v3287_v21  ;;  %v2343_v53 = vmul.f32 %v2278_v49, %v9569_v5  ;;  %v4273_v11 = vpop.permute.xlu2 %4272 }
 0x4e9   :  { %4463 = vst.msk [vmem:[%s9062_s13 + $0x1d8] sm:$0xff] %vm4403_vm4, %v4398_v1  ;;  %v3005_v8 = vmul.f32 %v2928_v55, %v2614_v51  ;;  %v3672_v55 = vmul.f32 %v9568_v26, %v3285_v43  ;;  %v9570_v51 = vld [vmem:[#allocation167_spill] sm:$0xff] }
 0x4ea   :  { %v3673_v29 = vmul.f32 %v9570_v51, %v3288_v18 }
 0x4eb   :  { %v3069_v63 = vadd.f32 %v3005_v8, %v2340_v27  ;;  %v4338_v27 = vmul.f32 %v4273_v11, %v3953_v20 }
 0x4ed   :  { %v3734_v48 = vadd.f32 %v3670_v9, %v3069_v63 }
 0x4ee   :  { %v2616_v34 = vpop.f32.mrf.mxu1 }
 0x4ef   :  { %v4399_v47 = vadd.f32 %v4335_v16, %v3734_v48  ;;  %v2617_v54 = vadd.f32 %v8875_v0, %v2616_v34 }
 0x4f1   :  { %4464 = vst.msk [vmem:[%s9062_s13 + $0x1e0] sm:$0xff] %vm4403_vm4, %v4399_v47  ;;  %v3006_v57 = vmul.f32 %v2933_v25, %v2617_v54 }
 0x4f3   :  { %v3070_v23 = vadd.f32 %v3006_v57, %v2341_v24 }
 0x4f5   :  { %v3735_v35 = vadd.f32 %v3671_v46, %v3070_v23 }
 0x4f6   :  { %v2619_v10 = vpop.f32.mrf.mxu1 }
 0x4f7   :  { %v4400_v3 = vadd.f32 %v4336_v7, %v3735_v35  ;;  %v2620_v61 = vadd.f32 %v8875_v0, %v2619_v10 }
 0x4f9   :  { %4465 = vst.msk [vmem:[%s9062_s13 + $0x1e8] sm:$0xff] %vm4403_vm4, %v4400_v3  ;;  %v3007_v31 = vmul.f32 %v2938_v14, %v2620_v61 }
 0x4fb   :  { %v3071_v58 = vadd.f32 %v3007_v31, %v2342_v52 }
 0x4fd   :  { %v3736_v37 = vadd.f32 %v3672_v55, %v3071_v58 }
 0x4fe   :  { %v2622_v15 = vpop.f32.mrf.mxu1 }
 0x4ff   :  { %v4401_v17 = vadd.f32 %v4337_v40, %v3736_v37  ;;  %v2623_v62 = vadd.f32 %v8875_v0, %v2622_v15 }
 0x501   :  { %4466 = vst.msk [vmem:[%s9062_s13 + $0x1f0] sm:$0xff] %vm4403_vm4, %v4401_v17  ;;  %v3008_v1 = vmul.f32 %v2943_v36, %v2623_v62 }
 0x503   :  { %v3072_v44 = vadd.f32 %v3008_v1, %v2343_v53 }
 0x505   :  { %v3737_v13 = vadd.f32 %v3673_v29, %v3072_v44 }
 0x507   :  { %v4402_v45 = vadd.f32 %v4338_v27, %v3737_v13 }
 0x509   :  { %4467 = vst.msk [vmem:[%s9062_s13 + $0x1f8] sm:$0xff] %vm4403_vm4, %v4402_v45 }

</bundles_post_ra>
